<compile_context>
chip_gen: v7x
topology: tpu7x:2x2x1
jax: 0.10.0
libtpu: 0.0.40
codegen_flags: <defaults>
</compile_context>

<pallas_src>
import functools

import numpy as np
import jax
import jax.numpy as jnp
from jax.experimental import pallas as pl
from jax.experimental.pallas import tpu as pltpu  # noqa: F401  (TPU backend)


# ----------------------------- in-kernel helpers -----------------------------

def _layernorm(x, g, b, eps=1e-5):
    mu = jnp.mean(x, axis=-1, keepdims=True)
    xc = x - mu
    var = jnp.mean(xc * xc, axis=-1, keepdims=True)
    return xc * jax.lax.rsqrt(var + eps) * g + b


def _gelu_exact(x):
    # exact (erf) GELU; erf via Abramowitz-Stegun 7.1.26 polynomial (|err|<1.5e-7)
    # so only exp/mul/add/select are needed (guaranteed Mosaic lowering).
    z = x * 0.7071067811865476
    a = jnp.abs(z)
    t = 1.0 / (1.0 + 0.3275911 * a)
    poly = t * (0.254829592 + t * (-0.284496736 + t * (1.421413741
               + t * (-1.453152027 + t * 1.061405429))))
    e = 1.0 - poly * jnp.exp(-a * a)
    erf = jnp.where(z >= 0.0, e, -e)
    return 0.5 * x * (1.0 + erf)


def _mha(xq, xkv, wq, wk, wv, wo, bo, mask_s, hm, scale, heads):
    """Multi-head attention, heads stacked along rows.

    xq: (Nq, E) queries, xkv: (Nk, E) keys/values.
    hm: (heads, E) 0/1 channel masks (head h owns channels [h*dh, (h+1)*dh)).
    mask_s: (heads*Nq, Nk) additive group mask (0 / -1e30), tiled over heads.
    (q*hm_h)@(k)^T == (q*hm_h)@(k*hm_h)^T because hm is 0/1, and
    (P_h@V)*hm_h == P_h@(V*hm_h), so one scores matmul + one softmax + one P@V
    reproduce the exact per-head math.
    """
    nq = xq.shape[0]
    q = jnp.dot(xq, wq, preferred_element_type=jnp.float32)
    k = jnp.dot(xkv, wk, preferred_element_type=jnp.float32)
    v = jnp.dot(xkv, wv, preferred_element_type=jnp.float32)
    # head-stacked queries: rows [h*nq:(h+1)*nq] hold q restricted to head h channels
    qs = jnp.concatenate([q * hm[h:h + 1] for h in range(heads)], axis=0)
    s = jax.lax.dot_general(qs, k, (((1,), (1,)), ((), ())),
                            preferred_element_type=jnp.float32)
    s = s * scale + mask_s
    s = s - jnp.max(s, axis=-1, keepdims=True)
    p = jnp.exp(s)
    p = p / jnp.sum(p, axis=-1, keepdims=True)          # exact division (fidelity)
    o = jnp.dot(p, v, preferred_element_type=jnp.float32)   # (heads*nq, E)
    out = o[0:nq] * hm[0:1]
    for h in range(1, heads):
        out = out + o[h * nq:(h + 1) * nq] * hm[h:h + 1]
    return jnp.dot(out, wo, preferred_element_type=jnp.float32) + bo


# ----------------------------- the fused kernel ------------------------------
#
# vec_b row order per block:
#   0 n1_g   1 n1_b   2 tn1_g  3 tn1_b  4 fn_g   5 fn_b   6 n2_g   7 n2_b
#   8 attn_proj_b  9 tattn_proj_b  10 temporal_fc_b  11 fusion_o_b  12 mlp_fc2_b
# proj_w index order per block:
#   0..3  spatial  wq wk wv wproj
#   4..7  temporal wq wk wv wproj
#   8     temporal_fc
#   9..12 fusion   wq wk wv wo

def _encoder_kernel(patches_ref, pw_ref, pb_ref,
                    projw_ref, vecb_ref, w1_ref, b1_ref, w2_ref, fn_ref,
                    msp_ref, mtp_ref, mfp_ref,
                    pfus_ref, pstate_ref, ptail_ref, ctop_ref, cbot_ref,
                    pout_ref, hm_ref, o_ref,
                    *, depth, heads, scale_head, scale_fusion):
    dot = functools.partial(jnp.dot, preferred_element_type=jnp.float32)

    hm = hm_ref[...]
    msp = msp_ref[...]
    mtp = mtp_ref[...]
    mfp = mfp_ref[...]
    p_fus = pfus_ref[...]
    p_state = pstate_ref[...]
    p_tail = ptail_ref[...]
    c_top = ctop_ref[...]
    c_bot = cbot_ref[...]

    # PatchEmbed (stride==kernel conv as matmul) + conv-bias + pos + time embedding.
    x = dot(patches_ref[...], pw_ref[...]) + pb_ref[...]          # (B*NT, E)

    for d in range(depth):                                        # static unroll
        vb = vecb_ref[d]                                          # (13, E)

        # ---- spatial attention: tokens of the same (batch, time) attend ----
        ln1 = _layernorm(x, vb[0:1], vb[1:2])
        res_sp = _mha(ln1, ln1, projw_ref[d, 0], projw_ref[d, 1], projw_ref[d, 2],
                      projw_ref[d, 3], vb[8:9], msp, hm, scale_head, heads)
        xs = x + res_sp

        # ---- temporal attention over t>=1 tokens of each (batch, location) ----
        xf_src = dot(p_fus, xs)                                   # (B*NF, E) in (n, t-1) order
        lnt = _layernorm(xf_src, vb[2:3], vb[3:4])
        res_t = _mha(lnt, lnt, projw_ref[d, 4], projw_ref[d, 5], projw_ref[d, 6],
                     projw_ref[d, 7], vb[9:10], mtp, hm, scale_head, heads)
        res_t = dot(res_t, projw_ref[d, 8]) + vb[10:11]           # temporal_fc
        # literal positional residual on the tail rows, exactly as in PyTorch
        xfusion = dot(p_tail, xs) + res_t

        # ---- fusion cross-attention: each state (t=0) token queries its fusion tokens ----
        q_state = dot(p_state, xs)                                # (B*N, E)
        res_state = _mha(q_state, xfusion, projw_ref[d, 9], projw_ref[d, 10],
                         projw_ref[d, 11], projw_ref[d, 12], vb[11:12],
                         mfp, hm, scale_fusion, heads)
        res_state = _layernorm(res_state, vb[4:5], vb[5:6])

        # concat([xstate, xfusion]) == xs + scatter(res_state) + scatter(res_t)
        xcat = xs + dot(c_top, res_state) + dot(c_bot, res_t)

        # ---- MLP: fc1 -> exact GELU -> fc2 ----
        ln2 = _layernorm(xcat, vb[6:7], vb[7:8])
        hdn = _gelu_exact(dot(ln2, w1_ref[d]) + b1_ref[d])
        x = xcat + dot(hdn, w2_ref[d]) + vb[12:13]

    # final LayerNorm + state/goal token selection (stacked into one matmul)
    fn = fn_ref[...]
    y = _layernorm(x, fn[0:1], fn[1:2])
    o_ref[...] = dot(pout_ref[...], y).astype(o_ref.dtype)


# ---------------------- compile-time masks / selections ----------------------

def _build_consts(B, T, N, heads, E):
    demoT = T - 1
    NT, NF = N * T, N * demoT
    BNT, BNF, BN = B * NT, B * NF, B * N
    dh = E // heads
    neg = np.float32(-1e30)

    # spatial: same batch & same time index (row = b*NT + n*T + t, so row % T == t)
    i = np.arange(BNT)
    msp = np.where(((i[:, None] // NT) == (i[None, :] // NT)) &
                   ((i[:, None] % T) == (i[None, :] % T)), 0.0, neg).astype(np.float32)
    # temporal: same batch & same spatial location (fusion-token row = b*NF + n*demoT + tau)
    j = np.arange(BNF)
    mtp = np.where(((j[:, None] // NF) == (j[None, :] // NF)) &
                   (((j[:, None] % NF) // demoT) == ((j[None, :] % NF) // demoT)),
                   0.0, neg).astype(np.float32)
    # fusion cross-attn: state query (b, n) attends fusion keys of the same (b, n)
    qn = np.arange(BN)
    mfp = np.where(((qn[:, None] // N) == (j[None, :] // NF)) &
                   ((qn[:, None] % N) == ((j[None, :] % NF) // demoT)),
                   0.0, neg).astype(np.float32)

    eye = np.eye(BNT, dtype=np.float32)
    p_fus = eye[[b * NT + n * T + t for b in range(B) for n in range(N)
                 for t in range(1, T)], :]                               # (BNF, BNT)
    p_state = eye[[b * NT + n * T for b in range(B) for n in range(N)], :]   # (BN, BNT)
    p_head = eye[[b * NT + r for b in range(B) for r in range(N)], :]        # (BN, BNT)
    p_tail = eye[[b * NT + r for b in range(B) for r in range(N, NT)], :]    # (BNF, BNT)
    p_last = eye[[b * NT + r for b in range(B) for r in range(NT - N, NT)], :]
    p_out = np.concatenate([p_head, p_last], axis=0)                         # (2BN, BNT)
    c_top = np.ascontiguousarray(p_head.T)                                   # (BNT, BN)
    c_bot = np.ascontiguousarray(p_tail.T)                                   # (BNT, BNF)

    col = np.arange(E)
    hm = np.stack([((col >= h * dh) & (col < (h + 1) * dh)).astype(np.float32)
                   for h in range(heads)], axis=0)                          # (heads, E)

    names = dict(msp=np.tile(msp, (heads, 1)),
                 mtp=np.tile(mtp, (heads, 1)),
                 mfp=np.tile(mfp, (heads, 1)),
                 p_fus=p_fus, p_state=p_state, p_tail=p_tail,
                 c_top=c_top, c_bot=c_bot, p_out=p_out, hm=hm)
    return {k: jnp.asarray(v) for k, v in names.items()}


# ----------------------------- encoder forward ------------------------------

def encoder_forward(x, params, cfg):
    B, C, T, H, W = x.shape
    ph, pw = cfg["patch_size"]
    Hp, Wp = H // ph, W // pw
    N = Hp * Wp
    E = cfg["embed_dim"]
    heads = cfg["num_heads"]
    depth = cfg["depth"]
    NT = N * T

    # PatchEmbed as matmul: rows in (b, n, t) order, features in (c, i, j) order
    xt = x.transpose(0, 2, 1, 3, 4)                          # (B, T, C, H, W)
    patches = xt.reshape(B, T, C, Hp, ph, Wp, pw)
    patches = patches.transpose(0, 3, 5, 1, 2, 4, 6)         # (B, Hp, Wp, T, C, ph, pw)
    patches = patches.reshape(B * NT, C * ph * pw)

    # combined conv-bias + positional + temporal embedding, tiled over batch
    # TODO(synk): F.interpolate branches for resized pos/time embeddings (sizes
    # differing from the configured num_patches/num_frames) are not implemented.
    eb = params["pos_embed"][0][:, None, :] + params["time_embed"][0][None, :, :]
    eb = eb.reshape(NT, E) + params["patch_b"]
    embed_b = jnp.tile(eb, (B, 1))                           # (B*NT, E)

    consts = _build_consts(B, T, N, heads, E)
    scale_head = float(E // heads) ** -0.5
    scale_fusion = float(E) ** -0.5                          # ScaledDotProductAttention: /sqrt(d_model)

    out2 = pl.pallas_call(
        functools.partial(_encoder_kernel, depth=depth, heads=heads,
                          scale_head=scale_head, scale_fusion=scale_fusion),
        out_shape=jax.ShapeDtypeStruct((2 * B * N, E), jnp.float32),
    )(patches, params["patch_w"], embed_b,
      params["proj_w"], params["vec_b"],
      params["mlp_w1"], params["mlp_b1"], params["mlp_w2"], params["fnorm"],
      consts["msp"], consts["mtp"], consts["mfp"],
      consts["p_fus"], consts["p_state"], consts["p_tail"],
      consts["c_top"], consts["c_bot"], consts["p_out"], consts["hm"])

    # y = cat([state, goal], dim=2); _reshape_output -> (B, 2E, Hp, Wp)
    o = out2.reshape(2, B, Hp, Wp, E)
    y = jnp.concatenate([o[0], o[1]], axis=-1)               # (B, Hp, Wp, 2E)
    return y.transpose(0, 3, 1, 2)


# ----------------------------- parameters ------------------------------

def init_params(key, cfg):
    E = cfg["embed_dim"]
    C = cfg["in_chans"]
    ph, pw = cfg["patch_size"]
    hidden = int(E * cfg["mlp_ratio"])
    depth = cfg["depth"]
    N = (cfg["img_size"][0] // ph) * (cfg["img_size"][1] // pw)
    T = cfg["num_frames"]
    keys = jax.random.split(key, depth + 2)

    def nrm(k, shape, std=0.02):
        return jax.random.normal(k, shape, jnp.float32) * std

    def lin_w(k, out_f, in_f):
        # nn.Linear weight layout (out, in) -> stored pre-transposed (in, out)
        return jnp.transpose(nrm(k, (out_f, in_f)))

    one = jnp.ones((E,), jnp.float32)
    zero = jnp.zeros((E,), jnp.float32)

    proj_w, vec_b, mlp_w1, mlp_b1, mlp_w2 = [], [], [], [], []
    for i in range(depth):
        bk = jax.random.split(keys[2 + i], 16)
        # temporal_fc zero-initialized for blocks i > 0 (as in Encoder.__init__)
        tfc = lin_w(bk[8], E, E) if i == 0 else jnp.zeros((E, E), jnp.float32)
        proj_w.append(jnp.stack([
            lin_w(bk[0], E, E), lin_w(bk[1], E, E), lin_w(bk[2], E, E), lin_w(bk[3], E, E),
            lin_w(bk[4], E, E), lin_w(bk[5], E, E), lin_w(bk[6], E, E), lin_w(bk[7], E, E),
            tfc,
            lin_w(bk[9], E, E), lin_w(bk[10], E, E), lin_w(bk[11], E, E), lin_w(bk[12], E, E)]))
        vec_b.append(jnp.stack([one, zero, one, zero, one, zero, one, zero,
                                zero, zero, zero, zero, zero]))
        mlp_w1.append(lin_w(bk[13], hidden, E))
        mlp_b1.append(jnp.zeros((1, hidden), jnp.float32))
        mlp_w2.append(lin_w(bk[14], E, hidden))

    params = {
        # conv weight (E, C, ph, pw) flattened over (C, ph, pw), stored (C*ph*pw, E)
        "patch_w": jnp.transpose(nrm(keys[0], (E, C * ph * pw))),
        "patch_b": jnp.zeros((1, E), jnp.float32),
        "pos_embed": nrm(keys[1], (1, N, E)),
        "time_embed": jnp.zeros((1, T, E), jnp.float32),
        "fnorm": jnp.stack([one, zero]),        # (2, E): [gamma, beta]
        "proj_w": jnp.stack(proj_w),            # (depth, 13, E, E)
        "vec_b": jnp.stack(vec_b),              # (depth, 13, E)
        "mlp_w1": jnp.stack(mlp_w1),            # (depth, E, hidden)
        "mlp_b1": jnp.stack(mlp_b1),            # (depth, 1, hidden)
        "mlp_w2": jnp.stack(mlp_w2),            # (depth, hidden, E)
    }
    return params


# ----------------------------- main ------------------------------

if __name__ == "__main__":
    cfg = dict(img_size=(16, 16), patch_size=(8, 8), in_chans=3, embed_dim=32,
               depth=2, num_heads=4, mlp_ratio=4.0, num_frames=4)
    key = jax.random.PRNGKey(0)
    kx, kp = jax.random.split(key)
    B, T = 2, cfg["num_frames"]
    x = jax.random.normal(
        kx, (B, cfg["in_chans"], T, cfg["img_size"][0], cfg["img_size"][1]), jnp.float32)
    params = init_params(kp, cfg)

    fwd = jax.jit(functools.partial(encoder_forward, cfg=cfg))
    out = jax.block_until_ready(fwd(x, params))

    Hp = cfg["img_size"][0] // cfg["patch_size"][0]
    Wp = cfg["img_size"][1] // cfg["patch_size"][1]
    assert out.shape == (B, 2 * cfg["embed_dim"], Hp, Wp), out.shape
    assert bool(jnp.all(jnp.isfinite(out)))
    print("KERNEL_OK")
</pallas_src>

<mosaic_0001>
module attributes {stable_mosaic.version = 11 : i64} {
  func.func @_encoder_kernel(%arg0: memref<32x192xf32, #tpu.memory_space<vmem>>, %arg1: memref<192x32xf32, #tpu.memory_space<vmem>>, %arg2: memref<32x32xf32, #tpu.memory_space<vmem>>, %arg3: memref<2x13x32x32xf32, #tpu.memory_space<vmem>>, %arg4: memref<2x13x32xf32, #tpu.memory_space<vmem>>, %arg5: memref<2x32x128xf32, #tpu.memory_space<vmem>>, %arg6: memref<2x1x128xf32, #tpu.memory_space<vmem>>, %arg7: memref<2x128x32xf32, #tpu.memory_space<vmem>>, %arg8: memref<2x32xf32, #tpu.memory_space<vmem>>, %arg9: memref<128x32xf32, #tpu.memory_space<vmem>>, %arg10: memref<96x24xf32, #tpu.memory_space<vmem>>, %arg11: memref<32x24xf32, #tpu.memory_space<vmem>>, %arg12: memref<24x32xf32, #tpu.memory_space<vmem>>, %arg13: memref<8x32xf32, #tpu.memory_space<vmem>>, %arg14: memref<24x32xf32, #tpu.memory_space<vmem>>, %arg15: memref<32x8xf32, #tpu.memory_space<vmem>>, %arg16: memref<32x24xf32, #tpu.memory_space<vmem>>, %arg17: memref<16x32xf32, #tpu.memory_space<vmem>>, %arg18: memref<4x32xf32, #tpu.memory_space<vmem>>, %arg19: memref<16x32xf32, #tpu.memory_space<vmem>>) attributes {dimension_semantics = [], scalar_prefetch = 0 : i64, scratch_operands = 0 : i64, tpu.core_type = #tpu.core_type<tc>} {
    %c0 = arith.constant 0 : index
    %c0_0 = arith.constant 0 : index
    %0 = vector.load %arg18[%c0, %c0_0] : memref<4x32xf32, #tpu.memory_space<vmem>>, vector<4x32xf32>
    %c0_1 = arith.constant 0 : index
    %c0_2 = arith.constant 0 : index
    %1 = vector.load %arg9[%c0_1, %c0_2] : memref<128x32xf32, #tpu.memory_space<vmem>>, vector<128x32xf32>
    %c0_3 = arith.constant 0 : index
    %c0_4 = arith.constant 0 : index
    %2 = vector.load %arg10[%c0_3, %c0_4] : memref<96x24xf32, #tpu.memory_space<vmem>>, vector<96x24xf32>
    %c0_5 = arith.constant 0 : index
    %c0_6 = arith.constant 0 : index
    %3 = vector.load %arg11[%c0_5, %c0_6] : memref<32x24xf32, #tpu.memory_space<vmem>>, vector<32x24xf32>
    %c0_7 = arith.constant 0 : index
    %c0_8 = arith.constant 0 : index
    %4 = vector.load %arg12[%c0_7, %c0_8] : memref<24x32xf32, #tpu.memory_space<vmem>>, vector<24x32xf32>
    %c0_9 = arith.constant 0 : index
    %c0_10 = arith.constant 0 : index
    %5 = vector.load %arg13[%c0_9, %c0_10] : memref<8x32xf32, #tpu.memory_space<vmem>>, vector<8x32xf32>
    %c0_11 = arith.constant 0 : index
    %c0_12 = arith.constant 0 : index
    %6 = vector.load %arg14[%c0_11, %c0_12] : memref<24x32xf32, #tpu.memory_space<vmem>>, vector<24x32xf32>
    %c0_13 = arith.constant 0 : index
    %c0_14 = arith.constant 0 : index
    %7 = vector.load %arg15[%c0_13, %c0_14] : memref<32x8xf32, #tpu.memory_space<vmem>>, vector<32x8xf32>
    %c0_15 = arith.constant 0 : index
    %c0_16 = arith.constant 0 : index
    %8 = vector.load %arg16[%c0_15, %c0_16] : memref<32x24xf32, #tpu.memory_space<vmem>>, vector<32x24xf32>
    %c0_17 = arith.constant 0 : index
    %c0_18 = arith.constant 0 : index
    %9 = vector.load %arg0[%c0_17, %c0_18] : memref<32x192xf32, #tpu.memory_space<vmem>>, vector<32x192xf32>
    %c0_19 = arith.constant 0 : index
    %c0_20 = arith.constant 0 : index
    %10 = vector.load %arg1[%c0_19, %c0_20] : memref<192x32xf32, #tpu.memory_space<vmem>>, vector<192x32xf32>
    %cst = arith.constant dense<0.000000e+00> : vector<32x32xf32>
    %11 = tpu.matmul %9, %10, %cst {dimension_numbers = #tpu.dot_dimension_numbers<[1], [0], [0], [1], [0, 0, 1, 1], [], []>} : vector<32x192xf32>, vector<192x32xf32>, vector<32x32xf32> -> vector<32x32xf32>
    %c0_21 = arith.constant 0 : index
    %c0_22 = arith.constant 0 : index
    %12 = vector.load %arg2[%c0_21, %c0_22] : memref<32x32xf32, #tpu.memory_space<vmem>>, vector<32x32xf32>
    %13 = arith.addf %11, %12 : vector<32x32xf32>
    %c0_23 = arith.constant 0 : index
    %c0_24 = arith.constant 0 : index
    %c0_25 = arith.constant 0 : index
    %14 = vector.load %arg4[%c0_23, %c0_24, %c0_25] : memref<2x13x32xf32, #tpu.memory_space<vmem>>, vector<1x13x32xf32>
    %15 = vector.shape_cast %14 : vector<1x13x32xf32> to vector<13x32xf32>
    %16 = vector.extract_strided_slice %15 {offsets = [0, 0], sizes = [1, 32], strides = [1, 1]} : vector<13x32xf32> to vector<1x32xf32>
    %17 = vector.extract_strided_slice %15 {offsets = [1, 0], sizes = [1, 32], strides = [1, 1]} : vector<13x32xf32> to vector<1x32xf32>
    %cst_26 = arith.constant dense<0.000000e+00> : vector<32xf32>
    %18 = vector.multi_reduction <add>, %13, %cst_26 [1] : vector<32x32xf32> to vector<32xf32>
    %19 = vector.shape_cast %18 : vector<32xf32> to vector<32x1xf32>
    %cst_27 = arith.constant 3.200000e+01 : f32
    %20 = vector.broadcast %cst_27 : f32 to vector<32x1xf32>
    %21 = arith.divf %19, %20 : vector<32x1xf32>
    %22 = vector.broadcast %21 : vector<32x1xf32> to vector<32x32xf32>
    %23 = arith.subf %13, %22 : vector<32x32xf32>
    %24 = arith.mulf %23, %23 : vector<32x32xf32>
    %cst_28 = arith.constant dense<0.000000e+00> : vector<32xf32>
    %25 = vector.multi_reduction <add>, %24, %cst_28 [1] : vector<32x32xf32> to vector<32xf32>
    %26 = vector.shape_cast %25 : vector<32xf32> to vector<32x1xf32>
    %cst_29 = arith.constant 3.200000e+01 : f32
    %27 = vector.broadcast %cst_29 : f32 to vector<32x1xf32>
    %28 = arith.divf %26, %27 : vector<32x1xf32>
    %cst_30 = arith.constant 9.99999974E-6 : f32
    %29 = vector.broadcast %cst_30 : f32 to vector<32x1xf32>
    %30 = arith.addf %28, %29 : vector<32x1xf32>
    %31 = math.rsqrt %30 : vector<32x1xf32>
    %32 = vector.broadcast %31 : vector<32x1xf32> to vector<32x32xf32>
    %33 = arith.mulf %23, %32 : vector<32x32xf32>
    %34 = vector.broadcast %16 : vector<1x32xf32> to vector<32x32xf32>
    %35 = arith.mulf %33, %34 : vector<32x32xf32>
    %36 = vector.broadcast %17 : vector<1x32xf32> to vector<32x32xf32>
    %37 = arith.addf %35, %36 : vector<32x32xf32>
    %c0_31 = arith.constant 0 : index
    %c0_32 = arith.constant 0 : index
    %c0_33 = arith.constant 0 : index
    %c0_34 = arith.constant 0 : index
    %38 = vector.load %arg3[%c0_31, %c0_32, %c0_33, %c0_34] : memref<2x13x32x32xf32, #tpu.memory_space<vmem>>, vector<1x1x32x32xf32>
    %39 = vector.shape_cast %38 : vector<1x1x32x32xf32> to vector<32x32xf32>
    %c0_35 = arith.constant 0 : index
    %c1 = arith.constant 1 : index
    %c0_36 = arith.constant 0 : index
    %c0_37 = arith.constant 0 : index
    %40 = vector.load %arg3[%c0_35, %c1, %c0_36, %c0_37] : memref<2x13x32x32xf32, #tpu.memory_space<vmem>>, vector<1x1x32x32xf32>
    %41 = vector.shape_cast %40 : vector<1x1x32x32xf32> to vector<32x32xf32>
    %c0_38 = arith.constant 0 : index
    %c2 = arith.constant 2 : index
    %c0_39 = arith.constant 0 : index
    %c0_40 = arith.constant 0 : index
    %42 = vector.load %arg3[%c0_38, %c2, %c0_39, %c0_40] : memref<2x13x32x32xf32, #tpu.memory_space<vmem>>, vector<1x1x32x32xf32>
    %43 = vector.shape_cast %42 : vector<1x1x32x32xf32> to vector<32x32xf32>
    %c0_41 = arith.constant 0 : index
    %c3 = arith.constant 3 : index
    %c0_42 = arith.constant 0 : index
    %c0_43 = arith.constant 0 : index
    %44 = vector.load %arg3[%c0_41, %c3, %c0_42, %c0_43] : memref<2x13x32x32xf32, #tpu.memory_space<vmem>>, vector<1x1x32x32xf32>
    %45 = vector.shape_cast %44 : vector<1x1x32x32xf32> to vector<32x32xf32>
    %46 = vector.extract_strided_slice %15 {offsets = [8, 0], sizes = [1, 32], strides = [1, 1]} : vector<13x32xf32> to vector<1x32xf32>
    %cst_44 = arith.constant dense<0.000000e+00> : vector<32x32xf32>
    %47 = tpu.matmul %37, %39, %cst_44 {dimension_numbers = #tpu.dot_dimension_numbers<[1], [0], [0], [1], [0, 0, 1, 1], [], []>} : vector<32x32xf32>, vector<32x32xf32>, vector<32x32xf32> -> vector<32x32xf32>
    %cst_45 = arith.constant dense<0.000000e+00> : vector<32x32xf32>
    %48 = tpu.matmul %37, %41, %cst_45 {dimension_numbers = #tpu.dot_dimension_numbers<[1], [0], [0], [1], [0, 0, 1, 1], [], []>} : vector<32x32xf32>, vector<32x32xf32>, vector<32x32xf32> -> vector<32x32xf32>
    %cst_46 = arith.constant dense<0.000000e+00> : vector<32x32xf32>
    %49 = tpu.matmul %37, %43, %cst_46 {dimension_numbers = #tpu.dot_dimension_numbers<[1], [0], [0], [1], [0, 0, 1, 1], [], []>} : vector<32x32xf32>, vector<32x32xf32>, vector<32x32xf32> -> vector<32x32xf32>
    %50 = vector.extract_strided_slice %0 {offsets = [0, 0], sizes = [1, 32], strides = [1, 1]} : vector<4x32xf32> to vector<1x32xf32>
    %51 = vector.broadcast %50 : vector<1x32xf32> to vector<32x32xf32>
    %52 = arith.mulf %47, %51 : vector<32x32xf32>
    %53 = vector.extract_strided_slice %0 {offsets = [1, 0], sizes = [1, 32], strides = [1, 1]} : vector<4x32xf32> to vector<1x32xf32>
    %54 = vector.broadcast %53 : vector<1x32xf32> to vector<32x32xf32>
    %55 = arith.mulf %47, %54 : vector<32x32xf32>
    %56 = vector.extract_strided_slice %0 {offsets = [2, 0], sizes = [1, 32], strides = [1, 1]} : vector<4x32xf32> to vector<1x32xf32>
    %57 = vector.broadcast %56 : vector<1x32xf32> to vector<32x32xf32>
    %58 = arith.mulf %47, %57 : vector<32x32xf32>
    %59 = vector.extract_strided_slice %0 {offsets = [3, 0], sizes = [1, 32], strides = [1, 1]} : vector<4x32xf32> to vector<1x32xf32>
    %60 = vector.broadcast %59 : vector<1x32xf32> to vector<32x32xf32>
    %61 = arith.mulf %47, %60 : vector<32x32xf32>
    %62 = tpu.concatenate %52, %55, %58, %61 in 0 : vector<32x32xf32>, vector<32x32xf32>, vector<32x32xf32>, vector<32x32xf32> -> vector<128x32xf32>
    %cst_47 = arith.constant dense<0.000000e+00> : vector<128x32xf32>
    %63 = tpu.matmul %62, %48, %cst_47 {dimension_numbers = #tpu.dot_dimension_numbers<[1], [1], [0], [0], [0, 0, 1, 0], [], []>} : vector<128x32xf32>, vector<32x32xf32>, vector<128x32xf32> -> vector<128x32xf32>
    %cst_48 = arith.constant 0.353553385 : f32
    %64 = vector.broadcast %cst_48 : f32 to vector<128x32xf32>
    %65 = arith.mulf %63, %64 : vector<128x32xf32>
    %66 = arith.addf %65, %1 : vector<128x32xf32>
    %cst_49 = arith.constant dense<0xFF800000> : vector<128xf32>
    %67 = vector.multi_reduction <maximumf>, %66, %cst_49 [1] : vector<128x32xf32> to vector<128xf32>
    %68 = vector.shape_cast %67 : vector<128xf32> to vector<128x1xf32>
    %69 = vector.broadcast %68 : vector<128x1xf32> to vector<128x32xf32>
    %70 = arith.subf %66, %69 : vector<128x32xf32>
    %71 = math.exp %70 : vector<128x32xf32>
    %cst_50 = arith.constant dense<0.000000e+00> : vector<128xf32>
    %72 = vector.multi_reduction <add>, %71, %cst_50 [1] : vector<128x32xf32> to vector<128xf32>
    %73 = vector.shape_cast %72 : vector<128xf32> to vector<128x1xf32>
    %74 = vector.broadcast %73 : vector<128x1xf32> to vector<128x32xf32>
    %75 = arith.divf %71, %74 : vector<128x32xf32>
    %cst_51 = arith.constant dense<0.000000e+00> : vector<128x32xf32>
    %76 = tpu.matmul %75, %49, %cst_51 {dimension_numbers = #tpu.dot_dimension_numbers<[1], [0], [0], [1], [0, 0, 1, 1], [], []>} : vector<128x32xf32>, vector<32x32xf32>, vector<128x32xf32> -> vector<128x32xf32>
    %77 = vector.extract_strided_slice %76 {offsets = [0, 0], sizes = [32, 32], strides = [1, 1]} : vector<128x32xf32> to vector<32x32xf32>
    %78 = vector.extract_strided_slice %0 {offsets = [0, 0], sizes = [1, 32], strides = [1, 1]} : vector<4x32xf32> to vector<1x32xf32>
    %79 = vector.broadcast %78 : vector<1x32xf32> to vector<32x32xf32>
    %80 = arith.mulf %77, %79 : vector<32x32xf32>
    %81 = vector.extract_strided_slice %76 {offsets = [32, 0], sizes = [32, 32], strides = [1, 1]} : vector<128x32xf32> to vector<32x32xf32>
    %82 = vector.extract_strided_slice %0 {offsets = [1, 0], sizes = [1, 32], strides = [1, 1]} : vector<4x32xf32> to vector<1x32xf32>
    %83 = vector.broadcast %82 : vector<1x32xf32> to vector<32x32xf32>
    %84 = arith.mulf %81, %83 : vector<32x32xf32>
    %85 = arith.addf %80, %84 : vector<32x32xf32>
    %86 = vector.extract_strided_slice %76 {offsets = [64, 0], sizes = [32, 32], strides = [1, 1]} : vector<128x32xf32> to vector<32x32xf32>
    %87 = vector.extract_strided_slice %0 {offsets = [2, 0], sizes = [1, 32], strides = [1, 1]} : vector<4x32xf32> to vector<1x32xf32>
    %88 = vector.broadcast %87 : vector<1x32xf32> to vector<32x32xf32>
    %89 = arith.mulf %86, %88 : vector<32x32xf32>
    %90 = arith.addf %85, %89 : vector<32x32xf32>
    %91 = vector.extract_strided_slice %76 {offsets = [96, 0], sizes = [32, 32], strides = [1, 1]} : vector<128x32xf32> to vector<32x32xf32>
    %92 = vector.extract_strided_slice %0 {offsets = [3, 0], sizes = [1, 32], strides = [1, 1]} : vector<4x32xf32> to vector<1x32xf32>
    %93 = vector.broadcast %92 : vector<1x32xf32> to vector<32x32xf32>
    %94 = arith.mulf %91, %93 : vector<32x32xf32>
    %95 = arith.addf %90, %94 : vector<32x32xf32>
    %cst_52 = arith.constant dense<0.000000e+00> : vector<32x32xf32>
    %96 = tpu.matmul %95, %45, %cst_52 {dimension_numbers = #tpu.dot_dimension_numbers<[1], [0], [0], [1], [0, 0, 1, 1], [], []>} : vector<32x32xf32>, vector<32x32xf32>, vector<32x32xf32> -> vector<32x32xf32>
    %97 = vector.broadcast %46 : vector<1x32xf32> to vector<32x32xf32>
    %98 = arith.addf %96, %97 : vector<32x32xf32>
    %99 = arith.addf %13, %98 : vector<32x32xf32>
    %cst_53 = arith.constant dense<0.000000e+00> : vector<24x32xf32>
    %100 = tpu.matmul %4, %99, %cst_53 {dimension_numbers = #tpu.dot_dimension_numbers<[1], [0], [0], [1], [0, 0, 1, 1], [], []>} : vector<24x32xf32>, vector<32x32xf32>, vector<24x32xf32> -> vector<24x32xf32>
    %101 = vector.extract_strided_slice %15 {offsets = [2, 0], sizes = [1, 32], strides = [1, 1]} : vector<13x32xf32> to vector<1x32xf32>
    %102 = vector.extract_strided_slice %15 {offsets = [3, 0], sizes = [1, 32], strides = [1, 1]} : vector<13x32xf32> to vector<1x32xf32>
    %cst_54 = arith.constant dense<0.000000e+00> : vector<24xf32>
    %103 = vector.multi_reduction <add>, %100, %cst_54 [1] : vector<24x32xf32> to vector<24xf32>
    %104 = vector.shape_cast %103 : vector<24xf32> to vector<24x1xf32>
    %cst_55 = arith.constant 3.200000e+01 : f32
    %105 = vector.broadcast %cst_55 : f32 to vector<24x1xf32>
    %106 = arith.divf %104, %105 : vector<24x1xf32>
    %107 = vector.broadcast %106 : vector<24x1xf32> to vector<24x32xf32>
    %108 = arith.subf %100, %107 : vector<24x32xf32>
    %109 = arith.mulf %108, %108 : vector<24x32xf32>
    %cst_56 = arith.constant dense<0.000000e+00> : vector<24xf32>
    %110 = vector.multi_reduction <add>, %109, %cst_56 [1] : vector<24x32xf32> to vector<24xf32>
    %111 = vector.shape_cast %110 : vector<24xf32> to vector<24x1xf32>
    %cst_57 = arith.constant 3.200000e+01 : f32
    %112 = vector.broadcast %cst_57 : f32 to vector<24x1xf32>
    %113 = arith.divf %111, %112 : vector<24x1xf32>
    %cst_58 = arith.constant 9.99999974E-6 : f32
    %114 = vector.broadcast %cst_58 : f32 to vector<24x1xf32>
    %115 = arith.addf %113, %114 : vector<24x1xf32>
    %116 = math.rsqrt %115 : vector<24x1xf32>
    %117 = vector.broadcast %116 : vector<24x1xf32> to vector<24x32xf32>
    %118 = arith.mulf %108, %117 : vector<24x32xf32>
    %119 = vector.broadcast %101 : vector<1x32xf32> to vector<24x32xf32>
    %120 = arith.mulf %118, %119 : vector<24x32xf32>
    %121 = vector.broadcast %102 : vector<1x32xf32> to vector<24x32xf32>
    %122 = arith.addf %120, %121 : vector<24x32xf32>
    %c0_59 = arith.constant 0 : index
    %c4 = arith.constant 4 : index
    %c0_60 = arith.constant 0 : index
    %c0_61 = arith.constant 0 : index
    %123 = vector.load %arg3[%c0_59, %c4, %c0_60, %c0_61] : memref<2x13x32x32xf32, #tpu.memory_space<vmem>>, vector<1x1x32x32xf32>
    %124 = vector.shape_cast %123 : vector<1x1x32x32xf32> to vector<32x32xf32>
    %c0_62 = arith.constant 0 : index
    %c5 = arith.constant 5 : index
    %c0_63 = arith.constant 0 : index
    %c0_64 = arith.constant 0 : index
    %125 = vector.load %arg3[%c0_62, %c5, %c0_63, %c0_64] : memref<2x13x32x32xf32, #tpu.memory_space<vmem>>, vector<1x1x32x32xf32>
    %126 = vector.shape_cast %125 : vector<1x1x32x32xf32> to vector<32x32xf32>
    %c0_65 = arith.constant 0 : index
    %c6 = arith.constant 6 : index
    %c0_66 = arith.constant 0 : index
    %c0_67 = arith.constant 0 : index
    %127 = vector.load %arg3[%c0_65, %c6, %c0_66, %c0_67] : memref<2x13x32x32xf32, #tpu.memory_space<vmem>>, vector<1x1x32x32xf32>
    %128 = vector.shape_cast %127 : vector<1x1x32x32xf32> to vector<32x32xf32>
    %c0_68 = arith.constant 0 : index
    %c7 = arith.constant 7 : index
    %c0_69 = arith.constant 0 : index
    %c0_70 = arith.constant 0 : index
    %129 = vector.load %arg3[%c0_68, %c7, %c0_69, %c0_70] : memref<2x13x32x32xf32, #tpu.memory_space<vmem>>, vector<1x1x32x32xf32>
    %130 = vector.shape_cast %129 : vector<1x1x32x32xf32> to vector<32x32xf32>
    %131 = vector.extract_strided_slice %15 {offsets = [9, 0], sizes = [1, 32], strides = [1, 1]} : vector<13x32xf32> to vector<1x32xf32>
    %cst_71 = arith.constant dense<0.000000e+00> : vector<24x32xf32>
    %132 = tpu.matmul %122, %124, %cst_71 {dimension_numbers = #tpu.dot_dimension_numbers<[1], [0], [0], [1], [0, 0, 1, 1], [], []>} : vector<24x32xf32>, vector<32x32xf32>, vector<24x32xf32> -> vector<24x32xf32>
    %cst_72 = arith.constant dense<0.000000e+00> : vector<24x32xf32>
    %133 = tpu.matmul %122, %126, %cst_72 {dimension_numbers = #tpu.dot_dimension_numbers<[1], [0], [0], [1], [0, 0, 1, 1], [], []>} : vector<24x32xf32>, vector<32x32xf32>, vector<24x32xf32> -> vector<24x32xf32>
    %cst_73 = arith.constant dense<0.000000e+00> : vector<24x32xf32>
    %134 = tpu.matmul %122, %128, %cst_73 {dimension_numbers = #tpu.dot_dimension_numbers<[1], [0], [0], [1], [0, 0, 1, 1], [], []>} : vector<24x32xf32>, vector<32x32xf32>, vector<24x32xf32> -> vector<24x32xf32>
    %135 = vector.extract_strided_slice %0 {offsets = [0, 0], sizes = [1, 32], strides = [1, 1]} : vector<4x32xf32> to vector<1x32xf32>
    %136 = vector.broadcast %135 : vector<1x32xf32> to vector<24x32xf32>
    %137 = arith.mulf %132, %136 : vector<24x32xf32>
    %138 = vector.extract_strided_slice %0 {offsets = [1, 0], sizes = [1, 32], strides = [1, 1]} : vector<4x32xf32> to vector<1x32xf32>
    %139 = vector.broadcast %138 : vector<1x32xf32> to vector<24x32xf32>
    %140 = arith.mulf %132, %139 : vector<24x32xf32>
    %141 = vector.extract_strided_slice %0 {offsets = [2, 0], sizes = [1, 32], strides = [1, 1]} : vector<4x32xf32> to vector<1x32xf32>
    %142 = vector.broadcast %141 : vector<1x32xf32> to vector<24x32xf32>
    %143 = arith.mulf %132, %142 : vector<24x32xf32>
    %144 = vector.extract_strided_slice %0 {offsets = [3, 0], sizes = [1, 32], strides = [1, 1]} : vector<4x32xf32> to vector<1x32xf32>
    %145 = vector.broadcast %144 : vector<1x32xf32> to vector<24x32xf32>
    %146 = arith.mulf %132, %145 : vector<24x32xf32>
    %147 = tpu.concatenate %137, %140, %143, %146 in 0 : vector<24x32xf32>, vector<24x32xf32>, vector<24x32xf32>, vector<24x32xf32> -> vector<96x32xf32>
    %cst_74 = arith.constant dense<0.000000e+00> : vector<96x24xf32>
    %148 = tpu.matmul %147, %133, %cst_74 {dimension_numbers = #tpu.dot_dimension_numbers<[1], [1], [0], [0], [0, 0, 1, 0], [], []>} : vector<96x32xf32>, vector<24x32xf32>, vector<96x24xf32> -> vector<96x24xf32>
    %cst_75 = arith.constant 0.353553385 : f32
    %149 = vector.broadcast %cst_75 : f32 to vector<96x24xf32>
    %150 = arith.mulf %148, %149 : vector<96x24xf32>
    %151 = arith.addf %150, %2 : vector<96x24xf32>
    %cst_76 = arith.constant dense<0xFF800000> : vector<96xf32>
    %152 = vector.multi_reduction <maximumf>, %151, %cst_76 [1] : vector<96x24xf32> to vector<96xf32>
    %153 = vector.shape_cast %152 : vector<96xf32> to vector<96x1xf32>
    %154 = vector.broadcast %153 : vector<96x1xf32> to vector<96x24xf32>
    %155 = arith.subf %151, %154 : vector<96x24xf32>
    %156 = math.exp %155 : vector<96x24xf32>
    %cst_77 = arith.constant dense<0.000000e+00> : vector<96xf32>
    %157 = vector.multi_reduction <add>, %156, %cst_77 [1] : vector<96x24xf32> to vector<96xf32>
    %158 = vector.shape_cast %157 : vector<96xf32> to vector<96x1xf32>
    %159 = vector.broadcast %158 : vector<96x1xf32> to vector<96x24xf32>
    %160 = arith.divf %156, %159 : vector<96x24xf32>
    %cst_78 = arith.constant dense<0.000000e+00> : vector<96x32xf32>
    %161 = tpu.matmul %160, %134, %cst_78 {dimension_numbers = #tpu.dot_dimension_numbers<[1], [0], [0], [1], [0, 0, 1, 1], [], []>} : vector<96x24xf32>, vector<24x32xf32>, vector<96x32xf32> -> vector<96x32xf32>
    %162 = vector.extract_strided_slice %161 {offsets = [0, 0], sizes = [24, 32], strides = [1, 1]} : vector<96x32xf32> to vector<24x32xf32>
    %163 = vector.extract_strided_slice %0 {offsets = [0, 0], sizes = [1, 32], strides = [1, 1]} : vector<4x32xf32> to vector<1x32xf32>
    %164 = vector.broadcast %163 : vector<1x32xf32> to vector<24x32xf32>
    %165 = arith.mulf %162, %164 : vector<24x32xf32>
    %166 = vector.extract_strided_slice %161 {offsets = [24, 0], sizes = [24, 32], strides = [1, 1]} : vector<96x32xf32> to vector<24x32xf32>
    %167 = vector.extract_strided_slice %0 {offsets = [1, 0], sizes = [1, 32], strides = [1, 1]} : vector<4x32xf32> to vector<1x32xf32>
    %168 = vector.broadcast %167 : vector<1x32xf32> to vector<24x32xf32>
    %169 = arith.mulf %166, %168 : vector<24x32xf32>
    %170 = arith.addf %165, %169 : vector<24x32xf32>
    %171 = vector.extract_strided_slice %161 {offsets = [48, 0], sizes = [24, 32], strides = [1, 1]} : vector<96x32xf32> to vector<24x32xf32>
    %172 = vector.extract_strided_slice %0 {offsets = [2, 0], sizes = [1, 32], strides = [1, 1]} : vector<4x32xf32> to vector<1x32xf32>
    %173 = vector.broadcast %172 : vector<1x32xf32> to vector<24x32xf32>
    %174 = arith.mulf %171, %173 : vector<24x32xf32>
    %175 = arith.addf %170, %174 : vector<24x32xf32>
    %176 = vector.extract_strided_slice %161 {offsets = [72, 0], sizes = [24, 32], strides = [1, 1]} : vector<96x32xf32> to vector<24x32xf32>
    %177 = vector.extract_strided_slice %0 {offsets = [3, 0], sizes = [1, 32], strides = [1, 1]} : vector<4x32xf32> to vector<1x32xf32>
    %178 = vector.broadcast %177 : vector<1x32xf32> to vector<24x32xf32>
    %179 = arith.mulf %176, %178 : vector<24x32xf32>
    %180 = arith.addf %175, %179 : vector<24x32xf32>
    %cst_79 = arith.constant dense<0.000000e+00> : vector<24x32xf32>
    %181 = tpu.matmul %180, %130, %cst_79 {dimension_numbers = #tpu.dot_dimension_numbers<[1], [0], [0], [1], [0, 0, 1, 1], [], []>} : vector<24x32xf32>, vector<32x32xf32>, vector<24x32xf32> -> vector<24x32xf32>
    %182 = vector.broadcast %131 : vector<1x32xf32> to vector<24x32xf32>
    %183 = arith.addf %181, %182 : vector<24x32xf32>
    %c0_80 = arith.constant 0 : index
    %c8 = arith.constant 8 : index
    %c0_81 = arith.constant 0 : index
    %c0_82 = arith.constant 0 : index
    %184 = vector.load %arg3[%c0_80, %c8, %c0_81, %c0_82] : memref<2x13x32x32xf32, #tpu.memory_space<vmem>>, vector<1x1x32x32xf32>
    %185 = vector.shape_cast %184 : vector<1x1x32x32xf32> to vector<32x32xf32>
    %cst_83 = arith.constant dense<0.000000e+00> : vector<24x32xf32>
    %186 = tpu.matmul %183, %185, %cst_83 {dimension_numbers = #tpu.dot_dimension_numbers<[1], [0], [0], [1], [0, 0, 1, 1], [], []>} : vector<24x32xf32>, vector<32x32xf32>, vector<24x32xf32> -> vector<24x32xf32>
    %187 = vector.extract_strided_slice %15 {offsets = [10, 0], sizes = [1, 32], strides = [1, 1]} : vector<13x32xf32> to vector<1x32xf32>
    %188 = vector.broadcast %187 : vector<1x32xf32> to vector<24x32xf32>
    %189 = arith.addf %186, %188 : vector<24x32xf32>
    %cst_84 = arith.constant dense<0.000000e+00> : vector<24x32xf32>
    %190 = tpu.matmul %6, %99, %cst_84 {dimension_numbers = #tpu.dot_dimension_numbers<[1], [0], [0], [1], [0, 0, 1, 1], [], []>} : vector<24x32xf32>, vector<32x32xf32>, vector<24x32xf32> -> vector<24x32xf32>
    %191 = arith.addf %190, %189 : vector<24x32xf32>
    %cst_85 = arith.constant dense<0.000000e+00> : vector<8x32xf32>
    %192 = tpu.matmul %5, %99, %cst_85 {dimension_numbers = #tpu.dot_dimension_numbers<[1], [0], [0], [1], [0, 0, 1, 1], [], []>} : vector<8x32xf32>, vector<32x32xf32>, vector<8x32xf32> -> vector<8x32xf32>
    %c0_86 = arith.constant 0 : index
    %c9 = arith.constant 9 : index
    %c0_87 = arith.constant 0 : index
    %c0_88 = arith.constant 0 : index
    %193 = vector.load %arg3[%c0_86, %c9, %c0_87, %c0_88] : memref<2x13x32x32xf32, #tpu.memory_space<vmem>>, vector<1x1x32x32xf32>
    %194 = vector.shape_cast %193 : vector<1x1x32x32xf32> to vector<32x32xf32>
    %c0_89 = arith.constant 0 : index
    %c10 = arith.constant 10 : index
    %c0_90 = arith.constant 0 : index
    %c0_91 = arith.constant 0 : index
    %195 = vector.load %arg3[%c0_89, %c10, %c0_90, %c0_91] : memref<2x13x32x32xf32, #tpu.memory_space<vmem>>, vector<1x1x32x32xf32>
    %196 = vector.shape_cast %195 : vector<1x1x32x32xf32> to vector<32x32xf32>
    %c0_92 = arith.constant 0 : index
    %c11 = arith.constant 11 : index
    %c0_93 = arith.constant 0 : index
    %c0_94 = arith.constant 0 : index
    %197 = vector.load %arg3[%c0_92, %c11, %c0_93, %c0_94] : memref<2x13x32x32xf32, #tpu.memory_space<vmem>>, vector<1x1x32x32xf32>
    %198 = vector.shape_cast %197 : vector<1x1x32x32xf32> to vector<32x32xf32>
    %c0_95 = arith.constant 0 : index
    %c12 = arith.constant 12 : index
    %c0_96 = arith.constant 0 : index
    %c0_97 = arith.constant 0 : index
    %199 = vector.load %arg3[%c0_95, %c12, %c0_96, %c0_97] : memref<2x13x32x32xf32, #tpu.memory_space<vmem>>, vector<1x1x32x32xf32>
    %200 = vector.shape_cast %199 : vector<1x1x32x32xf32> to vector<32x32xf32>
    %201 = vector.extract_strided_slice %15 {offsets = [11, 0], sizes = [1, 32], strides = [1, 1]} : vector<13x32xf32> to vector<1x32xf32>
    %cst_98 = arith.constant dense<0.000000e+00> : vector<8x32xf32>
    %202 = tpu.matmul %192, %194, %cst_98 {dimension_numbers = #tpu.dot_dimension_numbers<[1], [0], [0], [1], [0, 0, 1, 1], [], []>} : vector<8x32xf32>, vector<32x32xf32>, vector<8x32xf32> -> vector<8x32xf32>
    %cst_99 = arith.constant dense<0.000000e+00> : vector<24x32xf32>
    %203 = tpu.matmul %191, %196, %cst_99 {dimension_numbers = #tpu.dot_dimension_numbers<[1], [0], [0], [1], [0, 0, 1, 1], [], []>} : vector<24x32xf32>, vector<32x32xf32>, vector<24x32xf32> -> vector<24x32xf32>
    %cst_100 = arith.constant dense<0.000000e+00> : vector<24x32xf32>
    %204 = tpu.matmul %191, %198, %cst_100 {dimension_numbers = #tpu.dot_dimension_numbers<[1], [0], [0], [1], [0, 0, 1, 1], [], []>} : vector<24x32xf32>, vector<32x32xf32>, vector<24x32xf32> -> vector<24x32xf32>
    %205 = vector.extract_strided_slice %0 {offsets = [0, 0], sizes = [1, 32], strides = [1, 1]} : vector<4x32xf32> to vector<1x32xf32>
    %206 = vector.broadcast %205 : vector<1x32xf32> to vector<8x32xf32>
    %207 = arith.mulf %202, %206 : vector<8x32xf32>
    %208 = vector.extract_strided_slice %0 {offsets = [1, 0], sizes = [1, 32], strides = [1, 1]} : vector<4x32xf32> to vector<1x32xf32>
    %209 = vector.broadcast %208 : vector<1x32xf32> to vector<8x32xf32>
    %210 = arith.mulf %202, %209 : vector<8x32xf32>
    %211 = vector.extract_strided_slice %0 {offsets = [2, 0], sizes = [1, 32], strides = [1, 1]} : vector<4x32xf32> to vector<1x32xf32>
    %212 = vector.broadcast %211 : vector<1x32xf32> to vector<8x32xf32>
    %213 = arith.mulf %202, %212 : vector<8x32xf32>
    %214 = vector.extract_strided_slice %0 {offsets = [3, 0], sizes = [1, 32], strides = [1, 1]} : vector<4x32xf32> to vector<1x32xf32>
    %215 = vector.broadcast %214 : vector<1x32xf32> to vector<8x32xf32>
    %216 = arith.mulf %202, %215 : vector<8x32xf32>
    %217 = tpu.concatenate %207, %210, %213, %216 in 0 : vector<8x32xf32>, vector<8x32xf32>, vector<8x32xf32>, vector<8x32xf32> -> vector<32x32xf32>
    %cst_101 = arith.constant dense<0.000000e+00> : vector<32x24xf32>
    %218 = tpu.matmul %217, %203, %cst_101 {dimension_numbers = #tpu.dot_dimension_numbers<[1], [1], [0], [0], [0, 0, 1, 0], [], []>} : vector<32x32xf32>, vector<24x32xf32>, vector<32x24xf32> -> vector<32x24xf32>
    %cst_102 = arith.constant 0.176776692 : f32
    %219 = vector.broadcast %cst_102 : f32 to vector<32x24xf32>
    %220 = arith.mulf %218, %219 : vector<32x24xf32>
    %221 = arith.addf %220, %3 : vector<32x24xf32>
    %cst_103 = arith.constant dense<0xFF800000> : vector<32xf32>
    %222 = vector.multi_reduction <maximumf>, %221, %cst_103 [1] : vector<32x24xf32> to vector<32xf32>
    %223 = vector.shape_cast %222 : vector<32xf32> to vector<32x1xf32>
    %224 = vector.broadcast %223 : vector<32x1xf32> to vector<32x24xf32>
    %225 = arith.subf %221, %224 : vector<32x24xf32>
    %226 = math.exp %225 : vector<32x24xf32>
    %cst_104 = arith.constant dense<0.000000e+00> : vector<32xf32>
    %227 = vector.multi_reduction <add>, %226, %cst_104 [1] : vector<32x24xf32> to vector<32xf32>
    %228 = vector.shape_cast %227 : vector<32xf32> to vector<32x1xf32>
    %229 = vector.broadcast %228 : vector<32x1xf32> to vector<32x24xf32>
    %230 = arith.divf %226, %229 : vector<32x24xf32>
    %cst_105 = arith.constant dense<0.000000e+00> : vector<32x32xf32>
    %231 = tpu.matmul %230, %204, %cst_105 {dimension_numbers = #tpu.dot_dimension_numbers<[1], [0], [0], [1], [0, 0, 1, 1], [], []>} : vector<32x24xf32>, vector<24x32xf32>, vector<32x32xf32> -> vector<32x32xf32>
    %232 = vector.extract_strided_slice %231 {offsets = [0, 0], sizes = [8, 32], strides = [1, 1]} : vector<32x32xf32> to vector<8x32xf32>
    %233 = vector.extract_strided_slice %0 {offsets = [0, 0], sizes = [1, 32], strides = [1, 1]} : vector<4x32xf32> to vector<1x32xf32>
    %234 = vector.broadcast %233 : vector<1x32xf32> to vector<8x32xf32>
    %235 = arith.mulf %232, %234 : vector<8x32xf32>
    %236 = vector.extract_strided_slice %231 {offsets = [8, 0], sizes = [8, 32], strides = [1, 1]} : vector<32x32xf32> to vector<8x32xf32>
    %237 = vector.extract_strided_slice %0 {offsets = [1, 0], sizes = [1, 32], strides = [1, 1]} : vector<4x32xf32> to vector<1x32xf32>
    %238 = vector.broadcast %237 : vector<1x32xf32> to vector<8x32xf32>
    %239 = arith.mulf %236, %238 : vector<8x32xf32>
    %240 = arith.addf %235, %239 : vector<8x32xf32>
    %241 = vector.extract_strided_slice %231 {offsets = [16, 0], sizes = [8, 32], strides = [1, 1]} : vector<32x32xf32> to vector<8x32xf32>
    %242 = vector.extract_strided_slice %0 {offsets = [2, 0], sizes = [1, 32], strides = [1, 1]} : vector<4x32xf32> to vector<1x32xf32>
    %243 = vector.broadcast %242 : vector<1x32xf32> to vector<8x32xf32>
    %244 = arith.mulf %241, %243 : vector<8x32xf32>
    %245 = arith.addf %240, %244 : vector<8x32xf32>
    %246 = vector.extract_strided_slice %231 {offsets = [24, 0], sizes = [8, 32], strides = [1, 1]} : vector<32x32xf32> to vector<8x32xf32>
    %247 = vector.extract_strided_slice %0 {offsets = [3, 0], sizes = [1, 32], strides = [1, 1]} : vector<4x32xf32> to vector<1x32xf32>
    %248 = vector.broadcast %247 : vector<1x32xf32> to vector<8x32xf32>
    %249 = arith.mulf %246, %248 : vector<8x32xf32>
    %250 = arith.addf %245, %249 : vector<8x32xf32>
    %cst_106 = arith.constant dense<0.000000e+00> : vector<8x32xf32>
    %251 = tpu.matmul %250, %200, %cst_106 {dimension_numbers = #tpu.dot_dimension_numbers<[1], [0], [0], [1], [0, 0, 1, 1], [], []>} : vector<8x32xf32>, vector<32x32xf32>, vector<8x32xf32> -> vector<8x32xf32>
    %252 = vector.broadcast %201 : vector<1x32xf32> to vector<8x32xf32>
    %253 = arith.addf %251, %252 : vector<8x32xf32>
    %254 = vector.extract_strided_slice %15 {offsets = [4, 0], sizes = [1, 32], strides = [1, 1]} : vector<13x32xf32> to vector<1x32xf32>
    %255 = vector.extract_strided_slice %15 {offsets = [5, 0], sizes = [1, 32], strides = [1, 1]} : vector<13x32xf32> to vector<1x32xf32>
    %cst_107 = arith.constant dense<0.000000e+00> : vector<8xf32>
    %256 = vector.multi_reduction <add>, %253, %cst_107 [1] : vector<8x32xf32> to vector<8xf32>
    %257 = vector.shape_cast %256 : vector<8xf32> to vector<8x1xf32>
    %cst_108 = arith.constant 3.200000e+01 : f32
    %258 = vector.broadcast %cst_108 : f32 to vector<8x1xf32>
    %259 = arith.divf %257, %258 : vector<8x1xf32>
    %260 = vector.broadcast %259 : vector<8x1xf32> to vector<8x32xf32>
    %261 = arith.subf %253, %260 : vector<8x32xf32>
    %262 = arith.mulf %261, %261 : vector<8x32xf32>
    %cst_109 = arith.constant dense<0.000000e+00> : vector<8xf32>
    %263 = vector.multi_reduction <add>, %262, %cst_109 [1] : vector<8x32xf32> to vector<8xf32>
    %264 = vector.shape_cast %263 : vector<8xf32> to vector<8x1xf32>
    %cst_110 = arith.constant 3.200000e+01 : f32
    %265 = vector.broadcast %cst_110 : f32 to vector<8x1xf32>
    %266 = arith.divf %264, %265 : vector<8x1xf32>
    %cst_111 = arith.constant 9.99999974E-6 : f32
    %267 = vector.broadcast %cst_111 : f32 to vector<8x1xf32>
    %268 = arith.addf %266, %267 : vector<8x1xf32>
    %269 = math.rsqrt %268 : vector<8x1xf32>
    %270 = vector.broadcast %269 : vector<8x1xf32> to vector<8x32xf32>
    %271 = arith.mulf %261, %270 : vector<8x32xf32>
    %272 = vector.broadcast %254 : vector<1x32xf32> to vector<8x32xf32>
    %273 = arith.mulf %271, %272 : vector<8x32xf32>
    %274 = vector.broadcast %255 : vector<1x32xf32> to vector<8x32xf32>
    %275 = arith.addf %273, %274 : vector<8x32xf32>
    %cst_112 = arith.constant dense<0.000000e+00> : vector<32x32xf32>
    %276 = tpu.matmul %7, %275, %cst_112 {dimension_numbers = #tpu.dot_dimension_numbers<[1], [0], [0], [1], [0, 0, 1, 1], [], []>} : vector<32x8xf32>, vector<8x32xf32>, vector<32x32xf32> -> vector<32x32xf32>
    %277 = arith.addf %99, %276 : vector<32x32xf32>
    %cst_113 = arith.constant dense<0.000000e+00> : vector<32x32xf32>
    %278 = tpu.matmul %8, %189, %cst_113 {dimension_numbers = #tpu.dot_dimension_numbers<[1], [0], [0], [1], [0, 0, 1, 1], [], []>} : vector<32x24xf32>, vector<24x32xf32>, vector<32x32xf32> -> vector<32x32xf32>
    %279 = arith.addf %277, %278 : vector<32x32xf32>
    %280 = vector.extract_strided_slice %15 {offsets = [6, 0], sizes = [1, 32], strides = [1, 1]} : vector<13x32xf32> to vector<1x32xf32>
    %281 = vector.extract_strided_slice %15 {offsets = [7, 0], sizes = [1, 32], strides = [1, 1]} : vector<13x32xf32> to vector<1x32xf32>
    %cst_114 = arith.constant dense<0.000000e+00> : vector<32xf32>
    %282 = vector.multi_reduction <add>, %279, %cst_114 [1] : vector<32x32xf32> to vector<32xf32>
    %283 = vector.shape_cast %282 : vector<32xf32> to vector<32x1xf32>
    %cst_115 = arith.constant 3.200000e+01 : f32
    %284 = vector.broadcast %cst_115 : f32 to vector<32x1xf32>
    %285 = arith.divf %283, %284 : vector<32x1xf32>
    %286 = vector.broadcast %285 : vector<32x1xf32> to vector<32x32xf32>
    %287 = arith.subf %279, %286 : vector<32x32xf32>
    %288 = arith.mulf %287, %287 : vector<32x32xf32>
    %cst_116 = arith.constant dense<0.000000e+00> : vector<32xf32>
    %289 = vector.multi_reduction <add>, %288, %cst_116 [1] : vector<32x32xf32> to vector<32xf32>
    %290 = vector.shape_cast %289 : vector<32xf32> to vector<32x1xf32>
    %cst_117 = arith.constant 3.200000e+01 : f32
    %291 = vector.broadcast %cst_117 : f32 to vector<32x1xf32>
    %292 = arith.divf %290, %291 : vector<32x1xf32>
    %cst_118 = arith.constant 9.99999974E-6 : f32
    %293 = vector.broadcast %cst_118 : f32 to vector<32x1xf32>
    %294 = arith.addf %292, %293 : vector<32x1xf32>
    %295 = math.rsqrt %294 : vector<32x1xf32>
    %296 = vector.broadcast %295 : vector<32x1xf32> to vector<32x32xf32>
    %297 = arith.mulf %287, %296 : vector<32x32xf32>
    %298 = vector.broadcast %280 : vector<1x32xf32> to vector<32x32xf32>
    %299 = arith.mulf %297, %298 : vector<32x32xf32>
    %300 = vector.broadcast %281 : vector<1x32xf32> to vector<32x32xf32>
    %301 = arith.addf %299, %300 : vector<32x32xf32>
    %c0_119 = arith.constant 0 : index
    %c0_120 = arith.constant 0 : index
    %c0_121 = arith.constant 0 : index
    %302 = vector.load %arg5[%c0_119, %c0_120, %c0_121] : memref<2x32x128xf32, #tpu.memory_space<vmem>>, vector<1x32x128xf32>
    %303 = vector.shape_cast %302 : vector<1x32x128xf32> to vector<32x128xf32>
    %cst_122 = arith.constant dense<0.000000e+00> : vector<32x128xf32>
    %304 = tpu.matmul %301, %303, %cst_122 {dimension_numbers = #tpu.dot_dimension_numbers<[1], [0], [0], [1], [0, 0, 1, 1], [], []>} : vector<32x32xf32>, vector<32x128xf32>, vector<32x128xf32> -> vector<32x128xf32>
    %c0_123 = arith.constant 0 : index
    %c0_124 = arith.constant 0 : index
    %c0_125 = arith.constant 0 : index
    %305 = vector.load %arg6[%c0_123, %c0_124, %c0_125] : memref<2x1x128xf32, #tpu.memory_space<vmem>>, vector<1x1x128xf32>
    %306 = vector.shape_cast %305 : vector<1x1x128xf32> to vector<1x128xf32>
    %307 = vector.broadcast %306 : vector<1x128xf32> to vector<32x128xf32>
    %308 = arith.addf %304, %307 : vector<32x128xf32>
    %cst_126 = arith.constant 0.707106769 : f32
    %309 = vector.broadcast %cst_126 : f32 to vector<32x128xf32>
    %310 = arith.mulf %308, %309 : vector<32x128xf32>
    %311 = math.absf %310 : vector<32x128xf32>
    %cst_127 = arith.constant 0.327591091 : f32
    %312 = vector.broadcast %cst_127 : f32 to vector<32x128xf32>
    %313 = arith.mulf %312, %311 : vector<32x128xf32>
    %cst_128 = arith.constant 1.000000e+00 : f32
    %314 = vector.broadcast %cst_128 : f32 to vector<32x128xf32>
    %315 = arith.addf %314, %313 : vector<32x128xf32>
    %cst_129 = arith.constant 1.000000e+00 : f32
    %316 = vector.broadcast %cst_129 : f32 to vector<32x128xf32>
    %317 = arith.divf %316, %315 : vector<32x128xf32>
    %cst_130 = arith.constant 1.06140542 : f32
    %318 = vector.broadcast %cst_130 : f32 to vector<32x128xf32>
    %319 = arith.mulf %317, %318 : vector<32x128xf32>
    %cst_131 = arith.constant -1.45315206 : f32
    %320 = vector.broadcast %cst_131 : f32 to vector<32x128xf32>
    %321 = arith.addf %320, %319 : vector<32x128xf32>
    %322 = arith.mulf %317, %321 : vector<32x128xf32>
    %cst_132 = arith.constant 1.42141378 : f32
    %323 = vector.broadcast %cst_132 : f32 to vector<32x128xf32>
    %324 = arith.addf %323, %322 : vector<32x128xf32>
    %325 = arith.mulf %317, %324 : vector<32x128xf32>
    %cst_133 = arith.constant -0.284496725 : f32
    %326 = vector.broadcast %cst_133 : f32 to vector<32x128xf32>
    %327 = arith.addf %326, %325 : vector<32x128xf32>
    %328 = arith.mulf %317, %327 : vector<32x128xf32>
    %cst_134 = arith.constant 0.254829586 : f32
    %329 = vector.broadcast %cst_134 : f32 to vector<32x128xf32>
    %330 = arith.addf %329, %328 : vector<32x128xf32>
    %331 = arith.mulf %317, %330 : vector<32x128xf32>
    %cst_135 = arith.constant 0.000000e+00 : f32
    %332 = vector.broadcast %cst_135 : f32 to vector<32x128xf32>
    %333 = arith.subf %332, %311 : vector<32x128xf32>
    %334 = arith.mulf %333, %311 : vector<32x128xf32>
    %335 = math.exp %334 : vector<32x128xf32>
    %336 = arith.mulf %331, %335 : vector<32x128xf32>
    %cst_136 = arith.constant 1.000000e+00 : f32
    %337 = vector.broadcast %cst_136 : f32 to vector<32x128xf32>
    %338 = arith.subf %337, %336 : vector<32x128xf32>
    %cst_137 = arith.constant 0.000000e+00 : f32
    %339 = vector.broadcast %cst_137 : f32 to vector<32x128xf32>
    %340 = arith.cmpf oge, %310, %339 : vector<32x128xf32>
    %cst_138 = arith.constant 0.000000e+00 : f32
    %341 = vector.broadcast %cst_138 : f32 to vector<32x128xf32>
    %342 = arith.subf %341, %338 : vector<32x128xf32>
    %343 = arith.select %340, %338, %342 : vector<32x128xi1>, vector<32x128xf32>
    %cst_139 = arith.constant 5.000000e-01 : f32
    %344 = vector.broadcast %cst_139 : f32 to vector<32x128xf32>
    %345 = arith.mulf %344, %308 : vector<32x128xf32>
    %cst_140 = arith.constant 1.000000e+00 : f32
    %346 = vector.broadcast %cst_140 : f32 to vector<32x128xf32>
    %347 = arith.addf %346, %343 : vector<32x128xf32>
    %348 = arith.mulf %345, %347 : vector<32x128xf32>
    %c0_141 = arith.constant 0 : index
    %c0_142 = arith.constant 0 : index
    %c0_143 = arith.constant 0 : index
    %349 = vector.load %arg7[%c0_141, %c0_142, %c0_143] : memref<2x128x32xf32, #tpu.memory_space<vmem>>, vector<1x128x32xf32>
    %350 = vector.shape_cast %349 : vector<1x128x32xf32> to vector<128x32xf32>
    %cst_144 = arith.constant dense<0.000000e+00> : vector<32x32xf32>
    %351 = tpu.matmul %348, %350, %cst_144 {dimension_numbers = #tpu.dot_dimension_numbers<[1], [0], [0], [1], [0, 0, 1, 1], [], []>} : vector<32x128xf32>, vector<128x32xf32>, vector<32x32xf32> -> vector<32x32xf32>
    %352 = arith.addf %279, %351 : vector<32x32xf32>
    %353 = vector.extract_strided_slice %15 {offsets = [12, 0], sizes = [1, 32], strides = [1, 1]} : vector<13x32xf32> to vector<1x32xf32>
    %354 = vector.broadcast %353 : vector<1x32xf32> to vector<32x32xf32>
    %355 = arith.addf %352, %354 : vector<32x32xf32>
    %c1_145 = arith.constant 1 : index
    %c0_146 = arith.constant 0 : index
    %c0_147 = arith.constant 0 : index
    %356 = vector.load %arg4[%c1_145, %c0_146, %c0_147] : memref<2x13x32xf32, #tpu.memory_space<vmem>>, vector<1x13x32xf32>
    %357 = vector.shape_cast %356 : vector<1x13x32xf32> to vector<13x32xf32>
    %358 = vector.extract_strided_slice %357 {offsets = [0, 0], sizes = [1, 32], strides = [1, 1]} : vector<13x32xf32> to vector<1x32xf32>
    %359 = vector.extract_strided_slice %357 {offsets = [1, 0], sizes = [1, 32], strides = [1, 1]} : vector<13x32xf32> to vector<1x32xf32>
    %cst_148 = arith.constant dense<0.000000e+00> : vector<32xf32>
    %360 = vector.multi_reduction <add>, %355, %cst_148 [1] : vector<32x32xf32> to vector<32xf32>
    %361 = vector.shape_cast %360 : vector<32xf32> to vector<32x1xf32>
    %cst_149 = arith.constant 3.200000e+01 : f32
    %362 = vector.broadcast %cst_149 : f32 to vector<32x1xf32>
    %363 = arith.divf %361, %362 : vector<32x1xf32>
    %364 = vector.broadcast %363 : vector<32x1xf32> to vector<32x32xf32>
    %365 = arith.subf %355, %364 : vector<32x32xf32>
    %366 = arith.mulf %365, %365 : vector<32x32xf32>
    %cst_150 = arith.constant dense<0.000000e+00> : vector<32xf32>
    %367 = vector.multi_reduction <add>, %366, %cst_150 [1] : vector<32x32xf32> to vector<32xf32>
    %368 = vector.shape_cast %367 : vector<32xf32> to vector<32x1xf32>
    %cst_151 = arith.constant 3.200000e+01 : f32
    %369 = vector.broadcast %cst_151 : f32 to vector<32x1xf32>
    %370 = arith.divf %368, %369 : vector<32x1xf32>
    %cst_152 = arith.constant 9.99999974E-6 : f32
    %371 = vector.broadcast %cst_152 : f32 to vector<32x1xf32>
    %372 = arith.addf %370, %371 : vector<32x1xf32>
    %373 = math.rsqrt %372 : vector<32x1xf32>
    %374 = vector.broadcast %373 : vector<32x1xf32> to vector<32x32xf32>
    %375 = arith.mulf %365, %374 : vector<32x32xf32>
    %376 = vector.broadcast %358 : vector<1x32xf32> to vector<32x32xf32>
    %377 = arith.mulf %375, %376 : vector<32x32xf32>
    %378 = vector.broadcast %359 : vector<1x32xf32> to vector<32x32xf32>
    %379 = arith.addf %377, %378 : vector<32x32xf32>
    %c1_153 = arith.constant 1 : index
    %c0_154 = arith.constant 0 : index
    %c0_155 = arith.constant 0 : index
    %c0_156 = arith.constant 0 : index
    %380 = vector.load %arg3[%c1_153, %c0_154, %c0_155, %c0_156] : memref<2x13x32x32xf32, #tpu.memory_space<vmem>>, vector<1x1x32x32xf32>
    %381 = vector.shape_cast %380 : vector<1x1x32x32xf32> to vector<32x32xf32>
    %c1_157 = arith.constant 1 : index
    %c1_158 = arith.constant 1 : index
    %c0_159 = arith.constant 0 : index
    %c0_160 = arith.constant 0 : index
    %382 = vector.load %arg3[%c1_157, %c1_158, %c0_159, %c0_160] : memref<2x13x32x32xf32, #tpu.memory_space<vmem>>, vector<1x1x32x32xf32>
    %383 = vector.shape_cast %382 : vector<1x1x32x32xf32> to vector<32x32xf32>
    %c1_161 = arith.constant 1 : index
    %c2_162 = arith.constant 2 : index
    %c0_163 = arith.constant 0 : index
    %c0_164 = arith.constant 0 : index
    %384 = vector.load %arg3[%c1_161, %c2_162, %c0_163, %c0_164] : memref<2x13x32x32xf32, #tpu.memory_space<vmem>>, vector<1x1x32x32xf32>
    %385 = vector.shape_cast %384 : vector<1x1x32x32xf32> to vector<32x32xf32>
    %c1_165 = arith.constant 1 : index
    %c3_166 = arith.constant 3 : index
    %c0_167 = arith.constant 0 : index
    %c0_168 = arith.constant 0 : index
    %386 = vector.load %arg3[%c1_165, %c3_166, %c0_167, %c0_168] : memref<2x13x32x32xf32, #tpu.memory_space<vmem>>, vector<1x1x32x32xf32>
    %387 = vector.shape_cast %386 : vector<1x1x32x32xf32> to vector<32x32xf32>
    %388 = vector.extract_strided_slice %357 {offsets = [8, 0], sizes = [1, 32], strides = [1, 1]} : vector<13x32xf32> to vector<1x32xf32>
    %cst_169 = arith.constant dense<0.000000e+00> : vector<32x32xf32>
    %389 = tpu.matmul %379, %381, %cst_169 {dimension_numbers = #tpu.dot_dimension_numbers<[1], [0], [0], [1], [0, 0, 1, 1], [], []>} : vector<32x32xf32>, vector<32x32xf32>, vector<32x32xf32> -> vector<32x32xf32>
    %cst_170 = arith.constant dense<0.000000e+00> : vector<32x32xf32>
    %390 = tpu.matmul %379, %383, %cst_170 {dimension_numbers = #tpu.dot_dimension_numbers<[1], [0], [0], [1], [0, 0, 1, 1], [], []>} : vector<32x32xf32>, vector<32x32xf32>, vector<32x32xf32> -> vector<32x32xf32>
    %cst_171 = arith.constant dense<0.000000e+00> : vector<32x32xf32>
    %391 = tpu.matmul %379, %385, %cst_171 {dimension_numbers = #tpu.dot_dimension_numbers<[1], [0], [0], [1], [0, 0, 1, 1], [], []>} : vector<32x32xf32>, vector<32x32xf32>, vector<32x32xf32> -> vector<32x32xf32>
    %392 = vector.extract_strided_slice %0 {offsets = [0, 0], sizes = [1, 32], strides = [1, 1]} : vector<4x32xf32> to vector<1x32xf32>
    %393 = vector.broadcast %392 : vector<1x32xf32> to vector<32x32xf32>
    %394 = arith.mulf %389, %393 : vector<32x32xf32>
    %395 = vector.extract_strided_slice %0 {offsets = [1, 0], sizes = [1, 32], strides = [1, 1]} : vector<4x32xf32> to vector<1x32xf32>
    %396 = vector.broadcast %395 : vector<1x32xf32> to vector<32x32xf32>
    %397 = arith.mulf %389, %396 : vector<32x32xf32>
    %398 = vector.extract_strided_slice %0 {offsets = [2, 0], sizes = [1, 32], strides = [1, 1]} : vector<4x32xf32> to vector<1x32xf32>
    %399 = vector.broadcast %398 : vector<1x32xf32> to vector<32x32xf32>
    %400 = arith.mulf %389, %399 : vector<32x32xf32>
    %401 = vector.extract_strided_slice %0 {offsets = [3, 0], sizes = [1, 32], strides = [1, 1]} : vector<4x32xf32> to vector<1x32xf32>
    %402 = vector.broadcast %401 : vector<1x32xf32> to vector<32x32xf32>
    %403 = arith.mulf %389, %402 : vector<32x32xf32>
    %404 = tpu.concatenate %394, %397, %400, %403 in 0 : vector<32x32xf32>, vector<32x32xf32>, vector<32x32xf32>, vector<32x32xf32> -> vector<128x32xf32>
    %cst_172 = arith.constant dense<0.000000e+00> : vector<128x32xf32>
    %405 = tpu.matmul %404, %390, %cst_172 {dimension_numbers = #tpu.dot_dimension_numbers<[1], [1], [0], [0], [0, 0, 1, 0], [], []>} : vector<128x32xf32>, vector<32x32xf32>, vector<128x32xf32> -> vector<128x32xf32>
    %cst_173 = arith.constant 0.353553385 : f32
    %406 = vector.broadcast %cst_173 : f32 to vector<128x32xf32>
    %407 = arith.mulf %405, %406 : vector<128x32xf32>
    %408 = arith.addf %407, %1 : vector<128x32xf32>
    %cst_174 = arith.constant dense<0xFF800000> : vector<128xf32>
    %409 = vector.multi_reduction <maximumf>, %408, %cst_174 [1] : vector<128x32xf32> to vector<128xf32>
    %410 = vector.shape_cast %409 : vector<128xf32> to vector<128x1xf32>
    %411 = vector.broadcast %410 : vector<128x1xf32> to vector<128x32xf32>
    %412 = arith.subf %408, %411 : vector<128x32xf32>
    %413 = math.exp %412 : vector<128x32xf32>
    %cst_175 = arith.constant dense<0.000000e+00> : vector<128xf32>
    %414 = vector.multi_reduction <add>, %413, %cst_175 [1] : vector<128x32xf32> to vector<128xf32>
    %415 = vector.shape_cast %414 : vector<128xf32> to vector<128x1xf32>
    %416 = vector.broadcast %415 : vector<128x1xf32> to vector<128x32xf32>
    %417 = arith.divf %413, %416 : vector<128x32xf32>
    %cst_176 = arith.constant dense<0.000000e+00> : vector<128x32xf32>
    %418 = tpu.matmul %417, %391, %cst_176 {dimension_numbers = #tpu.dot_dimension_numbers<[1], [0], [0], [1], [0, 0, 1, 1], [], []>} : vector<128x32xf32>, vector<32x32xf32>, vector<128x32xf32> -> vector<128x32xf32>
    %419 = vector.extract_strided_slice %418 {offsets = [0, 0], sizes = [32, 32], strides = [1, 1]} : vector<128x32xf32> to vector<32x32xf32>
    %420 = vector.extract_strided_slice %0 {offsets = [0, 0], sizes = [1, 32], strides = [1, 1]} : vector<4x32xf32> to vector<1x32xf32>
    %421 = vector.broadcast %420 : vector<1x32xf32> to vector<32x32xf32>
    %422 = arith.mulf %419, %421 : vector<32x32xf32>
    %423 = vector.extract_strided_slice %418 {offsets = [32, 0], sizes = [32, 32], strides = [1, 1]} : vector<128x32xf32> to vector<32x32xf32>
    %424 = vector.extract_strided_slice %0 {offsets = [1, 0], sizes = [1, 32], strides = [1, 1]} : vector<4x32xf32> to vector<1x32xf32>
    %425 = vector.broadcast %424 : vector<1x32xf32> to vector<32x32xf32>
    %426 = arith.mulf %423, %425 : vector<32x32xf32>
    %427 = arith.addf %422, %426 : vector<32x32xf32>
    %428 = vector.extract_strided_slice %418 {offsets = [64, 0], sizes = [32, 32], strides = [1, 1]} : vector<128x32xf32> to vector<32x32xf32>
    %429 = vector.extract_strided_slice %0 {offsets = [2, 0], sizes = [1, 32], strides = [1, 1]} : vector<4x32xf32> to vector<1x32xf32>
    %430 = vector.broadcast %429 : vector<1x32xf32> to vector<32x32xf32>
    %431 = arith.mulf %428, %430 : vector<32x32xf32>
    %432 = arith.addf %427, %431 : vector<32x32xf32>
    %433 = vector.extract_strided_slice %418 {offsets = [96, 0], sizes = [32, 32], strides = [1, 1]} : vector<128x32xf32> to vector<32x32xf32>
    %434 = vector.extract_strided_slice %0 {offsets = [3, 0], sizes = [1, 32], strides = [1, 1]} : vector<4x32xf32> to vector<1x32xf32>
    %435 = vector.broadcast %434 : vector<1x32xf32> to vector<32x32xf32>
    %436 = arith.mulf %433, %435 : vector<32x32xf32>
    %437 = arith.addf %432, %436 : vector<32x32xf32>
    %cst_177 = arith.constant dense<0.000000e+00> : vector<32x32xf32>
    %438 = tpu.matmul %437, %387, %cst_177 {dimension_numbers = #tpu.dot_dimension_numbers<[1], [0], [0], [1], [0, 0, 1, 1], [], []>} : vector<32x32xf32>, vector<32x32xf32>, vector<32x32xf32> -> vector<32x32xf32>
    %439 = vector.broadcast %388 : vector<1x32xf32> to vector<32x32xf32>
    %440 = arith.addf %438, %439 : vector<32x32xf32>
    %441 = arith.addf %355, %440 : vector<32x32xf32>
    %cst_178 = arith.constant dense<0.000000e+00> : vector<24x32xf32>
    %442 = tpu.matmul %4, %441, %cst_178 {dimension_numbers = #tpu.dot_dimension_numbers<[1], [0], [0], [1], [0, 0, 1, 1], [], []>} : vector<24x32xf32>, vector<32x32xf32>, vector<24x32xf32> -> vector<24x32xf32>
    %443 = vector.extract_strided_slice %357 {offsets = [2, 0], sizes = [1, 32], strides = [1, 1]} : vector<13x32xf32> to vector<1x32xf32>
    %444 = vector.extract_strided_slice %357 {offsets = [3, 0], sizes = [1, 32], strides = [1, 1]} : vector<13x32xf32> to vector<1x32xf32>
    %cst_179 = arith.constant dense<0.000000e+00> : vector<24xf32>
    %445 = vector.multi_reduction <add>, %442, %cst_179 [1] : vector<24x32xf32> to vector<24xf32>
    %446 = vector.shape_cast %445 : vector<24xf32> to vector<24x1xf32>
    %cst_180 = arith.constant 3.200000e+01 : f32
    %447 = vector.broadcast %cst_180 : f32 to vector<24x1xf32>
    %448 = arith.divf %446, %447 : vector<24x1xf32>
    %449 = vector.broadcast %448 : vector<24x1xf32> to vector<24x32xf32>
    %450 = arith.subf %442, %449 : vector<24x32xf32>
    %451 = arith.mulf %450, %450 : vector<24x32xf32>
    %cst_181 = arith.constant dense<0.000000e+00> : vector<24xf32>
    %452 = vector.multi_reduction <add>, %451, %cst_181 [1] : vector<24x32xf32> to vector<24xf32>
    %453 = vector.shape_cast %452 : vector<24xf32> to vector<24x1xf32>
    %cst_182 = arith.constant 3.200000e+01 : f32
    %454 = vector.broadcast %cst_182 : f32 to vector<24x1xf32>
    %455 = arith.divf %453, %454 : vector<24x1xf32>
    %cst_183 = arith.constant 9.99999974E-6 : f32
    %456 = vector.broadcast %cst_183 : f32 to vector<24x1xf32>
    %457 = arith.addf %455, %456 : vector<24x1xf32>
    %458 = math.rsqrt %457 : vector<24x1xf32>
    %459 = vector.broadcast %458 : vector<24x1xf32> to vector<24x32xf32>
    %460 = arith.mulf %450, %459 : vector<24x32xf32>
    %461 = vector.broadcast %443 : vector<1x32xf32> to vector<24x32xf32>
    %462 = arith.mulf %460, %461 : vector<24x32xf32>
    %463 = vector.broadcast %444 : vector<1x32xf32> to vector<24x32xf32>
    %464 = arith.addf %462, %463 : vector<24x32xf32>
    %c1_184 = arith.constant 1 : index
    %c4_185 = arith.constant 4 : index
    %c0_186 = arith.constant 0 : index
    %c0_187 = arith.constant 0 : index
    %465 = vector.load %arg3[%c1_184, %c4_185, %c0_186, %c0_187] : memref<2x13x32x32xf32, #tpu.memory_space<vmem>>, vector<1x1x32x32xf32>
    %466 = vector.shape_cast %465 : vector<1x1x32x32xf32> to vector<32x32xf32>
    %c1_188 = arith.constant 1 : index
    %c5_189 = arith.constant 5 : index
    %c0_190 = arith.constant 0 : index
    %c0_191 = arith.constant 0 : index
    %467 = vector.load %arg3[%c1_188, %c5_189, %c0_190, %c0_191] : memref<2x13x32x32xf32, #tpu.memory_space<vmem>>, vector<1x1x32x32xf32>
    %468 = vector.shape_cast %467 : vector<1x1x32x32xf32> to vector<32x32xf32>
    %c1_192 = arith.constant 1 : index
    %c6_193 = arith.constant 6 : index
    %c0_194 = arith.constant 0 : index
    %c0_195 = arith.constant 0 : index
    %469 = vector.load %arg3[%c1_192, %c6_193, %c0_194, %c0_195] : memref<2x13x32x32xf32, #tpu.memory_space<vmem>>, vector<1x1x32x32xf32>
    %470 = vector.shape_cast %469 : vector<1x1x32x32xf32> to vector<32x32xf32>
    %c1_196 = arith.constant 1 : index
    %c7_197 = arith.constant 7 : index
    %c0_198 = arith.constant 0 : index
    %c0_199 = arith.constant 0 : index
    %471 = vector.load %arg3[%c1_196, %c7_197, %c0_198, %c0_199] : memref<2x13x32x32xf32, #tpu.memory_space<vmem>>, vector<1x1x32x32xf32>
    %472 = vector.shape_cast %471 : vector<1x1x32x32xf32> to vector<32x32xf32>
    %473 = vector.extract_strided_slice %357 {offsets = [9, 0], sizes = [1, 32], strides = [1, 1]} : vector<13x32xf32> to vector<1x32xf32>
    %cst_200 = arith.constant dense<0.000000e+00> : vector<24x32xf32>
    %474 = tpu.matmul %464, %466, %cst_200 {dimension_numbers = #tpu.dot_dimension_numbers<[1], [0], [0], [1], [0, 0, 1, 1], [], []>} : vector<24x32xf32>, vector<32x32xf32>, vector<24x32xf32> -> vector<24x32xf32>
    %cst_201 = arith.constant dense<0.000000e+00> : vector<24x32xf32>
    %475 = tpu.matmul %464, %468, %cst_201 {dimension_numbers = #tpu.dot_dimension_numbers<[1], [0], [0], [1], [0, 0, 1, 1], [], []>} : vector<24x32xf32>, vector<32x32xf32>, vector<24x32xf32> -> vector<24x32xf32>
    %cst_202 = arith.constant dense<0.000000e+00> : vector<24x32xf32>
    %476 = tpu.matmul %464, %470, %cst_202 {dimension_numbers = #tpu.dot_dimension_numbers<[1], [0], [0], [1], [0, 0, 1, 1], [], []>} : vector<24x32xf32>, vector<32x32xf32>, vector<24x32xf32> -> vector<24x32xf32>
    %477 = vector.extract_strided_slice %0 {offsets = [0, 0], sizes = [1, 32], strides = [1, 1]} : vector<4x32xf32> to vector<1x32xf32>
    %478 = vector.broadcast %477 : vector<1x32xf32> to vector<24x32xf32>
    %479 = arith.mulf %474, %478 : vector<24x32xf32>
    %480 = vector.extract_strided_slice %0 {offsets = [1, 0], sizes = [1, 32], strides = [1, 1]} : vector<4x32xf32> to vector<1x32xf32>
    %481 = vector.broadcast %480 : vector<1x32xf32> to vector<24x32xf32>
    %482 = arith.mulf %474, %481 : vector<24x32xf32>
    %483 = vector.extract_strided_slice %0 {offsets = [2, 0], sizes = [1, 32], strides = [1, 1]} : vector<4x32xf32> to vector<1x32xf32>
    %484 = vector.broadcast %483 : vector<1x32xf32> to vector<24x32xf32>
    %485 = arith.mulf %474, %484 : vector<24x32xf32>
    %486 = vector.extract_strided_slice %0 {offsets = [3, 0], sizes = [1, 32], strides = [1, 1]} : vector<4x32xf32> to vector<1x32xf32>
    %487 = vector.broadcast %486 : vector<1x32xf32> to vector<24x32xf32>
    %488 = arith.mulf %474, %487 : vector<24x32xf32>
    %489 = tpu.concatenate %479, %482, %485, %488 in 0 : vector<24x32xf32>, vector<24x32xf32>, vector<24x32xf32>, vector<24x32xf32> -> vector<96x32xf32>
    %cst_203 = arith.constant dense<0.000000e+00> : vector<96x24xf32>
    %490 = tpu.matmul %489, %475, %cst_203 {dimension_numbers = #tpu.dot_dimension_numbers<[1], [1], [0], [0], [0, 0, 1, 0], [], []>} : vector<96x32xf32>, vector<24x32xf32>, vector<96x24xf32> -> vector<96x24xf32>
    %cst_204 = arith.constant 0.353553385 : f32
    %491 = vector.broadcast %cst_204 : f32 to vector<96x24xf32>
    %492 = arith.mulf %490, %491 : vector<96x24xf32>
    %493 = arith.addf %492, %2 : vector<96x24xf32>
    %cst_205 = arith.constant dense<0xFF800000> : vector<96xf32>
    %494 = vector.multi_reduction <maximumf>, %493, %cst_205 [1] : vector<96x24xf32> to vector<96xf32>
    %495 = vector.shape_cast %494 : vector<96xf32> to vector<96x1xf32>
    %496 = vector.broadcast %495 : vector<96x1xf32> to vector<96x24xf32>
    %497 = arith.subf %493, %496 : vector<96x24xf32>
    %498 = math.exp %497 : vector<96x24xf32>
    %cst_206 = arith.constant dense<0.000000e+00> : vector<96xf32>
    %499 = vector.multi_reduction <add>, %498, %cst_206 [1] : vector<96x24xf32> to vector<96xf32>
    %500 = vector.shape_cast %499 : vector<96xf32> to vector<96x1xf32>
    %501 = vector.broadcast %500 : vector<96x1xf32> to vector<96x24xf32>
    %502 = arith.divf %498, %501 : vector<96x24xf32>
    %cst_207 = arith.constant dense<0.000000e+00> : vector<96x32xf32>
    %503 = tpu.matmul %502, %476, %cst_207 {dimension_numbers = #tpu.dot_dimension_numbers<[1], [0], [0], [1], [0, 0, 1, 1], [], []>} : vector<96x24xf32>, vector<24x32xf32>, vector<96x32xf32> -> vector<96x32xf32>
    %504 = vector.extract_strided_slice %503 {offsets = [0, 0], sizes = [24, 32], strides = [1, 1]} : vector<96x32xf32> to vector<24x32xf32>
    %505 = vector.extract_strided_slice %0 {offsets = [0, 0], sizes = [1, 32], strides = [1, 1]} : vector<4x32xf32> to vector<1x32xf32>
    %506 = vector.broadcast %505 : vector<1x32xf32> to vector<24x32xf32>
    %507 = arith.mulf %504, %506 : vector<24x32xf32>
    %508 = vector.extract_strided_slice %503 {offsets = [24, 0], sizes = [24, 32], strides = [1, 1]} : vector<96x32xf32> to vector<24x32xf32>
    %509 = vector.extract_strided_slice %0 {offsets = [1, 0], sizes = [1, 32], strides = [1, 1]} : vector<4x32xf32> to vector<1x32xf32>
    %510 = vector.broadcast %509 : vector<1x32xf32> to vector<24x32xf32>
    %511 = arith.mulf %508, %510 : vector<24x32xf32>
    %512 = arith.addf %507, %511 : vector<24x32xf32>
    %513 = vector.extract_strided_slice %503 {offsets = [48, 0], sizes = [24, 32], strides = [1, 1]} : vector<96x32xf32> to vector<24x32xf32>
    %514 = vector.extract_strided_slice %0 {offsets = [2, 0], sizes = [1, 32], strides = [1, 1]} : vector<4x32xf32> to vector<1x32xf32>
    %515 = vector.broadcast %514 : vector<1x32xf32> to vector<24x32xf32>
    %516 = arith.mulf %513, %515 : vector<24x32xf32>
    %517 = arith.addf %512, %516 : vector<24x32xf32>
    %518 = vector.extract_strided_slice %503 {offsets = [72, 0], sizes = [24, 32], strides = [1, 1]} : vector<96x32xf32> to vector<24x32xf32>
    %519 = vector.extract_strided_slice %0 {offsets = [3, 0], sizes = [1, 32], strides = [1, 1]} : vector<4x32xf32> to vector<1x32xf32>
    %520 = vector.broadcast %519 : vector<1x32xf32> to vector<24x32xf32>
    %521 = arith.mulf %518, %520 : vector<24x32xf32>
    %522 = arith.addf %517, %521 : vector<24x32xf32>
    %cst_208 = arith.constant dense<0.000000e+00> : vector<24x32xf32>
    %523 = tpu.matmul %522, %472, %cst_208 {dimension_numbers = #tpu.dot_dimension_numbers<[1], [0], [0], [1], [0, 0, 1, 1], [], []>} : vector<24x32xf32>, vector<32x32xf32>, vector<24x32xf32> -> vector<24x32xf32>
    %524 = vector.broadcast %473 : vector<1x32xf32> to vector<24x32xf32>
    %525 = arith.addf %523, %524 : vector<24x32xf32>
    %c1_209 = arith.constant 1 : index
    %c8_210 = arith.constant 8 : index
    %c0_211 = arith.constant 0 : index
    %c0_212 = arith.constant 0 : index
    %526 = vector.load %arg3[%c1_209, %c8_210, %c0_211, %c0_212] : memref<2x13x32x32xf32, #tpu.memory_space<vmem>>, vector<1x1x32x32xf32>
    %527 = vector.shape_cast %526 : vector<1x1x32x32xf32> to vector<32x32xf32>
    %cst_213 = arith.constant dense<0.000000e+00> : vector<24x32xf32>
    %528 = tpu.matmul %525, %527, %cst_213 {dimension_numbers = #tpu.dot_dimension_numbers<[1], [0], [0], [1], [0, 0, 1, 1], [], []>} : vector<24x32xf32>, vector<32x32xf32>, vector<24x32xf32> -> vector<24x32xf32>
    %529 = vector.extract_strided_slice %357 {offsets = [10, 0], sizes = [1, 32], strides = [1, 1]} : vector<13x32xf32> to vector<1x32xf32>
    %530 = vector.broadcast %529 : vector<1x32xf32> to vector<24x32xf32>
    %531 = arith.addf %528, %530 : vector<24x32xf32>
    %cst_214 = arith.constant dense<0.000000e+00> : vector<24x32xf32>
    %532 = tpu.matmul %6, %441, %cst_214 {dimension_numbers = #tpu.dot_dimension_numbers<[1], [0], [0], [1], [0, 0, 1, 1], [], []>} : vector<24x32xf32>, vector<32x32xf32>, vector<24x32xf32> -> vector<24x32xf32>
    %533 = arith.addf %532, %531 : vector<24x32xf32>
    %cst_215 = arith.constant dense<0.000000e+00> : vector<8x32xf32>
    %534 = tpu.matmul %5, %441, %cst_215 {dimension_numbers = #tpu.dot_dimension_numbers<[1], [0], [0], [1], [0, 0, 1, 1], [], []>} : vector<8x32xf32>, vector<32x32xf32>, vector<8x32xf32> -> vector<8x32xf32>
    %c1_216 = arith.constant 1 : index
    %c9_217 = arith.constant 9 : index
    %c0_218 = arith.constant 0 : index
    %c0_219 = arith.constant 0 : index
    %535 = vector.load %arg3[%c1_216, %c9_217, %c0_218, %c0_219] : memref<2x13x32x32xf32, #tpu.memory_space<vmem>>, vector<1x1x32x32xf32>
    %536 = vector.shape_cast %535 : vector<1x1x32x32xf32> to vector<32x32xf32>
    %c1_220 = arith.constant 1 : index
    %c10_221 = arith.constant 10 : index
    %c0_222 = arith.constant 0 : index
    %c0_223 = arith.constant 0 : index
    %537 = vector.load %arg3[%c1_220, %c10_221, %c0_222, %c0_223] : memref<2x13x32x32xf32, #tpu.memory_space<vmem>>, vector<1x1x32x32xf32>
    %538 = vector.shape_cast %537 : vector<1x1x32x32xf32> to vector<32x32xf32>
    %c1_224 = arith.constant 1 : index
    %c11_225 = arith.constant 11 : index
    %c0_226 = arith.constant 0 : index
    %c0_227 = arith.constant 0 : index
    %539 = vector.load %arg3[%c1_224, %c11_225, %c0_226, %c0_227] : memref<2x13x32x32xf32, #tpu.memory_space<vmem>>, vector<1x1x32x32xf32>
    %540 = vector.shape_cast %539 : vector<1x1x32x32xf32> to vector<32x32xf32>
    %c1_228 = arith.constant 1 : index
    %c12_229 = arith.constant 12 : index
    %c0_230 = arith.constant 0 : index
    %c0_231 = arith.constant 0 : index
    %541 = vector.load %arg3[%c1_228, %c12_229, %c0_230, %c0_231] : memref<2x13x32x32xf32, #tpu.memory_space<vmem>>, vector<1x1x32x32xf32>
    %542 = vector.shape_cast %541 : vector<1x1x32x32xf32> to vector<32x32xf32>
    %543 = vector.extract_strided_slice %357 {offsets = [11, 0], sizes = [1, 32], strides = [1, 1]} : vector<13x32xf32> to vector<1x32xf32>
    %cst_232 = arith.constant dense<0.000000e+00> : vector<8x32xf32>
    %544 = tpu.matmul %534, %536, %cst_232 {dimension_numbers = #tpu.dot_dimension_numbers<[1], [0], [0], [1], [0, 0, 1, 1], [], []>} : vector<8x32xf32>, vector<32x32xf32>, vector<8x32xf32> -> vector<8x32xf32>
    %cst_233 = arith.constant dense<0.000000e+00> : vector<24x32xf32>
    %545 = tpu.matmul %533, %538, %cst_233 {dimension_numbers = #tpu.dot_dimension_numbers<[1], [0], [0], [1], [0, 0, 1, 1], [], []>} : vector<24x32xf32>, vector<32x32xf32>, vector<24x32xf32> -> vector<24x32xf32>
    %cst_234 = arith.constant dense<0.000000e+00> : vector<24x32xf32>
    %546 = tpu.matmul %533, %540, %cst_234 {dimension_numbers = #tpu.dot_dimension_numbers<[1], [0], [0], [1], [0, 0, 1, 1], [], []>} : vector<24x32xf32>, vector<32x32xf32>, vector<24x32xf32> -> vector<24x32xf32>
    %547 = vector.extract_strided_slice %0 {offsets = [0, 0], sizes = [1, 32], strides = [1, 1]} : vector<4x32xf32> to vector<1x32xf32>
    %548 = vector.broadcast %547 : vector<1x32xf32> to vector<8x32xf32>
    %549 = arith.mulf %544, %548 : vector<8x32xf32>
    %550 = vector.extract_strided_slice %0 {offsets = [1, 0], sizes = [1, 32], strides = [1, 1]} : vector<4x32xf32> to vector<1x32xf32>
    %551 = vector.broadcast %550 : vector<1x32xf32> to vector<8x32xf32>
    %552 = arith.mulf %544, %551 : vector<8x32xf32>
    %553 = vector.extract_strided_slice %0 {offsets = [2, 0], sizes = [1, 32], strides = [1, 1]} : vector<4x32xf32> to vector<1x32xf32>
    %554 = vector.broadcast %553 : vector<1x32xf32> to vector<8x32xf32>
    %555 = arith.mulf %544, %554 : vector<8x32xf32>
    %556 = vector.extract_strided_slice %0 {offsets = [3, 0], sizes = [1, 32], strides = [1, 1]} : vector<4x32xf32> to vector<1x32xf32>
    %557 = vector.broadcast %556 : vector<1x32xf32> to vector<8x32xf32>
    %558 = arith.mulf %544, %557 : vector<8x32xf32>
    %559 = tpu.concatenate %549, %552, %555, %558 in 0 : vector<8x32xf32>, vector<8x32xf32>, vector<8x32xf32>, vector<8x32xf32> -> vector<32x32xf32>
    %cst_235 = arith.constant dense<0.000000e+00> : vector<32x24xf32>
    %560 = tpu.matmul %559, %545, %cst_235 {dimension_numbers = #tpu.dot_dimension_numbers<[1], [1], [0], [0], [0, 0, 1, 0], [], []>} : vector<32x32xf32>, vector<24x32xf32>, vector<32x24xf32> -> vector<32x24xf32>
    %cst_236 = arith.constant 0.176776692 : f32
    %561 = vector.broadcast %cst_236 : f32 to vector<32x24xf32>
    %562 = arith.mulf %560, %561 : vector<32x24xf32>
    %563 = arith.addf %562, %3 : vector<32x24xf32>
    %cst_237 = arith.constant dense<0xFF800000> : vector<32xf32>
    %564 = vector.multi_reduction <maximumf>, %563, %cst_237 [1] : vector<32x24xf32> to vector<32xf32>
    %565 = vector.shape_cast %564 : vector<32xf32> to vector<32x1xf32>
    %566 = vector.broadcast %565 : vector<32x1xf32> to vector<32x24xf32>
    %567 = arith.subf %563, %566 : vector<32x24xf32>
    %568 = math.exp %567 : vector<32x24xf32>
    %cst_238 = arith.constant dense<0.000000e+00> : vector<32xf32>
    %569 = vector.multi_reduction <add>, %568, %cst_238 [1] : vector<32x24xf32> to vector<32xf32>
    %570 = vector.shape_cast %569 : vector<32xf32> to vector<32x1xf32>
    %571 = vector.broadcast %570 : vector<32x1xf32> to vector<32x24xf32>
    %572 = arith.divf %568, %571 : vector<32x24xf32>
    %cst_239 = arith.constant dense<0.000000e+00> : vector<32x32xf32>
    %573 = tpu.matmul %572, %546, %cst_239 {dimension_numbers = #tpu.dot_dimension_numbers<[1], [0], [0], [1], [0, 0, 1, 1], [], []>} : vector<32x24xf32>, vector<24x32xf32>, vector<32x32xf32> -> vector<32x32xf32>
    %574 = vector.extract_strided_slice %573 {offsets = [0, 0], sizes = [8, 32], strides = [1, 1]} : vector<32x32xf32> to vector<8x32xf32>
    %575 = vector.extract_strided_slice %0 {offsets = [0, 0], sizes = [1, 32], strides = [1, 1]} : vector<4x32xf32> to vector<1x32xf32>
    %576 = vector.broadcast %575 : vector<1x32xf32> to vector<8x32xf32>
    %577 = arith.mulf %574, %576 : vector<8x32xf32>
    %578 = vector.extract_strided_slice %573 {offsets = [8, 0], sizes = [8, 32], strides = [1, 1]} : vector<32x32xf32> to vector<8x32xf32>
    %579 = vector.extract_strided_slice %0 {offsets = [1, 0], sizes = [1, 32], strides = [1, 1]} : vector<4x32xf32> to vector<1x32xf32>
    %580 = vector.broadcast %579 : vector<1x32xf32> to vector<8x32xf32>
    %581 = arith.mulf %578, %580 : vector<8x32xf32>
    %582 = arith.addf %577, %581 : vector<8x32xf32>
    %583 = vector.extract_strided_slice %573 {offsets = [16, 0], sizes = [8, 32], strides = [1, 1]} : vector<32x32xf32> to vector<8x32xf32>
    %584 = vector.extract_strided_slice %0 {offsets = [2, 0], sizes = [1, 32], strides = [1, 1]} : vector<4x32xf32> to vector<1x32xf32>
    %585 = vector.broadcast %584 : vector<1x32xf32> to vector<8x32xf32>
    %586 = arith.mulf %583, %585 : vector<8x32xf32>
    %587 = arith.addf %582, %586 : vector<8x32xf32>
    %588 = vector.extract_strided_slice %573 {offsets = [24, 0], sizes = [8, 32], strides = [1, 1]} : vector<32x32xf32> to vector<8x32xf32>
    %589 = vector.extract_strided_slice %0 {offsets = [3, 0], sizes = [1, 32], strides = [1, 1]} : vector<4x32xf32> to vector<1x32xf32>
    %590 = vector.broadcast %589 : vector<1x32xf32> to vector<8x32xf32>
    %591 = arith.mulf %588, %590 : vector<8x32xf32>
    %592 = arith.addf %587, %591 : vector<8x32xf32>
    %cst_240 = arith.constant dense<0.000000e+00> : vector<8x32xf32>
    %593 = tpu.matmul %592, %542, %cst_240 {dimension_numbers = #tpu.dot_dimension_numbers<[1], [0], [0], [1], [0, 0, 1, 1], [], []>} : vector<8x32xf32>, vector<32x32xf32>, vector<8x32xf32> -> vector<8x32xf32>
    %594 = vector.broadcast %543 : vector<1x32xf32> to vector<8x32xf32>
    %595 = arith.addf %593, %594 : vector<8x32xf32>
    %596 = vector.extract_strided_slice %357 {offsets = [4, 0], sizes = [1, 32], strides = [1, 1]} : vector<13x32xf32> to vector<1x32xf32>
    %597 = vector.extract_strided_slice %357 {offsets = [5, 0], sizes = [1, 32], strides = [1, 1]} : vector<13x32xf32> to vector<1x32xf32>
    %cst_241 = arith.constant dense<0.000000e+00> : vector<8xf32>
    %598 = vector.multi_reduction <add>, %595, %cst_241 [1] : vector<8x32xf32> to vector<8xf32>
    %599 = vector.shape_cast %598 : vector<8xf32> to vector<8x1xf32>
    %cst_242 = arith.constant 3.200000e+01 : f32
    %600 = vector.broadcast %cst_242 : f32 to vector<8x1xf32>
    %601 = arith.divf %599, %600 : vector<8x1xf32>
    %602 = vector.broadcast %601 : vector<8x1xf32> to vector<8x32xf32>
    %603 = arith.subf %595, %602 : vector<8x32xf32>
    %604 = arith.mulf %603, %603 : vector<8x32xf32>
    %cst_243 = arith.constant dense<0.000000e+00> : vector<8xf32>
    %605 = vector.multi_reduction <add>, %604, %cst_243 [1] : vector<8x32xf32> to vector<8xf32>
    %606 = vector.shape_cast %605 : vector<8xf32> to vector<8x1xf32>
    %cst_244 = arith.constant 3.200000e+01 : f32
    %607 = vector.broadcast %cst_244 : f32 to vector<8x1xf32>
    %608 = arith.divf %606, %607 : vector<8x1xf32>
    %cst_245 = arith.constant 9.99999974E-6 : f32
    %609 = vector.broadcast %cst_245 : f32 to vector<8x1xf32>
    %610 = arith.addf %608, %609 : vector<8x1xf32>
    %611 = math.rsqrt %610 : vector<8x1xf32>
    %612 = vector.broadcast %611 : vector<8x1xf32> to vector<8x32xf32>
    %613 = arith.mulf %603, %612 : vector<8x32xf32>
    %614 = vector.broadcast %596 : vector<1x32xf32> to vector<8x32xf32>
    %615 = arith.mulf %613, %614 : vector<8x32xf32>
    %616 = vector.broadcast %597 : vector<1x32xf32> to vector<8x32xf32>
    %617 = arith.addf %615, %616 : vector<8x32xf32>
    %cst_246 = arith.constant dense<0.000000e+00> : vector<32x32xf32>
    %618 = tpu.matmul %7, %617, %cst_246 {dimension_numbers = #tpu.dot_dimension_numbers<[1], [0], [0], [1], [0, 0, 1, 1], [], []>} : vector<32x8xf32>, vector<8x32xf32>, vector<32x32xf32> -> vector<32x32xf32>
    %619 = arith.addf %441, %618 : vector<32x32xf32>
    %cst_247 = arith.constant dense<0.000000e+00> : vector<32x32xf32>
    %620 = tpu.matmul %8, %531, %cst_247 {dimension_numbers = #tpu.dot_dimension_numbers<[1], [0], [0], [1], [0, 0, 1, 1], [], []>} : vector<32x24xf32>, vector<24x32xf32>, vector<32x32xf32> -> vector<32x32xf32>
    %621 = arith.addf %619, %620 : vector<32x32xf32>
    %622 = vector.extract_strided_slice %357 {offsets = [6, 0], sizes = [1, 32], strides = [1, 1]} : vector<13x32xf32> to vector<1x32xf32>
    %623 = vector.extract_strided_slice %357 {offsets = [7, 0], sizes = [1, 32], strides = [1, 1]} : vector<13x32xf32> to vector<1x32xf32>
    %cst_248 = arith.constant dense<0.000000e+00> : vector<32xf32>
    %624 = vector.multi_reduction <add>, %621, %cst_248 [1] : vector<32x32xf32> to vector<32xf32>
    %625 = vector.shape_cast %624 : vector<32xf32> to vector<32x1xf32>
    %cst_249 = arith.constant 3.200000e+01 : f32
    %626 = vector.broadcast %cst_249 : f32 to vector<32x1xf32>
    %627 = arith.divf %625, %626 : vector<32x1xf32>
    %628 = vector.broadcast %627 : vector<32x1xf32> to vector<32x32xf32>
    %629 = arith.subf %621, %628 : vector<32x32xf32>
    %630 = arith.mulf %629, %629 : vector<32x32xf32>
    %cst_250 = arith.constant dense<0.000000e+00> : vector<32xf32>
    %631 = vector.multi_reduction <add>, %630, %cst_250 [1] : vector<32x32xf32> to vector<32xf32>
    %632 = vector.shape_cast %631 : vector<32xf32> to vector<32x1xf32>
    %cst_251 = arith.constant 3.200000e+01 : f32
    %633 = vector.broadcast %cst_251 : f32 to vector<32x1xf32>
    %634 = arith.divf %632, %633 : vector<32x1xf32>
    %cst_252 = arith.constant 9.99999974E-6 : f32
    %635 = vector.broadcast %cst_252 : f32 to vector<32x1xf32>
    %636 = arith.addf %634, %635 : vector<32x1xf32>
    %637 = math.rsqrt %636 : vector<32x1xf32>
    %638 = vector.broadcast %637 : vector<32x1xf32> to vector<32x32xf32>
    %639 = arith.mulf %629, %638 : vector<32x32xf32>
    %640 = vector.broadcast %622 : vector<1x32xf32> to vector<32x32xf32>
    %641 = arith.mulf %639, %640 : vector<32x32xf32>
    %642 = vector.broadcast %623 : vector<1x32xf32> to vector<32x32xf32>
    %643 = arith.addf %641, %642 : vector<32x32xf32>
    %c1_253 = arith.constant 1 : index
    %c0_254 = arith.constant 0 : index
    %c0_255 = arith.constant 0 : index
    %644 = vector.load %arg5[%c1_253, %c0_254, %c0_255] : memref<2x32x128xf32, #tpu.memory_space<vmem>>, vector<1x32x128xf32>
    %645 = vector.shape_cast %644 : vector<1x32x128xf32> to vector<32x128xf32>
    %cst_256 = arith.constant dense<0.000000e+00> : vector<32x128xf32>
    %646 = tpu.matmul %643, %645, %cst_256 {dimension_numbers = #tpu.dot_dimension_numbers<[1], [0], [0], [1], [0, 0, 1, 1], [], []>} : vector<32x32xf32>, vector<32x128xf32>, vector<32x128xf32> -> vector<32x128xf32>
    %c1_257 = arith.constant 1 : index
    %c0_258 = arith.constant 0 : index
    %c0_259 = arith.constant 0 : index
    %647 = vector.load %arg6[%c1_257, %c0_258, %c0_259] : memref<2x1x128xf32, #tpu.memory_space<vmem>>, vector<1x1x128xf32>
    %648 = vector.shape_cast %647 : vector<1x1x128xf32> to vector<1x128xf32>
    %649 = vector.broadcast %648 : vector<1x128xf32> to vector<32x128xf32>
    %650 = arith.addf %646, %649 : vector<32x128xf32>
    %cst_260 = arith.constant 0.707106769 : f32
    %651 = vector.broadcast %cst_260 : f32 to vector<32x128xf32>
    %652 = arith.mulf %650, %651 : vector<32x128xf32>
    %653 = math.absf %652 : vector<32x128xf32>
    %cst_261 = arith.constant 0.327591091 : f32
    %654 = vector.broadcast %cst_261 : f32 to vector<32x128xf32>
    %655 = arith.mulf %654, %653 : vector<32x128xf32>
    %cst_262 = arith.constant 1.000000e+00 : f32
    %656 = vector.broadcast %cst_262 : f32 to vector<32x128xf32>
    %657 = arith.addf %656, %655 : vector<32x128xf32>
    %cst_263 = arith.constant 1.000000e+00 : f32
    %658 = vector.broadcast %cst_263 : f32 to vector<32x128xf32>
    %659 = arith.divf %658, %657 : vector<32x128xf32>
    %cst_264 = arith.constant 1.06140542 : f32
    %660 = vector.broadcast %cst_264 : f32 to vector<32x128xf32>
    %661 = arith.mulf %659, %660 : vector<32x128xf32>
    %cst_265 = arith.constant -1.45315206 : f32
    %662 = vector.broadcast %cst_265 : f32 to vector<32x128xf32>
    %663 = arith.addf %662, %661 : vector<32x128xf32>
    %664 = arith.mulf %659, %663 : vector<32x128xf32>
    %cst_266 = arith.constant 1.42141378 : f32
    %665 = vector.broadcast %cst_266 : f32 to vector<32x128xf32>
    %666 = arith.addf %665, %664 : vector<32x128xf32>
    %667 = arith.mulf %659, %666 : vector<32x128xf32>
    %cst_267 = arith.constant -0.284496725 : f32
    %668 = vector.broadcast %cst_267 : f32 to vector<32x128xf32>
    %669 = arith.addf %668, %667 : vector<32x128xf32>
    %670 = arith.mulf %659, %669 : vector<32x128xf32>
    %cst_268 = arith.constant 0.254829586 : f32
    %671 = vector.broadcast %cst_268 : f32 to vector<32x128xf32>
    %672 = arith.addf %671, %670 : vector<32x128xf32>
    %673 = arith.mulf %659, %672 : vector<32x128xf32>
    %cst_269 = arith.constant 0.000000e+00 : f32
    %674 = vector.broadcast %cst_269 : f32 to vector<32x128xf32>
    %675 = arith.subf %674, %653 : vector<32x128xf32>
    %676 = arith.mulf %675, %653 : vector<32x128xf32>
    %677 = math.exp %676 : vector<32x128xf32>
    %678 = arith.mulf %673, %677 : vector<32x128xf32>
    %cst_270 = arith.constant 1.000000e+00 : f32
    %679 = vector.broadcast %cst_270 : f32 to vector<32x128xf32>
    %680 = arith.subf %679, %678 : vector<32x128xf32>
    %cst_271 = arith.constant 0.000000e+00 : f32
    %681 = vector.broadcast %cst_271 : f32 to vector<32x128xf32>
    %682 = arith.cmpf oge, %652, %681 : vector<32x128xf32>
    %cst_272 = arith.constant 0.000000e+00 : f32
    %683 = vector.broadcast %cst_272 : f32 to vector<32x128xf32>
    %684 = arith.subf %683, %680 : vector<32x128xf32>
    %685 = arith.select %682, %680, %684 : vector<32x128xi1>, vector<32x128xf32>
    %cst_273 = arith.constant 5.000000e-01 : f32
    %686 = vector.broadcast %cst_273 : f32 to vector<32x128xf32>
    %687 = arith.mulf %686, %650 : vector<32x128xf32>
    %cst_274 = arith.constant 1.000000e+00 : f32
    %688 = vector.broadcast %cst_274 : f32 to vector<32x128xf32>
    %689 = arith.addf %688, %685 : vector<32x128xf32>
    %690 = arith.mulf %687, %689 : vector<32x128xf32>
    %c1_275 = arith.constant 1 : index
    %c0_276 = arith.constant 0 : index
    %c0_277 = arith.constant 0 : index
    %691 = vector.load %arg7[%c1_275, %c0_276, %c0_277] : memref<2x128x32xf32, #tpu.memory_space<vmem>>, vector<1x128x32xf32>
    %692 = vector.shape_cast %691 : vector<1x128x32xf32> to vector<128x32xf32>
    %cst_278 = arith.constant dense<0.000000e+00> : vector<32x32xf32>
    %693 = tpu.matmul %690, %692, %cst_278 {dimension_numbers = #tpu.dot_dimension_numbers<[1], [0], [0], [1], [0, 0, 1, 1], [], []>} : vector<32x128xf32>, vector<128x32xf32>, vector<32x32xf32> -> vector<32x32xf32>
    %694 = arith.addf %621, %693 : vector<32x32xf32>
    %695 = vector.extract_strided_slice %357 {offsets = [12, 0], sizes = [1, 32], strides = [1, 1]} : vector<13x32xf32> to vector<1x32xf32>
    %696 = vector.broadcast %695 : vector<1x32xf32> to vector<32x32xf32>
    %697 = arith.addf %694, %696 : vector<32x32xf32>
    %c0_279 = arith.constant 0 : index
    %c0_280 = arith.constant 0 : index
    %698 = vector.load %arg8[%c0_279, %c0_280] : memref<2x32xf32, #tpu.memory_space<vmem>>, vector<2x32xf32>
    %699 = vector.extract_strided_slice %698 {offsets = [0, 0], sizes = [1, 32], strides = [1, 1]} : vector<2x32xf32> to vector<1x32xf32>
    %700 = vector.extract_strided_slice %698 {offsets = [1, 0], sizes = [1, 32], strides = [1, 1]} : vector<2x32xf32> to vector<1x32xf32>
    %cst_281 = arith.constant dense<0.000000e+00> : vector<32xf32>
    %701 = vector.multi_reduction <add>, %697, %cst_281 [1] : vector<32x32xf32> to vector<32xf32>
    %702 = vector.shape_cast %701 : vector<32xf32> to vector<32x1xf32>
    %cst_282 = arith.constant 3.200000e+01 : f32
    %703 = vector.broadcast %cst_282 : f32 to vector<32x1xf32>
    %704 = arith.divf %702, %703 : vector<32x1xf32>
    %705 = vector.broadcast %704 : vector<32x1xf32> to vector<32x32xf32>
    %706 = arith.subf %697, %705 : vector<32x32xf32>
    %707 = arith.mulf %706, %706 : vector<32x32xf32>
    %cst_283 = arith.constant dense<0.000000e+00> : vector<32xf32>
    %708 = vector.multi_reduction <add>, %707, %cst_283 [1] : vector<32x32xf32> to vector<32xf32>
    %709 = vector.shape_cast %708 : vector<32xf32> to vector<32x1xf32>
    %cst_284 = arith.constant 3.200000e+01 : f32
    %710 = vector.broadcast %cst_284 : f32 to vector<32x1xf32>
    %711 = arith.divf %709, %710 : vector<32x1xf32>
    %cst_285 = arith.constant 9.99999974E-6 : f32
    %712 = vector.broadcast %cst_285 : f32 to vector<32x1xf32>
    %713 = arith.addf %711, %712 : vector<32x1xf32>
    %714 = math.rsqrt %713 : vector<32x1xf32>
    %715 = vector.broadcast %714 : vector<32x1xf32> to vector<32x32xf32>
    %716 = arith.mulf %706, %715 : vector<32x32xf32>
    %717 = vector.broadcast %699 : vector<1x32xf32> to vector<32x32xf32>
    %718 = arith.mulf %716, %717 : vector<32x32xf32>
    %719 = vector.broadcast %700 : vector<1x32xf32> to vector<32x32xf32>
    %720 = arith.addf %718, %719 : vector<32x32xf32>
    %c0_286 = arith.constant 0 : index
    %c0_287 = arith.constant 0 : index
    %721 = vector.load %arg17[%c0_286, %c0_287] : memref<16x32xf32, #tpu.memory_space<vmem>>, vector<16x32xf32>
    %cst_288 = arith.constant dense<0.000000e+00> : vector<16x32xf32>
    %722 = tpu.matmul %721, %720, %cst_288 {dimension_numbers = #tpu.dot_dimension_numbers<[1], [0], [0], [1], [0, 0, 1, 1], [], []>} : vector<16x32xf32>, vector<32x32xf32>, vector<16x32xf32> -> vector<16x32xf32>
    %c0_289 = arith.constant 0 : index
    %c0_290 = arith.constant 0 : index
    %723 = vector.load %arg19[%c0_289, %c0_290] : memref<16x32xf32, #tpu.memory_space<vmem>>, vector<16x32xf32>
    tpu.vector_store %arg19[%c0_289, %c0_290], %722 {strides = array<i32>} : memref<16x32xf32, #tpu.memory_space<vmem>>, vector<16x32xf32>,
    return
  }
}

</mosaic_0001>

<bundles_post_ra>
// kernel: encoder_forward.1
= control target key start
LH: loop header
LB: loop body
LE: loop exit
PB: predicated region body
PF: predicated region fallthrough
CT: control target
= control target key end

     0   :  { %v10246_v0 = vmov 0.0|0.0   ;;  %vm146_vm0 = vcmask 523264   ;;  %vm246_vm1 = vcmask 261120   ;;  %vm10247_vm3 = vmmov 0   ;;  %s12719_s1 = inlined_call_operand.vmem [shape: f32[192,32], index: 1, kind: input, shape index: {}]   ;;  %s12720_s0 = inlined_call_operand.vmem [shape: f32[32,192], index: 0, kind: input, shape index: {}]   ;;  %s12721_s2 = inlined_call_operand.vmem [shape: f32[32,32], index: 2, kind: input, shape index: {}]   ;;  %s12722_s3 = inlined_call_operand.vmem [shape: f32[2,13,32,32], index: 3, kind: input, shape index: {}]   ;;  %s12723_s4 = inlined_call_operand.vmem [shape: f32[2,13,32], index: 4, kind: input, shape index: {}]   ;;  %s12724_s18 = inlined_call_operand.vmem [shape: f32[4,32], index: 18, kind: input, shape index: {}]   ;;  %s12725_s9 = inlined_call_operand.vmem [shape: f32[128,32], index: 9, kind: input, shape index: {}]   ;;  %s12726_s12 = inlined_call_operand.vmem [shape: f32[24,32], index: 12, kind: input, shape index: {}]   ;;  %s12727_s10 = inlined_call_operand.vmem [shape: f32[96,24], index: 10, kind: input, shape index: {}]   ;;  %s12728_s14 = inlined_call_operand.vmem [shape: f32[24,32], index: 14, kind: input, shape index: {}]   ;;  %s12729_s13 = inlined_call_operand.vmem [shape: f32[8,32], index: 13, kind: input, shape index: {}]   ;;  %s12730_s11 = inlined_call_operand.vmem [shape: f32[32,24], index: 11, kind: input, shape index: {}]   ;;  %s12731_s15 = inlined_call_operand.vmem [shape: f32[32,8], index: 15, kind: input, shape index: {}]   ;;  %s12732_s16 = inlined_call_operand.vmem [shape: f32[32,24], index: 16, kind: input, shape index: {}]   ;;  %s12733_s5 = inlined_call_operand.vmem [shape: f32[2,32,128], index: 5, kind: input, shape index: {}]   ;;  %s12734_s7 = inlined_call_operand.vmem [shape: f32[2,128,32], index: 7, kind: input, shape index: {}]   ;;  %s12735_s6 = inlined_call_operand.vmem [shape: f32[2,1,128], index: 6, kind: input, shape index: {}]   ;;  %s12736_s17 = inlined_call_operand.vmem [shape: f32[16,32], index: 17, kind: input, shape index: {}]   ;;  %s12737_s8 = inlined_call_operand.vmem [shape: f32[2,32], index: 8, kind: input, shape index: {}]   ;;  %s12738_s19 = inlined_call_operand.vmem [shape: f32[16,32], index: 19, kind: output, shape index: {}]  }
   0x1   :  { %12743 = sst [smem:[#allocation2_spill]] %s12719_s1  ;;  %9406 = vmatprep.subr.bf16.mxu0 %v10246_v0  ;;  %vm10578_vm2 = vmpackc.low %vm246_vm1, %vm246_vm1  ;;  %vm1990_vm4 = vcmask 195584   ;;  %vm3286_vm5 = vcmask 64512  }
   0x2   :  { %12744 = sst [smem:[#allocation3_spill]] %s12720_s0  ;;  %s12747_s20 = sld [smem:[#allocation2_spill]] }
   0x3   :  { %12745 = sst [smem:[#allocation4_spill]] %s12721_s2  ;;  %s12748_s22 = sld [smem:[#allocation3_spill]] }
   0x4   :  { %12746 = sst [smem:[#allocation5_spill]] %s12722_s3  ;;  %s12749_s29 = sld [smem:[#allocation4_spill]] }
   0x5   :  { %s12750_s24 = sld [smem:[#allocation5_spill]] }
   0x8   :  { %v118_v1 = vld [vmem:[%s12747_s20] sm:$0xff]  ;;  %v119_v2 = vld [vmem:[%s12747_s20 + $0x8] sm:$0xff]  ;;  %v120_v3 = vld [vmem:[%s12747_s20 + $0x10] sm:$0xff] }
   0x9   :  { %v9407_v4 = vpack.c.bf16 %v119_v2, %v118_v1  ;;  %v121_v5 = vld [vmem:[%s12747_s20 + $0x18] sm:$0xff]  ;;  %v122_v7 = vld [vmem:[%s12747_s20 + $0x20] sm:$0xff]  ;;  %v123_v8 = vld [vmem:[%s12747_s20 + $0x28] sm:$0xff] }
   0xa   :  { %v9410_v6 = vpack.c.bf16 %v121_v5, %v120_v3  ;;  %v9413_v9 = vpack.c.bf16 %v123_v8, %v122_v7  ;;  %v124_v10 = vld [vmem:[%s12747_s20 + $0x30] sm:$0xff]  ;;  %v125_v11 = vld [vmem:[%s12747_s20 + $0x38] sm:$0xff]  ;;  %v111_v12 = vld [vmem:[%s12748_s22 + $0x8] sm:$0xff] }
   0xb   :  { %9408 = vmatpush1.bf16.msra.mxu0 %v9407_v4  ;;  %7626 = vmatprep.mubr.msk.f32.mxu0 %vm146_vm0, %v111_v12  ;;  %v9416_v13 = vpack.c.bf16 %v125_v11, %v124_v10  ;;  %v126_v14 = vld [vmem:[%s12747_s20 + $0x40] sm:$0xff]  ;;  %v127_v15 = vld [vmem:[%s12747_s20 + $0x48] sm:$0xff]  ;;  %v128_v17 = vld [vmem:[%s12747_s20 + $0x50] sm:$0xff] }
   0xc   :  { %9409 = vmatprep.subr.bf16.mxu0 %v10246_v0  ;;  %v9419_v16 = vpack.c.bf16 %v127_v15, %v126_v14  ;;  %v129_v18 = vld [vmem:[%s12747_s20 + $0x58] sm:$0xff]  ;;  %v130_v20 = vld [vmem:[%s12747_s20 + $0x60] sm:$0xff]  ;;  %v131_v21 = vld [vmem:[%s12747_s20 + $0x68] sm:$0xff] }
   0xd   :  { %v9422_v19 = vpack.c.bf16 %v129_v18, %v128_v17  ;;  %v9425_v22 = vpack.c.bf16 %v131_v21, %v130_v20  ;;  %v132_v23 = vld [vmem:[%s12747_s20 + $0x70] sm:$0xff]  ;;  %v133_v24 = vld [vmem:[%s12747_s20 + $0x78] sm:$0xff]  ;;  %v134_v26 = vld [vmem:[%s12747_s20 + $0x80] sm:$0xff] }
   0xe   :  { %v9428_v25 = vpack.c.bf16 %v133_v24, %v132_v23  ;;  %v135_v27 = vld [vmem:[%s12747_s20 + $0x88] sm:$0xff]  ;;  %v136_v29 = vld [vmem:[%s12747_s20 + $0x90] sm:$0xff]  ;;  %v137_v30 = vld [vmem:[%s12747_s20 + $0x98] sm:$0xff] }
   0xf   :  { %9411 = vmatpush1.bf16.msra.mxu0 %v9410_v6  ;;  %v9431_v28 = vpack.c.bf16 %v135_v27, %v134_v26  ;;  %v9434_v31 = vpack.c.bf16 %v137_v30, %v136_v29  ;;  %v138_v32 = vld [vmem:[%s12747_s20 + $0xa0] sm:$0xff]  ;;  %v139_v33 = vld [vmem:[%s12747_s20 + $0xa8] sm:$0xff]  ;;  %v140_v35 = vld [vmem:[%s12747_s20 + $0xb0] sm:$0xff] }
  0x10   :  { %9412 = vmatprep.subr.bf16.mxu0 %v10246_v0  ;;  %v9437_v34 = vpack.c.bf16 %v139_v33, %v138_v32  ;;  %v141_v36 = vld [vmem:[%s12747_s20 + $0xb8] sm:$0xff]  ;;  %v110_v38 = vld [vmem:[%s12748_s22] sm:$0xff]  ;;  %v112_v40 = vld [vmem:[%s12748_s22 + $0x10] sm:$0xff]  ;;  %v300_v33 = vlaneseq }
  0x11   :  { %v9440_v37 = vpack.c.bf16 %v141_v36, %v140_v35  ;;  %v113_v39 = vld [vmem:[%s12748_s22 + $0x18] sm:$0xff]  ;;  %v115_v41 = vld [vmem:[%s12748_s22 + $0x28] sm:$0xff]  ;;  %v114_v42 = vld [vmem:[%s12748_s22 + $0x20] sm:$0xff] }
  0x12   :  { %v117_v43 = vld [vmem:[%s12748_s22 + $0x38] sm:$0xff]  ;;  %v116_v44 = vld [vmem:[%s12748_s22 + $0x30] sm:$0xff]  ;;  %v142_v45 = vld [vmem:[%s12749_s29] sm:$0xff] }
  0x13   :  { %9414 = vmatpush1.bf16.msra.mxu0 %v9413_v9  ;;  %v143_v49 = vld [vmem:[%s12749_s29 + $0x8] sm:$0xff]  ;;  %v144_v54 = vld [vmem:[%s12749_s29 + $0x10] sm:$0xff]  ;;  %v145_v59 = vld [vmem:[%s12749_s29 + $0x18] sm:$0xff] }
  0x14   :  { %9415 = vmatprep.subr.bf16.mxu0 %v10246_v0  ;;  %v317_v23 = vld [vmem:[%s12750_s24 + $0x8] sm:$0xff]  ;;  %v319_v26 = vld [vmem:[%s12750_s24 + $0x18] sm:$0xff] }
  0x15   :  { %v7631_v29 = vld [vmem:[%s12750_s24 + $0x28] sm:$0xff] }
  0x17   :  { %9417 = vmatpush1.bf16.msra.mxu0 %v9416_v13 }
  0x18   :  { %9418 = vmatprep.subr.bf16.mxu0 %v10246_v0 }
  0x1b   :  { %9420 = vmatpush1.bf16.msra.mxu0 %v9419_v16 }
  0x1c   :  { %9421 = vmatprep.subr.bf16.mxu0 %v10246_v0 }
  0x1f   :  { %9423 = vmatpush1.bf16.msra.mxu0 %v9422_v19 }
  0x20   :  { %9424 = vmatprep.subr.bf16.mxu0 %v10246_v0 }
  0x23   :  { %9426 = vmatpush1.bf16.msra.mxu0 %v9425_v22  ;;  %v316_v22 = vld [vmem:[%s12750_s24] sm:$0xff] }
  0x24   :  { %9427 = vmatprep.subr.bf16.mxu0 %v10246_v0  ;;  %v9442_v24 = vpack.c.bf16 %v317_v23, %v316_v22 }
  0x26   :  { %9443 = vmatprep.subr.bf16.mxu1 %v9442_v24 }
  0x27   :  { %9429 = vmatpush1.bf16.msra.mxu0 %v9428_v25  ;;  %v318_v25 = vld [vmem:[%s12750_s24 + $0x10] sm:$0xff]  ;;  %9445 = vmatpush3.bf16.msra.mxu1 %v9442_v24 }
  0x28   :  { %9430 = vmatprep.subr.bf16.mxu0 %v10246_v0  ;;  %v9446_v27 = vpack.c.bf16 %v319_v26, %v318_v25 }
  0x2a   :  { %9447 = vmatprep.subr.bf16.mxu1 %v9446_v27 }
  0x2b   :  { %9432 = vmatpush1.bf16.msra.mxu0 %v9431_v28  ;;  %9449 = vmatpush3.bf16.msra.mxu1 %v9446_v27  ;;  %v7630_v28 = vld [vmem:[%s12750_s24 + $0x20] sm:$0xff] }
  0x2c   :  { %9433 = vmatprep.subr.bf16.mxu0 %v10246_v0  ;;  %v9450_v30 = vpack.c.bf16 %v7631_v29, %v7630_v28 }
  0x2e   :  { %9451 = vmatprep.subr.bf16.mxu1 %v9450_v30 }
  0x2f   :  { %9435 = vmatpush1.bf16.msra.mxu0 %v9434_v31 }
  0x30   :  { %9436 = vmatprep.subr.bf16.mxu0 %v10246_v0 }
  0x33   :  { %9438 = vmatpush1.bf16.msra.mxu0 %v9437_v34 }
  0x34   :  { %9439 = vmatprep.subr.bf16.mxu0 %v10246_v0 }
  0x37   :  { %9441 = vmatpush1.bf16.msra.mxu0 %v9440_v37  ;;  %v10523_v37 = vshrl.u32 %v300_v33, 7 }
  0x3a   :  { %224 = vmatmul.mubr.f32.vlgmr.msra.gmra.mrb[0].mxu0 %v110_v38 }
  0x3b   :  { %7627 = vmatprep.mubr.msk.f32.mxu0 %vm146_vm0, %v113_v39 }
  0x3e   :  { %229 = vmatmul.mubr.f32.gmra.mrb[2].mxu0 %v112_v40 }
  0x3f   :  { %7628 = vmatprep.mubr.msk.f32.mxu0 %vm146_vm0, %v115_v41  ;;  %v10526_v41 = vsub.s32 0, %v10523_v37 }
  0x42   :  { %234 = vmatmul.mubr.f32.gmra.mrb[4].mxu0 %v114_v42 }
  0x43   :  { %7629 = vmatprep.mubr.msk.f32.mxu0 %vm146_vm0, %v117_v43  ;;  %v244_v43 = vld [vmem:[%s12723_s4] sm:$0xff] }
  0x46   :  { %239 = vmatmul.mubr.f32.gmra.mrb[6].mxu0 %v116_v44 }
 0x10d   :  { %v225_v46 = vpop.f32.mrb[0].mxu0 }
 0x10e   :  { %v10464_v47 = vadd.f32 %v225_v46, %v142_v45  ;;  %v227_v48 = vpop.f32.mrb[1].mxu0  ;;  %v10532_v45 = vsub.s32 1, %v10523_v37 }
 0x10f   :  { %v303_v48 = vrot.slane %v244_v43, %v10526_v41 }
 0x110   :  { %v247_v50 = vsel %vm246_vm1, %v10464_v47, 0.0 }
 0x111   :  { %v230_v51 = vpop.f32.mrb[2].mxu0  ;;  %248 = vadd.xlane.f32.xlu0 %v247_v50 }
 0x112   :  { %v10471_v52 = vadd.f32 %v230_v51, %v143_v49  ;;  %v232_v53 = vpop.f32.mrb[3].mxu0 }
 0x113   :  { %v311_v53 = vrot.slane %v244_v43, %v10532_v45 }
 0x114   :  { %v250_v55 = vsel %vm246_vm1, %v10471_v52, 0.0 }
 0x115   :  { %v235_v56 = vpop.f32.mrb[4].mxu0  ;;  %251 = vadd.xlane.f32.xlu0 %v250_v55 }
 0x116   :  { %v10478_v57 = vadd.f32 %v235_v56, %v144_v54  ;;  %v237_v58 = vpop.f32.mrb[5].mxu0 }
 0x118   :  { %v253_v60 = vsel %vm246_vm1, %v10478_v57, 0.0 }
 0x119   :  { %v240_v61 = vpop.f32.mrb[6].mxu0  ;;  %254 = vadd.xlane.f32.xlu1 %v253_v60  ;;  %v7633_v60 = vld [vmem:[%s12750_s24 + $0x38] sm:$0xff] }
 0x11a   :  { %v10485_v62 = vadd.f32 %v240_v61, %v145_v59  ;;  %v242_v63 = vpop.f32.mrb[7].mxu0  ;;  %v7632_v59 = vld [vmem:[%s12750_s24 + $0x30] sm:$0xff] }
 0x11c   :  { %v256_v1 = vsel %vm246_vm1, %v10485_v62, 0.0 }
 0x11d   :  { %257 = vadd.xlane.f32.xlu1 %v256_v1 }
 0x19e   :  { %v249_v2 = vpop.xlane.xlu0 %248 }
 0x19f   :  { %v260_v3 = vmul.f32 0.03125, %v249_v2 }
 0x1a1   :  { %v264_v4 = vsub.f32 %v10464_v47, %v260_v3  ;;  %v9454_v3 = vpack.c.bf16 %v7633_v60, %v7632_v59 }
 0x1a2   :  { %v252_v5 = vpop.xlane.xlu0 %251 }
 0x1a3   :  { %v261_v6 = vmul.f32 0.03125, %v252_v5  ;;  %v268_v7 = vmul.f32 %v264_v4, %v264_v4  ;;  %v7635_v5 = vld [vmem:[%s12750_s24 + $0x48] sm:$0xff] }
 0x1a5   :  { %v265_v8 = vsub.f32 %v10471_v52, %v261_v6  ;;  %v272_v9 = vsel %vm246_vm1, %v268_v7, 0.0 }
 0x1a6   :  { %v255_v10 = vpop.xlane.xlu1 %254  ;;  %273 = vadd.xlane.f32.xlu0 %v272_v9 }
 0x1a7   :  { %v262_v11 = vmul.f32 0.03125, %v255_v10  ;;  %v269_v12 = vmul.f32 %v265_v8, %v265_v8 }
 0x1a9   :  { %v10493_v13 = vsub.f32 %v10478_v57, %v262_v11  ;;  %v275_v14 = vsel %vm246_vm1, %v269_v12, 0.0 }
 0x1aa   :  { %v258_v15 = vpop.xlane.xlu1 %257  ;;  %276 = vadd.xlane.f32.xlu1 %v275_v14  ;;  %v7637_v14 = vld [vmem:[%s12750_s24 + $0x58] sm:$0xff] }
 0x1ab   :  { %v263_v16 = vmul.f32 0.03125, %v258_v15  ;;  %v270_v17 = vmul.f32 %v10493_v13, %v10493_v13 }
 0x1ad   :  { %v10499_v18 = vsub.f32 %v10485_v62, %v263_v16  ;;  %v278_v19 = vsel %vm246_vm1, %v270_v17, 0.0  ;;  %v62_v16 = vld [vmem:[%s12724_s18] sm:$0xf] }
 0x1ae   :  { %279 = vadd.xlane.f32.xlu0 %v278_v19  ;;  %v10572_v17 = vrot.slane %v62_v16, %v10526_v41 }
 0x1af   :  { %v271_v20 = vmul.f32 %v10499_v18, %v10499_v18 }
 0x1b1   :  { %v281_v21 = vsel %vm246_vm1, %v271_v20, 0.0 }
 0x1b2   :  { %282 = vadd.xlane.f32.xlu1 %v281_v21 }
 0x233   :  { %v274_v31 = vpop.xlane.xlu0 %273 }
 0x234   :  { %v284_v32 = vmul.f32 0.03125, %v274_v31 }
 0x236   :  { %v288_v34 = vadd.f32 1e-05, %v284_v32 }
 0x237   :  { %v277_v35 = vpop.xlane.xlu1 %276 }
 0x238   :  { %9849 = vrsqrt.f32 %v288_v34  ;;  %v285_v36 = vmul.f32 0.03125, %v277_v35 }
 0x23a   :  { %v289_v38 = vadd.f32 1e-05, %v285_v36 }
 0x23b   :  { %v280_v39 = vpop.xlane.xlu0 %279 }
 0x23c   :  { %9851 = vrsqrt.f32 %v289_v38  ;;  %v286_v40 = vmul.f32 0.03125, %v280_v39  ;;  %v10593_v38 = vrot.slane %v62_v16, %v10532_v45 }
 0x23e   :  { %v290_v42 = vadd.f32 1e-05, %v286_v40 }
 0x23f   :  { %v283_v44 = vpop.xlane.xlu1 %282 }
 0x240   :  { %9853 = vrsqrt.f32 %v290_v42  ;;  %v287_v46 = vmul.f32 0.03125, %v283_v44  ;;  %v10600_v42 = vsub.s32 2, %v10523_v37 }
 0x242   :  { %v9850_v49 = vpop.eup %9849  ;;  %v291_v50 = vadd.f32 1e-05, %v287_v46  ;;  %v10607_v46 = vrot.slane %v62_v16, %v10600_v42 }
 0x243   :  { %v296_v51 = vmul.f32 %v9850_v49, %v264_v4  ;;  %v7634_v4 = vld [vmem:[%s12750_s24 + $0x40] sm:$0xff] }
 0x244   :  { %9855 = vrsqrt.f32 %v291_v50  ;;  %v9458_v10 = vpack.c.bf16 %v7635_v5, %v7634_v4  ;;  %v10614_v50 = vsub.s32 3, %v10523_v37  ;;  %v63_v4 = vld [vmem:[%s12725_s9] sm:$0xff] }
 0x245   :  { %v304_v54 = vmul.f32 %v303_v48, %v296_v51 }
 0x246   :  { %v9852_v55 = vpop.eup %9851 }
 0x247   :  { %v312_v56 = vadd.f32 %v311_v53, %v304_v54  ;;  %v297_v58 = vmul.f32 %v9852_v55, %v265_v8  ;;  %v10621_v54 = vrot.slane %v62_v16, %v10614_v50 }
 0x249   :  { %8503 = vmatprep.mubr.msk.f32.mxu1 %vm246_vm1, %v312_v56  ;;  %v305_v61 = vmul.f32 %v303_v48, %v297_v58 }
 0x24a   :  { %v9854_v63 = vpop.eup %9853 }
 0x24b   :  { %v313_v1 = vadd.f32 %v311_v53, %v305_v61  ;;  %v298_v2 = vmul.f32 %v9854_v63, %v10493_v13  ;;  %v7636_v13 = vld [vmem:[%s12750_s24 + $0x50] sm:$0xff] }
 0x24c   :  { %v9462_v15 = vpack.c.bf16 %v7637_v14, %v7636_v13  ;;  %v65_v13 = vld [vmem:[%s12725_s9 + $0x10] sm:$0xff] }
 0x24d   :  { %8504 = vmatmul.mubr.msk.f32.vlgmr.msra.gmra.mrb[0].mxu1 %vm246_vm1, %v313_v1  ;;  %v306_v6 = vmul.f32 %v303_v48, %v298_v2 }
 0x24e   :  { %v9856_v7 = vpop.eup %9855  ;;  %9453 = vmatpush3.bf16.msra.mxu1 %v9450_v30 }
 0x24f   :  { %v314_v8 = vadd.f32 %v311_v53, %v306_v6  ;;  %v299_v9 = vmul.f32 %v9856_v7, %v10499_v18  ;;  %9455 = vmatprep.subr.bf16.mxu1 %v9454_v3 }
 0x251   :  { %8506 = vmatprep.mubr.msk.f32.mxu1 %vm246_vm1, %v314_v8  ;;  %v307_v11 = vmul.f32 %v303_v48, %v299_v9  ;;  %v66_v9 = vld [vmem:[%s12725_s9 + $0x18] sm:$0xff] }
 0x252   :  { %9457 = vmatpush3.bf16.msra.mxu1 %v9454_v3 }
 0x253   :  { %v315_v12 = vadd.f32 %v311_v53, %v307_v11  ;;  %9459 = vmatprep.subr.bf16.mxu1 %v9458_v10 }
 0x255   :  { %8507 = vmatmul.mubr.msk.f32.gmra.mrb[2].mxu1 %vm246_vm1, %v315_v12 }
 0x256   :  { %8517 = vmatprep.mubr.msk.f32.mxu1 %vm246_vm1, %v312_v56 }
 0x259   :  { %8518 = vmatmul.mubr.msk.f32.vlgmr.msra.gmra.mrb[4].mxu1 %vm246_vm1, %v313_v1 }
 0x25a   :  { %8520 = vmatprep.mubr.msk.f32.mxu1 %vm246_vm1, %v314_v8  ;;  %9461 = vmatpush3.bf16.msra.mxu1 %v9458_v10 }
 0x25b   :  { %9463 = vmatprep.subr.bf16.mxu1 %v9462_v15 }
 0x25d   :  { %8521 = vmatmul.mubr.msk.f32.gmra.mrb[6].mxu1 %vm246_vm1, %v315_v12 }
 0x25e   :  { %9465 = vmatpush3.bf16.msra.mxu1 %v9462_v15  ;;  %8531 = vmatprep.mubr.msk.f32.mxu1 %vm246_vm1, %v312_v56 }
 0x261   :  { %8532 = vmatmul.mubr.msk.f32.vlgmr.msra.gmra.mrb[8].mxu1 %vm246_vm1, %v313_v1  ;;  %v64_v1 = vld [vmem:[%s12725_s9 + $0x8] sm:$0xff] }
 0x262   :  { %8534 = vmatprep.mubr.msk.f32.mxu1 %vm246_vm1, %v314_v8 }
 0x265   :  { %8535 = vmatmul.mubr.msk.f32.gmra.mrb[10].mxu1 %vm246_vm1, %v315_v12 }
 0x320   :  { %v8505_v18 = vpop.f32.mrb[0].mxu1 }
 0x321   :  { %v413_v19 = vpop.f32.mrb[1].mxu1  ;;  %v607_v36 = vmul.f32 %v8505_v18, %v10572_v17  ;;  %v615_v44 = vmul.f32 %v8505_v18, %v10593_v38  ;;  %v623_v53 = vmul.f32 %v8505_v18, %v10607_v46  ;;  %v631_v59 = vmul.f32 %v8505_v18, %v10621_v54 }
 0x322   :  { %v606_v20 = vmul.f32 %v10572_v17, %v413_v19  ;;  %v614_v43 = vmul.f32 %v10593_v38, %v413_v19  ;;  %v622_v51 = vmul.f32 %v10607_v46, %v413_v19  ;;  %v630_v58 = vmul.f32 %v10621_v54, %v413_v19 }
 0x324   :  { %8545 = vmatprep.mubr.msk.f32.mxu1 %vm246_vm1, %v606_v20  ;;  %v68_v20 = vld [vmem:[%s12725_s9 + $0x28] sm:$0xff] }
 0x328   :  { %v8508_v21 = vpop.f32.mrb[2].mxu1 }
 0x329   :  { %v423_v22 = vpop.f32.mrb[3].mxu1  ;;  %v609_v40 = vmul.f32 %v8508_v21, %v10572_v17  ;;  %v617_v49 = vmul.f32 %v8508_v21, %v10593_v38  ;;  %v625_v56 = vmul.f32 %v8508_v21, %v10607_v46  ;;  %v633_v61 = vmul.f32 %v8508_v21, %v10621_v54 }
 0x32a   :  { %v608_v39 = vmul.f32 %v10572_v17, %v423_v22  ;;  %v616_v48 = vmul.f32 %v10593_v38, %v423_v22  ;;  %v624_v55 = vmul.f32 %v10607_v46, %v423_v22  ;;  %v632_v60 = vmul.f32 %v10621_v54, %v423_v22 }
 0x32c   :  { %v8519_v23 = vpop.f32.mrb[4].mxu1 }
 0x32d   :  { %v498_v24 = vpop.f32.mrb[5].mxu1 }
 0x32e   :  { %v9466_v26 = vpack.c.bf16 %v8519_v23, %v498_v24  ;;  %v67_v24 = vld [vmem:[%s12725_s9 + $0x20] sm:$0xff] }
 0x330   :  { %v8522_v27 = vpop.f32.mrb[6].mxu1  ;;  %9468 = vmatprep.subr.msk.bf16.mxu1 %vm10578_vm2, %v9466_v26 }
 0x331   :  { %v508_v28 = vpop.f32.mrb[7].mxu1  ;;  %9471 = vmatpush3.bf16.xpose.msk.msra.mxu1 %vm10578_vm2, %v9466_v26 }
 0x332   :  { %v9472_v29 = vpack.c.bf16 %v8522_v27, %v508_v28 }
 0x334   :  { %v8533_v30 = vpop.f32.mrb[8].mxu1  ;;  %9474 = vmatprep.subr.msk.bf16.mxu1 %vm10578_vm2, %v9472_v29 }
 0x335   :  { %v583_v31 = vpop.f32.mrb[9].mxu1 }
 0x336   :  { %v9478_v32 = vpack.c.bf16 %v8533_v30, %v583_v31  ;;  %v70_v31 = vld [vmem:[%s12725_s9 + $0x38] sm:$0xff] }
 0x338   :  { %v8536_v33 = vpop.f32.mrb[10].mxu1  ;;  %9479 = vmatprep.subr.bf16.mxu0 %v9478_v32 }
 0x339   :  { %v593_v34 = vpop.f32.mrb[11].mxu1  ;;  %9477 = vmatpush3.bf16.xpose.msk.msra.mxu1 %vm10578_vm2, %v9472_v29  ;;  %9481 = vmatpush3.bf16.msra.mxu0 %v9478_v32 }
 0x33a   :  { %v9482_v35 = vpack.c.bf16 %v8536_v33, %v593_v34  ;;  %9826 = vmatprep.subr.bf16.mxu1 %v9478_v32 }
 0x33c   :  { %9483 = vmatprep.subr.bf16.mxu0 %v9482_v35 }
 0x33d   :  { %9485 = vmatpush3.bf16.msra.mxu0 %v9482_v35 }
 0x33e   :  { %9506 = vmatprep.subr.bf16.mxu0 %v10246_v0 }
 0x340   :  { %8546 = vmatmul.mubr.msk.f32.vlgmr.msra.gmra.mrb[12].mxu1 %vm246_vm1, %v607_v36 }
 0x341   :  { %8548 = vmatprep.mubr.msk.f32.mxu1 %vm246_vm1, %v608_v39  ;;  %9828 = vmatpush3.bf16.msra.mxu1 %v9478_v32 }
 0x342   :  { %9827 = vmatprep.subr.bf16.mxu1 %v9482_v35 }
 0x344   :  { %8549 = vmatmul.mubr.msk.f32.gmra.mrb[14].mxu1 %vm246_vm1, %v609_v40 }
 0x345   :  { %8551 = vmatprep.mubr.msk.f32.mxu1 %vm246_vm1, %v614_v43  ;;  %9829 = vmatpush3.bf16.msra.mxu1 %v9482_v35  ;;  %v69_v35 = vld [vmem:[%s12725_s9 + $0x30] sm:$0xff] }
 0x348   :  { %8552 = vmatmul.mubr.msk.f32.gmra.mrb[16].mxu1 %vm246_vm1, %v615_v44 }
 0x349   :  { %8554 = vmatprep.mubr.msk.f32.mxu1 %vm246_vm1, %v616_v48  ;;  %v72_v48 = vld [vmem:[%s12725_s9 + $0x48] sm:$0xff] }
 0x34c   :  { %8555 = vmatmul.mubr.msk.f32.gmra.mrb[18].mxu1 %vm246_vm1, %v617_v49 }
 0x34d   :  { %8557 = vmatprep.mubr.msk.f32.mxu1 %vm246_vm1, %v622_v51 }
 0x350   :  { %8558 = vmatmul.mubr.msk.f32.gmra.mrb[20].mxu1 %vm246_vm1, %v623_v53 }
 0x351   :  { %8560 = vmatprep.mubr.msk.f32.mxu1 %vm246_vm1, %v624_v55  ;;  %v71_v55 = vld [vmem:[%s12725_s9 + $0x40] sm:$0xff] }
 0x354   :  { %8561 = vmatmul.mubr.msk.f32.gmra.mrb[22].mxu1 %vm246_vm1, %v625_v56 }
 0x355   :  { %8563 = vmatprep.mubr.msk.f32.mxu1 %vm246_vm1, %v630_v58 }
 0x358   :  { %8564 = vmatmul.mubr.msk.f32.gmra.mrb[24].mxu1 %vm246_vm1, %v631_v59 }
 0x359   :  { %8566 = vmatprep.mubr.msk.f32.mxu1 %vm246_vm1, %v632_v60 }
 0x35c   :  { %8567 = vmatmul.mubr.msk.f32.gmra.mrb[26].mxu1 %vm246_vm1, %v633_v61 }
 0x413   :  { %v8547_v63 = vpop.f32.mrb[12].mxu1 }
 0x414   :  { %v840_v2 = vmul.f32 0.35355338, %v8547_v63  ;;  %v760_v3 = vpop.f32.mrb[13].mxu1  ;;  %v74_v63 = vld [vmem:[%s12725_s9 + $0x58] sm:$0xff] }
 0x415   :  { %v839_v5 = vmul.f32 0.35355338, %v760_v3 }
 0x416   :  { %v10642_v6 = vadd.f32 %v840_v2, %v64_v1 }
 0x417   :  { %v8550_v7 = vpop.f32.mrb[14].mxu1  ;;  %v10644_v8 = vadd.f32 %v839_v5, %v63_v4  ;;  %v73_v4 = vld [vmem:[%s12725_s9 + $0x50] sm:$0xff] }
 0x418   :  { %v842_v10 = vmul.f32 0.35355338, %v8550_v7  ;;  %v770_v11 = vpop.f32.mrb[15].mxu1  ;;  %v874_v12 = vsel %vm246_vm1, %v10642_v6, -inf }
 0x419   :  { %v841_v14 = vmul.f32 0.35355338, %v770_v11  ;;  %875 = vmax.xlane.f32.xlu1 %v874_v12  ;;  %v871_v15 = vsel %vm246_vm1, %v10644_v8, -inf  ;;  %v76_v12 = vld [vmem:[%s12725_s9 + $0x68] sm:$0xff] }
 0x41a   :  { %872 = vmax.xlane.f32.xlu0 %v871_v15  ;;  %v10656_v16 = vadd.f32 %v842_v10, %v66_v9 }
 0x41b   :  { %v8553_v18 = vpop.f32.mrb[16].mxu1  ;;  %v10658_v19 = vadd.f32 %v841_v14, %v65_v13 }
 0x41c   :  { %v844_v21 = vmul.f32 0.35355338, %v8553_v18  ;;  %v780_v22 = vpop.f32.mrb[17].mxu1  ;;  %v880_v23 = vsel %vm246_vm1, %v10656_v16, -inf  ;;  %v75_v18 = vld [vmem:[%s12725_s9 + $0x60] sm:$0xff] }
 0x41d   :  { %v843_v26 = vmul.f32 0.35355338, %v780_v22  ;;  %881 = vmax.xlane.f32.xlu1 %v880_v23  ;;  %v877_v27 = vsel %vm246_vm1, %v10658_v19, -inf }
 0x41e   :  { %878 = vmax.xlane.f32.xlu0 %v877_v27  ;;  %v10670_v28 = vadd.f32 %v844_v21, %v68_v20 }
 0x41f   :  { %v8556_v29 = vpop.f32.mrb[18].mxu1  ;;  %v10672_v30 = vadd.f32 %v843_v26, %v67_v24  ;;  %v78_v26 = vld [vmem:[%s12725_s9 + $0x78] sm:$0xff] }
 0x420   :  { %v846_v32 = vmul.f32 0.35355338, %v8556_v29  ;;  %v790_v33 = vpop.f32.mrb[19].mxu1  ;;  %v886_v34 = vsel %vm246_vm1, %v10670_v28, -inf }
 0x421   :  { %v845_v36 = vmul.f32 0.35355338, %v790_v33  ;;  %887 = vmax.xlane.f32.xlu1 %v886_v34  ;;  %v883_v39 = vsel %vm246_vm1, %v10672_v30, -inf }
 0x422   :  { %884 = vmax.xlane.f32.xlu0 %v883_v39  ;;  %v10684_v40 = vadd.f32 %v846_v32, %v70_v31  ;;  %v77_v32 = vld [vmem:[%s12725_s9 + $0x70] sm:$0xff] }
 0x423   :  { %v8559_v43 = vpop.f32.mrb[20].mxu1  ;;  %v10686_v44 = vadd.f32 %v845_v36, %v69_v35 }
 0x424   :  { %v848_v49 = vmul.f32 0.35355338, %v8559_v43  ;;  %v800_v51 = vpop.f32.mrb[21].mxu1  ;;  %v892_v53 = vsel %vm246_vm1, %v10684_v40, -inf }
 0x425   :  { %v847_v56 = vmul.f32 0.35355338, %v800_v51  ;;  %893 = vmax.xlane.f32.xlu1 %v892_v53  ;;  %v889_v58 = vsel %vm246_vm1, %v10686_v44, -inf }
 0x426   :  { %890 = vmax.xlane.f32.xlu0 %v889_v58  ;;  %v10698_v59 = vadd.f32 %v848_v49, %v72_v48 }
 0x427   :  { %v8562_v60 = vpop.f32.mrb[22].mxu1  ;;  %v10700_v61 = vadd.f32 %v847_v56, %v71_v55 }
 0x428   :  { %v850_v1 = vmul.f32 0.35355338, %v8562_v60  ;;  %v810_v2 = vpop.f32.mrb[23].mxu1  ;;  %v898_v3 = vsel %vm246_vm1, %v10698_v59, -inf }
 0x429   :  { %v849_v5 = vmul.f32 0.35355338, %v810_v2  ;;  %899 = vmax.xlane.f32.xlu1 %v898_v3  ;;  %v895_v7 = vsel %vm246_vm1, %v10700_v61, -inf }
 0x42a   :  { %896 = vmax.xlane.f32.xlu0 %v895_v7  ;;  %v10712_v9 = vadd.f32 %v850_v1, %v74_v63 }
 0x42b   :  { %v8565_v10 = vpop.f32.mrb[24].mxu1  ;;  %v10714_v11 = vadd.f32 %v849_v5, %v73_v4 }
 0x42c   :  { %v852_v13 = vmul.f32 0.35355338, %v8565_v10  ;;  %v820_v14 = vpop.f32.mrb[25].mxu1  ;;  %v904_v15 = vsel %vm246_vm1, %v10712_v9, -inf }
 0x42d   :  { %v851_v20 = vmul.f32 0.35355338, %v820_v14  ;;  %905 = vmax.xlane.f32.xlu1 %v904_v15  ;;  %v901_v21 = vsel %vm246_vm1, %v10714_v11, -inf }
 0x42e   :  { %902 = vmax.xlane.f32.xlu0 %v901_v21  ;;  %v10726_v22 = vadd.f32 %v852_v13, %v76_v12 }
 0x42f   :  { %v8568_v23 = vpop.f32.mrb[26].mxu1  ;;  %v10728_v24 = vadd.f32 %v851_v20, %v75_v18 }
 0x430   :  { %v854_v27 = vmul.f32 0.35355338, %v8568_v23  ;;  %v830_v29 = vpop.f32.mrb[27].mxu1  ;;  %v910_v31 = vsel %vm246_vm1, %v10726_v22, -inf }
 0x431   :  { %v853_v33 = vmul.f32 0.35355338, %v830_v29  ;;  %911 = vmax.xlane.f32.xlu1 %v910_v31  ;;  %v907_v34 = vsel %vm246_vm1, %v10728_v24, -inf }
 0x432   :  { %908 = vmax.xlane.f32.xlu0 %v907_v34  ;;  %v10740_v35 = vadd.f32 %v854_v27, %v78_v26 }
 0x433   :  { %v10742_v36 = vadd.f32 %v853_v33, %v77_v32 }
 0x434   :  { %v916_v39 = vsel %vm246_vm1, %v10740_v35, -inf }
 0x435   :  { %917 = vmax.xlane.f32.xlu1 %v916_v39  ;;  %v913_v43 = vsel %vm246_vm1, %v10742_v36, -inf }
 0x436   :  { %914 = vmax.xlane.f32.xlu0 %v913_v43 }
 0x4a6   :  { %v876_v48 = vpop.xlane.xlu1 %875 }
 0x4a7   :  { %v920_v49 = vsub.f32 %v10642_v6, %v876_v48  ;;  %v873_v51 = vpop.xlane.xlu0 %872 }
 0x4a8   :  { %v919_v53 = vsub.f32 %v10644_v8, %v873_v51 }
 0x4a9   :  { %v937_v55 = vmul.f32 1.442695, %v920_v49 }
 0x4aa   :  { %v935_v56 = vmul.f32 1.442695, %v919_v53  ;;  %v882_v58 = vpop.xlane.xlu1 %881 }
 0x4ab   :  { %9857 = vpow2.f32 %v937_v55  ;;  %v922_v60 = vsub.f32 %v10656_v16, %v882_v58  ;;  %v879_v63 = vpop.xlane.xlu0 %878 }
 0x4ac   :  { %9859 = vpow2.f32 %v935_v56  ;;  %v921_v1 = vsub.f32 %v10658_v19, %v879_v63 }
 0x4ad   :  { %v941_v2 = vmul.f32 1.442695, %v922_v60 }
 0x4ae   :  { %v939_v3 = vmul.f32 1.442695, %v921_v1  ;;  %v888_v4 = vpop.xlane.xlu1 %887 }
 0x4af   :  { %9861 = vpow2.f32 %v941_v2  ;;  %v924_v5 = vsub.f32 %v10670_v28, %v888_v4  ;;  %v885_v6 = vpop.xlane.xlu0 %884 }
 0x4b0   :  { %9863 = vpow2.f32 %v939_v3  ;;  %v923_v8 = vsub.f32 %v10672_v30, %v885_v6 }
 0x4b1   :  { %v945_v7 = vmul.f32 1.442695, %v924_v5 }
 0x4b2   :  { %v943_v10 = vmul.f32 1.442695, %v923_v8  ;;  %v894_v12 = vpop.xlane.xlu1 %893 }
 0x4b3   :  { %9865 = vpow2.f32 %v945_v7  ;;  %v926_v16 = vsub.f32 %v10684_v40, %v894_v12  ;;  %v891_v13 = vpop.xlane.xlu0 %890 }
 0x4b4   :  { %9867 = vpow2.f32 %v943_v10  ;;  %v925_v19 = vsub.f32 %v10686_v44, %v891_v13 }
 0x4b5   :  { %v10756_v14 = vpop.eup %9857  ;;  %v949_v15 = vmul.f32 1.442695, %v926_v16 }
 0x4b6   :  { %v10758_v18 = vpop.eup %9859  ;;  %v947_v28 = vmul.f32 1.442695, %v925_v19  ;;  %v900_v20 = vpop.xlane.xlu1 %899  ;;  %v970_v30 = vsel %vm246_vm1, %v10756_v14, 0.0 }
 0x4b7   :  { %9869 = vpow2.f32 %v949_v15  ;;  %v928_v21 = vsub.f32 %v10698_v59, %v900_v20  ;;  %v897_v23 = vpop.xlane.xlu0 %896  ;;  %971 = vadd.xlane.f32.xlu1 %v970_v30  ;;  %v967_v40 = vsel %vm246_vm1, %v10758_v18, 0.0 }
 0x4b8   :  { %9871 = vpow2.f32 %v947_v28  ;;  %v927_v44 = vsub.f32 %v10700_v61, %v897_v23  ;;  %968 = vadd.xlane.f32.xlu0 %v967_v40 }
 0x4b9   :  { %v10766_v26 = vpop.eup %9861  ;;  %v953_v27 = vmul.f32 1.442695, %v928_v21 }
 0x4ba   :  { %v10768_v29 = vpop.eup %9863  ;;  %v951_v31 = vmul.f32 1.442695, %v927_v44  ;;  %v906_v32 = vpop.xlane.xlu1 %905  ;;  %v976_v33 = vsel %vm246_vm1, %v10766_v26, 0.0 }
 0x4bb   :  { %9873 = vpow2.f32 %v953_v27  ;;  %v930_v59 = vsub.f32 %v10712_v9, %v906_v32  ;;  %v903_v34 = vpop.xlane.xlu0 %902  ;;  %977 = vadd.xlane.f32.xlu1 %v976_v33  ;;  %v973_v39 = vsel %vm246_vm1, %v10768_v29, 0.0 }
 0x4bc   :  { %9875 = vpow2.f32 %v951_v31  ;;  %v929_v61 = vsub.f32 %v10714_v11, %v903_v34  ;;  %974 = vadd.xlane.f32.xlu0 %v973_v39 }
 0x4bd   :  { %v10776_v43 = vpop.eup %9865  ;;  %v957_v48 = vmul.f32 1.442695, %v930_v59 }
 0x4be   :  { %v10778_v49 = vpop.eup %9867  ;;  %v955_v51 = vmul.f32 1.442695, %v929_v61  ;;  %v912_v53 = vpop.xlane.xlu1 %911  ;;  %v982_v55 = vsel %vm246_vm1, %v10776_v43, 0.0 }
 0x4bf   :  { %9877 = vpow2.f32 %v957_v48  ;;  %v932_v9 = vsub.f32 %v10726_v22, %v912_v53  ;;  %v909_v56 = vpop.xlane.xlu0 %908  ;;  %983 = vadd.xlane.f32.xlu1 %v982_v55  ;;  %v979_v58 = vsel %vm246_vm1, %v10778_v49, 0.0 }
 0x4c0   :  { %9879 = vpow2.f32 %v955_v51  ;;  %v931_v11 = vsub.f32 %v10728_v24, %v909_v56  ;;  %980 = vadd.xlane.f32.xlu0 %v979_v58 }
 0x4c1   :  { %v10786_v60 = vpop.eup %9869  ;;  %v961_v63 = vmul.f32 1.442695, %v932_v9 }
 0x4c2   :  { %v10788_v1 = vpop.eup %9871  ;;  %v959_v2 = vmul.f32 1.442695, %v931_v11  ;;  %v918_v3 = vpop.xlane.xlu1 %917  ;;  %v988_v4 = vsel %vm246_vm1, %v10786_v60, 0.0 }
 0x4c3   :  { %9881 = vpow2.f32 %v961_v63  ;;  %v934_v22 = vsub.f32 %v10740_v35, %v918_v3  ;;  %989 = vadd.xlane.f32.xlu1 %v988_v4  ;;  %v915_v5 = vpop.xlane.xlu0 %914  ;;  %v985_v6 = vsel %vm246_vm1, %v10788_v1, 0.0 }
 0x4c4   :  { %9883 = vpow2.f32 %v959_v2  ;;  %v933_v24 = vsub.f32 %v10742_v36, %v915_v5  ;;  %986 = vadd.xlane.f32.xlu0 %v985_v6 }
 0x4c5   :  { %v10796_v8 = vpop.eup %9873  ;;  %v965_v7 = vmul.f32 1.442695, %v934_v22 }
 0x4c6   :  { %v10798_v10 = vpop.eup %9875  ;;  %v963_v12 = vmul.f32 1.442695, %v933_v24  ;;  %v994_v16 = vsel %vm246_vm1, %v10796_v8, 0.0 }
 0x4c7   :  { %9885 = vpow2.f32 %v965_v7  ;;  %995 = vadd.xlane.f32.xlu1 %v994_v16  ;;  %v991_v35 = vsel %vm246_vm1, %v10798_v10, 0.0 }
 0x4c8   :  { %9887 = vpow2.f32 %v963_v12  ;;  %992 = vadd.xlane.f32.xlu0 %v991_v35 }
 0x4c9   :  { %v10804_v13 = vpop.eup %9877 }
 0x4ca   :  { %v10806_v36 = vpop.eup %9879  ;;  %v1000_v19 = vsel %vm246_vm1, %v10804_v13, 0.0 }
 0x4cb   :  { %1001 = vadd.xlane.f32.xlu1 %v1000_v19  ;;  %v997_v15 = vsel %vm246_vm1, %v10806_v36, 0.0 }
 0x4cc   :  { %998 = vadd.xlane.f32.xlu0 %v997_v15 }
 0x4cd   :  { %v10812_v28 = vpop.eup %9881 }
 0x4ce   :  { %v10814_v20 = vpop.eup %9883  ;;  %v1006_v30 = vsel %vm246_vm1, %v10812_v28, 0.0 }
 0x4cf   :  { %1007 = vadd.xlane.f32.xlu1 %v1006_v30  ;;  %v1003_v21 = vsel %vm246_vm1, %v10814_v20, 0.0 }
 0x4d0   :  { %1004 = vadd.xlane.f32.xlu0 %v1003_v21 }
 0x4d1   :  { %v10820_v23 = vpop.eup %9885 }
 0x4d2   :  { %v10822_v40 = vpop.eup %9887  ;;  %v1012_v44 = vsel %vm246_vm1, %v10820_v23, 0.0 }
 0x4d3   :  { %1013 = vadd.xlane.f32.xlu1 %v1012_v44  ;;  %v1009_v27 = vsel %vm246_vm1, %v10822_v40, 0.0 }
 0x4d4   :  { %1010 = vadd.xlane.f32.xlu0 %v1009_v27 }
 0x544   :  { %v972_v31 = vpop.xlane.xlu1 %971 }
 0x545   :  { %9889 = vrcp.f32 %v972_v31  ;;  %v969_v32 = vpop.xlane.xlu0 %968 }
 0x546   :  { %9891 = vrcp.f32 %v969_v32 }
 0x548   :  { %v978_v33 = vpop.xlane.xlu1 %977 }
 0x549   :  { %9893 = vrcp.f32 %v978_v33  ;;  %v975_v59 = vpop.xlane.xlu0 %974 }
 0x54a   :  { %9895 = vrcp.f32 %v975_v59 }
 0x54c   :  { %v984_v34 = vpop.xlane.xlu1 %983 }
 0x54d   :  { %9897 = vrcp.f32 %v984_v34  ;;  %v981_v39 = vpop.xlane.xlu0 %980 }
 0x54e   :  { %9899 = vrcp.f32 %v981_v39 }
 0x54f   :  { %v9890_v61 = vpop.eup %9889 }
 0x550   :  { %v9892_v48 = vpop.eup %9891  ;;  %v990_v51 = vpop.xlane.xlu1 %989  ;;  %v1018_v9 = vmul.f32 %v9890_v61, %v10756_v14 }
 0x551   :  { %9901 = vrcp.f32 %v990_v51  ;;  %v987_v53 = vpop.xlane.xlu0 %986  ;;  %v1016_v55 = vmul.f32 %v9892_v48, %v10758_v18 }
 0x552   :  { %9903 = vrcp.f32 %v987_v53 }
 0x553   :  { %v9894_v56 = vpop.eup %9893  ;;  %8577 = vmatprep.mubr.msk.f32.mxu0 %vm246_vm1, %v1016_v55 }
 0x554   :  { %v9896_v58 = vpop.eup %9895  ;;  %v996_v11 = vpop.xlane.xlu1 %995  ;;  %8578 = vmatmul.mubr.msk.f32.vlgmr.msra.gmra.mrb[8].mxu0 %vm246_vm1, %v1018_v9  ;;  %v1022_v3 = vmul.f32 %v9894_v56, %v10766_v26 }
 0x555   :  { %9905 = vrcp.f32 %v996_v11  ;;  %v993_v63 = vpop.xlane.xlu0 %992  ;;  %v1020_v2 = vmul.f32 %v9896_v58, %v10768_v29 }
 0x556   :  { %9907 = vrcp.f32 %v993_v63 }
 0x557   :  { %v9898_v4 = vpop.eup %9897  ;;  %8580 = vmatprep.mubr.msk.f32.mxu0 %vm246_vm1, %v1020_v2 }
 0x558   :  { %v9900_v18 = vpop.eup %9899  ;;  %v1002_v14 = vpop.xlane.xlu1 %1001  ;;  %8581 = vmatmul.mubr.msk.f32.gmra.mrb[10].mxu0 %vm246_vm1, %v1022_v3  ;;  %v1026_v6 = vmul.f32 %v9898_v4, %v10776_v43 }
 0x559   :  { %9909 = vrcp.f32 %v1002_v14  ;;  %v999_v22 = vpop.xlane.xlu0 %998  ;;  %v1024_v5 = vmul.f32 %v9900_v18, %v10778_v49 }
 0x55a   :  { %9911 = vrcp.f32 %v999_v22 }
 0x55b   :  { %v9902_v24 = vpop.eup %9901  ;;  %8583 = vmatprep.mubr.msk.f32.mxu0 %vm246_vm1, %v1024_v5 }
 0x55c   :  { %v9904_v29 = vpop.eup %9903  ;;  %v1008_v7 = vpop.xlane.xlu1 %1007  ;;  %8584 = vmatmul.mubr.msk.f32.gmra.mrb[12].mxu0 %vm246_vm1, %v1026_v6  ;;  %v1030_v16 = vmul.f32 %v9902_v24, %v10786_v60 }
 0x55d   :  { %9913 = vrcp.f32 %v1008_v7  ;;  %v1005_v26 = vpop.xlane.xlu0 %1004  ;;  %v1028_v12 = vmul.f32 %v9904_v29, %v10788_v1 }
 0x55e   :  { %9915 = vrcp.f32 %v1005_v26 }
 0x55f   :  { %v9906_v35 = vpop.eup %9905  ;;  %8586 = vmatprep.mubr.msk.f32.mxu0 %vm246_vm1, %v1028_v12 }
 0x560   :  { %v9908_v49 = vpop.eup %9907  ;;  %v1014_v19 = vpop.xlane.xlu1 %1013  ;;  %8587 = vmatmul.mubr.msk.f32.gmra.mrb[14].mxu0 %vm246_vm1, %v1030_v16  ;;  %v1034_v30 = vmul.f32 %v9906_v35, %v10796_v8 }
 0x561   :  { %9917 = vrcp.f32 %v1014_v19  ;;  %v1011_v43 = vpop.xlane.xlu0 %1010  ;;  %v1032_v15 = vmul.f32 %v9908_v49, %v10798_v10 }
 0x562   :  { %9919 = vrcp.f32 %v1011_v43 }
 0x563   :  { %v9910_v21 = vpop.eup %9909  ;;  %8589 = vmatprep.mubr.msk.f32.mxu0 %vm246_vm1, %v1032_v15 }
 0x564   :  { %v9912_v1 = vpop.eup %9911  ;;  %8590 = vmatmul.mubr.msk.f32.gmra.mrb[16].mxu0 %vm246_vm1, %v1034_v30  ;;  %v1038_v44 = vmul.f32 %v9910_v21, %v10804_v13 }
 0x565   :  { %v1036_v60 = vmul.f32 %v9912_v1, %v10806_v36 }
 0x567   :  { %v9914_v27 = vpop.eup %9913  ;;  %8592 = vmatprep.mubr.msk.f32.mxu1 %vm246_vm1, %v1036_v60 }
 0x568   :  { %v9916_v31 = vpop.eup %9915  ;;  %8593 = vmatmul.mubr.msk.f32.vlgmr.msra.gmra.mrb[28].mxu1 %vm246_vm1, %v1038_v44  ;;  %v1042_v8 = vmul.f32 %v9914_v27, %v10812_v28  ;;  %v7639_v28 = vld [vmem:[%s12750_s24 + $0x68] sm:$0xff] }
 0x569   :  { %v1040_v10 = vmul.f32 %v9916_v31, %v10814_v20  ;;  %v7638_v20 = vld [vmem:[%s12750_s24 + $0x60] sm:$0xff] }
 0x56a   :  { %v9486_v59 = vpack.c.bf16 %v7639_v28, %v7638_v20  ;;  %v10248_v28 = vmov 0.0  }
 0x56b   :  { %v9918_v32 = vpop.eup %9917  ;;  %8595 = vmatprep.mubr.msk.f32.mxu1 %vm246_vm1, %v1040_v10  ;;  %8657 = vmatprep.mubr.msk.f32.mxu0 %vm10247_vm3, %v10248_v28 }
 0x56c   :  { %v9920_v33 = vpop.eup %9919  ;;  %8596 = vmatmul.mubr.msk.f32.gmra.mrb[30].mxu1 %vm246_vm1, %v1042_v8  ;;  %v1046_v13 = vmul.f32 %v9918_v32, %v10820_v23  ;;  %9487 = vmatprep.subr.bf16.mxu1 %v9486_v59  ;;  %v7641_v23 = vld [vmem:[%s12750_s24 + $0x78] sm:$0xff] }
 0x56d   :  { %v1044_v36 = vmul.f32 %v9920_v33, %v10822_v40  ;;  %9489 = vmatpush3.bf16.msra.mxu1 %v9486_v59  ;;  %v7640_v40 = vld [vmem:[%s12750_s24 + $0x70] sm:$0xff]  ;;  %v10900_v59 = vld [vmem:[%s12723_s4 + $0x8] sm:$0x1f] }
 0x56e   :  { %v9490_v34 = vpack.c.bf16 %v7641_v23, %v7640_v40  ;;  %v1271_v40 = vrot.slane %v10900_v59, %v10526_v41 }
 0x56f   :  { %8598 = vmatprep.mubr.msk.f32.mxu1 %vm246_vm1, %v1044_v36 }
 0x570   :  { %8599 = vmatmul.mubr.msk.f32.gmra.mrb[32].mxu1 %vm246_vm1, %v1046_v13  ;;  %9491 = vmatprep.subr.bf16.mxu1 %v9490_v34 }
 0x571   :  { %9493 = vmatpush3.bf16.msra.mxu1 %v9490_v34 }
 0x572   :  { %9494 = vmatprep.subr.bf16.mxu1 %v10246_v0 }
 0x627   :  { %v8579_v39 = vpop.f32.mrb[8].mxu0 }
 0x628   :  { %v1161_v61 = vpop.f32.mrb[9].mxu0  ;;  %v1241_v55 = vmul.f32 %v8579_v39, %v10572_v17 }
 0x629   :  { %v1240_v58 = vmul.f32 %v1161_v61, %v10572_v17 }
 0x62b   :  { %v8582_v48 = vpop.f32.mrb[10].mxu0 }
 0x62c   :  { %v1171_v51 = vpop.f32.mrb[11].mxu0  ;;  %v1243_v4 = vmul.f32 %v8582_v48, %v10572_v17 }
 0x62d   :  { %v1242_v22 = vmul.f32 %v1171_v51, %v10572_v17 }
 0x62f   :  { %v8585_v53 = vpop.f32.mrb[12].mxu0 }
 0x630   :  { %v1245_v9 = vmul.f32 %v8585_v53, %v10593_v38  ;;  %v1181_v56 = vpop.f32.mrb[13].mxu0 }
 0x631   :  { %v1244_v11 = vmul.f32 %v1181_v56, %v10593_v38 }
 0x632   :  { %v1249_v63 = vadd.f32 %v1245_v9, %v1241_v55 }
 0x633   :  { %v1248_v2 = vadd.f32 %v1244_v11, %v1240_v58  ;;  %v8588_v3 = vpop.f32.mrb[14].mxu0 }
 0x634   :  { %v1247_v18 = vmul.f32 %v8588_v3, %v10593_v38  ;;  %v1191_v14 = vpop.f32.mrb[15].mxu0 }
 0x635   :  { %v1246_v5 = vmul.f32 %v1191_v14, %v10593_v38 }
 0x636   :  { %v1251_v6 = vadd.f32 %v1247_v18, %v1243_v4 }
 0x637   :  { %v1250_v24 = vadd.f32 %v1246_v5, %v1242_v22  ;;  %v8591_v29 = vpop.f32.mrb[16].mxu0 }
 0x638   :  { %v1253_v7 = vmul.f32 %v8591_v29, %v10607_v46  ;;  %v1201_v26 = vpop.f32.mrb[17].mxu0 }
 0x639   :  { %v1252_v12 = vmul.f32 %v1201_v26, %v10607_v46 }
 0x63a   :  { %v1257_v16 = vadd.f32 %v1253_v7, %v1249_v63 }
 0x63b   :  { %v1256_v35 = vadd.f32 %v1252_v12, %v1248_v2  ;;  %v8594_v49 = vpop.f32.mrb[28].mxu1 }
 0x63c   :  { %v1255_v19 = vmul.f32 %v8594_v49, %v10607_v46  ;;  %v1211_v43 = vpop.f32.mrb[29].mxu1 }
 0x63d   :  { %v1254_v15 = vmul.f32 %v1211_v43, %v10607_v46 }
 0x63e   :  { %v1259_v30 = vadd.f32 %v1255_v19, %v1251_v6 }
 0x63f   :  { %v1258_v21 = vadd.f32 %v1254_v15, %v1250_v24  ;;  %v8597_v1 = vpop.f32.mrb[30].mxu1 }
 0x640   :  { %v1261_v60 = vmul.f32 %v8597_v1, %v10621_v54  ;;  %v1221_v44 = vpop.f32.mrb[31].mxu1 }
 0x641   :  { %v1260_v27 = vmul.f32 %v1221_v44, %v10621_v54 }
 0x642   :  { %v1265_v31 = vadd.f32 %v1261_v60, %v1257_v16 }
 0x643   :  { %v1264_v10 = vadd.f32 %v1260_v27, %v1256_v35  ;;  %v8600_v8 = vpop.f32.mrb[32].mxu1  ;;  %v7697_v27 = vld [vmem:[%s12750_s24 + $0x80] sm:$0xff] }
 0x644   :  { %v1263_v32 = vmul.f32 %v8600_v8, %v10621_v54  ;;  %v1231_v33 = vpop.f32.mrb[33].mxu1 }
 0x645   :  { %v1262_v36 = vmul.f32 %v1231_v33, %v10621_v54  ;;  %8609 = vmatprep.mubr.msk.f32.mxu1 %vm246_vm1, %v1264_v10  ;;  %v7701_v10 = vld [vmem:[%s12750_s24 + $0xa0] sm:$0xff] }
 0x646   :  { %v1267_v13 = vadd.f32 %v1263_v32, %v1259_v30  ;;  %8610 = vmatmul.mubr.msk.f32.vlgmr.msra.gmra.mrb[34].mxu1 %vm246_vm1, %v1265_v31  ;;  %v7698_v31 = vld [vmem:[%s12750_s24 + $0x88] sm:$0xff] }
 0x647   :  { %v1266_v20 = vadd.f32 %v1262_v36, %v1258_v21  ;;  %v9501_v8 = vpack.c.bf16 %v7698_v31, %v7697_v27  ;;  %v7702_v32 = vld [vmem:[%s12750_s24 + $0xa8] sm:$0xff]  ;;  %v7699_v36 = vld [vmem:[%s12750_s24 + $0x90] sm:$0xff] }
 0x648   :  { %v9507_v33 = vpack.c.bf16 %v7702_v32, %v7701_v10 }
 0x649   :  { %8612 = vmatprep.mubr.msk.f32.mxu1 %vm246_vm1, %v1266_v20  ;;  %v7703_v20 = vld [vmem:[%s12750_s24 + $0xb0] sm:$0xff] }
 0x64a   :  { %8613 = vmatmul.mubr.msk.f32.gmra.mrb[36].mxu1 %vm246_vm1, %v1267_v13  ;;  %9508 = vmatpush3.bf16.msra.mxu0 %v9507_v33  ;;  %v7700_v13 = vld [vmem:[%s12750_s24 + $0x98] sm:$0xff] }
 0x64b   :  { %8623 = vmatprep.mubr.msk.f32.mxu1 %vm10247_vm3, %v10248_v28  ;;  %9509 = vmatprep.subr.bf16.mxu0 %v10246_v0 }
 0x719   :  { %v8611_v23 = vpop.f32.mrb[34].mxu1 }
 0x71a   :  { %v1356_v34 = vadd.f32 %v8611_v23, %v1271_v40  ;;  %v1350_v39 = vpop.f32.mrb[35].mxu1  ;;  %v7704_v23 = vld [vmem:[%s12750_s24 + $0xb8] sm:$0xff] }
 0x71b   :  { %v1351_v61 = vadd.f32 %v1350_v39, %v1271_v40 }
 0x71c   :  { %v10905_v48 = vadd.f32 %v1356_v34, %v10471_v52  ;;  %v95_v52 = vld [vmem:[%s12726_s12] sm:$0xff]  ;;  %v9510_v34 = vpack.c.bf16 %v7704_v23, %v7703_v20 }
 0x71d   :  { %v10908_v51 = vadd.f32 %v1351_v61, %v10464_v47  ;;  %v8614_v53 = vpop.f32.mrb[36].mxu1 }
 0x71e   :  { %v1366_v55 = vadd.f32 %v8614_v53, %v1271_v40  ;;  %v1360_v9 = vpop.f32.mrb[37].mxu1  ;;  %9511 = vmatpush3.bf16.msra.mxu0 %v9510_v34 }
 0x71f   :  { %v10912_v56 = vpack.c.bf16 %v10905_v48, %v10908_v51  ;;  %v1361_v58 = vadd.f32 %v1360_v9, %v1271_v40  ;;  %v9504_v40 = vpack.c.bf16 %v7700_v13, %v7699_v36 }
 0x720   :  { %v10915_v11 = vadd.f32 %v1366_v55, %v10485_v62  ;;  %v97_v62 = vld [vmem:[%s12726_s12 + $0x10] sm:$0xff] }
 0x721   :  { %v10918_v63 = vadd.f32 %v1361_v58, %v10478_v57  ;;  %9496 = vmatpush3.bf16.msra.mxu1 %v10912_v56  ;;  %v96_v57 = vld [vmem:[%s12726_s12 + $0x8] sm:$0xff] }
 0x722   :  { %9497 = vmatprep.subr.bf16.mxu1 %v10246_v0 }
 0x723   :  { %v10924_v47 = vpack.c.bf16 %v10915_v11, %v10918_v63 }
 0x725   :  { %9499 = vmatpush3.bf16.msra.mxu1 %v10924_v47 }
 0x726   :  { %9500 = vmatprep.subr.bf16.mxu1 %v10246_v0 }
 0x728   :  { %8624 = vmatmul.mubr.msk.f32.vlgmr.msra.gmra.mrb[38].mxu1 %vm246_vm1, %v95_v52 }
 0x729   :  { %8626 = vmatprep.mubr.msk.f32.mxu1 %vm10247_vm3, %v10248_v28  ;;  %9502 = vmatpush3.bf16.msra.mxu1 %v9501_v8 }
 0x72a   :  { %9503 = vmatprep.subr.bf16.mxu1 %v10246_v0 }
 0x72c   :  { %8627 = vmatmul.mubr.msk.f32.gmra.mrb[40].mxu1 %vm246_vm1, %v96_v57 }
 0x72d   :  { %8629 = vmatprep.mubr.msk.f32.mxu1 %vm10247_vm3, %v10248_v28  ;;  %9505 = vmatpush3.bf16.msra.mxu1 %v9504_v40 }
 0x72e   :  { %9512 = vmatprep.subr.bf16.mxu1 %v10246_v0 }
 0x730   :  { %8630 = vmatmul.mubr.msk.f32.gmra.mrb[42].mxu1 %vm246_vm1, %v97_v62 }
 0x731   :  { %8640 = vmatprep.mubr.msk.f32.mxu1 %vm10247_vm3, %v10248_v28 }
 0x7fb   :  { %v1448_v2 = vpop.f32.mrb[38].mxu1 }
 0x7fc   :  { %v8625_v3 = vpop.f32.mrb[39].mxu1  ;;  %v1462_v4 = vsel %vm246_vm1, %v1448_v2, 0.0 }
 0x7fd   :  { %1463 = vadd.xlane.f32.xlu0 %v1462_v4 }
 0x7ff   :  { %v1453_v18 = vpop.f32.mrb[40].mxu1 }
 0x800   :  { %v8628_v14 = vpop.f32.mrb[41].mxu1  ;;  %v1465_v22 = vsel %vm246_vm1, %v1453_v18, 0.0 }
 0x801   :  { %1466 = vadd.xlane.f32.xlu1 %v1465_v22  ;;  %v7705_v22 = vld [vmem:[%s12750_s24 + $0xc0] sm:$0xff] }
 0x803   :  { %v1458_v5 = vpop.f32.mrb[42].mxu1 }
 0x804   :  { %v1468_v6 = vsel %vm246_vm1, %v1458_v5, 0.0  ;;  %v8631_v24 = vpop.f32.mrb[43].mxu1 }
 0x805   :  { %1469 = vadd.xlane.f32.xlu0 %v1468_v6 }
 0x88a   :  { %v1464_v29 = vpop.xlane.xlu0 %1463 }
 0x88b   :  { %v1471_v7 = vmul.f32 0.03125, %v1464_v29 }
 0x88d   :  { %v1474_v26 = vsub.f32 %v1448_v2, %v1471_v7  ;;  %v10193_v2 = vld [vmem:[%s12723_s4] sm:$0xff] }
 0x88e   :  { %v1467_v12 = vpop.xlane.xlu1 %1466  ;;  %v1504_v3 = vrot.slane %v10193_v2, %v10600_v42  ;;  %v1511_v14 = vrot.slane %v10193_v2, %v10614_v50 }
 0x88f   :  { %v1472_v16 = vmul.f32 0.03125, %v1467_v12  ;;  %v1477_v35 = vmul.f32 %v1474_v26, %v1474_v26 }
 0x891   :  { %v1475_v49 = vsub.f32 %v1453_v18, %v1472_v16  ;;  %v1480_v19 = vsel %vm246_vm1, %v1477_v35, 0.0  ;;  %v7707_v16 = vld [vmem:[%s12750_s24 + $0xd0] sm:$0xff] }
 0x892   :  { %1481 = vadd.xlane.f32.xlu1 %v1480_v19  ;;  %v1470_v43 = vpop.xlane.xlu0 %1469 }
 0x893   :  { %v1473_v15 = vmul.f32 0.03125, %v1470_v43  ;;  %v1478_v30 = vmul.f32 %v1475_v49, %v1475_v49 }
 0x895   :  { %v1476_v21 = vsub.f32 %v1458_v5, %v1473_v15  ;;  %v1483_v1 = vsel %vm246_vm1, %v1478_v30, 0.0  ;;  %v7706_v5 = vld [vmem:[%s12750_s24 + $0xc8] sm:$0xff] }
 0x896   :  { %1484 = vadd.xlane.f32.xlu0 %v1483_v1  ;;  %v9513_v12 = vpack.c.bf16 %v7706_v5, %v7705_v22 }
 0x897   :  { %v1479_v60 = vmul.f32 %v1476_v21, %v1476_v21 }
 0x899   :  { %v1486_v44 = vsel %vm246_vm1, %v1479_v60, 0.0 }
 0x89a   :  { %1487 = vadd.xlane.f32.xlu1 %v1486_v44 }
 0x91f   :  { %v1482_v39 = vpop.xlane.xlu1 %1481 }
 0x920   :  { %v1489_v61 = vmul.f32 0.03125, %v1482_v39 }
 0x922   :  { %v1492_v53 = vadd.f32 1e-05, %v1489_v61 }
 0x923   :  { %v1485_v55 = vpop.xlane.xlu0 %1484 }
 0x924   :  { %9921 = vrsqrt.f32 %v1492_v53  ;;  %v1490_v9 = vmul.f32 0.03125, %v1485_v55 }
 0x926   :  { %v1493_v58 = vadd.f32 1e-05, %v1490_v9 }
 0x927   :  { %v1488_v52 = vpop.xlane.xlu1 %1487 }
 0x928   :  { %9923 = vrsqrt.f32 %v1493_v58  ;;  %v1491_v57 = vmul.f32 0.03125, %v1488_v52 }
 0x92a   :  { %v1494_v62 = vadd.f32 1e-05, %v1491_v57 }
 0x92c   :  { %9925 = vrsqrt.f32 %v1494_v62 }
 0x92e   :  { %v9922_v4 = vpop.eup %9921 }
 0x92f   :  { %v1498_v18 = vmul.f32 %v9922_v4, %v1474_v26  ;;  %v7708_v26 = vld [vmem:[%s12750_s24 + $0xd8] sm:$0xff] }
 0x930   :  { %v9516_v15 = vpack.c.bf16 %v7708_v26, %v7707_v16  ;;  %v79_v16 = vld [vmem:[%s12727_s10] sm:$0xff] }
 0x931   :  { %v1505_v6 = vmul.f32 %v1504_v3, %v1498_v18 }
 0x932   :  { %v9924_v24 = vpop.eup %9923 }
 0x933   :  { %v1512_v29 = vadd.f32 %v1511_v14, %v1505_v6  ;;  %v1499_v7 = vmul.f32 %v9924_v24, %v1475_v49 }
 0x935   :  { %8641 = vmatmul.mubr.msk.f32.vlgmr.msra.gmra.mrb[44].mxu1 %vm246_vm1, %v1512_v29  ;;  %8658 = vmatmul.mubr.msk.f32.vlgmr.msra.gmra.mrb[18].mxu0 %vm246_vm1, %v1512_v29  ;;  %v1506_v35 = vmul.f32 %v1504_v3, %v1499_v7 }
 0x936   :  { %v9926_v19 = vpop.eup %9925  ;;  %8643 = vmatprep.mubr.msk.f32.mxu1 %vm10247_vm3, %v10248_v28  ;;  %8660 = vmatprep.mubr.msk.f32.mxu0 %vm10247_vm3, %v10248_v28 }
 0x937   :  { %v1513_v49 = vadd.f32 %v1511_v14, %v1506_v35  ;;  %9514 = vmatpush3.bf16.msra.mxu1 %v9513_v12  ;;  %v1500_v43 = vmul.f32 %v9926_v19, %v1476_v21 }
 0x938   :  { %9515 = vmatprep.subr.bf16.mxu1 %v10246_v0 }
 0x939   :  { %8644 = vmatmul.mubr.msk.f32.gmra.mrb[46].mxu1 %vm246_vm1, %v1513_v49  ;;  %8661 = vmatmul.mubr.msk.f32.gmra.mrb[20].mxu0 %vm246_vm1, %v1513_v49  ;;  %v1507_v30 = vmul.f32 %v1504_v3, %v1500_v43  ;;  %v82_v43 = vld [vmem:[%s12727_s10 + $0x18] sm:$0xff] }
 0x93a   :  { %8646 = vmatprep.mubr.msk.f32.mxu1 %vm10247_vm3, %v10248_v28  ;;  %8663 = vmatprep.mubr.msk.f32.mxu0 %vm10247_vm3, %v10248_v28 }
 0x93b   :  { %v1514_v1 = vadd.f32 %v1511_v14, %v1507_v30  ;;  %9517 = vmatpush3.bf16.msra.mxu1 %v9516_v15 }
 0x93d   :  { %8647 = vmatmul.mubr.msk.f32.gmra.mrb[48].mxu1 %vm246_vm1, %v1514_v1  ;;  %8664 = vmatmul.mubr.msk.f32.gmra.mrb[22].mxu0 %vm246_vm1, %v1514_v1 }
 0x93e   :  { %8674 = vmatprep.mubr.msk.f32.mxu1 %vm10247_vm3, %v10248_v28 }
 0x941   :  { %8675 = vmatmul.mubr.msk.f32.vlgmr.msra.gmra.mrb[50].mxu1 %vm246_vm1, %v1512_v29  ;;  %v80_v29 = vld [vmem:[%s12727_s10 + $0x8] sm:$0xff] }
 0x942   :  { %8677 = vmatprep.mubr.msk.f32.mxu1 %vm10247_vm3, %v10248_v28 }
 0x945   :  { %8678 = vmatmul.mubr.msk.f32.gmra.mrb[52].mxu1 %vm246_vm1, %v1513_v49 }
 0x946   :  { %8680 = vmatprep.mubr.msk.f32.mxu1 %vm10247_vm3, %v10248_v28 }
 0x949   :  { %8681 = vmatmul.mubr.msk.f32.gmra.mrb[54].mxu1 %vm246_vm1, %v1514_v1 }
 0xa08   :  { %v1610_v21 = vpop.f32.mrb[44].mxu1  ;;  %v1690_v60 = vpop.f32.mrb[18].mxu0 }
 0xa09   :  { %v1784_v44 = vmul.f32 %v1610_v21, %v10572_v17  ;;  %v8642_v27 = vpop.f32.mrb[45].mxu1  ;;  %v8659_v31 = vpop.f32.mrb[19].mxu0  ;;  %v1787_v62 = vmul.f32 %v1610_v21, %v10593_v38  ;;  %v1790_v4 = vmul.f32 %v1610_v21, %v10607_v46  ;;  %v1793_v22 = vmul.f32 %v1610_v21, %v10621_v54  ;;  %v81_v21 = vld [vmem:[%s12727_s10 + $0x10] sm:$0xff] }
 0xa0b   :  { %8689 = vmatprep.mubr.msk.f32.mxu0 %vm246_vm1, %v1784_v44 }
 0xa0c   :  { %v1615_v10 = vpop.f32.mrb[46].mxu1  ;;  %v1695_v8 = vpop.f32.mrb[20].mxu0 }
 0xa0d   :  { %v8645_v32 = vpop.f32.mrb[47].mxu1  ;;  %v8662_v33 = vpop.f32.mrb[21].mxu0  ;;  %v9518_v36 = vpack.c.bf16 %v1695_v8, %v1690_v60  ;;  %v1785_v9 = vmul.f32 %v1615_v10, %v10572_v17  ;;  %v1788_v2 = vmul.f32 %v1615_v10, %v10593_v38  ;;  %v1791_v18 = vmul.f32 %v1615_v10, %v10607_v46  ;;  %v84_v8 = vld [vmem:[%s12727_s10 + $0x28] sm:$0xff] }
 0xa0e   :  { %v1794_v5 = vmul.f32 %v1615_v10, %v10621_v54 }
 0xa0f   :  { %9520 = vmatprep.subr.msk.bf16.mxu0 %vm10578_vm2, %v9518_v36 }
 0xa10   :  { %v1620_v13 = vpop.f32.mrb[48].mxu1  ;;  %v1700_v20 = vpop.f32.mrb[22].mxu0  ;;  %9523 = vmatpush3.bf16.xpose.msk.msra.mxu0 %vm10578_vm2, %v9518_v36 }
 0xa11   :  { %v8648_v40 = vpop.f32.mrb[49].mxu1  ;;  %v8665_v23 = vpop.f32.mrb[23].mxu0  ;;  %8687 = vmatprep.subr.msk.mxu0 %vm246_vm1, %v1700_v20  ;;  %v1786_v58 = vmul.f32 %v1620_v13, %v10572_v17  ;;  %v1789_v3 = vmul.f32 %v1620_v13, %v10593_v38  ;;  %v1792_v14 = vmul.f32 %v1620_v13, %v10607_v46  ;;  %v1795_v6 = vmul.f32 %v1620_v13, %v10621_v54  ;;  %v83_v13 = vld [vmem:[%s12727_s10 + $0x20] sm:$0xff] }
 0xa14   :  { %v1770_v34 = vpop.f32.mrb[50].mxu1 }
 0xa15   :  { %v8676_v39 = vpop.f32.mrb[51].mxu1 }
 0xa18   :  { %v1775_v61 = vpop.f32.mrb[52].mxu1  ;;  %8688 = vmatpush3.xpose.msk.msra.mxu0 %vm246_vm1, %v1700_v20 }
 0xa19   :  { %v9524_v53 = vpack.c.bf16 %v1775_v61, %v1770_v34  ;;  %v8679_v55 = vpop.f32.mrb[53].mxu1  ;;  %9528 = vmatprep.subr.bf16.mxu0 %v10246_v0  ;;  %v86_v61 = vld [vmem:[%s12727_s10 + $0x38] sm:$0xff] }
 0xa1b   :  { %9525 = vmatprep.subr.bf16.mxu1 %v9524_v53  ;;  %8690 = vmatmul.mubr.msk.f32.vlgmr.msra.gmra.mrb[24].mxu0 %vm246_vm1, %v1785_v9 }
 0xa1c   :  { %v1780_v52 = vpop.f32.mrb[54].mxu1  ;;  %9527 = vmatpush3.bf16.msra.mxu1 %v9524_v53  ;;  %8692 = vmatprep.mubr.msk.f32.mxu0 %vm246_vm1, %v1786_v58  ;;  %v85_v58 = vld [vmem:[%s12727_s10 + $0x30] sm:$0xff] }
 0xa1d   :  { %v8682_v57 = vpop.f32.mrb[55].mxu1  ;;  %8711 = vmatprep.subr.mxu1 %v1780_v52 }
 0xa1f   :  { %8693 = vmatmul.mubr.msk.f32.gmra.mrb[26].mxu0 %vm246_vm1, %v1787_v62 }
 0xa20   :  { %8712 = vmatpush3.msra.mxu1 %v1780_v52  ;;  %8695 = vmatprep.mubr.msk.f32.mxu0 %vm246_vm1, %v1788_v2 }
 0xa21   :  { %9534 = vmatprep.subr.bf16.mxu1 %v10246_v0 }
 0xa23   :  { %8696 = vmatmul.mubr.msk.f32.gmra.mrb[28].mxu0 %vm246_vm1, %v1789_v3 }
 0xa24   :  { %8698 = vmatprep.mubr.msk.f32.mxu0 %vm246_vm1, %v1790_v4  ;;  %v88_v4 = vld [vmem:[%s12727_s10 + $0x48] sm:$0xff] }
 0xa27   :  { %8699 = vmatmul.mubr.msk.f32.gmra.mrb[30].mxu0 %vm246_vm1, %v1791_v18 }
 0xa28   :  { %8701 = vmatprep.mubr.msk.f32.mxu0 %vm246_vm1, %v1792_v14 }
 0xa2b   :  { %8702 = vmatmul.mubr.msk.f32.gmra.mrb[32].mxu0 %vm246_vm1, %v1793_v22 }
 0xa2c   :  { %8704 = vmatprep.mubr.msk.f32.mxu0 %vm246_vm1, %v1794_v5  ;;  %v87_v5 = vld [vmem:[%s12727_s10 + $0x40] sm:$0xff] }
 0xa2f   :  { %8705 = vmatmul.mubr.msk.f32.gmra.mrb[34].mxu0 %vm246_vm1, %v1795_v6 }
 0xa30   :  { %8739 = vmatprep.mubr.msk.f32.mxu0 %vm10247_vm3, %v10248_v28 }
 0xaee   :  { %v8691_v24 = vpop.f32.mrb[24].mxu0 }
 0xaef   :  { %v1967_v7 = vmul.f32 0.35355338, %v8691_v24  ;;  %v1907_v12 = vpop.f32.mrb[25].mxu0 }
 0xaf0   :  { %v1966_v26 = vmul.f32 0.35355338, %v1907_v12 }
 0xaf1   :  { %v11060_v35 = vadd.f32 %v1967_v7, %v80_v29 }
 0xaf2   :  { %v8694_v19 = vpop.f32.mrb[26].mxu0  ;;  %v11062_v49 = vadd.f32 %v1966_v26, %v79_v16  ;;  %v90_v16 = vld [vmem:[%s12727_s10 + $0x58] sm:$0xff] }
 0xaf3   :  { %v1969_v15 = vmul.f32 0.35355338, %v8694_v19  ;;  %v1917_v30 = vpop.f32.mrb[27].mxu0  ;;  %v1994_v1 = vsel %vm1990_vm4, %v11060_v35, -inf }
 0xaf4   :  { %v1968_v60 = vmul.f32 0.35355338, %v1917_v30  ;;  %1995 = vmax.xlane.f32.xlu1 %v1994_v1  ;;  %v1991_v44 = vsel %vm1990_vm4, %v11062_v49, -inf }
 0xaf5   :  { %1992 = vmax.xlane.f32.xlu0 %v1991_v44  ;;  %v11074_v27 = vadd.f32 %v1969_v15, %v82_v43  ;;  %v89_v15 = vld [vmem:[%s12727_s10 + $0x50] sm:$0xff] }
 0xaf6   :  { %v8697_v31 = vpop.f32.mrb[28].mxu0  ;;  %v11076_v10 = vadd.f32 %v1968_v60, %v81_v21 }
 0xaf7   :  { %v1971_v32 = vmul.f32 0.35355338, %v8697_v31  ;;  %v1927_v33 = vpop.f32.mrb[29].mxu0  ;;  %v2000_v36 = vsel %vm1990_vm4, %v11074_v27, -inf }
 0xaf8   :  { %v1970_v20 = vmul.f32 0.35355338, %v1927_v33  ;;  %2001 = vmax.xlane.f32.xlu1 %v2000_v36  ;;  %v1997_v40 = vsel %vm1990_vm4, %v11076_v10, -inf }
 0xaf9   :  { %1998 = vmax.xlane.f32.xlu0 %v1997_v40  ;;  %v1983_v23 = vadd.f32 %v1971_v32, %v84_v8 }
 0xafa   :  { %v8700_v34 = vpop.f32.mrb[30].mxu0  ;;  %v1982_v39 = vadd.f32 %v1970_v20, %v83_v13 }
 0xafb   :  { %v1973_v53 = vmul.f32 0.35355338, %v8700_v34  ;;  %v1937_v55 = vpop.f32.mrb[31].mxu0  ;;  %v2006_v9 = vsel %vm1990_vm4, %v1983_v23, -inf }
 0xafc   :  { %v1972_v52 = vmul.f32 0.35355338, %v1937_v55  ;;  %2007 = vmax.xlane.f32.xlu1 %v2006_v9  ;;  %v2003_v57 = vsel %vm1990_vm4, %v1982_v39, -inf }
 0xafd   :  { %2004 = vmax.xlane.f32.xlu0 %v2003_v57  ;;  %v1985_v62 = vadd.f32 %v1973_v53, %v86_v61 }
 0xafe   :  { %v8703_v2 = vpop.f32.mrb[32].mxu0  ;;  %v1984_v3 = vadd.f32 %v1972_v52, %v85_v58 }
 0xaff   :  { %v1975_v18 = vmul.f32 0.35355338, %v8703_v2  ;;  %v1947_v14 = vpop.f32.mrb[33].mxu0  ;;  %v2012_v22 = vsel %vm1990_vm4, %v1985_v62, -inf }
 0xb00   :  { %v1974_v6 = vmul.f32 0.35355338, %v1947_v14  ;;  %2013 = vmax.xlane.f32.xlu1 %v2012_v22  ;;  %v2009_v24 = vsel %vm1990_vm4, %v1984_v3, -inf }
 0xb01   :  { %2010 = vmax.xlane.f32.xlu0 %v2009_v24  ;;  %v1987_v29 = vadd.f32 %v1975_v18, %v88_v4 }
 0xb02   :  { %v8706_v7 = vpop.f32.mrb[34].mxu0  ;;  %v1986_v12 = vadd.f32 %v1974_v6, %v87_v5 }
 0xb03   :  { %v1977_v26 = vmul.f32 0.35355338, %v8706_v7  ;;  %v1957_v19 = vpop.f32.mrb[35].mxu0  ;;  %v2018_v43 = vsel %vm1990_vm4, %v1987_v29, -inf }
 0xb04   :  { %v1976_v30 = vmul.f32 0.35355338, %v1957_v19  ;;  %2019 = vmax.xlane.f32.xlu1 %v2018_v43  ;;  %v2015_v1 = vsel %vm1990_vm4, %v1986_v12, -inf }
 0xb05   :  { %2016 = vmax.xlane.f32.xlu0 %v2015_v1  ;;  %v11112_v21 = vadd.f32 %v1977_v26, %v90_v16 }
 0xb06   :  { %v11114_v60 = vadd.f32 %v1976_v30, %v89_v15 }
 0xb07   :  { %v2024_v44 = vsel %vm1990_vm4, %v11112_v21, -inf }
 0xb08   :  { %2025 = vmax.xlane.f32.xlu1 %v2024_v44  ;;  %v2021_v31 = vsel %vm1990_vm4, %v11114_v60, -inf }
 0xb09   :  { %2022 = vmax.xlane.f32.xlu0 %v2021_v31 }
 0xb81   :  { %v1996_v8 = vpop.xlane.xlu1 %1995 }
 0xb82   :  { %v2028_v32 = vsub.f32 %v11060_v35, %v1996_v8  ;;  %v1993_v33 = vpop.xlane.xlu0 %1992 }
 0xb83   :  { %v2027_v36 = vsub.f32 %v11062_v49, %v1993_v33 }
 0xb84   :  { %v2041_v13 = vmul.f32 1.442695, %v2028_v32 }
 0xb85   :  { %v2039_v20 = vmul.f32 1.442695, %v2027_v36  ;;  %v2002_v40 = vpop.xlane.xlu1 %2001 }
 0xb86   :  { %9927 = vpow2.f32 %v2041_v13  ;;  %v2030_v34 = vsub.f32 %v11074_v27, %v2002_v40  ;;  %v1999_v61 = vpop.xlane.xlu0 %1998 }
 0xb87   :  { %9929 = vpow2.f32 %v2039_v20  ;;  %v2029_v53 = vsub.f32 %v11076_v10, %v1999_v61 }
 0xb88   :  { %v2045_v55 = vmul.f32 1.442695, %v2030_v34 }
 0xb89   :  { %v2043_v9 = vmul.f32 1.442695, %v2029_v53  ;;  %v2008_v58 = vpop.xlane.xlu1 %2007 }
 0xb8a   :  { %9931 = vpow2.f32 %v2045_v55  ;;  %v2032_v52 = vsub.f32 %v1983_v23, %v2008_v58  ;;  %v2005_v57 = vpop.xlane.xlu0 %2004 }
 0xb8b   :  { %9933 = vpow2.f32 %v2043_v9  ;;  %v2031_v35 = vsub.f32 %v1982_v39, %v2005_v57 }
 0xb8c   :  { %v2049_v2 = vmul.f32 1.442695, %v2032_v52 }
 0xb8d   :  { %v2047_v49 = vmul.f32 1.442695, %v2031_v35  ;;  %v2014_v4 = vpop.xlane.xlu1 %2013 }
 0xb8e   :  { %9935 = vpow2.f32 %v2049_v2  ;;  %v2034_v18 = vsub.f32 %v1985_v62, %v2014_v4  ;;  %v2011_v14 = vpop.xlane.xlu0 %2010 }
 0xb8f   :  { %9937 = vpow2.f32 %v2047_v49  ;;  %v2033_v27 = vsub.f32 %v1984_v3, %v2011_v14 }
 0xb90   :  { %v11124_v22 = vpop.eup %9927  ;;  %v2053_v5 = vmul.f32 1.442695, %v2034_v18 }
 0xb91   :  { %v11126_v10 = vpop.eup %9929  ;;  %v2051_v6 = vmul.f32 1.442695, %v2033_v27  ;;  %v2020_v24 = vpop.xlane.xlu1 %2019  ;;  %v2066_v23 = vsel %vm1990_vm4, %v11124_v22, 0.0 }
 0xb92   :  { %9939 = vpow2.f32 %v2053_v5  ;;  %v2036_v39 = vsub.f32 %v1987_v29, %v2020_v24  ;;  %v2017_v7 = vpop.xlane.xlu0 %2016  ;;  %2067 = vadd.xlane.f32.xlu1 %v2066_v23  ;;  %v2063_v62 = vsel %vm1990_vm4, %v11126_v10, 0.0 }
 0xb93   :  { %9941 = vpow2.f32 %v2051_v6  ;;  %v2035_v16 = vsub.f32 %v1986_v12, %v2017_v7  ;;  %2064 = vadd.xlane.f32.xlu0 %v2063_v62 }
 0xb94   :  { %v11132_v3 = vpop.eup %9931  ;;  %v2057_v26 = vmul.f32 1.442695, %v2036_v39 }
 0xb95   :  { %v11134_v19 = vpop.eup %9933  ;;  %v2055_v43 = vmul.f32 1.442695, %v2035_v16  ;;  %v2026_v15 = vpop.xlane.xlu1 %2025  ;;  %v2072_v30 = vsel %vm1990_vm4, %v11132_v3, 0.0 }
 0xb96   :  { %9943 = vpow2.f32 %v2057_v26  ;;  %v2038_v29 = vsub.f32 %v11112_v21, %v2026_v15  ;;  %2073 = vadd.xlane.f32.xlu1 %v2072_v30  ;;  %v2023_v1 = vpop.xlane.xlu0 %2022  ;;  %v2069_v44 = vsel %vm1990_vm4, %v11134_v19, 0.0 }
 0xb97   :  { %9945 = vpow2.f32 %v2055_v43  ;;  %v2037_v12 = vsub.f32 %v11114_v60, %v2023_v1  ;;  %2070 = vadd.xlane.f32.xlu0 %v2069_v44 }
 0xb98   :  { %v11142_v31 = vpop.eup %9935  ;;  %v2061_v8 = vmul.f32 1.442695, %v2038_v29 }
 0xb99   :  { %v11144_v32 = vpop.eup %9937  ;;  %v2059_v33 = vmul.f32 1.442695, %v2037_v12  ;;  %v2078_v36 = vsel %vm1990_vm4, %v11142_v31, 0.0 }
 0xb9a   :  { %9947 = vpow2.f32 %v2061_v8  ;;  %2079 = vadd.xlane.f32.xlu1 %v2078_v36  ;;  %v2075_v21 = vsel %vm1990_vm4, %v11144_v32, 0.0 }
 0xb9b   :  { %9949 = vpow2.f32 %v2059_v33  ;;  %2076 = vadd.xlane.f32.xlu0 %v2075_v21 }
 0xb9c   :  { %v11150_v13 = vpop.eup %9939 }
 0xb9d   :  { %v9942_v60 = vpop.eup %9941  ;;  %v2084_v20 = vsel %vm1990_vm4, %v11150_v13, 0.0 }
 0xb9e   :  { %2085 = vadd.xlane.f32.xlu1 %v2084_v20  ;;  %v2081_v40 = vsel %vm1990_vm4, %v9942_v60, 0.0 }
 0xb9f   :  { %2082 = vadd.xlane.f32.xlu0 %v2081_v40 }
 0xba0   :  { %v11155_v34 = vpop.eup %9943 }
 0xba1   :  { %v9946_v61 = vpop.eup %9945  ;;  %v2090_v53 = vsel %vm1990_vm4, %v11155_v34, 0.0 }
 0xba2   :  { %2091 = vadd.xlane.f32.xlu1 %v2090_v53  ;;  %v2087_v55 = vsel %vm1990_vm4, %v9946_v61, 0.0  ;;  %v7711_v53 = vld [vmem:[%s12750_s24 + $0xf0] sm:$0xff] }
 0xba3   :  { %2088 = vadd.xlane.f32.xlu0 %v2087_v55  ;;  %v7712_v55 = vld [vmem:[%s12750_s24 + $0xf8] sm:$0xff] }
 0xba4   :  { %v11160_v9 = vpop.eup %9947 }
 0xba5   :  { %v9950_v58 = vpop.eup %9949  ;;  %v2096_v52 = vsel %vm1990_vm4, %v11160_v9, 0.0 }
 0xba6   :  { %2097 = vadd.xlane.f32.xlu1 %v2096_v52  ;;  %v2093_v57 = vsel %vm1990_vm4, %v9950_v58, 0.0  ;;  %v7753_v52 = vld [vmem:[%s12750_s24 + $0x108] sm:$0xff] }
 0xba7   :  { %2094 = vadd.xlane.f32.xlu0 %v2093_v57  ;;  %v7754_v57 = vld [vmem:[%s12750_s24 + $0x110] sm:$0xff] }
 0xc1f   :  { %v2068_v35 = vpop.xlane.xlu1 %2067 }
 0xc20   :  { %9951 = vrcp.f32 %v2068_v35  ;;  %v2065_v2 = vpop.xlane.xlu0 %2064 }
 0xc21   :  { %9953 = vrcp.f32 %v2065_v2  ;;  %v7755_v2 = vld [vmem:[%s12750_s24 + $0x118] sm:$0xff] }
 0xc23   :  { %v2074_v49 = vpop.xlane.xlu1 %2073 }
 0xc24   :  { %9955 = vrcp.f32 %v2074_v49  ;;  %v2071_v4 = vpop.xlane.xlu0 %2070  ;;  %v9538_v49 = vpack.c.bf16 %v7755_v2, %v7754_v57 }
 0xc25   :  { %9957 = vrcp.f32 %v2071_v4 }
 0xc27   :  { %v2080_v18 = vpop.xlane.xlu1 %2079 }
 0xc28   :  { %9959 = vrcp.f32 %v2080_v18  ;;  %v2077_v14 = vpop.xlane.xlu0 %2076 }
 0xc29   :  { %9961 = vrcp.f32 %v2077_v14 }
 0xc2a   :  { %v9952_v27 = vpop.eup %9951 }
 0xc2b   :  { %v9954_v5 = vpop.eup %9953  ;;  %v2086_v6 = vpop.xlane.xlu1 %2085  ;;  %v2102_v39 = vmul.f32 %v9952_v27, %v11124_v22 }
 0xc2c   :  { %9963 = vrcp.f32 %v2086_v6  ;;  %v2083_v24 = vpop.xlane.xlu0 %2082  ;;  %v2100_v23 = vmul.f32 %v9954_v5, %v11126_v10 }
 0xc2d   :  { %9965 = vrcp.f32 %v2083_v24 }
 0xc2e   :  { %v9956_v7 = vpop.eup %9955  ;;  %8713 = vmatprep.mubr.msk.f32.mxu1 %vm1990_vm4, %v2100_v23 }
 0xc2f   :  { %v9958_v62 = vpop.eup %9957  ;;  %v2092_v16 = vpop.xlane.xlu1 %2091  ;;  %8714 = vmatmul.mubr.msk.f32.vlgmr.msra.gmra.mrb[56].mxu1 %vm1990_vm4, %v2102_v39  ;;  %v2106_v15 = vmul.f32 %v9956_v7, %v11132_v3 }
 0xc30   :  { %9967 = vrcp.f32 %v2092_v16  ;;  %v2089_v26 = vpop.xlane.xlu0 %2088  ;;  %v2104_v43 = vmul.f32 %v9958_v62, %v11134_v19 }
 0xc31   :  { %9969 = vrcp.f32 %v2089_v26 }
 0xc32   :  { %v9960_v30 = vpop.eup %9959  ;;  %8716 = vmatprep.mubr.msk.f32.mxu1 %vm1990_vm4, %v2104_v43 }
 0xc33   :  { %v9962_v10 = vpop.eup %9961  ;;  %v2098_v22 = vpop.xlane.xlu1 %2097  ;;  %8717 = vmatmul.mubr.msk.f32.gmra.mrb[58].mxu1 %vm1990_vm4, %v2106_v15  ;;  %v2110_v44 = vmul.f32 %v9960_v30, %v11142_v31 }
 0xc34   :  { %9971 = vrcp.f32 %v2098_v22  ;;  %v2095_v29 = vpop.xlane.xlu0 %2094  ;;  %v2108_v1 = vmul.f32 %v9962_v10, %v11144_v32 }
 0xc35   :  { %9973 = vrcp.f32 %v2095_v29 }
 0xc36   :  { %v9964_v12 = vpop.eup %9963  ;;  %8719 = vmatprep.mubr.msk.f32.mxu1 %vm1990_vm4, %v2108_v1 }
 0xc37   :  { %v9966_v19 = vpop.eup %9965  ;;  %8720 = vmatmul.mubr.msk.f32.gmra.mrb[60].mxu1 %vm1990_vm4, %v2110_v44  ;;  %v2114_v8 = vmul.f32 %v9964_v12, %v11150_v13  ;;  %v7709_v13 = vld [vmem:[%s12750_s24 + $0xe0] sm:$0xff] }
 0xc38   :  { %v2112_v3 = vmul.f32 %v9966_v19, %v9942_v60 }
 0xc3a   :  { %v9968_v33 = vpop.eup %9967  ;;  %8722 = vmatprep.mubr.msk.f32.mxu1 %vm1990_vm4, %v2112_v3 }
 0xc3b   :  { %v9970_v36 = vpop.eup %9969  ;;  %8723 = vmatmul.mubr.msk.f32.gmra.mrb[62].mxu1 %vm1990_vm4, %v2114_v8  ;;  %v2118_v32 = vmul.f32 %v9968_v33, %v11155_v34  ;;  %v7710_v34 = vld [vmem:[%s12750_s24 + $0xe8] sm:$0xff] }
 0xc3c   :  { %v2116_v21 = vmul.f32 %v9970_v36, %v9946_v61  ;;  %v9529_v61 = vpack.c.bf16 %v7710_v34, %v7709_v13  ;;  %v99_v13 = vld [vmem:[%s12728_s14] sm:$0xff]  ;;  %v100_v34 = vld [vmem:[%s12728_s14 + $0x8] sm:$0xff] }
 0xc3e   :  { %v9972_v20 = vpop.eup %9971  ;;  %8725 = vmatprep.mubr.msk.f32.mxu1 %vm1990_vm4, %v2116_v21  ;;  %9530 = vmatpush3.bf16.msra.mxu0 %v9529_v61  ;;  %v101_v61 = vld [vmem:[%s12728_s14 + $0x10] sm:$0xff] }
 0xc3f   :  { %v9974_v31 = vpop.eup %9973  ;;  %8726 = vmatmul.mubr.msk.f32.gmra.mrb[64].mxu1 %vm1990_vm4, %v2118_v32  ;;  %v2122_v60 = vmul.f32 %v9972_v20, %v11160_v9  ;;  %9531 = vmatprep.subr.bf16.mxu0 %v10246_v0  ;;  %v9532_v9 = vpack.c.bf16 %v7712_v55, %v7711_v53  ;;  %v2308_v53 = vrot.slane %v10900_v59, %v10532_v45 }
 0xc40   :  { %v2120_v40 = vmul.f32 %v9974_v31, %v9950_v58  ;;  %v7752_v58 = vld [vmem:[%s12750_s24 + $0x100] sm:$0xff] }
 0xc41   :  { %v9535_v35 = vpack.c.bf16 %v7753_v52, %v7752_v58 }
 0xc42   :  { %8728 = vmatprep.mubr.msk.f32.mxu1 %vm1990_vm4, %v2120_v40  ;;  %9533 = vmatpush3.bf16.msra.mxu0 %v9532_v9 }
 0xc43   :  { %8729 = vmatmul.mubr.msk.f32.gmra.mrb[66].mxu1 %vm1990_vm4, %v2122_v60  ;;  %9540 = vmatprep.subr.bf16.mxu0 %v10246_v0 }
 0xc44   :  { %8756 = vmatprep.mubr.msk.f32.mxu1 %vm10247_vm3, %v10248_v28  ;;  %9536 = vmatpush3.bf16.msra.mxu1 %v9535_v35 }
 0xc45   :  { %9537 = vmatprep.subr.bf16.mxu1 %v10246_v0 }
 0xc48   :  { %9539 = vmatpush3.bf16.msra.mxu1 %v9538_v49  ;;  %v7767_v49 = vld [vmem:[%s12750_s24 + $0x140] sm:$0xff] }
 0xc49   :  { %9546 = vmatprep.subr.bf16.mxu1 %v10246_v0 }
 0xd02   :  { %v8715_v4 = vpop.f32.mrb[56].mxu1 }
 0xd03   :  { %v2225_v18 = vpop.f32.mrb[57].mxu1  ;;  %v2285_v16 = vmul.f32 %v8715_v4, %v10572_v17  ;;  %v7768_v4 = vld [vmem:[%s12750_s24 + $0x148] sm:$0xff] }
 0xd04   :  { %v2284_v27 = vmul.f32 %v2225_v18, %v10572_v17  ;;  %v9559_v18 = vpack.c.bf16 %v7768_v4, %v7767_v49 }
 0xd06   :  { %v8718_v14 = vpop.f32.mrb[58].mxu1 }
 0xd07   :  { %v2287_v5 = vmul.f32 %v8718_v14, %v10593_v38  ;;  %v2235_v6 = vpop.f32.mrb[59].mxu1  ;;  %v7769_v14 = vld [vmem:[%s12750_s24 + $0x150] sm:$0xff] }
 0xd08   :  { %v2286_v39 = vmul.f32 %v2235_v6, %v10572_v17 }
 0xd09   :  { %v2290_v24 = vadd.f32 %v2287_v5, %v2284_v27  ;;  %v7770_v27 = vld [vmem:[%s12750_s24 + $0x158] sm:$0xff] }
 0xd0a   :  { %v8721_v23 = vpop.f32.mrb[60].mxu1  ;;  %v9562_v5 = vpack.c.bf16 %v7770_v27, %v7769_v14 }
 0xd0b   :  { %v2289_v7 = vmul.f32 %v8721_v23, %v10593_v38  ;;  %v2245_v62 = vpop.f32.mrb[61].mxu1  ;;  %v7763_v23 = vld [vmem:[%s12750_s24 + $0x120] sm:$0xff] }
 0xd0c   :  { %v2288_v26 = vmul.f32 %v2245_v62, %v10593_v38 }
 0xd0d   :  { %v2292_v43 = vadd.f32 %v2289_v7, %v2286_v39  ;;  %v7764_v39 = vld [vmem:[%s12750_s24 + $0x128] sm:$0xff] }
 0xd0e   :  { %v2291_v15 = vadd.f32 %v2288_v26, %v2285_v16  ;;  %v8724_v30 = vpop.f32.mrb[62].mxu1  ;;  %v9553_v7 = vpack.c.bf16 %v7764_v39, %v7763_v23  ;;  %v7765_v26 = vld [vmem:[%s12750_s24 + $0x130] sm:$0xff] }
 0xd0f   :  { %v2294_v10 = vmul.f32 %v8724_v30, %v10607_v46  ;;  %v2255_v22 = vpop.f32.mrb[63].mxu1 }
 0xd10   :  { %v2293_v29 = vmul.f32 %v2255_v22, %v10607_v46  ;;  %v11310_v22 = vld [vmem:[%s12723_s4 + $0x8] sm:$0x1f] }
 0xd11   :  { %v2297_v1 = vadd.f32 %v2294_v10, %v2291_v15 }
 0xd12   :  { %v2296_v44 = vadd.f32 %v2293_v29, %v2290_v24  ;;  %v8727_v12 = vpop.f32.mrb[64].mxu1  ;;  %v2406_v29 = vrot.slane %v11310_v22, %v10600_v42 }
 0xd13   :  { %v2299_v19 = vmul.f32 %v8727_v12, %v10621_v54  ;;  %v2265_v3 = vpop.f32.mrb[65].mxu1 }
 0xd14   :  { %v2295_v8 = vmul.f32 %v2265_v3, %v10607_v46 }
 0xd15   :  { %v2302_v33 = vadd.f32 %v2299_v19, %v2296_v44 }
 0xd16   :  { %v2298_v36 = vadd.f32 %v2295_v8, %v2292_v43  ;;  %v8730_v21 = vpop.f32.mrb[66].mxu1  ;;  %v7766_v43 = vld [vmem:[%s12750_s24 + $0x138] sm:$0xff] }
 0xd17   :  { %v2301_v32 = vmul.f32 %v8730_v21, %v10621_v54  ;;  %v2275_v20 = vpop.f32.mrb[67].mxu1  ;;  %8740 = vmatmul.mubr.msk.f32.vlgmr.msra.gmra.mrb[36].mxu0 %vm246_vm1, %v2302_v33  ;;  %v9556_v15 = vpack.c.bf16 %v7766_v43, %v7765_v26  ;;  %v92_v43 = vld [vmem:[%s12730_s11 + $0x8] sm:$0xff] }
 0xd18   :  { %v2300_v31 = vmul.f32 %v2275_v20, %v10621_v54  ;;  %9542 = vmatpush3.bf16.msra.mxu0 %v10912_v56  ;;  %8742 = vmatprep.mubr.msk.f32.mxu0 %vm10247_vm3, %v10248_v28  ;;  %v7772_v20 = vld [vmem:[%s12750_s24 + $0x168] sm:$0xff] }
 0xd19   :  { %v2304_v40 = vadd.f32 %v2301_v32, %v2298_v36  ;;  %9543 = vmatprep.subr.bf16.mxu0 %v10246_v0  ;;  %v7771_v32 = vld [vmem:[%s12750_s24 + $0x160] sm:$0xff] }
 0xd1a   :  { %v2303_v60 = vadd.f32 %v2300_v31, %v2297_v1 }
 0xd1c   :  { %9545 = vmatpush3.bf16.msra.mxu0 %v10924_v47 }
 0xd1d   :  { %8743 = vmatmul.mubr.msk.f32.gmra.mrb[38].mxu0 %vm246_vm1, %v2303_v60  ;;  %9552 = vmatprep.subr.bf16.mxu0 %v10246_v0 }
 0xd1e   :  { %8745 = vmatprep.mubr.msk.f32.mxu0 %vm10247_vm3, %v10248_v28 }
 0xd21   :  { %8746 = vmatmul.mubr.msk.f32.gmra.mrb[40].mxu0 %vm246_vm1, %v2304_v40 }
 0xd22   :  { %8773 = vmatprep.mubr.msk.f32.mxu0 %vm10247_vm3, %v10248_v28 }
 0xd25   :  { %8774 = vmatmul.mubr.msk.f32.vlgmr.msra.gmra.mrb[42].mxu0 %vm246_vm1, %v99_v13  ;;  %v9565_v13 = vpack.c.bf16 %v7772_v20, %v7771_v32 }
 0xd26   :  { %8776 = vmatprep.mubr.msk.f32.mxu0 %vm10247_vm3, %v10248_v28  ;;  %9554 = vmatpush3.bf16.msra.mxu0 %v9553_v7 }
 0xd27   :  { %9555 = vmatprep.subr.bf16.mxu0 %v10246_v0 }
 0xd29   :  { %8777 = vmatmul.mubr.msk.f32.gmra.mrb[44].mxu0 %vm246_vm1, %v100_v34 }
 0xd2a   :  { %8779 = vmatprep.mubr.msk.f32.mxu0 %vm10247_vm3, %v10248_v28  ;;  %9557 = vmatpush3.bf16.msra.mxu0 %v9556_v15 }
 0xd2b   :  { %9564 = vmatprep.subr.bf16.mxu0 %v10246_v0 }
 0xd2d   :  { %8780 = vmatmul.mubr.msk.f32.gmra.mrb[46].mxu0 %vm246_vm1, %v101_v61  ;;  %v7773_v61 = vld [vmem:[%s12750_s24 + $0x170] sm:$0xff] }
 0xd2e   :  { %8801 = vmatprep.mubr.msk.f32.mxu0 %vm10247_vm3, %v10248_v28 }
 0xdea   :  { %v2384_v55 = vpop.f32.mrb[36].mxu0 }
 0xdeb   :  { %v2385_v9 = vadd.f32 %v2384_v55, %v2308_v53  ;;  %v8741_v58 = vpop.f32.mrb[37].mxu0 }
 0xded   :  { %8757 = vmatmul.mubr.msk.f32.vlgmr.msra.gmra.mrb[68].mxu1 %vm246_vm1, %v2385_v9 }
 0xdee   :  { %9548 = vmatpush3.bf16.msra.mxu1 %v10912_v56  ;;  %8759 = vmatprep.mubr.msk.f32.mxu1 %vm10247_vm3, %v10248_v28 }
 0xdef   :  { %9549 = vmatprep.subr.bf16.mxu1 %v10246_v0 }
 0xdf0   :  { %v2389_v52 = vpop.f32.mrb[38].mxu0 }
 0xdf1   :  { %v2390_v57 = vadd.f32 %v2389_v52, %v2308_v53  ;;  %v8744_v35 = vpop.f32.mrb[39].mxu0 }
 0xdf2   :  { %9551 = vmatpush3.bf16.msra.mxu1 %v10924_v47  ;;  %v98_v47 = vld [vmem:[%s12729_s13] sm:$0xff] }
 0xdf3   :  { %8760 = vmatmul.mubr.msk.f32.gmra.mrb[70].mxu1 %vm246_vm1, %v2390_v57  ;;  %9558 = vmatprep.subr.bf16.mxu1 %v10246_v0 }
 0xdf4   :  { %v2394_v59 = vpop.f32.mrb[40].mxu0  ;;  %8762 = vmatprep.mubr.msk.f32.mxu1 %vm10247_vm3, %v10248_v28 }
 0xdf5   :  { %v2395_v2 = vadd.f32 %v2394_v59, %v2308_v53  ;;  %v8747_v56 = vpop.f32.mrb[41].mxu0  ;;  %v7774_v53 = vld [vmem:[%s12750_s24 + $0x178] sm:$0xff] }
 0xdf6   :  { %v9568_v58 = vpack.c.bf16 %v7774_v53, %v7773_v61 }
 0xdf7   :  { %8763 = vmatmul.mubr.msk.f32.gmra.mrb[72].mxu1 %vm246_vm1, %v2395_v2 }
 0xdf8   :  { %8790 = vmatprep.mubr.msk.f32.mxu1 %vm10247_vm3, %v10248_v28  ;;  %v2571_v6 = vpop.f32.mrb[42].mxu0 }
 0xdf9   :  { %v8775_v24 = vpop.f32.mrb[43].mxu0 }
 0xdfb   :  { %8791 = vmatmul.mubr.msk.f32.vlgmr.msra.gmra.mrb[74].mxu1 %vm246_vm1, %v98_v47 }
 0xdfc   :  { %9560 = vmatpush3.bf16.msra.mxu1 %v9559_v18  ;;  %8812 = vmatprep.mubr.msk.f32.mxu1 %vm10247_vm3, %v10248_v28  ;;  %v2576_v62 = vpop.f32.mrb[44].mxu0 }
 0xdfd   :  { %9561 = vmatprep.subr.bf16.mxu1 %v10246_v0  ;;  %v8778_v16 = vpop.f32.mrb[45].mxu0 }
 0xe00   :  { %9563 = vmatpush3.bf16.msra.mxu1 %v9562_v5  ;;  %v2581_v30 = vpop.f32.mrb[46].mxu0 }
 0xe01   :  { %v8781_v10 = vpop.f32.mrb[47].mxu0 }
 0xe02   :  { %v91_v10 = vld [vmem:[%s12730_s11] sm:$0xff] }
 0xec0   :  { %v2482_v1 = vpop.f32.mrb[68].mxu1 }
 0xec1   :  { %v2483_v44 = vadd.f32 %v2482_v1, %v2406_v29  ;;  %v8758_v12 = vpop.f32.mrb[69].mxu1 }
 0xec3   :  { %v2572_v19 = vadd.f32 %v2571_v6, %v2483_v44 }
 0xec5   :  { %8813 = vmatmul.mubr.msk.f32.vlgmr.msra.gmra.mrb[76].mxu1 %vm246_vm1, %v2572_v19 }
 0xec6   :  { %v2487_v3 = vpop.f32.mrb[70].mxu1  ;;  %8815 = vmatprep.mubr.msk.f32.mxu1 %vm10247_vm3, %v10248_v28 }
 0xec7   :  { %v2488_v8 = vadd.f32 %v2487_v3, %v2406_v29  ;;  %v8761_v33 = vpop.f32.mrb[71].mxu1 }
 0xec9   :  { %v11317_v36 = vpack.c.bf16 %v2488_v8, %v2483_v44  ;;  %v2577_v21 = vadd.f32 %v2576_v62, %v2488_v8 }
 0xeca   :  { %v2492_v31 = vpop.f32.mrb[72].mxu1 }
 0xecb   :  { %v11325_v40 = vadd.f32 %v2492_v31, %v2406_v29  ;;  %v8764_v60 = vpop.f32.mrb[73].mxu1  ;;  %8816 = vmatmul.mubr.msk.f32.gmra.mrb[78].mxu1 %vm246_vm1, %v2577_v21 }
 0xecc   :  { %8818 = vmatprep.mubr.msk.f32.mxu1 %vm10247_vm3, %v10248_v28 }
 0xecd   :  { %v2582_v34 = vadd.f32 %v2581_v30, %v11325_v40 }
 0xece   :  { %v2654_v55 = vpop.f32.mrb[74].mxu1 }
 0xecf   :  { %8802 = vmatmul.mubr.msk.f32.vlgmr.msra.gmra.mrb[48].mxu0 %vm246_vm1, %v2654_v55  ;;  %8819 = vmatmul.mubr.msk.f32.gmra.mrb[80].mxu1 %vm246_vm1, %v2582_v34  ;;  %v8792_v9 = vpop.f32.mrb[75].mxu1 }
 0xed0   :  { %9566 = vmatpush3.bf16.msra.mxu0 %v9565_v13  ;;  %8829 = vmatprep.mubr.msk.f32.mxu0 %vm10247_vm3, %v10248_v28 }
 0xed1   :  { %9567 = vmatprep.subr.bf16.mxu0 %v10246_v0 }
 0xed4   :  { %9569 = vmatpush3.bf16.msra.mxu0 %v9568_v58 }
 0xed7   :  { %8830 = vmatmul.mubr.msk.f32.vlgmr.msra.gmra.mrb[50].mxu0 %vm246_vm1, %v2572_v19  ;;  %v94_v19 = vld [vmem:[%s12730_s11 + $0x18] sm:$0xff] }
 0xed8   :  { %8832 = vmatprep.mubr.msk.f32.mxu0 %vm10247_vm3, %v10248_v28 }
 0xedb   :  { %8833 = vmatmul.mubr.msk.f32.gmra.mrb[52].mxu0 %vm246_vm1, %v2577_v21  ;;  %v93_v21 = vld [vmem:[%s12730_s11 + $0x10] sm:$0xff] }
 0xedc   :  { %8835 = vmatprep.mubr.msk.f32.mxu0 %vm10247_vm3, %v10248_v28 }
 0xedf   :  { %8836 = vmatmul.mubr.msk.f32.gmra.mrb[54].mxu0 %vm246_vm1, %v2582_v34 }
 0xf98   :  { %v2826_v52 = vpop.f32.mrb[76].mxu1 }
 0xf99   :  { %v8814_v57 = vpop.f32.mrb[77].mxu1 }
 0xf9e   :  { %v2831_v35 = vpop.f32.mrb[78].mxu1 }
 0xf9f   :  { %v9570_v59 = vpack.c.bf16 %v2831_v35, %v2826_v52  ;;  %v8817_v2 = vpop.f32.mrb[79].mxu1 }
 0xfa1   :  { %9572 = vmatprep.subr.msk.bf16.mxu1 %vm10578_vm2, %v9570_v59 }
 0xfa2   :  { %v2836_v56 = vpop.f32.mrb[80].mxu1  ;;  %9575 = vmatpush3.bf16.xpose.msk.msra.mxu1 %vm10578_vm2, %v9570_v59  ;;  %v2747_v49 = vpop.f32.mrb[48].mxu0 }
 0xfa3   :  { %v8820_v4 = vpop.f32.mrb[81].mxu1  ;;  %8842 = vmatprep.subr.msk.mxu1 %vm246_vm1, %v2836_v56  ;;  %v2920_v47 = vmul.f32 %v2747_v49, %v10572_v17  ;;  %v8803_v18 = vpop.f32.mrb[49].mxu0  ;;  %v2921_v14 = vmul.f32 %v2747_v49, %v10593_v38  ;;  %v2922_v6 = vmul.f32 %v2747_v49, %v10607_v46  ;;  %v2923_v23 = vmul.f32 %v2747_v49, %v10621_v54 }
 0xfa5   :  { %8844 = vmatprep.mubr.msk.f32.mxu1 %vm246_vm1, %v2920_v47 }
 0xfaa   :  { %v2906_v27 = vpop.f32.mrb[50].mxu0  ;;  %8843 = vmatpush3.xpose.msk.msra.mxu1 %vm246_vm1, %v2836_v56 }
 0xfab   :  { %v8831_v5 = vpop.f32.mrb[51].mxu0  ;;  %9580 = vmatprep.subr.bf16.mxu1 %v10246_v0 }
 0xfad   :  { %8845 = vmatmul.mubr.msk.f32.vlgmr.msra.gmra.mrb[82].mxu1 %vm246_vm1, %v2921_v14 }
 0xfae   :  { %v2911_v24 = vpop.f32.mrb[52].mxu0  ;;  %8847 = vmatprep.mubr.msk.f32.mxu1 %vm246_vm1, %v2922_v6 }
 0xfaf   :  { %v9576_v39 = vpack.c.bf16 %v2911_v24, %v2906_v27  ;;  %v8834_v7 = vpop.f32.mrb[53].mxu0 }
 0xfb1   :  { %9577 = vmatprep.subr.bf16.mxu0 %v9576_v39  ;;  %8848 = vmatmul.mubr.msk.f32.gmra.mrb[84].mxu1 %vm246_vm1, %v2923_v23 }
 0xfb2   :  { %v2916_v62 = vpop.f32.mrb[54].mxu0  ;;  %9579 = vmatpush3.bf16.msra.mxu0 %v9576_v39  ;;  %8870 = vmatprep.mubr.msk.f32.mxu1 %vm10247_vm3, %v10248_v28 }
 0xfb3   :  { %v8837_v16 = vpop.f32.mrb[55].mxu0  ;;  %8854 = vmatprep.subr.mxu0 %v2916_v62 }
 0xfb6   :  { %8855 = vmatpush3.msra.mxu0 %v2916_v62 }
0x1080   :  { %v8846_v26 = vpop.f32.mrb[82].mxu1 }
0x1081   :  { %v3031_v15 = vmul.f32 0.17677669, %v8846_v26  ;;  %v3011_v30 = vpop.f32.mrb[83].mxu1 }
0x1082   :  { %v3030_v29 = vmul.f32 0.17677669, %v3011_v30 }
0x1083   :  { %v3035_v1 = vadd.f32 %v3031_v15, %v92_v43 }
0x1084   :  { %v8849_v44 = vpop.f32.mrb[84].mxu1  ;;  %v3034_v12 = vadd.f32 %v3030_v29, %v91_v10 }
0x1085   :  { %v3033_v3 = vmul.f32 0.17677669, %v8849_v44  ;;  %v3021_v8 = vpop.f32.mrb[85].mxu1  ;;  %v3041_v33 = vsel %vm1990_vm4, %v3035_v1, -inf  ;;  %v7775_v44 = vld [vmem:[%s12750_s24 + $0x180] sm:$0xff] }
0x1086   :  { %v3032_v32 = vmul.f32 0.17677669, %v3021_v8  ;;  %3042 = vmax.xlane.f32.xlu1 %v3041_v33  ;;  %v3038_v20 = vsel %vm1990_vm4, %v3034_v12, -inf  ;;  %v7778_v8 = vld [vmem:[%s12750_s24 + $0x198] sm:$0xff] }
0x1087   :  { %3039 = vmax.xlane.f32.xlu0 %v3038_v20  ;;  %v3037_v31 = vadd.f32 %v3033_v3, %v94_v19  ;;  %v7777_v3 = vld [vmem:[%s12750_s24 + $0x190] sm:$0xff] }
0x1088   :  { %v3036_v60 = vadd.f32 %v3032_v32, %v93_v21  ;;  %v9584_v33 = vpack.c.bf16 %v7778_v8, %v7777_v3 }
0x1089   :  { %v3047_v13 = vsel %vm1990_vm4, %v3037_v31, -inf }
0x108a   :  { %3048 = vmax.xlane.f32.xlu1 %v3047_v13  ;;  %v3044_v34 = vsel %vm1990_vm4, %v3036_v60, -inf }
0x108b   :  { %3045 = vmax.xlane.f32.xlu0 %v3044_v34 }
0x1113   :  { %v3043_v61 = vpop.xlane.xlu1 %3042 }
0x1114   :  { %v3051_v53 = vsub.f32 %v3035_v1, %v3043_v61  ;;  %v3040_v55 = vpop.xlane.xlu0 %3039 }
0x1115   :  { %v3050_v9 = vsub.f32 %v3034_v12, %v3040_v55  ;;  %v7776_v12 = vld [vmem:[%s12750_s24 + $0x188] sm:$0xff] }
0x1116   :  { %v3056_v58 = vmul.f32 1.442695, %v3051_v53  ;;  %v9581_v19 = vpack.c.bf16 %v7776_v12, %v7775_v44  ;;  %v109_v44 = vld [vmem:[%s12732_s16 + $0x18] sm:$0xff] }
0x1117   :  { %v3054_v52 = vmul.f32 1.442695, %v3050_v9  ;;  %v3049_v57 = vpop.xlane.xlu1 %3048 }
0x1118   :  { %9975 = vpow2.f32 %v3056_v58  ;;  %v3053_v35 = vsub.f32 %v3037_v31, %v3049_v57  ;;  %v3046_v59 = vpop.xlane.xlu0 %3045  ;;  %9582 = vmatpush3.bf16.msra.mxu1 %v9581_v19  ;;  %v3189_v58 = vrot.slane %v11310_v22, %v10614_v50 }
0x1119   :  { %9977 = vpow2.f32 %v3054_v52  ;;  %v3052_v2 = vsub.f32 %v3036_v60, %v3046_v59  ;;  %9583 = vmatprep.subr.bf16.mxu1 %v10246_v0 }
0x111a   :  { %v3060_v56 = vmul.f32 1.442695, %v3053_v35 }
0x111b   :  { %v3058_v49 = vmul.f32 1.442695, %v3052_v2 }
0x111c   :  { %9979 = vpow2.f32 %v3060_v56  ;;  %9585 = vmatpush3.bf16.msra.mxu1 %v9584_v33 }
0x111d   :  { %9981 = vpow2.f32 %v3058_v49 }
0x1122   :  { %v9976_v4 = vpop.eup %9975 }
0x1123   :  { %v9978_v47 = vpop.eup %9977  ;;  %v3065_v18 = vsel %vm1990_vm4, %v9976_v4, 0.0 }
0x1124   :  { %3066 = vadd.xlane.f32.xlu1 %v3065_v18  ;;  %v3062_v14 = vsel %vm1990_vm4, %v9978_v47, 0.0  ;;  %v102_v18 = vld [vmem:[%s12731_s15] sm:$0xff] }
0x1125   :  { %3063 = vadd.xlane.f32.xlu0 %v3062_v14 }
0x1126   :  { %v9980_v27 = vpop.eup %9979 }
0x1127   :  { %v9982_v5 = vpop.eup %9981  ;;  %v3071_v6 = vsel %vm1990_vm4, %v9980_v27, 0.0 }
0x1128   :  { %3072 = vadd.xlane.f32.xlu1 %v3071_v6  ;;  %v3068_v24 = vsel %vm1990_vm4, %v9982_v5, 0.0  ;;  %v11417_v6 = vsub.s32 4, %v10523_v37 }
0x1129   :  { %3069 = vadd.xlane.f32.xlu0 %v3068_v24  ;;  %v3283_v24 = vsub.s32 5, %v10523_v37 }
0x11b1   :  { %v3067_v23 = vpop.xlane.xlu1 %3066 }
0x11b2   :  { %9983 = vrcp.f32 %v3067_v23  ;;  %v3064_v39 = vpop.xlane.xlu0 %3063  ;;  %v11423_v23 = vld [vmem:[%s12723_s4] sm:$0xff] }
0x11b3   :  { %9985 = vrcp.f32 %v3064_v39  ;;  %v3279_v39 = vrot.slane %v11423_v23, %v11417_v6 }
0x11b5   :  { %v3073_v7 = vpop.xlane.xlu1 %3072 }
0x11b6   :  { %9987 = vrcp.f32 %v3073_v7  ;;  %v3070_v62 = vpop.xlane.xlu0 %3069 }
0x11b7   :  { %9989 = vrcp.f32 %v3070_v62 }
0x11bc   :  { %v9984_v16 = vpop.eup %9983 }
0x11bd   :  { %v9986_v26 = vpop.eup %9985  ;;  %v3077_v15 = vmul.f32 %v9984_v16, %v9976_v4  ;;  %v3284_v16 = vrot.slane %v11423_v23, %v3283_v24 }
0x11be   :  { %v3075_v43 = vmul.f32 %v9986_v26, %v9978_v47 }
0x11c0   :  { %v9988_v30 = vpop.eup %9987  ;;  %8856 = vmatprep.mubr.msk.f32.mxu0 %vm1990_vm4, %v3075_v43 }
0x11c1   :  { %v9990_v10 = vpop.eup %9989  ;;  %8857 = vmatmul.mubr.msk.f32.vlgmr.msra.gmra.mrb[56].mxu0 %vm1990_vm4, %v3077_v15  ;;  %v3081_v1 = vmul.f32 %v9988_v30, %v9980_v27  ;;  %v103_v15 = vld [vmem:[%s12731_s15 + $0x8] sm:$0xff]  ;;  %v104_v30 = vld [vmem:[%s12731_s15 + $0x10] sm:$0xff] }
0x11c2   :  { %v3079_v29 = vmul.f32 %v9990_v10, %v9982_v5  ;;  %v105_v10 = vld [vmem:[%s12731_s15 + $0x18] sm:$0xff] }
0x11c4   :  { %8859 = vmatprep.mubr.msk.f32.mxu0 %vm1990_vm4, %v3079_v29  ;;  %v106_v29 = vld [vmem:[%s12732_s16] sm:$0xff] }
0x11c5   :  { %8860 = vmatmul.mubr.msk.f32.gmra.mrb[58].mxu0 %vm1990_vm4, %v3081_v1  ;;  %v108_v1 = vld [vmem:[%s12732_s16 + $0x10] sm:$0xff] }
0x11c6   :  { %8875 = vmatprep.mubr.msk.f32.mxu0 %vm3286_vm5, %v102_v18 }
0x1294   :  { %v8858_v21 = vpop.f32.mrb[56].mxu0 }
0x1295   :  { %v3180_v32 = vmul.f32 %v8858_v21, %v10593_v38  ;;  %v3160_v20 = vpop.f32.mrb[57].mxu0 }
0x1296   :  { %v3179_v31 = vmul.f32 %v3160_v20, %v10572_v17 }
0x1298   :  { %v3181_v60 = vadd.f32 %v3180_v32, %v3179_v31  ;;  %v8861_v13 = vpop.f32.mrb[58].mxu0 }
0x1299   :  { %v3170_v34 = vpop.f32.mrb[59].mxu0  ;;  %v3184_v53 = vmul.f32 %v8861_v13, %v10621_v54 }
0x129a   :  { %v3182_v61 = vmul.f32 %v3170_v34, %v10607_v46 }
0x129c   :  { %v3183_v55 = vadd.f32 %v3182_v61, %v3181_v60 }
0x129e   :  { %v3185_v9 = vadd.f32 %v3184_v53, %v3183_v55 }
0x12a0   :  { %8871 = vmatmul.mubr.msk.f32.vlgmr.msra.gmra.mrb[86].mxu1 %vm246_vm1, %v3185_v9 }
0x1373   :  { %v3259_v52 = vpop.f32.mrb[86].mxu1 }
0x1374   :  { %v3260_v57 = vadd.f32 %v3259_v52, %v3189_v58  ;;  %v8872_v35 = vpop.f32.mrb[87].mxu1 }
0x1376   :  { %v3263_v59 = vsel %vm246_vm1, %v3260_v57, 0.0 }
0x1377   :  { %3264 = vadd.xlane.f32.xlu0 %v3263_v59 }
0x1404   :  { %v3265_v2 = vpop.xlane.xlu0 %3264 }
0x1405   :  { %v3266_v56 = vmul.f32 0.03125, %v3265_v2 }
0x1407   :  { %v3267_v49 = vsub.f32 %v3260_v57, %v3266_v56 }
0x1409   :  { %v3268_v4 = vmul.f32 %v3267_v49, %v3267_v49 }
0x140b   :  { %v3269_v47 = vsel %vm246_vm1, %v3268_v4, 0.0 }
0x140c   :  { %3270 = vadd.xlane.f32.xlu1 %v3269_v47 }
0x1499   :  { %v3271_v14 = vpop.xlane.xlu1 %3270 }
0x149a   :  { %v3272_v27 = vmul.f32 0.03125, %v3271_v14  ;;  %v3557_v14 = vld [vmem:[%s12733_s5] sm:$0xff] }
0x149c   :  { %v3273_v5 = vadd.f32 1e-05, %v3272_v27  ;;  %v3558_v27 = vld [vmem:[%s12733_s5 + $0x8] sm:$0xff] }
0x149e   :  { %9991 = vrsqrt.f32 %v3273_v5  ;;  %v9590_v5 = vpack.c.bf16 %v3558_v27, %v3557_v14  ;;  %v3778_v14 = vld [vmem:[%s12734_s7 + $0x28] sm:$0xff] }
0x14a0   :  { %9591 = vmatprep.subr.bf16.mxu1 %v9590_v5 }
0x14a1   :  { %9593 = vmatpush3.bf16.msra.mxu1 %v9590_v5  ;;  %v3779_v5 = vld [vmem:[%s12734_s7 + $0x30] sm:$0xff] }
0x14a8   :  { %v9992_v7 = vpop.eup %9991 }
0x14a9   :  { %v3275_v62 = vmul.f32 %v9992_v7, %v3267_v49  ;;  %v3560_v7 = vld [vmem:[%s12733_s5 + $0x18] sm:$0xff] }
0x14ab   :  { %v3280_v26 = vmul.f32 %v3279_v39, %v3275_v62  ;;  %v3559_v39 = vld [vmem:[%s12733_s5 + $0x10] sm:$0xff] }
0x14ac   :  { %v9594_v62 = vpack.c.bf16 %v3560_v7, %v3559_v39  ;;  %v3780_v39 = vld [vmem:[%s12734_s7 + $0x38] sm:$0xff] }
0x14ad   :  { %v3285_v43 = vadd.f32 %v3284_v16, %v3280_v26  ;;  %v9610_v7 = vpack.c.bf16 %v3780_v39, %v3779_v5 }
0x14ae   :  { %9595 = vmatprep.subr.bf16.mxu1 %v9594_v62 }
0x14af   :  { %8873 = vmatprep.subr.mxu0 %v3285_v43  ;;  %9597 = vmatpush3.bf16.msra.mxu1 %v9594_v62  ;;  %v3781_v62 = vld [vmem:[%s12734_s7 + $0x40] sm:$0xff] }
0x14b0   :  { %8874 = vmatpush3.msra.mxu0 %v3285_v43 }
0x14b1   :  { %8876 = vmatmul.mubr.msk.f32.vlgmr.msra.gmra.mrb[60].mxu0 %vm3286_vm5, %v103_v15  ;;  %9587 = vmatprep.subr.bf16.mxu0 %v11317_v36 }
0x14b2   :  { %9589 = vmatpush3.bf16.msra.mxu0 %v11317_v36  ;;  %8878 = vmatprep.mubr.msk.f32.mxu0 %vm3286_vm5, %v104_v30  ;;  %v107_v36 = vld [vmem:[%s12732_s16 + $0x8] sm:$0xff] }
0x14b3   :  { %8885 = vmatprep.subr.mxu0 %v11325_v40 }
0x14b5   :  { %8879 = vmatmul.mubr.msk.f32.gmra.mrb[62].mxu0 %vm3286_vm5, %v105_v10 }
0x14b6   :  { %8886 = vmatpush3.msra.mxu0 %v11325_v40  ;;  %8887 = vmatprep.mubr.msk.f32.mxu0 %vm1990_vm4, %v106_v29 }
0x14b9   :  { %8888 = vmatmul.mubr.msk.f32.vlgmr.msra.gmra.mrb[60].mxu0 %vm1990_vm4, %v107_v36 }
0x14ba   :  { %8890 = vmatprep.mubr.msk.f32.mxu0 %vm1990_vm4, %v108_v1 }
0x14bd   :  { %8891 = vmatmul.mubr.msk.f32.gmra.mrb[62].mxu0 %vm1990_vm4, %v109_v44 }
0x158c   :  { %v8889_v40 = vpop.f32.mrb[60].mxu0 }
0x158d   :  { %v11463_v12 = vadd.f32 %v8889_v40, %v10905_v48  ;;  %v3466_v19 = vpop.f32.mrb[61].mxu0 }
0x158e   :  { %v11466_v3 = vadd.f32 %v3466_v19, %v10908_v51 }
0x158f   :  { %v3492_v8 = vsel %vm246_vm1, %v11463_v12, 0.0 }
0x1590   :  { %3493 = vadd.xlane.f32.xlu1 %v3492_v8  ;;  %v8892_v33 = vpop.f32.mrb[62].mxu0  ;;  %v3489_v21 = vsel %vm246_vm1, %v11466_v3, 0.0  ;;  %v3543_v8 = vsub.s32 6, %v10523_v37 }
0x1591   :  { %v11473_v32 = vadd.f32 %v8892_v33, %v10915_v11  ;;  %3490 = vadd.xlane.f32.xlu0 %v3489_v21  ;;  %v3476_v20 = vpop.f32.mrb[63].mxu0  ;;  %v3551_v33 = vsub.s32 7, %v10523_v37  ;;  %v8003_v37 = vld [vmem:[%s12734_s7 + $0x80] sm:$0xff] }
0x1592   :  { %v11476_v48 = vadd.f32 %v3476_v20, %v10918_v63  ;;  %v3544_v21 = vrot.slane %v11423_v23, %v3543_v8 }
0x1593   :  { %v3498_v51 = vsel %vm246_vm1, %v11473_v32, 0.0 }
0x1594   :  { %3499 = vadd.xlane.f32.xlu1 %v3498_v51  ;;  %v3495_v31 = vsel %vm246_vm1, %v11476_v48, 0.0 }
0x1595   :  { %3496 = vadd.xlane.f32.xlu0 %v3495_v31 }
0x161d   :  { %v3494_v60 = vpop.xlane.xlu1 %3493 }
0x161e   :  { %v3502_v13 = vmul.f32 0.03125, %v3494_v60  ;;  %v3491_v34 = vpop.xlane.xlu0 %3490 }
0x161f   :  { %v3501_v61 = vmul.f32 0.03125, %v3491_v34 }
0x1620   :  { %v3506_v11 = vsub.f32 %v11463_v12, %v3502_v13  ;;  %v3552_v13 = vrot.slane %v11423_v23, %v3551_v33  ;;  %v3773_v23 = vld [vmem:[%s12734_s7] sm:$0xff] }
0x1621   :  { %v3505_v53 = vsub.f32 %v11466_v3, %v3501_v61  ;;  %v3500_v55 = vpop.xlane.xlu1 %3499 }
0x1622   :  { %v3504_v9 = vmul.f32 0.03125, %v3500_v55  ;;  %v3497_v63 = vpop.xlane.xlu0 %3496  ;;  %v3510_v58 = vmul.f32 %v3506_v11, %v3506_v11 }
0x1623   :  { %v3503_v52 = vmul.f32 0.03125, %v3497_v63  ;;  %v3509_v57 = vmul.f32 %v3505_v53, %v3505_v53 }
0x1624   :  { %v3508_v35 = vsub.f32 %v11473_v32, %v3504_v9  ;;  %v3516_v59 = vsel %vm246_vm1, %v3510_v58, 0.0 }
0x1625   :  { %v3507_v2 = vsub.f32 %v11476_v48, %v3503_v52  ;;  %3517 = vadd.xlane.f32.xlu1 %v3516_v59  ;;  %v3513_v56 = vsel %vm246_vm1, %v3509_v57, 0.0 }
0x1626   :  { %3514 = vadd.xlane.f32.xlu0 %v3513_v56  ;;  %v3512_v49 = vmul.f32 %v3508_v35, %v3508_v35 }
0x1627   :  { %v3511_v4 = vmul.f32 %v3507_v2, %v3507_v2 }
0x1628   :  { %v3522_v47 = vsel %vm246_vm1, %v3512_v49, 0.0  ;;  %v3775_v49 = vld [vmem:[%s12734_s7 + $0x10] sm:$0xff] }
0x1629   :  { %3523 = vadd.xlane.f32.xlu1 %v3522_v47  ;;  %v3519_v18 = vsel %vm246_vm1, %v3511_v4, 0.0  ;;  %v3776_v4 = vld [vmem:[%s12734_s7 + $0x18] sm:$0xff] }
0x162a   :  { %3520 = vadd.xlane.f32.xlu0 %v3519_v18  ;;  %v9602_v47 = vpack.c.bf16 %v3776_v4, %v3775_v49  ;;  %v3777_v18 = vld [vmem:[%s12734_s7 + $0x20] sm:$0xff] }
0x162b   :  { %v9606_v27 = vpack.c.bf16 %v3778_v14, %v3777_v18 }
0x16b2   :  { %v3518_v16 = vpop.xlane.xlu1 %3517 }
0x16b3   :  { %v3526_v26 = vmul.f32 0.03125, %v3518_v16  ;;  %v3515_v43 = vpop.xlane.xlu0 %3514  ;;  %v3782_v16 = vld [vmem:[%s12734_s7 + $0x48] sm:$0xff] }
0x16b4   :  { %v3525_v15 = vmul.f32 0.03125, %v3515_v43  ;;  %v3783_v43 = vld [vmem:[%s12734_s7 + $0x50] sm:$0xff] }
0x16b5   :  { %v3530_v30 = vadd.f32 1e-05, %v3526_v26  ;;  %v9614_v26 = vpack.c.bf16 %v3782_v16, %v3781_v62 }
0x16b6   :  { %v3529_v10 = vadd.f32 1e-05, %v3525_v15  ;;  %v3524_v29 = vpop.xlane.xlu1 %3523  ;;  %v3784_v15 = vld [vmem:[%s12734_s7 + $0x58] sm:$0xff] }
0x16b7   :  { %9993 = vrsqrt.f32 %v3530_v30  ;;  %v3528_v36 = vmul.f32 0.03125, %v3524_v29  ;;  %v3521_v1 = vpop.xlane.xlu0 %3520  ;;  %v9618_v30 = vpack.c.bf16 %v3784_v15, %v3783_v43  ;;  %v3786_v29 = vld [vmem:[%s12734_s7 + $0x68] sm:$0xff] }
0x16b8   :  { %9995 = vrsqrt.f32 %v3529_v10  ;;  %v3527_v44 = vmul.f32 0.03125, %v3521_v1  ;;  %v3785_v10 = vld [vmem:[%s12734_s7 + $0x60] sm:$0xff]  ;;  %v3787_v1 = vld [vmem:[%s12734_s7 + $0x70] sm:$0xff] }
0x16b9   :  { %v3532_v40 = vadd.f32 1e-05, %v3528_v36  ;;  %v9622_v36 = vpack.c.bf16 %v3786_v29, %v3785_v10 }
0x16ba   :  { %v3531_v19 = vadd.f32 1e-05, %v3527_v44  ;;  %v3788_v44 = vld [vmem:[%s12734_s7 + $0x78] sm:$0xff] }
0x16bb   :  { %9997 = vrsqrt.f32 %v3532_v40  ;;  %v9626_v40 = vpack.c.bf16 %v3788_v44, %v3787_v1 }
0x16bc   :  { %9999 = vrsqrt.f32 %v3531_v19  ;;  %v7806_v19 = vld [vmem:[%s12735_s6] ss:$0 sm:$0xff] }
0x16c1   :  { %v9994_v20 = vpop.eup %9993 }
0x16c2   :  { %v9996_v51 = vpop.eup %9995  ;;  %v3538_v31 = vmul.f32 %v9994_v20, %v3506_v11 }
0x16c3   :  { %v3537_v60 = vmul.f32 %v9996_v51, %v3505_v53 }
0x16c4   :  { %v3546_v34 = vmul.f32 %v3544_v21, %v3538_v31 }
0x16c5   :  { %v9998_v61 = vpop.eup %9997  ;;  %v3545_v55 = vmul.f32 %v3544_v21, %v3537_v60 }
0x16c6   :  { %v10000_v9 = vpop.eup %9999  ;;  %v3540_v63 = vmul.f32 %v9998_v61, %v3508_v35  ;;  %v3554_v57 = vadd.f32 %v3552_v13, %v3546_v34  ;;  %v3774_v35 = vld [vmem:[%s12734_s7 + $0x8] sm:$0xff] }
0x16c7   :  { %v3553_v58 = vadd.f32 %v3552_v13, %v3545_v55  ;;  %v3539_v52 = vmul.f32 %v10000_v9, %v3507_v2  ;;  %v9598_v2 = vpack.c.bf16 %v3774_v35, %v3773_v23 }
0x16c8   :  { %v3548_v59 = vmul.f32 %v3544_v21, %v3540_v63 }
0x16c9   :  { %8901 = vmatprep.mubr.msk.f32.mxu1 %vm246_vm1, %v3553_v58  ;;  %v3547_v56 = vmul.f32 %v3544_v21, %v3539_v52  ;;  %9599 = vmatprep.subr.bf16.mxu1 %v9598_v2 }
0x16ca   :  { %8902 = vmatmul.mubr.msk.f32.vlgmr.msra.gmra.mrb[88].mxu1 %vm246_vm1, %v3554_v57  ;;  %v3556_v53 = vadd.f32 %v3552_v13, %v3548_v59 }
0x16cb   :  { %v3555_v11 = vadd.f32 %v3552_v13, %v3547_v56  ;;  %9601 = vmatpush3.bf16.msra.mxu1 %v9598_v2 }
0x16cc   :  { %9603 = vmatprep.subr.bf16.mxu1 %v9602_v47 }
0x16cd   :  { %8904 = vmatprep.mubr.msk.f32.mxu1 %vm246_vm1, %v3555_v11 }
0x16ce   :  { %8905 = vmatmul.mubr.msk.f32.gmra.mrb[90].mxu1 %vm246_vm1, %v3556_v53 }
0x16cf   :  { %9605 = vmatpush3.bf16.msra.mxu1 %v9602_v47 }
0x16d0   :  { %9607 = vmatprep.subr.bf16.mxu1 %v9606_v27 }
0x16d3   :  { %9609 = vmatpush3.bf16.msra.mxu1 %v9606_v27 }
0x16d4   :  { %9611 = vmatprep.subr.bf16.mxu1 %v9610_v7 }
0x16d7   :  { %9613 = vmatpush3.bf16.msra.mxu1 %v9610_v7 }
0x16d8   :  { %9615 = vmatprep.subr.bf16.mxu1 %v9614_v26 }
0x16db   :  { %9617 = vmatpush3.bf16.msra.mxu1 %v9614_v26 }
0x16dc   :  { %9619 = vmatprep.subr.bf16.mxu1 %v9618_v30 }
0x16df   :  { %9621 = vmatpush3.bf16.msra.mxu1 %v9618_v30 }
0x16e0   :  { %9623 = vmatprep.subr.bf16.mxu1 %v9622_v36 }
0x16e3   :  { %9625 = vmatpush3.bf16.msra.mxu1 %v9622_v36 }
0x16e4   :  { %9627 = vmatprep.subr.bf16.mxu1 %v9626_v40 }
0x16e7   :  { %9629 = vmatpush3.bf16.msra.mxu1 %v9626_v40 }
0x179d   :  { %v8903_v21 = vpop.f32.mrb[88].mxu1 }
0x179e   :  { %v11565_v20 = vadd.f32 %v8903_v21, %v7806_v19  ;;  %v3646_v51 = vpop.f32.mrb[89].mxu1 }
0x179f   :  { %v11567_v31 = vadd.f32 %v7806_v19, %v3646_v51 }
0x17a0   :  { %v11570_v60 = vmul.f32 0.70710677, %v11565_v20 }
0x17a1   :  { %v11573_v13 = vmul.f32 0.70710677, %v11567_v31  ;;  %v8906_v34 = vpop.f32.mrb[90].mxu1 }
0x17a2   :  { %v3670_v61 = vand.u32 2147483647, %v11570_v60  ;;  %v11576_v55 = vadd.f32 %v8906_v34, %v7806_v19  ;;  %v3656_v9 = vpop.f32.mrb[91].mxu1  ;;  %vm3750_vm6 = vcmp.ge.f32.partialorder %v11570_v60, 0.0 }
0x17a3   :  { %v3669_v63 = vand.u32 2147483647, %v11573_v13  ;;  %v11579_v58 = vadd.f32 %v7806_v19, %v3656_v9  ;;  %vm3749_vm7 = vcmp.ge.f32.partialorder %v11573_v13, 0.0 }
0x17a4   :  { %v3674_v52 = vmul.f32 0.3275911, %v3670_v61  ;;  %v11582_v57 = vmul.f32 0.70710677, %v11576_v55  ;;  %v3726_v18 = vsub.f32 0.0, %v3670_v61 }
0x17a5   :  { %v3673_v59 = vmul.f32 0.3275911, %v3669_v63  ;;  %v11585_v56 = vmul.f32 0.70710677, %v11579_v58  ;;  %v3725_v14 = vsub.f32 0.0, %v3669_v63 }
0x17a6   :  { %v3678_v11 = vadd.f32 1.0, %v3674_v52  ;;  %v3672_v53 = vand.u32 2147483647, %v11582_v57  ;;  %v3730_v5 = vmul.f32 %v3726_v18, %v3670_v61  ;;  %vm3752_vm8 = vcmp.ge.f32.partialorder %v11582_v57, 0.0 }
0x17a7   :  { %v3677_v23 = vadd.f32 1.0, %v3673_v59  ;;  %v3671_v35 = vand.u32 2147483647, %v11585_v56  ;;  %v3729_v16 = vmul.f32 %v3725_v14, %v3669_v63  ;;  %vm3751_vm9 = vcmp.ge.f32.partialorder %v11585_v56, 0.0 }
0x17a8   :  { %10001 = vrcp.f32 %v3678_v11  ;;  %v3676_v2 = vmul.f32 0.3275911, %v3672_v53  ;;  %v3728_v39 = vsub.f32 0.0, %v3672_v53  ;;  %v3735_v10 = vmul.f32 1.442695, %v3730_v5 }
0x17a9   :  { %10003 = vrcp.f32 %v3677_v23  ;;  %v3675_v49 = vmul.f32 0.3275911, %v3671_v35  ;;  %v3727_v26 = vsub.f32 0.0, %v3671_v35  ;;  %v3733_v40 = vmul.f32 1.442695, %v3729_v16 }
0x17aa   :  { %v3680_v4 = vadd.f32 1.0, %v3676_v2  ;;  %v3732_v29 = vmul.f32 %v3728_v39, %v3672_v53 }
0x17ab   :  { %v3679_v47 = vadd.f32 1.0, %v3675_v49  ;;  %v3731_v19 = vmul.f32 %v3727_v26, %v3671_v35 }
0x17ac   :  { %10005 = vrcp.f32 %v3680_v4  ;;  %v3739_v52 = vmul.f32 1.442695, %v3732_v29 }
0x17ad   :  { %10007 = vrcp.f32 %v3679_v47  ;;  %v3737_v23 = vmul.f32 1.442695, %v3731_v19 }
0x17ae   :  { %10009 = vpow2.f32 %v3735_v10 }
0x17af   :  { %10011 = vpow2.f32 %v3733_v40 }
0x17b0   :  { %10013 = vpow2.f32 %v3739_v52 }
0x17b1   :  { %10015 = vpow2.f32 %v3737_v23 }
0x17b2   :  { %v10002_v27 = vpop.eup %10001 }
0x17b3   :  { %v10004_v7 = vpop.eup %10003  ;;  %v3690_v62 = vmul.f32 1.0614054, %v10002_v27 }
0x17b4   :  { %v3689_v43 = vmul.f32 1.0614054, %v10004_v7 }
0x17b5   :  { %v3694_v15 = vadd.f32 -1.4531521, %v3690_v62 }
0x17b6   :  { %v10006_v30 = vpop.eup %10005  ;;  %v3693_v36 = vadd.f32 -1.4531521, %v3689_v43 }
0x17b7   :  { %v10008_v1 = vpop.eup %10007  ;;  %v3698_v44 = vmul.f32 %v10002_v27, %v3694_v15  ;;  %v3692_v21 = vmul.f32 1.0614054, %v10006_v30 }
0x17b8   :  { %v3697_v51 = vmul.f32 %v10004_v7, %v3693_v36  ;;  %v3691_v34 = vmul.f32 1.0614054, %v10008_v1  ;;  %v10010_v36 = vpop.eup %10009 }
0x17b9   :  { %v3702_v9 = vadd.f32 1.4214138, %v3698_v44  ;;  %v3696_v61 = vadd.f32 -1.4531521, %v3692_v21  ;;  %v10012_v19 = vpop.eup %10011 }
0x17ba   :  { %v3701_v59 = vadd.f32 1.4214138, %v3697_v51  ;;  %v3695_v63 = vadd.f32 -1.4531521, %v3691_v34 }
0x17bb   :  { %v3706_v11 = vmul.f32 %v10002_v27, %v3702_v9  ;;  %v3700_v2 = vmul.f32 %v10006_v30, %v3696_v61 }
0x17bc   :  { %v3705_v49 = vmul.f32 %v10004_v7, %v3701_v59  ;;  %v3699_v53 = vmul.f32 %v10008_v1, %v3695_v63  ;;  %v10014_v59 = vpop.eup %10013 }
0x17bd   :  { %v3710_v4 = vadd.f32 -0.28449672, %v3706_v11  ;;  %v3704_v47 = vadd.f32 1.4214138, %v3700_v2  ;;  %v10016_v23 = vpop.eup %10015 }
0x17be   :  { %v3709_v18 = vadd.f32 -0.28449672, %v3705_v49  ;;  %v3703_v35 = vadd.f32 1.4214138, %v3699_v53 }
0x17bf   :  { %v3714_v14 = vmul.f32 %v10002_v27, %v3710_v4  ;;  %v3708_v5 = vmul.f32 %v10006_v30, %v3704_v47 }
0x17c0   :  { %v3713_v39 = vmul.f32 %v10004_v7, %v3709_v18  ;;  %v3707_v62 = vmul.f32 %v10008_v1, %v3703_v35 }
0x17c1   :  { %v3718_v16 = vadd.f32 0.2548296, %v3714_v14  ;;  %v3712_v26 = vadd.f32 -0.28449672, %v3708_v5  ;;  %v3761_v14 = vmul.f32 0.5, %v11567_v31  ;;  %v3764_v31 = vmul.f32 0.5, %v11576_v55 }
0x17c2   :  { %v3717_v43 = vadd.f32 0.2548296, %v3713_v39  ;;  %v3711_v15 = vadd.f32 -0.28449672, %v3707_v62 }
0x17c3   :  { %v3722_v10 = vmul.f32 %v10002_v27, %v3718_v16  ;;  %v3716_v29 = vmul.f32 %v10006_v30, %v3712_v26 }
0x17c4   :  { %v3721_v44 = vmul.f32 %v10004_v7, %v3717_v43  ;;  %v3715_v40 = vmul.f32 %v10008_v1, %v3711_v15  ;;  %v3763_v43 = vmul.f32 0.5, %v11579_v58 }
0x17c5   :  { %v3742_v21 = vmul.f32 %v10010_v36, %v3722_v10  ;;  %v3720_v51 = vadd.f32 0.2548296, %v3716_v29 }
0x17c6   :  { %v3741_v34 = vmul.f32 %v10012_v19, %v3721_v44  ;;  %v3719_v9 = vadd.f32 0.2548296, %v3715_v40 }
0x17c7   :  { %v3746_v61 = vsub.f32 1.0, %v3742_v21  ;;  %v3724_v52 = vmul.f32 %v10006_v30, %v3720_v51 }
0x17c8   :  { %v3745_v63 = vsub.f32 1.0, %v3741_v34  ;;  %v3723_v11 = vmul.f32 %v10008_v1, %v3719_v9  ;;  %v3762_v1 = vmul.f32 0.5, %v11565_v20  ;;  %v3881_v20 = vrot.slane %v11310_v22, %v11417_v6 }
0x17c9   :  { %v3754_v2 = vsub.f32 0.0, %v3746_v61  ;;  %v3744_v49 = vmul.f32 %v10014_v59, %v3724_v52 }
0x17ca   :  { %v3753_v27 = vsub.f32 0.0, %v3745_v63  ;;  %v3743_v53 = vmul.f32 %v10016_v23, %v3723_v11 }
0x17cb   :  { %v3758_v4 = vsel %vm3750_vm6, %v3746_v61, %v3754_v2  ;;  %v3748_v7 = vsub.f32 1.0, %v3744_v49 }
0x17cc   :  { %v3766_v47 = vadd.f32 1.0, %v3758_v4  ;;  %v3757_v18 = vsel %vm3749_vm7, %v3745_v63, %v3753_v27  ;;  %v3747_v35 = vsub.f32 1.0, %v3743_v53 }
0x17cd   :  { %v3765_v30 = vadd.f32 1.0, %v3757_v18  ;;  %v3756_v5 = vsub.f32 0.0, %v3748_v7 }
0x17ce   :  { %v3755_v39 = vsub.f32 0.0, %v3747_v35  ;;  %v3770_v16 = vmul.f32 %v3766_v47, %v3762_v1 }
0x17cf   :  { %v3769_v60 = vmul.f32 %v3765_v30, %v3761_v14  ;;  %v3760_v62 = vsel %vm3752_vm8, %v3748_v7, %v3756_v5 }
0x17d0   :  { %v3759_v26 = vsel %vm3751_vm9, %v3747_v35, %v3755_v39  ;;  %v3768_v13 = vadd.f32 1.0, %v3760_v62  ;;  %v7813_v39 = vld [vmem:[%s12750_s24 + $0x1a0] sm:$0xff] }
0x17d1   :  { %8939 = vmatprep.mubr.f32.mxu1 %v3769_v60  ;;  %v3767_v15 = vadd.f32 1.0, %v3759_v26  ;;  %v7814_v60 = vld [vmem:[%s12750_s24 + $0x1a8] sm:$0xff]  ;;  %v7816_v26 = vld [vmem:[%s12750_s24 + $0x1b8] sm:$0xff] }
0x17d2   :  { %8940 = vmatmul.mubr.f32.vlgmr.msra.gmra.mrb[92].mxu1 %v3770_v16  ;;  %v3772_v29 = vmul.f32 %v3768_v13, %v3764_v31  ;;  %v9630_v62 = vpack.c.bf16 %v7814_v60, %v7813_v39  ;;  %v7815_v16 = vld [vmem:[%s12750_s24 + $0x1b0] sm:$0xff]  ;;  %v7822_v39 = vld [vmem:[%s12750_s24 + $0x1e8] sm:$0xff] }
0x17d3   :  { %v3771_v10 = vmul.f32 %v3767_v15, %v3763_v43  ;;  %v9634_v13 = vpack.c.bf16 %v7816_v26, %v7815_v16  ;;  %v7817_v43 = vld [vmem:[%s12750_s24 + $0x1c0] sm:$0xff]  ;;  %v7818_v15 = vld [vmem:[%s12750_s24 + $0x1c8] sm:$0xff]  ;;  %v7824_v16 = vld [vmem:[%s12750_s24 + $0x1f8] sm:$0xff] }
0x17d4   :  { %9631 = vmatprep.subr.bf16.mxu0 %v9630_v62  ;;  %v9638_v31 = vpack.c.bf16 %v7818_v15, %v7817_v43 }
0x17d5   :  { %8942 = vmatprep.mubr.f32.mxu1 %v3771_v10  ;;  %9633 = vmatpush3.bf16.msra.mxu0 %v9630_v62  ;;  %v7823_v62 = vld [vmem:[%s12750_s24 + $0x1f0] sm:$0xff] }
0x17d6   :  { %8943 = vmatmul.mubr.f32.gmra.mrb[94].mxu1 %v3772_v29  ;;  %9635 = vmatprep.subr.bf16.mxu0 %v9634_v13  ;;  %v9650_v26 = vpack.c.bf16 %v7824_v16, %v7823_v62 }
0x17d9   :  { %9637 = vmatpush3.bf16.msra.mxu0 %v9634_v13 }
0x17da   :  { %9639 = vmatprep.subr.bf16.mxu0 %v9638_v31 }
0x18a5   :  { %v8941_v57 = vpop.f32.mrb[92].mxu1 }
0x18a6   :  { %v3875_v56 = vadd.f32 %v11463_v12, %v8941_v57  ;;  %v3855_v36 = vpop.f32.mrb[93].mxu1 }
0x18a7   :  { %v3874_v44 = vadd.f32 %v11466_v3, %v3855_v36 }
0x18a8   :  { %v11601_v40 = vadd.f32 %v3881_v20, %v3875_v56 }
0x18a9   :  { %v11603_v58 = vadd.f32 %v3881_v20, %v3874_v44  ;;  %v8944_v19 = vpop.f32.mrb[94].mxu1 }
0x18aa   :  { %v3877_v55 = vadd.f32 %v11473_v32, %v8944_v19  ;;  %v3865_v21 = vpop.f32.mrb[95].mxu1  ;;  %v3892_v51 = vsel %vm246_vm1, %v11601_v40, 0.0 }
0x18ab   :  { %v3876_v34 = vadd.f32 %v11476_v48, %v3865_v21  ;;  %3893 = vadd.xlane.f32.xlu1 %v3892_v51  ;;  %v3889_v22 = vsel %vm246_vm1, %v11603_v58, 0.0 }
0x18ac   :  { %v11611_v12 = vadd.f32 %v3881_v20, %v3877_v55  ;;  %3890 = vadd.xlane.f32.xlu0 %v3889_v22  ;;  %v7811_v22 = vld [vmem:[%s12723_s4 + $0x10] sm:$0xff] }
0x18ad   :  { %v11613_v3 = vadd.f32 %v3881_v20, %v3876_v34 }
0x18ae   :  { %v3898_v9 = vsel %vm246_vm1, %v11611_v12, 0.0 }
0x18af   :  { %3899 = vadd.xlane.f32.xlu1 %v3898_v9  ;;  %v3895_v32 = vsel %vm246_vm1, %v11613_v3, 0.0  ;;  %v3944_v9 = vrot.slane %v7811_v22, %v10526_v41 }
0x18b0   :  { %3896 = vadd.xlane.f32.xlu0 %v3895_v32 }
0x1938   :  { %v3894_v61 = vpop.xlane.xlu1 %3893 }
0x1939   :  { %v3902_v52 = vmul.f32 0.03125, %v3894_v61  ;;  %v3891_v48 = vpop.xlane.xlu0 %3890 }
0x193a   :  { %v3901_v59 = vmul.f32 0.03125, %v3891_v48 }
0x193b   :  { %v3906_v63 = vsub.f32 %v11601_v40, %v3902_v52 }
0x193c   :  { %v3905_v11 = vsub.f32 %v11603_v58, %v3901_v59  ;;  %v3900_v23 = vpop.xlane.xlu1 %3899  ;;  %v3952_v59 = vrot.slane %v7811_v22, %v10532_v45 }
0x193d   :  { %v3904_v2 = vmul.f32 0.03125, %v3900_v23  ;;  %v3897_v49 = vpop.xlane.xlu0 %3896  ;;  %v3910_v27 = vmul.f32 %v3906_v63, %v3906_v63 }
0x193e   :  { %v3903_v53 = vmul.f32 0.03125, %v3897_v49  ;;  %v3909_v4 = vmul.f32 %v3905_v11, %v3905_v11 }
0x193f   :  { %v3908_v7 = vsub.f32 %v11611_v12, %v3904_v2  ;;  %v3916_v47 = vsel %vm246_vm1, %v3910_v27, 0.0  ;;  %v7819_v27 = vld [vmem:[%s12750_s24 + $0x1d0] sm:$0xff] }
0x1940   :  { %v3907_v18 = vsub.f32 %v11613_v3, %v3903_v53  ;;  %3917 = vadd.xlane.f32.xlu1 %v3916_v47  ;;  %v3913_v35 = vsel %vm246_vm1, %v3909_v4, 0.0  ;;  %v7820_v53 = vld [vmem:[%s12750_s24 + $0x1d8] sm:$0xff] }
0x1941   :  { %3914 = vadd.xlane.f32.xlu0 %v3913_v35  ;;  %v3912_v14 = vmul.f32 %v3908_v7, %v3908_v7 }
0x1942   :  { %v3911_v30 = vmul.f32 %v3907_v18, %v3907_v18 }
0x1943   :  { %v3922_v5 = vsel %vm246_vm1, %v3912_v14, 0.0 }
0x1944   :  { %3923 = vadd.xlane.f32.xlu1 %v3922_v5  ;;  %v3919_v1 = vsel %vm246_vm1, %v3911_v30, 0.0 }
0x1945   :  { %3920 = vadd.xlane.f32.xlu0 %v3919_v1  ;;  %v7821_v1 = vld [vmem:[%s12750_s24 + $0x1e0] sm:$0xff] }
0x19cd   :  { %v3918_v10 = vpop.xlane.xlu1 %3917 }
0x19ce   :  { %v3926_v29 = vmul.f32 0.03125, %v3918_v10  ;;  %v3915_v20 = vpop.xlane.xlu0 %3914 }
0x19cf   :  { %v3925_v57 = vmul.f32 0.03125, %v3915_v20 }
0x19d0   :  { %v3930_v56 = vadd.f32 1e-05, %v3926_v29 }
0x19d1   :  { %v3929_v36 = vadd.f32 1e-05, %v3925_v57  ;;  %v3924_v44 = vpop.xlane.xlu1 %3923 }
0x19d2   :  { %10017 = vrsqrt.f32 %v3930_v56  ;;  %v3928_v19 = vmul.f32 0.03125, %v3924_v44  ;;  %v3921_v55 = vpop.xlane.xlu0 %3920 }
0x19d3   :  { %10019 = vrsqrt.f32 %v3929_v36  ;;  %v3927_v21 = vmul.f32 0.03125, %v3921_v55 }
0x19d4   :  { %v3932_v51 = vadd.f32 1e-05, %v3928_v19 }
0x19d5   :  { %v3931_v34 = vadd.f32 1e-05, %v3927_v21 }
0x19d6   :  { %10021 = vrsqrt.f32 %v3932_v51 }
0x19d7   :  { %10023 = vrsqrt.f32 %v3931_v34 }
0x19dc   :  { %v10018_v32 = vpop.eup %10017 }
0x19dd   :  { %v10020_v61 = vpop.eup %10019  ;;  %v3938_v52 = vmul.f32 %v10018_v32, %v3906_v63 }
0x19de   :  { %v3937_v48 = vmul.f32 %v10020_v61, %v3905_v11  ;;  %v9642_v11 = vpack.c.bf16 %v7820_v53, %v7819_v27 }
0x19df   :  { %v3946_v23 = vmul.f32 %v3944_v9, %v3938_v52 }
0x19e0   :  { %v10022_v2 = vpop.eup %10021  ;;  %v3945_v49 = vmul.f32 %v3944_v9, %v3937_v48 }
0x19e1   :  { %v10024_v4 = vpop.eup %10023  ;;  %v3940_v47 = vmul.f32 %v10022_v2, %v3908_v7  ;;  %v3954_v30 = vadd.f32 %v3952_v59, %v3946_v23 }
0x19e2   :  { %v3953_v35 = vadd.f32 %v3952_v59, %v3945_v49  ;;  %v3939_v14 = vmul.f32 %v10024_v4, %v3907_v18  ;;  %v9646_v18 = vpack.c.bf16 %v7822_v39, %v7821_v1  ;;  %v10196_v1 = vld [vmem:[%s12725_s9 + $0x8] sm:$0xff] }
0x19e3   :  { %v3948_v63 = vmul.f32 %v3944_v9, %v3940_v47 }
0x19e4   :  { %8953 = vmatprep.mubr.msk.f32.mxu0 %vm246_vm1, %v3953_v35  ;;  %v3947_v5 = vmul.f32 %v3944_v9, %v3939_v14 }
0x19e5   :  { %8954 = vmatmul.mubr.msk.f32.vlgmr.msra.gmra.mrb[64].mxu0 %vm246_vm1, %v3954_v30  ;;  %v3956_v60 = vadd.f32 %v3952_v59, %v3948_v63 }
0x19e6   :  { %9641 = vmatpush3.bf16.msra.mxu0 %v9638_v31  ;;  %v3955_v7 = vadd.f32 %v3952_v59, %v3947_v5 }
0x19e7   :  { %9643 = vmatprep.subr.bf16.mxu0 %v9642_v11 }
0x19e8   :  { %8956 = vmatprep.mubr.msk.f32.mxu0 %vm246_vm1, %v3955_v7 }
0x19e9   :  { %8957 = vmatmul.mubr.msk.f32.gmra.mrb[66].mxu0 %vm246_vm1, %v3956_v60 }
0x19ea   :  { %9645 = vmatpush3.bf16.msra.mxu0 %v9642_v11  ;;  %8967 = vmatprep.mubr.msk.f32.mxu0 %vm246_vm1, %v3953_v35 }
0x19eb   :  { %9647 = vmatprep.subr.bf16.mxu0 %v9646_v18 }
0x19ed   :  { %8968 = vmatmul.mubr.msk.f32.vlgmr.msra.gmra.mrb[68].mxu0 %vm246_vm1, %v3954_v30 }
0x19ee   :  { %8970 = vmatprep.mubr.msk.f32.mxu0 %vm246_vm1, %v3955_v7  ;;  %9649 = vmatpush3.bf16.msra.mxu0 %v9646_v18 }
0x19ef   :  { %9651 = vmatprep.subr.bf16.mxu0 %v9650_v26 }
0x19f1   :  { %8971 = vmatmul.mubr.msk.f32.gmra.mrb[70].mxu0 %vm246_vm1, %v3956_v60 }
0x19f2   :  { %9653 = vmatpush3.bf16.msra.mxu0 %v9650_v26  ;;  %8981 = vmatprep.mubr.msk.f32.mxu0 %vm246_vm1, %v3953_v35 }
0x19f5   :  { %8982 = vmatmul.mubr.msk.f32.vlgmr.msra.gmra.mrb[72].mxu0 %vm246_vm1, %v3954_v30 }
0x19f6   :  { %8984 = vmatprep.mubr.msk.f32.mxu0 %vm246_vm1, %v3955_v7 }
0x19f9   :  { %8985 = vmatmul.mubr.msk.f32.gmra.mrb[74].mxu0 %vm246_vm1, %v3956_v60  ;;  %v10197_v60 = vld [vmem:[%s12725_s9] sm:$0xff] }
0x1ab8   :  { %v8955_v13 = vpop.f32.mrb[64].mxu0 }
0x1ab9   :  { %v4055_v43 = vpop.f32.mrb[65].mxu0  ;;  %v4245_v9 = vmul.f32 %v8955_v13, %v10572_v17  ;;  %v4249_v48 = vmul.f32 %v8955_v13, %v10593_v38  ;;  %v4253_v49 = vmul.f32 %v8955_v13, %v10607_v46  ;;  %v4257_v47 = vmul.f32 %v8955_v13, %v10621_v54 }
0x1aba   :  { %v4244_v15 = vmul.f32 %v4055_v43, %v10572_v17  ;;  %v4248_v52 = vmul.f32 %v4055_v43, %v10593_v38  ;;  %v4252_v2 = vmul.f32 %v4055_v43, %v10607_v46  ;;  %v4256_v4 = vmul.f32 %v4055_v43, %v10621_v54 }
0x1abc   :  { %v8958_v31 = vpop.f32.mrb[66].mxu0  ;;  %8995 = vmatprep.mubr.msk.f32.mxu0 %vm246_vm1, %v4244_v15  ;;  %v10198_v15 = vld [vmem:[%s12725_s9 + $0x18] sm:$0xff] }
0x1abd   :  { %v4065_v10 = vpop.f32.mrb[67].mxu0  ;;  %v4247_v61 = vmul.f32 %v8958_v31, %v10572_v17  ;;  %v4251_v23 = vmul.f32 %v8958_v31, %v10593_v38  ;;  %v4255_v53 = vmul.f32 %v8958_v31, %v10607_v46  ;;  %v4259_v14 = vmul.f32 %v8958_v31, %v10621_v54 }
0x1abe   :  { %v4246_v32 = vmul.f32 %v4065_v10, %v10572_v17  ;;  %v4250_v59 = vmul.f32 %v4065_v10, %v10593_v38  ;;  %v4254_v27 = vmul.f32 %v4065_v10, %v10607_v46  ;;  %v4258_v35 = vmul.f32 %v4065_v10, %v10621_v54  ;;  %v10199_v10 = vld [vmem:[%s12725_s9 + $0x10] sm:$0xff] }
0x1ac0   :  { %v8969_v29 = vpop.f32.mrb[68].mxu0 }
0x1ac1   :  { %v4140_v20 = vpop.f32.mrb[69].mxu0 }
0x1ac2   :  { %v9654_v57 = vpack.c.bf16 %v8969_v29, %v4140_v20 }
0x1ac4   :  { %v8972_v56 = vpop.f32.mrb[70].mxu0  ;;  %9656 = vmatprep.subr.msk.bf16.mxu0 %vm10578_vm2, %v9654_v57 }
0x1ac5   :  { %v4150_v36 = vpop.f32.mrb[71].mxu0  ;;  %9659 = vmatpush3.bf16.xpose.msk.msra.mxu0 %vm10578_vm2, %v9654_v57 }
0x1ac6   :  { %v9660_v44 = vpack.c.bf16 %v8972_v56, %v4150_v36 }
0x1ac8   :  { %v8983_v19 = vpop.f32.mrb[72].mxu0  ;;  %9662 = vmatprep.subr.msk.bf16.mxu0 %vm10578_vm2, %v9660_v44 }
0x1ac9   :  { %v4225_v55 = vpop.f32.mrb[73].mxu0 }
0x1aca   :  { %v9666_v21 = vpack.c.bf16 %v8983_v19, %v4225_v55  ;;  %v10200_v55 = vld [vmem:[%s12725_s9 + $0x28] sm:$0xff] }
0x1acc   :  { %v8986_v51 = vpop.f32.mrb[74].mxu0  ;;  %9667 = vmatprep.subr.bf16.mxu1 %v9666_v21 }
0x1acd   :  { %v4235_v34 = vpop.f32.mrb[75].mxu0  ;;  %9665 = vmatpush3.bf16.xpose.msk.msra.mxu0 %vm10578_vm2, %v9660_v44  ;;  %9669 = vmatpush3.bf16.msra.mxu1 %v9666_v21 }
0x1ace   :  { %v9670_v22 = vpack.c.bf16 %v8986_v51, %v4235_v34  ;;  %9682 = vmatprep.subr.bf16.mxu0 %v10246_v0  ;;  %v10201_v51 = vld [vmem:[%s12725_s9 + $0x20] sm:$0xff] }
0x1ad0   :  { %9671 = vmatprep.subr.bf16.mxu1 %v9670_v22 }
0x1ad1   :  { %9673 = vmatpush3.bf16.msra.mxu1 %v9670_v22 }
0x1ad4   :  { %8996 = vmatmul.mubr.msk.f32.vlgmr.msra.gmra.mrb[76].mxu0 %vm246_vm1, %v4245_v9 }
0x1ad5   :  { %8998 = vmatprep.mubr.msk.f32.mxu0 %vm246_vm1, %v4246_v32 }
0x1ad8   :  { %8999 = vmatmul.mubr.msk.f32.gmra.mrb[78].mxu0 %vm246_vm1, %v4247_v61 }
0x1ad9   :  { %9001 = vmatprep.mubr.msk.f32.mxu0 %vm246_vm1, %v4248_v52 }
0x1adc   :  { %9002 = vmatmul.mubr.msk.f32.gmra.mrb[80].mxu0 %vm246_vm1, %v4249_v48 }
0x1add   :  { %9004 = vmatprep.mubr.msk.f32.mxu0 %vm246_vm1, %v4250_v59  ;;  %v10202_v59 = vld [vmem:[%s12725_s9 + $0x38] sm:$0xff] }
0x1ae0   :  { %9005 = vmatmul.mubr.msk.f32.gmra.mrb[82].mxu0 %vm246_vm1, %v4251_v23 }
0x1ae1   :  { %9007 = vmatprep.mubr.msk.f32.mxu0 %vm246_vm1, %v4252_v2  ;;  %v10203_v2 = vld [vmem:[%s12725_s9 + $0x30] sm:$0xff] }
0x1ae4   :  { %9008 = vmatmul.mubr.msk.f32.gmra.mrb[84].mxu0 %vm246_vm1, %v4253_v49 }
0x1ae5   :  { %9010 = vmatprep.mubr.msk.f32.mxu0 %vm246_vm1, %v4254_v27 }
0x1ae8   :  { %9011 = vmatmul.mubr.msk.f32.gmra.mrb[86].mxu0 %vm246_vm1, %v4255_v53 }
0x1ae9   :  { %9013 = vmatprep.mubr.msk.f32.mxu0 %vm246_vm1, %v4256_v4 }
0x1aec   :  { %9014 = vmatmul.mubr.msk.f32.gmra.mrb[88].mxu0 %vm246_vm1, %v4257_v47 }
0x1aed   :  { %9016 = vmatprep.mubr.msk.f32.mxu0 %vm246_vm1, %v4258_v35 }
0x1af0   :  { %9017 = vmatmul.mubr.msk.f32.gmra.mrb[90].mxu0 %vm246_vm1, %v4259_v14 }
0x1af1   :  { %9073 = vmatprep.mubr.msk.f32.mxu0 %vm10247_vm3, %v10248_v28 }
0x1ba7   :  { %v8997_v30 = vpop.f32.mrb[76].mxu0 }
0x1ba8   :  { %v4466_v63 = vmul.f32 0.35355338, %v8997_v30  ;;  %v4386_v11 = vpop.f32.mrb[77].mxu0  ;;  %v10204_v30 = vld [vmem:[%s12725_s9 + $0x48] sm:$0xff] }
0x1ba9   :  { %v4465_v5 = vmul.f32 0.35355338, %v4386_v11  ;;  %v10205_v11 = vld [vmem:[%s12725_s9 + $0x40] sm:$0xff] }
0x1baa   :  { %v11726_v39 = vadd.f32 %v10196_v1, %v4466_v63 }
0x1bab   :  { %v9000_v7 = vpop.f32.mrb[78].mxu0  ;;  %v11731_v18 = vadd.f32 %v10197_v60, %v4465_v5 }
0x1bac   :  { %v4468_v62 = vmul.f32 0.35355338, %v9000_v7  ;;  %v4396_v16 = vpop.f32.mrb[79].mxu0  ;;  %v4500_v26 = vsel %vm246_vm1, %v11726_v39, -inf }
0x1bad   :  { %v4467_v13 = vmul.f32 0.35355338, %v4396_v16  ;;  %4501 = vmax.xlane.f32.xlu1 %v4500_v26  ;;  %v4497_v43 = vsel %vm246_vm1, %v11731_v18, -inf }
0x1bae   :  { %v11740_v31 = vadd.f32 %v10198_v15, %v4468_v62  ;;  %4498 = vmax.xlane.f32.xlu0 %v4497_v43  ;;  %v10207_v15 = vld [vmem:[%s12725_s9 + $0x50] sm:$0xff] }
0x1baf   :  { %v11745_v29 = vadd.f32 %v10199_v10, %v4467_v13  ;;  %v9003_v20 = vpop.f32.mrb[80].mxu0  ;;  %v10206_v13 = vld [vmem:[%s12725_s9 + $0x58] sm:$0xff] }
0x1bb0   :  { %v4470_v57 = vmul.f32 0.35355338, %v9003_v20  ;;  %v4406_v56 = vpop.f32.mrb[81].mxu0  ;;  %v4506_v36 = vsel %vm246_vm1, %v11740_v31, -inf }
0x1bb1   :  { %v4469_v44 = vmul.f32 0.35355338, %v4406_v56  ;;  %4507 = vmax.xlane.f32.xlu1 %v4506_v36  ;;  %v4503_v19 = vsel %vm246_vm1, %v11745_v29, -inf }
0x1bb2   :  { %v11754_v21 = vadd.f32 %v10200_v55, %v4470_v57  ;;  %4504 = vmax.xlane.f32.xlu0 %v4503_v19  ;;  %v10208_v55 = vld [vmem:[%s12725_s9 + $0x68] sm:$0xff] }
0x1bb3   :  { %v11759_v34 = vadd.f32 %v10201_v51, %v4469_v44  ;;  %v9006_v22 = vpop.f32.mrb[82].mxu0 }
0x1bb4   :  { %v4472_v9 = vmul.f32 0.35355338, %v9006_v22  ;;  %v4416_v32 = vpop.f32.mrb[83].mxu0  ;;  %v4512_v61 = vsel %vm246_vm1, %v11754_v21, -inf  ;;  %v10209_v22 = vld [vmem:[%s12725_s9 + $0x60] sm:$0xff] }
0x1bb5   :  { %v4471_v52 = vmul.f32 0.35355338, %v4416_v32  ;;  %4513 = vmax.xlane.f32.xlu1 %v4512_v61  ;;  %v4509_v48 = vsel %vm246_vm1, %v11759_v34, -inf }
0x1bb6   :  { %v11768_v23 = vadd.f32 %v10202_v59, %v4472_v9  ;;  %4510 = vmax.xlane.f32.xlu0 %v4509_v48 }
0x1bb7   :  { %v11773_v49 = vadd.f32 %v10203_v2, %v4471_v52  ;;  %v9009_v27 = vpop.f32.mrb[84].mxu0 }
0x1bb8   :  { %v4474_v53 = vmul.f32 0.35355338, %v9009_v27  ;;  %v4426_v4 = vpop.f32.mrb[85].mxu0  ;;  %v4518_v47 = vsel %vm246_vm1, %v11768_v23, -inf  ;;  %v10210_v27 = vld [vmem:[%s12725_s9 + $0x78] sm:$0xff] }
0x1bb9   :  { %v4473_v35 = vmul.f32 0.35355338, %v4426_v4  ;;  %4519 = vmax.xlane.f32.xlu1 %v4518_v47  ;;  %v4515_v14 = vsel %vm246_vm1, %v11773_v49, -inf  ;;  %v10211_v4 = vld [vmem:[%s12725_s9 + $0x70] sm:$0xff] }
0x1bba   :  { %v11782_v63 = vadd.f32 %v10204_v30, %v4474_v53  ;;  %4516 = vmax.xlane.f32.xlu0 %v4515_v14 }
0x1bbb   :  { %v11787_v5 = vadd.f32 %v10205_v11, %v4473_v35  ;;  %v9012_v1 = vpop.f32.mrb[86].mxu0 }
0x1bbc   :  { %v4476_v7 = vmul.f32 0.35355338, %v9012_v1  ;;  %v4436_v60 = vpop.f32.mrb[87].mxu0  ;;  %v4524_v62 = vsel %vm246_vm1, %v11782_v63, -inf }
0x1bbd   :  { %v4475_v16 = vmul.f32 0.35355338, %v4436_v60  ;;  %4525 = vmax.xlane.f32.xlu1 %v4524_v62  ;;  %v4521_v26 = vsel %vm246_vm1, %v11787_v5, -inf }
0x1bbe   :  { %v11796_v43 = vadd.f32 %v10206_v13, %v4476_v7  ;;  %4522 = vmax.xlane.f32.xlu0 %v4521_v26 }
0x1bbf   :  { %v11801_v10 = vadd.f32 %v10207_v15, %v4475_v16  ;;  %v9015_v20 = vpop.f32.mrb[88].mxu0 }
0x1bc0   :  { %v4478_v57 = vmul.f32 0.35355338, %v9015_v20  ;;  %v4446_v56 = vpop.f32.mrb[89].mxu0  ;;  %v4530_v36 = vsel %vm246_vm1, %v11796_v43, -inf }
0x1bc1   :  { %v4477_v44 = vmul.f32 0.35355338, %v4446_v56  ;;  %4531 = vmax.xlane.f32.xlu1 %v4530_v36  ;;  %v4527_v19 = vsel %vm246_vm1, %v11801_v10, -inf }
0x1bc2   :  { %v11810_v51 = vadd.f32 %v10208_v55, %v4478_v57  ;;  %4528 = vmax.xlane.f32.xlu0 %v4527_v19 }
0x1bc3   :  { %v11815_v9 = vadd.f32 %v10209_v22, %v4477_v44  ;;  %v9018_v32 = vpop.f32.mrb[90].mxu0 }
0x1bc4   :  { %v4480_v61 = vmul.f32 0.35355338, %v9018_v32  ;;  %v4456_v52 = vpop.f32.mrb[91].mxu0  ;;  %v4536_v48 = vsel %vm246_vm1, %v11810_v51, -inf }
0x1bc5   :  { %v4479_v59 = vmul.f32 0.35355338, %v4456_v52  ;;  %4537 = vmax.xlane.f32.xlu1 %v4536_v48  ;;  %v4533_v2 = vsel %vm246_vm1, %v11815_v9, -inf }
0x1bc6   :  { %v11824_v53 = vadd.f32 %v10210_v27, %v4480_v61  ;;  %4534 = vmax.xlane.f32.xlu0 %v4533_v2 }
0x1bc7   :  { %v11829_v47 = vadd.f32 %v10211_v4, %v4479_v59 }
0x1bc8   :  { %v4542_v35 = vsel %vm246_vm1, %v11824_v53, -inf }
0x1bc9   :  { %4543 = vmax.xlane.f32.xlu1 %v4542_v35  ;;  %v4539_v14 = vsel %vm246_vm1, %v11829_v47, -inf }
0x1bca   :  { %4540 = vmax.xlane.f32.xlu0 %v4539_v14 }
0x1c3a   :  { %v4502_v30 = vpop.xlane.xlu1 %4501 }
0x1c3b   :  { %v4546_v11 = vsub.f32 %v11726_v39, %v4502_v30  ;;  %v4499_v1 = vpop.xlane.xlu0 %4498 }
0x1c3c   :  { %v4545_v7 = vsub.f32 %v11731_v18, %v4499_v1 }
0x1c3d   :  { %v4563_v60 = vmul.f32 1.442695, %v4546_v11 }
0x1c3e   :  { %v4561_v62 = vmul.f32 1.442695, %v4545_v7  ;;  %v4508_v16 = vpop.xlane.xlu1 %4507 }
0x1c3f   :  { %10025 = vpow2.f32 %v4563_v60  ;;  %v4548_v26 = vsub.f32 %v11740_v31, %v4508_v16  ;;  %v4505_v13 = vpop.xlane.xlu0 %4504 }
0x1c40   :  { %10027 = vpow2.f32 %v4561_v62  ;;  %v4547_v15 = vsub.f32 %v11745_v29, %v4505_v13 }
0x1c41   :  { %v4567_v20 = vmul.f32 1.442695, %v4548_v26 }
0x1c42   :  { %v4565_v57 = vmul.f32 1.442695, %v4547_v15  ;;  %v4514_v56 = vpop.xlane.xlu1 %4513 }
0x1c43   :  { %10029 = vpow2.f32 %v4567_v20  ;;  %v4550_v36 = vsub.f32 %v11754_v21, %v4514_v56  ;;  %v4511_v39 = vpop.xlane.xlu0 %4510 }
0x1c44   :  { %10031 = vpow2.f32 %v4565_v57  ;;  %v4549_v18 = vsub.f32 %v11759_v34, %v4511_v39 }
0x1c45   :  { %v4571_v44 = vmul.f32 1.442695, %v4550_v36 }
0x1c46   :  { %v4569_v19 = vmul.f32 1.442695, %v4549_v18  ;;  %v4520_v55 = vpop.xlane.xlu1 %4519 }
0x1c47   :  { %10033 = vpow2.f32 %v4571_v44  ;;  %v4552_v31 = vsub.f32 %v11768_v23, %v4520_v55  ;;  %v4517_v22 = vpop.xlane.xlu0 %4516 }
0x1c48   :  { %10035 = vpow2.f32 %v4569_v19  ;;  %v4551_v29 = vsub.f32 %v11773_v49, %v4517_v22 }
0x1c49   :  { %v11843_v32 = vpop.eup %10025  ;;  %v4575_v61 = vmul.f32 1.442695, %v4552_v31 }
0x1c4a   :  { %v11845_v52 = vpop.eup %10027  ;;  %v4573_v21 = vmul.f32 1.442695, %v4551_v29  ;;  %v4526_v48 = vpop.xlane.xlu1 %4525  ;;  %v4596_v34 = vsel %vm246_vm1, %v11843_v32, 0.0 }
0x1c4b   :  { %10037 = vpow2.f32 %v4575_v61  ;;  %v4554_v59 = vsub.f32 %v11782_v63, %v4526_v48  ;;  %v4523_v2 = vpop.xlane.xlu0 %4522  ;;  %4597 = vadd.xlane.f32.xlu1 %v4596_v34  ;;  %v4593_v23 = vsel %vm246_vm1, %v11845_v52, 0.0 }
0x1c4c   :  { %10039 = vpow2.f32 %v4573_v21  ;;  %v4553_v49 = vsub.f32 %v11787_v5, %v4523_v2  ;;  %4594 = vadd.xlane.f32.xlu0 %v4593_v23 }
0x1c4d   :  { %v11853_v27 = vpop.eup %10029  ;;  %v4579_v4 = vmul.f32 1.442695, %v4554_v59 }
0x1c4e   :  { %v11855_v35 = vpop.eup %10031  ;;  %v4577_v14 = vmul.f32 1.442695, %v4553_v49  ;;  %v4532_v30 = vpop.xlane.xlu1 %4531  ;;  %v4602_v11 = vsel %vm246_vm1, %v11853_v27, 0.0 }
0x1c4f   :  { %10041 = vpow2.f32 %v4579_v4  ;;  %v4556_v63 = vsub.f32 %v11796_v43, %v4532_v30  ;;  %v4529_v1 = vpop.xlane.xlu0 %4528  ;;  %4603 = vadd.xlane.f32.xlu1 %v4602_v11  ;;  %v4599_v7 = vsel %vm246_vm1, %v11855_v35, 0.0 }
0x1c50   :  { %10043 = vpow2.f32 %v4577_v14  ;;  %v4555_v5 = vsub.f32 %v11801_v10, %v4529_v1  ;;  %4600 = vadd.xlane.f32.xlu0 %v4599_v7 }
0x1c51   :  { %v11863_v60 = vpop.eup %10033  ;;  %v4583_v62 = vmul.f32 1.442695, %v4556_v63 }
0x1c52   :  { %v11865_v16 = vpop.eup %10035  ;;  %v4581_v26 = vmul.f32 1.442695, %v4555_v5  ;;  %v4538_v13 = vpop.xlane.xlu1 %4537  ;;  %v4608_v15 = vsel %vm246_vm1, %v11863_v60, 0.0 }
0x1c53   :  { %10045 = vpow2.f32 %v4583_v62  ;;  %v4558_v43 = vsub.f32 %v11810_v51, %v4538_v13  ;;  %v4535_v20 = vpop.xlane.xlu0 %4534  ;;  %4609 = vadd.xlane.f32.xlu1 %v4608_v15  ;;  %v4605_v57 = vsel %vm246_vm1, %v11865_v16, 0.0 }
0x1c54   :  { %10047 = vpow2.f32 %v4581_v26  ;;  %v4557_v10 = vsub.f32 %v11815_v9, %v4535_v20  ;;  %4606 = vadd.xlane.f32.xlu0 %v4605_v57 }
0x1c55   :  { %v11873_v56 = vpop.eup %10037  ;;  %v4587_v36 = vmul.f32 1.442695, %v4558_v43 }
0x1c56   :  { %v11875_v39 = vpop.eup %10039  ;;  %v4585_v18 = vmul.f32 1.442695, %v4557_v10  ;;  %v4544_v44 = vpop.xlane.xlu1 %4543  ;;  %v4614_v19 = vsel %vm246_vm1, %v11873_v56, 0.0 }
0x1c57   :  { %10049 = vpow2.f32 %v4587_v36  ;;  %v4560_v51 = vsub.f32 %v11824_v53, %v4544_v44  ;;  %4615 = vadd.xlane.f32.xlu1 %v4614_v19  ;;  %v4541_v55 = vpop.xlane.xlu0 %4540  ;;  %v4611_v31 = vsel %vm246_vm1, %v11875_v39, 0.0 }
0x1c58   :  { %10051 = vpow2.f32 %v4585_v18  ;;  %v4559_v9 = vsub.f32 %v11829_v47, %v4541_v55  ;;  %4612 = vadd.xlane.f32.xlu0 %v4611_v31 }
0x1c59   :  { %v11883_v22 = vpop.eup %10041  ;;  %v4591_v29 = vmul.f32 1.442695, %v4560_v51 }
0x1c5a   :  { %v11885_v61 = vpop.eup %10043  ;;  %v4589_v21 = vmul.f32 1.442695, %v4559_v9  ;;  %v4620_v48 = vsel %vm246_vm1, %v11883_v22, 0.0 }
0x1c5b   :  { %10053 = vpow2.f32 %v4591_v29  ;;  %4621 = vadd.xlane.f32.xlu1 %v4620_v48  ;;  %v4617_v53 = vsel %vm246_vm1, %v11885_v61, 0.0 }
0x1c5c   :  { %10055 = vpow2.f32 %v4589_v21  ;;  %4618 = vadd.xlane.f32.xlu0 %v4617_v53 }
0x1c5d   :  { %v11891_v34 = vpop.eup %10045 }
0x1c5e   :  { %v11893_v47 = vpop.eup %10047  ;;  %v4626_v59 = vsel %vm246_vm1, %v11891_v34, 0.0 }
0x1c5f   :  { %4627 = vadd.xlane.f32.xlu1 %v4626_v59  ;;  %v4623_v2 = vsel %vm246_vm1, %v11893_v47, 0.0 }
0x1c60   :  { %4624 = vadd.xlane.f32.xlu0 %v4623_v2 }
0x1c61   :  { %v11899_v23 = vpop.eup %10049 }
0x1c62   :  { %v11901_v49 = vpop.eup %10051  ;;  %v4632_v4 = vsel %vm246_vm1, %v11899_v23, 0.0 }
0x1c63   :  { %4633 = vadd.xlane.f32.xlu1 %v4632_v4  ;;  %v4629_v14 = vsel %vm246_vm1, %v11901_v49, 0.0 }
0x1c64   :  { %4630 = vadd.xlane.f32.xlu0 %v4629_v14 }
0x1c65   :  { %v11907_v30 = vpop.eup %10053 }
0x1c66   :  { %v11909_v11 = vpop.eup %10055  ;;  %v4638_v63 = vsel %vm246_vm1, %v11907_v30, 0.0 }
0x1c67   :  { %4639 = vadd.xlane.f32.xlu1 %v4638_v63  ;;  %v4635_v1 = vsel %vm246_vm1, %v11909_v11, 0.0 }
0x1c68   :  { %4636 = vadd.xlane.f32.xlu0 %v4635_v1 }
0x1cd8   :  { %v4598_v7 = vpop.xlane.xlu1 %4597 }
0x1cd9   :  { %10057 = vrcp.f32 %v4598_v7  ;;  %v4595_v5 = vpop.xlane.xlu0 %4594 }
0x1cda   :  { %10059 = vrcp.f32 %v4595_v5 }
0x1cdc   :  { %v4604_v62 = vpop.xlane.xlu1 %4603 }
0x1cdd   :  { %10061 = vrcp.f32 %v4604_v62  ;;  %v4601_v26 = vpop.xlane.xlu0 %4600 }
0x1cde   :  { %10063 = vrcp.f32 %v4601_v26 }
0x1ce0   :  { %v4610_v13 = vpop.xlane.xlu1 %4609 }
0x1ce1   :  { %10065 = vrcp.f32 %v4610_v13  ;;  %v4607_v15 = vpop.xlane.xlu0 %4606 }
0x1ce2   :  { %10067 = vrcp.f32 %v4607_v15 }
0x1ce3   :  { %v10058_v43 = vpop.eup %10057 }
0x1ce4   :  { %v10060_v20 = vpop.eup %10059  ;;  %v4616_v57 = vpop.xlane.xlu1 %4615  ;;  %v4644_v18 = vmul.f32 %v10058_v43, %v11843_v32 }
0x1ce5   :  { %10069 = vrcp.f32 %v4616_v57  ;;  %v4613_v10 = vpop.xlane.xlu0 %4612  ;;  %v4642_v36 = vmul.f32 %v10060_v20, %v11845_v52 }
0x1ce6   :  { %10071 = vrcp.f32 %v4613_v10 }
0x1ce7   :  { %v10062_v44 = vpop.eup %10061  ;;  %9027 = vmatprep.mubr.msk.f32.mxu1 %vm246_vm1, %v4642_v36 }
0x1ce8   :  { %v10064_v19 = vpop.eup %10063  ;;  %v4622_v51 = vpop.xlane.xlu1 %4621  ;;  %9028 = vmatmul.mubr.msk.f32.vlgmr.msra.gmra.mrb[96].mxu1 %vm246_vm1, %v4644_v18  ;;  %v4648_v9 = vmul.f32 %v10062_v44, %v11853_v27 }
0x1ce9   :  { %10073 = vrcp.f32 %v4622_v51  ;;  %v4619_v55 = vpop.xlane.xlu0 %4618  ;;  %v4646_v31 = vmul.f32 %v10064_v19, %v11855_v35 }
0x1cea   :  { %10075 = vrcp.f32 %v4619_v55 }
0x1ceb   :  { %v10066_v29 = vpop.eup %10065  ;;  %9030 = vmatprep.mubr.msk.f32.mxu1 %vm246_vm1, %v4646_v31 }
0x1cec   :  { %v10068_v52 = vpop.eup %10067  ;;  %v4628_v32 = vpop.xlane.xlu1 %4627  ;;  %9031 = vmatmul.mubr.msk.f32.gmra.mrb[98].mxu1 %vm246_vm1, %v4648_v9  ;;  %v4652_v53 = vmul.f32 %v10066_v29, %v11863_v60 }
0x1ced   :  { %10077 = vrcp.f32 %v4628_v32  ;;  %v4625_v21 = vpop.xlane.xlu0 %4624  ;;  %v4650_v48 = vmul.f32 %v10068_v52, %v11865_v16 }
0x1cee   :  { %10079 = vrcp.f32 %v4625_v21 }
0x1cef   :  { %v10070_v59 = vpop.eup %10069  ;;  %9033 = vmatprep.mubr.msk.f32.mxu1 %vm246_vm1, %v4650_v48 }
0x1cf0   :  { %v10072_v35 = vpop.eup %10071  ;;  %v4634_v2 = vpop.xlane.xlu1 %4633  ;;  %9034 = vmatmul.mubr.msk.f32.gmra.mrb[100].mxu1 %vm246_vm1, %v4652_v53  ;;  %v4656_v14 = vmul.f32 %v10070_v59, %v11873_v56 }
0x1cf1   :  { %10081 = vrcp.f32 %v4634_v2  ;;  %v4631_v27 = vpop.xlane.xlu0 %4630  ;;  %v4654_v4 = vmul.f32 %v10072_v35, %v11875_v39 }
0x1cf2   :  { %10083 = vrcp.f32 %v4631_v27 }
0x1cf3   :  { %v10074_v63 = vpop.eup %10073  ;;  %9036 = vmatprep.mubr.msk.f32.mxu1 %vm246_vm1, %v4654_v4 }
0x1cf4   :  { %v10076_v16 = vpop.eup %10075  ;;  %v4640_v1 = vpop.xlane.xlu1 %4639  ;;  %9037 = vmatmul.mubr.msk.f32.gmra.mrb[102].mxu1 %vm246_vm1, %v4656_v14  ;;  %v4660_v5 = vmul.f32 %v10074_v63, %v11883_v22 }
0x1cf5   :  { %10085 = vrcp.f32 %v4640_v1  ;;  %v4637_v60 = vpop.xlane.xlu0 %4636  ;;  %v4658_v7 = vmul.f32 %v10076_v16, %v11885_v61 }
0x1cf6   :  { %10087 = vrcp.f32 %v4637_v60 }
0x1cf7   :  { %v10078_v62 = vpop.eup %10077  ;;  %9039 = vmatprep.mubr.msk.f32.mxu1 %vm246_vm1, %v4658_v7 }
0x1cf8   :  { %v10080_v39 = vpop.eup %10079  ;;  %9040 = vmatmul.mubr.msk.f32.gmra.mrb[104].mxu1 %vm246_vm1, %v4660_v5  ;;  %v4664_v26 = vmul.f32 %v10078_v62, %v11891_v34 }
0x1cf9   :  { %v4662_v56 = vmul.f32 %v10080_v39, %v11893_v47 }
0x1cfb   :  { %v10082_v13 = vpop.eup %10081  ;;  %9042 = vmatprep.mubr.msk.f32.mxu1 %vm246_vm1, %v4662_v56 }
0x1cfc   :  { %v10084_v15 = vpop.eup %10083  ;;  %9043 = vmatmul.mubr.msk.f32.gmra.mrb[106].mxu1 %vm246_vm1, %v4664_v26  ;;  %v4668_v22 = vmul.f32 %v10082_v13, %v11899_v23  ;;  %v7826_v23 = vld [vmem:[%s12750_s24 + $0x208] sm:$0xff] }
0x1cfd   :  { %v4666_v61 = vmul.f32 %v10084_v15, %v11901_v49  ;;  %v7825_v49 = vld [vmem:[%s12750_s24 + $0x200] sm:$0xff] }
0x1cfe   :  { %v9674_v57 = vpack.c.bf16 %v7826_v23, %v7825_v49 }
0x1cff   :  { %v10086_v43 = vpop.eup %10085  ;;  %9045 = vmatprep.mubr.msk.f32.mxu1 %vm246_vm1, %v4666_v61 }
0x1d00   :  { %v10088_v20 = vpop.eup %10087  ;;  %9046 = vmatmul.mubr.msk.f32.gmra.mrb[108].mxu1 %vm246_vm1, %v4668_v22  ;;  %v4672_v34 = vmul.f32 %v10086_v43, %v11907_v30  ;;  %9675 = vmatprep.subr.bf16.mxu1 %v9674_v57  ;;  %v7828_v30 = vld [vmem:[%s12750_s24 + $0x218] sm:$0xff] }
0x1d01   :  { %v4670_v47 = vmul.f32 %v10088_v20, %v11909_v11  ;;  %9677 = vmatpush3.bf16.msra.mxu1 %v9674_v57  ;;  %v7827_v11 = vld [vmem:[%s12750_s24 + $0x210] sm:$0xff] }
0x1d02   :  { %v9678_v10 = vpack.c.bf16 %v7828_v30, %v7827_v11 }
0x1d03   :  { %9048 = vmatprep.mubr.msk.f32.mxu1 %vm246_vm1, %v4670_v47 }
0x1d04   :  { %9049 = vmatmul.mubr.msk.f32.gmra.mrb[110].mxu1 %vm246_vm1, %v4672_v34  ;;  %9679 = vmatprep.subr.bf16.mxu1 %v9678_v10 }
0x1d05   :  { %9681 = vmatpush3.bf16.msra.mxu1 %v9678_v10 }
0x1d06   :  { %9688 = vmatprep.subr.bf16.mxu1 %v10246_v0 }
0x1dbb   :  { %v9029_v36 = vpop.f32.mrb[96].mxu1 }
0x1dbc   :  { %v4787_v18 = vpop.f32.mrb[97].mxu1  ;;  %v4867_v55 = vmul.f32 %v9029_v36, %v10572_v17  ;;  %v11985_v36 = vld [vmem:[%s12723_s4 + $0x18] sm:$0x1f] }
0x1dbd   :  { %v4866_v29 = vmul.f32 %v4787_v18, %v10572_v17  ;;  %v4897_v18 = vrot.slane %v11985_v36, %v10526_v41 }
0x1dbf   :  { %v9032_v44 = vpop.f32.mrb[98].mxu1 }
0x1dc0   :  { %v4797_v19 = vpop.f32.mrb[99].mxu1  ;;  %v4869_v53 = vmul.f32 %v9032_v44, %v10572_v17 }
0x1dc1   :  { %v4868_v2 = vmul.f32 %v4797_v19, %v10572_v17 }
0x1dc3   :  { %v9035_v51 = vpop.f32.mrb[100].mxu1 }
0x1dc4   :  { %v4871_v31 = vmul.f32 %v9035_v51, %v10593_v38  ;;  %v4807_v9 = vpop.f32.mrb[101].mxu1 }
0x1dc5   :  { %v4870_v52 = vmul.f32 %v4807_v9, %v10593_v38 }
0x1dc6   :  { %v4875_v32 = vadd.f32 %v4871_v31, %v4867_v55 }
0x1dc7   :  { %v4874_v21 = vadd.f32 %v4870_v52, %v4866_v29  ;;  %v9038_v48 = vpop.f32.mrb[102].mxu1 }
0x1dc8   :  { %v4873_v59 = vmul.f32 %v9038_v48, %v10593_v38  ;;  %v4817_v35 = vpop.f32.mrb[103].mxu1 }
0x1dc9   :  { %v4872_v27 = vmul.f32 %v4817_v35, %v10593_v38 }
0x1dca   :  { %v4877_v4 = vadd.f32 %v4873_v59, %v4869_v53 }
0x1dcb   :  { %v4876_v14 = vadd.f32 %v4872_v27, %v4868_v2  ;;  %v9041_v63 = vpop.f32.mrb[104].mxu1 }
0x1dcc   :  { %v4879_v16 = vmul.f32 %v9041_v63, %v10607_v46  ;;  %v4827_v1 = vpop.f32.mrb[105].mxu1 }
0x1dcd   :  { %v4878_v60 = vmul.f32 %v4827_v1, %v10607_v46 }
0x1dce   :  { %v4883_v7 = vadd.f32 %v4879_v16, %v4875_v32 }
0x1dcf   :  { %v4882_v5 = vadd.f32 %v4878_v60, %v4874_v21  ;;  %v9044_v62 = vpop.f32.mrb[106].mxu1 }
0x1dd0   :  { %v4881_v39 = vmul.f32 %v9044_v62, %v10607_v46  ;;  %v4837_v56 = vpop.f32.mrb[107].mxu1 }
0x1dd1   :  { %v4880_v26 = vmul.f32 %v4837_v56, %v10607_v46 }
0x1dd2   :  { %v4885_v13 = vadd.f32 %v4881_v39, %v4877_v4 }
0x1dd3   :  { %v4884_v15 = vadd.f32 %v4880_v26, %v4876_v14  ;;  %v9047_v61 = vpop.f32.mrb[108].mxu1 }
0x1dd4   :  { %v4887_v22 = vmul.f32 %v9047_v61, %v10621_v54  ;;  %v4847_v43 = vpop.f32.mrb[109].mxu1 }
0x1dd5   :  { %v4886_v20 = vmul.f32 %v4847_v43, %v10621_v54 }
0x1dd6   :  { %v4891_v47 = vadd.f32 %v4887_v22, %v4883_v7 }
0x1dd7   :  { %v4890_v34 = vadd.f32 %v4886_v20, %v4882_v5  ;;  %v9050_v49 = vpop.f32.mrb[110].mxu1 }
0x1dd8   :  { %v4889_v23 = vmul.f32 %v9050_v49, %v10621_v54  ;;  %v4857_v57 = vpop.f32.mrb[111].mxu1 }
0x1dd9   :  { %v4888_v11 = vmul.f32 %v4857_v57, %v10621_v54  ;;  %9059 = vmatprep.mubr.msk.f32.mxu1 %vm246_vm1, %v4890_v34  ;;  %v7885_v57 = vld [vmem:[%s12750_s24 + $0x228] sm:$0xff] }
0x1dda   :  { %v4893_v30 = vadd.f32 %v4889_v23, %v4885_v13  ;;  %9060 = vmatmul.mubr.msk.f32.vlgmr.msra.gmra.mrb[112].mxu1 %vm246_vm1, %v4891_v47  ;;  %v7884_v23 = vld [vmem:[%s12750_s24 + $0x220] sm:$0xff] }
0x1ddb   :  { %v4892_v10 = vadd.f32 %v4888_v11, %v4884_v15  ;;  %v7888_v11 = vld [vmem:[%s12750_s24 + $0x240] sm:$0xff] }
0x1ddd   :  { %9062 = vmatprep.mubr.msk.f32.mxu1 %vm246_vm1, %v4892_v10  ;;  %v7889_v10 = vld [vmem:[%s12750_s24 + $0x248] sm:$0xff] }
0x1dde   :  { %9063 = vmatmul.mubr.msk.f32.gmra.mrb[114].mxu1 %vm246_vm1, %v4893_v30  ;;  %v9689_v30 = vpack.c.bf16 %v7885_v57, %v7884_v23 }
0x1ddf   :  { %9090 = vmatprep.mubr.msk.f32.mxu1 %vm10247_vm3, %v10248_v28 }
0x1de0   :  { %9690 = vmatpush3.bf16.msra.mxu1 %v9689_v30 }
0x1de1   :  { %9691 = vmatprep.subr.bf16.mxu1 %v10246_v0 }
0x1ead   :  { %v9061_v44 = vpop.f32.mrb[112].mxu1 }
0x1eae   :  { %v4982_v19 = vadd.f32 %v9061_v44, %v4897_v18  ;;  %v4976_v51 = vpop.f32.mrb[113].mxu1  ;;  %v7886_v44 = vld [vmem:[%s12750_s24 + $0x230] sm:$0xff] }
0x1eaf   :  { %v4977_v55 = vadd.f32 %v4976_v51, %v4897_v18  ;;  %v7890_v51 = vld [vmem:[%s12750_s24 + $0x250] sm:$0xff] }
0x1eb0   :  { %v11990_v31 = vadd.f32 %v4982_v19, %v11601_v40  ;;  %v7887_v19 = vld [vmem:[%s12750_s24 + $0x238] sm:$0xff] }
0x1eb1   :  { %v11993_v9 = vadd.f32 %v4977_v55, %v11603_v58  ;;  %v9064_v29 = vpop.f32.mrb[114].mxu1  ;;  %v10212_v58 = vld [vmem:[%s12726_s12] sm:$0xff]  ;;  %v9692_v55 = vpack.c.bf16 %v7887_v19, %v7886_v44 }
0x1eb2   :  { %v4992_v52 = vadd.f32 %v9064_v29, %v4897_v18  ;;  %v4986_v32 = vpop.f32.mrb[115].mxu1  ;;  %v7891_v29 = vld [vmem:[%s12750_s24 + $0x258] sm:$0xff] }
0x1eb3   :  { %v11997_v21 = vpack.c.bf16 %v11990_v31, %v11993_v9  ;;  %v4987_v48 = vadd.f32 %v4986_v32, %v4897_v18  ;;  %v9695_v18 = vpack.c.bf16 %v7889_v10, %v7888_v11  ;;  %9693 = vmatpush3.bf16.msra.mxu1 %v9692_v55 }
0x1eb4   :  { %v12000_v53 = vadd.f32 %v4992_v52, %v11611_v12  ;;  %v10213_v12 = vld [vmem:[%s12726_s12 + $0x8] sm:$0xff]  ;;  %v9698_v52 = vpack.c.bf16 %v7891_v29, %v7890_v51  ;;  %9700 = vmatprep.subr.bf16.mxu1 %v10246_v0 }
0x1eb5   :  { %v12003_v59 = vadd.f32 %v4987_v48, %v11613_v3  ;;  %9684 = vmatpush3.bf16.msra.mxu0 %v11997_v21  ;;  %v10214_v3 = vld [vmem:[%s12726_s12 + $0x10] sm:$0xff] }
0x1eb6   :  { %9685 = vmatprep.subr.bf16.mxu0 %v10246_v0 }
0x1eb7   :  { %v12009_v40 = vpack.c.bf16 %v12000_v53, %v12003_v59 }
0x1eb9   :  { %9687 = vmatpush3.bf16.msra.mxu0 %v12009_v40 }
0x1eba   :  { %9694 = vmatprep.subr.bf16.mxu0 %v10246_v0 }
0x1ebc   :  { %9074 = vmatmul.mubr.msk.f32.vlgmr.msra.gmra.mrb[92].mxu0 %vm246_vm1, %v10212_v58 }
0x1ebd   :  { %9076 = vmatprep.mubr.msk.f32.mxu0 %vm10247_vm3, %v10248_v28  ;;  %9696 = vmatpush3.bf16.msra.mxu0 %v9695_v18 }
0x1ebe   :  { %9697 = vmatprep.subr.bf16.mxu0 %v10246_v0 }
0x1ec0   :  { %9077 = vmatmul.mubr.msk.f32.gmra.mrb[94].mxu0 %vm246_vm1, %v10213_v12 }
0x1ec1   :  { %9079 = vmatprep.mubr.msk.f32.mxu0 %vm10247_vm3, %v10248_v28  ;;  %9699 = vmatpush3.bf16.msra.mxu0 %v9698_v52 }
0x1ec4   :  { %9080 = vmatmul.mubr.msk.f32.gmra.mrb[96].mxu0 %vm246_vm1, %v10214_v3 }
0x1ec5   :  { %9107 = vmatprep.mubr.msk.f32.mxu0 %vm10247_vm3, %v10248_v28 }
0x1f8f   :  { %v5065_v35 = vpop.f32.mrb[92].mxu0 }
0x1f90   :  { %v5079_v2 = vsel %vm246_vm1, %v5065_v35, 0.0  ;;  %v9075_v27 = vpop.f32.mrb[93].mxu0 }
0x1f91   :  { %5080 = vadd.xlane.f32.xlu0 %v5079_v2 }
0x1f93   :  { %v5070_v4 = vpop.f32.mrb[94].mxu0 }
0x1f94   :  { %v5082_v14 = vsel %vm246_vm1, %v5070_v4, 0.0  ;;  %v9078_v63 = vpop.f32.mrb[95].mxu0 }
0x1f95   :  { %5083 = vadd.xlane.f32.xlu1 %v5082_v14  ;;  %v10215_v14 = vld [vmem:[%s12723_s4 + $0x10] sm:$0xff] }
0x1f96   :  { %v5121_v63 = vrot.slane %v10215_v14, %v10600_v42 }
0x1f97   :  { %v5075_v16 = vpop.f32.mrb[96].mxu0 }
0x1f98   :  { %v5085_v1 = vsel %vm246_vm1, %v5075_v16, 0.0  ;;  %v9081_v60 = vpop.f32.mrb[97].mxu0 }
0x1f99   :  { %5086 = vadd.xlane.f32.xlu0 %v5085_v1  ;;  %v5128_v1 = vrot.slane %v10215_v14, %v10614_v50 }
0x201e   :  { %v5081_v7 = vpop.xlane.xlu0 %5080 }
0x201f   :  { %v5088_v5 = vmul.f32 0.03125, %v5081_v7  ;;  %v7892_v7 = vld [vmem:[%s12750_s24 + $0x260] sm:$0xff] }
0x2021   :  { %v5091_v62 = vsub.f32 %v5065_v35, %v5088_v5  ;;  %v7893_v5 = vld [vmem:[%s12750_s24 + $0x268] sm:$0xff] }
0x2022   :  { %v5084_v39 = vpop.xlane.xlu1 %5083 }
0x2023   :  { %v5089_v56 = vmul.f32 0.03125, %v5084_v39  ;;  %v5094_v26 = vmul.f32 %v5091_v62, %v5091_v62 }
0x2025   :  { %v5092_v13 = vsub.f32 %v5070_v4, %v5089_v56  ;;  %v5097_v15 = vsel %vm246_vm1, %v5094_v26, 0.0 }
0x2026   :  { %5098 = vadd.xlane.f32.xlu1 %v5097_v15  ;;  %v5087_v61 = vpop.xlane.xlu0 %5086 }
0x2027   :  { %v5090_v22 = vmul.f32 0.03125, %v5087_v61  ;;  %v5095_v43 = vmul.f32 %v5092_v13, %v5092_v13  ;;  %v9701_v61 = vpack.c.bf16 %v7893_v5, %v7892_v7 }
0x2029   :  { %v5093_v20 = vsub.f32 %v5075_v16, %v5090_v22  ;;  %v5100_v47 = vsel %vm246_vm1, %v5095_v43, 0.0  ;;  %v7894_v22 = vld [vmem:[%s12750_s24 + $0x270] sm:$0xff] }
0x202a   :  { %5101 = vadd.xlane.f32.xlu0 %v5100_v47 }
0x202b   :  { %v5096_v34 = vmul.f32 %v5093_v20, %v5093_v20 }
0x202d   :  { %v5103_v49 = vsel %vm246_vm1, %v5096_v34, 0.0 }
0x202e   :  { %5104 = vadd.xlane.f32.xlu1 %v5103_v49 }
0x20b3   :  { %v5099_v32 = vpop.xlane.xlu1 %5098 }
0x20b4   :  { %v5106_v48 = vmul.f32 0.03125, %v5099_v32 }
0x20b6   :  { %v5109_v58 = vadd.f32 1e-05, %v5106_v48 }
0x20b7   :  { %v5102_v12 = vpop.xlane.xlu0 %5101 }
0x20b8   :  { %10089 = vrsqrt.f32 %v5109_v58  ;;  %v5107_v3 = vmul.f32 0.03125, %v5102_v12 }
0x20ba   :  { %v5110_v35 = vadd.f32 1e-05, %v5107_v3 }
0x20bb   :  { %v5105_v2 = vpop.xlane.xlu1 %5104 }
0x20bc   :  { %10091 = vrsqrt.f32 %v5110_v35  ;;  %v5108_v27 = vmul.f32 0.03125, %v5105_v2 }
0x20be   :  { %v5111_v4 = vadd.f32 1e-05, %v5108_v27 }
0x20c0   :  { %10093 = vrsqrt.f32 %v5111_v4 }
0x20c2   :  { %v10090_v16 = vpop.eup %10089 }
0x20c3   :  { %v5115_v60 = vmul.f32 %v10090_v16, %v5091_v62  ;;  %v7895_v62 = vld [vmem:[%s12750_s24 + $0x278] sm:$0xff] }
0x20c4   :  { %v9704_v49 = vpack.c.bf16 %v7895_v62, %v7894_v22 }
0x20c5   :  { %v5122_v39 = vmul.f32 %v5121_v63, %v5115_v60 }
0x20c6   :  { %v10092_v56 = vpop.eup %10091 }
0x20c7   :  { %v5129_v26 = vadd.f32 %v5128_v1, %v5122_v39  ;;  %v5116_v15 = vmul.f32 %v10092_v56, %v5092_v13 }
0x20c9   :  { %9091 = vmatmul.mubr.msk.f32.vlgmr.msra.gmra.mrb[116].mxu1 %vm246_vm1, %v5129_v26  ;;  %9108 = vmatmul.mubr.msk.f32.vlgmr.msra.gmra.mrb[98].mxu0 %vm246_vm1, %v5129_v26  ;;  %v5123_v43 = vmul.f32 %v5121_v63, %v5116_v15 }
0x20ca   :  { %v10094_v47 = vpop.eup %10093  ;;  %9093 = vmatprep.mubr.msk.f32.mxu1 %vm10247_vm3, %v10248_v28  ;;  %9110 = vmatprep.mubr.msk.f32.mxu0 %vm10247_vm3, %v10248_v28 }
0x20cb   :  { %v5130_v13 = vadd.f32 %v5128_v1, %v5123_v43  ;;  %9702 = vmatpush3.bf16.msra.mxu1 %v9701_v61  ;;  %v5117_v34 = vmul.f32 %v10094_v47, %v5093_v20 }
0x20cc   :  { %9703 = vmatprep.subr.bf16.mxu1 %v10246_v0 }
0x20cd   :  { %9094 = vmatmul.mubr.msk.f32.gmra.mrb[118].mxu1 %vm246_vm1, %v5130_v13  ;;  %9111 = vmatmul.mubr.msk.f32.gmra.mrb[100].mxu0 %vm246_vm1, %v5130_v13  ;;  %v5124_v23 = vmul.f32 %v5121_v63, %v5117_v34 }
0x20ce   :  { %9096 = vmatprep.mubr.msk.f32.mxu1 %vm10247_vm3, %v10248_v28  ;;  %9113 = vmatprep.mubr.msk.f32.mxu0 %vm10247_vm3, %v10248_v28 }
0x20cf   :  { %v5131_v57 = vadd.f32 %v5128_v1, %v5124_v23  ;;  %9705 = vmatpush3.bf16.msra.mxu1 %v9704_v49  ;;  %v10217_v49 = vld [vmem:[%s12727_s10] sm:$0xff] }
0x20d1   :  { %9097 = vmatmul.mubr.msk.f32.gmra.mrb[120].mxu1 %vm246_vm1, %v5131_v57  ;;  %9114 = vmatmul.mubr.msk.f32.gmra.mrb[102].mxu0 %vm246_vm1, %v5131_v57 }
0x20d2   :  { %9124 = vmatprep.mubr.msk.f32.mxu1 %vm10247_vm3, %v10248_v28 }
0x20d5   :  { %9125 = vmatmul.mubr.msk.f32.vlgmr.msra.gmra.mrb[122].mxu1 %vm246_vm1, %v5129_v26 }
0x20d6   :  { %9127 = vmatprep.mubr.msk.f32.mxu1 %vm10247_vm3, %v10248_v28 }
0x20d9   :  { %9128 = vmatmul.mubr.msk.f32.gmra.mrb[124].mxu1 %vm246_vm1, %v5130_v13  ;;  %v10216_v13 = vld [vmem:[%s12727_s10 + $0x8] sm:$0xff] }
0x20da   :  { %9130 = vmatprep.mubr.msk.f32.mxu1 %vm10247_vm3, %v10248_v28 }
0x20dd   :  { %9131 = vmatmul.mubr.msk.f32.gmra.mrb[126].mxu1 %vm246_vm1, %v5131_v57 }
0x219c   :  { %v5227_v20 = vpop.f32.mrb[116].mxu1  ;;  %v5307_v11 = vpop.f32.mrb[98].mxu0 }
0x219d   :  { %v5401_v30 = vmul.f32 %v5227_v20, %v10572_v17  ;;  %v9092_v10 = vpop.f32.mrb[117].mxu1  ;;  %v9109_v18 = vpop.f32.mrb[99].mxu0  ;;  %v5404_v1 = vmul.f32 %v5227_v20, %v10593_v38  ;;  %v5407_v5 = vmul.f32 %v5227_v20, %v10607_v46  ;;  %v5410_v26 = vmul.f32 %v5227_v20, %v10621_v54 }
0x219f   :  { %9139 = vmatprep.mubr.msk.f32.mxu0 %vm246_vm1, %v5401_v30 }
0x21a0   :  { %v5232_v44 = vpop.f32.mrb[118].mxu1  ;;  %v5312_v19 = vpop.f32.mrb[100].mxu0 }
0x21a1   :  { %v9095_v51 = vpop.f32.mrb[119].mxu1  ;;  %v9112_v55 = vpop.f32.mrb[101].mxu0  ;;  %v9706_v29 = vpack.c.bf16 %v5312_v19, %v5307_v11  ;;  %v5402_v4 = vmul.f32 %v5232_v44, %v10572_v17  ;;  %v5405_v60 = vmul.f32 %v5232_v44, %v10593_v38  ;;  %v5408_v39 = vmul.f32 %v5232_v44, %v10607_v46 }
0x21a2   :  { %v5411_v15 = vmul.f32 %v5232_v44, %v10621_v54  ;;  %v10218_v44 = vld [vmem:[%s12727_s10 + $0x18] sm:$0xff]  ;;  %v10219_v51 = vld [vmem:[%s12727_s10 + $0x10] sm:$0xff] }
0x21a3   :  { %9708 = vmatprep.subr.msk.bf16.mxu0 %vm10578_vm2, %v9706_v29 }
0x21a4   :  { %v5237_v52 = vpop.f32.mrb[120].mxu1  ;;  %v5317_v32 = vpop.f32.mrb[102].mxu0  ;;  %9711 = vmatpush3.bf16.xpose.msk.msra.mxu0 %vm10578_vm2, %v9706_v29 }
0x21a5   :  { %v9098_v48 = vpop.f32.mrb[121].mxu1  ;;  %v9115_v58 = vpop.f32.mrb[103].mxu0  ;;  %9137 = vmatprep.subr.msk.mxu0 %vm246_vm1, %v5317_v32  ;;  %v5403_v14 = vmul.f32 %v5237_v52, %v10572_v17  ;;  %v5406_v7 = vmul.f32 %v5237_v52, %v10593_v38  ;;  %v5409_v56 = vmul.f32 %v5237_v52, %v10607_v46  ;;  %v5412_v61 = vmul.f32 %v5237_v52, %v10621_v54 }
0x21a8   :  { %v5387_v12 = vpop.f32.mrb[122].mxu1 }
0x21a9   :  { %v9126_v3 = vpop.f32.mrb[123].mxu1 }
0x21aa   :  { %v10220_v3 = vld [vmem:[%s12727_s10 + $0x28] sm:$0xff] }
0x21ac   :  { %v5392_v35 = vpop.f32.mrb[124].mxu1  ;;  %9138 = vmatpush3.xpose.msk.msra.mxu0 %vm246_vm1, %v5317_v32 }
0x21ad   :  { %v9712_v2 = vpack.c.bf16 %v5392_v35, %v5387_v12  ;;  %v9129_v27 = vpop.f32.mrb[125].mxu1  ;;  %9716 = vmatprep.subr.bf16.mxu0 %v10246_v0 }
0x21af   :  { %9713 = vmatprep.subr.bf16.mxu1 %v9712_v2  ;;  %9140 = vmatmul.mubr.msk.f32.vlgmr.msra.gmra.mrb[104].mxu0 %vm246_vm1, %v5402_v4 }
0x21b0   :  { %v5397_v63 = vpop.f32.mrb[126].mxu1  ;;  %9715 = vmatpush3.bf16.msra.mxu1 %v9712_v2  ;;  %9142 = vmatprep.mubr.msk.f32.mxu0 %vm246_vm1, %v5403_v14  ;;  %v10221_v2 = vld [vmem:[%s12727_s10 + $0x20] sm:$0xff] }
0x21b1   :  { %v9132_v16 = vpop.f32.mrb[127].mxu1  ;;  %9161 = vmatprep.subr.mxu1 %v5397_v63 }
0x21b3   :  { %9143 = vmatmul.mubr.msk.f32.gmra.mrb[106].mxu0 %vm246_vm1, %v5404_v1 }
0x21b4   :  { %9162 = vmatpush3.msra.mxu1 %v5397_v63  ;;  %9145 = vmatprep.mubr.msk.f32.mxu0 %vm246_vm1, %v5405_v60 }
0x21b5   :  { %9722 = vmatprep.subr.bf16.mxu1 %v10246_v0 }
0x21b7   :  { %9146 = vmatmul.mubr.msk.f32.gmra.mrb[108].mxu0 %vm246_vm1, %v5406_v7  ;;  %v10222_v7 = vld [vmem:[%s12727_s10 + $0x38] sm:$0xff] }
0x21b8   :  { %9148 = vmatprep.mubr.msk.f32.mxu0 %vm246_vm1, %v5407_v5 }
0x21bb   :  { %9149 = vmatmul.mubr.msk.f32.gmra.mrb[110].mxu0 %vm246_vm1, %v5408_v39  ;;  %v10223_v39 = vld [vmem:[%s12727_s10 + $0x30] sm:$0xff] }
0x21bc   :  { %9151 = vmatprep.mubr.msk.f32.mxu0 %vm246_vm1, %v5409_v56 }
0x21bf   :  { %9152 = vmatmul.mubr.msk.f32.gmra.mrb[112].mxu0 %vm246_vm1, %v5410_v26 }
0x21c0   :  { %9154 = vmatprep.mubr.msk.f32.mxu0 %vm246_vm1, %v5411_v15 }
0x21c3   :  { %9155 = vmatmul.mubr.msk.f32.gmra.mrb[114].mxu0 %vm246_vm1, %v5412_v61 }
0x21c4   :  { %9189 = vmatprep.mubr.msk.f32.mxu0 %vm10247_vm3, %v10248_v28 }
0x2282   :  { %v9141_v22 = vpop.f32.mrb[104].mxu0 }
0x2283   :  { %v5584_v62 = vmul.f32 0.35355338, %v9141_v22  ;;  %v5524_v43 = vpop.f32.mrb[105].mxu0 }
0x2284   :  { %v5583_v47 = vmul.f32 0.35355338, %v5524_v43 }
0x2285   :  { %v12142_v34 = vadd.f32 %v10216_v13, %v5584_v62 }
0x2286   :  { %v12147_v23 = vadd.f32 %v10217_v49, %v5583_v47  ;;  %v9144_v57 = vpop.f32.mrb[106].mxu0  ;;  %v10224_v47 = vld [vmem:[%s12727_s10 + $0x48] sm:$0xff]  ;;  %v10225_v49 = vld [vmem:[%s12727_s10 + $0x40] sm:$0xff] }
0x2287   :  { %v5586_v20 = vmul.f32 0.35355338, %v9144_v57  ;;  %v5534_v11 = vpop.f32.mrb[107].mxu0  ;;  %v5610_v30 = vsel %vm1990_vm4, %v12142_v34, -inf }
0x2288   :  { %v5585_v10 = vmul.f32 0.35355338, %v5534_v11  ;;  %5611 = vmax.xlane.f32.xlu1 %v5610_v30  ;;  %v5607_v18 = vsel %vm1990_vm4, %v12147_v23, -inf }
0x2289   :  { %v12156_v19 = vadd.f32 %v10218_v44, %v5586_v20  ;;  %5608 = vmax.xlane.f32.xlu0 %v5607_v18 }
0x228a   :  { %v12161_v55 = vadd.f32 %v10219_v51, %v5585_v10  ;;  %v9147_v29 = vpop.f32.mrb[108].mxu0  ;;  %v10226_v51 = vld [vmem:[%s12727_s10 + $0x58] sm:$0xff] }
0x228b   :  { %v5588_v52 = vmul.f32 0.35355338, %v9147_v29  ;;  %v5544_v32 = vpop.f32.mrb[109].mxu0  ;;  %v5616_v48 = vsel %vm1990_vm4, %v12156_v19, -inf }
0x228c   :  { %v5587_v58 = vmul.f32 0.35355338, %v5544_v32  ;;  %5617 = vmax.xlane.f32.xlu1 %v5616_v48  ;;  %v5613_v12 = vsel %vm1990_vm4, %v12161_v55, -inf }
0x228d   :  { %v12170_v35 = vadd.f32 %v10220_v3, %v5588_v52  ;;  %5614 = vmax.xlane.f32.xlu0 %v5613_v12  ;;  %v10227_v52 = vld [vmem:[%s12727_s10 + $0x50] sm:$0xff] }
0x228e   :  { %v5599_v27 = vadd.f32 %v10221_v2, %v5587_v58  ;;  %v9150_v4 = vpop.f32.mrb[110].mxu0 }
0x228f   :  { %v5590_v14 = vmul.f32 0.35355338, %v9150_v4  ;;  %v5554_v63 = vpop.f32.mrb[111].mxu0  ;;  %v5622_v16 = vsel %vm1990_vm4, %v12170_v35, -inf }
0x2290   :  { %v5589_v1 = vmul.f32 0.35355338, %v5554_v63  ;;  %5623 = vmax.xlane.f32.xlu1 %v5622_v16  ;;  %v5619_v60 = vsel %vm1990_vm4, %v5599_v27, -inf }
0x2291   :  { %v5602_v5 = vadd.f32 %v10222_v7, %v5590_v14  ;;  %5620 = vmax.xlane.f32.xlu0 %v5619_v60 }
0x2292   :  { %v5601_v56 = vadd.f32 %v10223_v39, %v5589_v1  ;;  %v9153_v26 = vpop.f32.mrb[112].mxu0 }
0x2293   :  { %v5592_v15 = vmul.f32 0.35355338, %v9153_v26  ;;  %v5564_v61 = vpop.f32.mrb[113].mxu0  ;;  %v5628_v22 = vsel %vm1990_vm4, %v5602_v5, -inf }
0x2294   :  { %v5591_v62 = vmul.f32 0.35355338, %v5564_v61  ;;  %5629 = vmax.xlane.f32.xlu1 %v5628_v22  ;;  %v5625_v43 = vsel %vm1990_vm4, %v5601_v56, -inf }
0x2295   :  { %v12189_v13 = vadd.f32 %v10224_v47, %v5592_v15  ;;  %5626 = vmax.xlane.f32.xlu0 %v5625_v43 }
0x2296   :  { %v5603_v57 = vadd.f32 %v10225_v49, %v5591_v62  ;;  %v9156_v20 = vpop.f32.mrb[114].mxu0 }
0x2297   :  { %v5594_v11 = vmul.f32 0.35355338, %v9156_v20  ;;  %v5574_v30 = vpop.f32.mrb[115].mxu0  ;;  %v5634_v10 = vsel %vm1990_vm4, %v12189_v13, -inf }
0x2298   :  { %v5593_v18 = vmul.f32 0.35355338, %v5574_v30  ;;  %5635 = vmax.xlane.f32.xlu1 %v5634_v10  ;;  %v5631_v44 = vsel %vm1990_vm4, %v5603_v57, -inf }
0x2299   :  { %v12200_v29 = vadd.f32 %v10226_v51, %v5594_v11  ;;  %5632 = vmax.xlane.f32.xlu0 %v5631_v44 }
0x229a   :  { %v12205_v32 = vadd.f32 %v10227_v52, %v5593_v18 }
0x229b   :  { %v5640_v48 = vsel %vm1990_vm4, %v12200_v29, -inf }
0x229c   :  { %5641 = vmax.xlane.f32.xlu1 %v5640_v48  ;;  %v5637_v58 = vsel %vm1990_vm4, %v12205_v32, -inf }
0x229d   :  { %5638 = vmax.xlane.f32.xlu0 %v5637_v58 }
0x2315   :  { %v5612_v12 = vpop.xlane.xlu1 %5611 }
0x2316   :  { %v5644_v3 = vsub.f32 %v12142_v34, %v5612_v12  ;;  %v5609_v2 = vpop.xlane.xlu0 %5608 }
0x2317   :  { %v5643_v4 = vsub.f32 %v12147_v23, %v5609_v2 }
0x2318   :  { %v5657_v14 = vmul.f32 1.442695, %v5644_v3 }
0x2319   :  { %v5655_v63 = vmul.f32 1.442695, %v5643_v4  ;;  %v5618_v16 = vpop.xlane.xlu1 %5617 }
0x231a   :  { %10095 = vpow2.f32 %v5657_v14  ;;  %v5646_v1 = vsub.f32 %v12156_v19, %v5618_v16  ;;  %v5615_v60 = vpop.xlane.xlu0 %5614 }
0x231b   :  { %10097 = vpow2.f32 %v5655_v63  ;;  %v5645_v7 = vsub.f32 %v12161_v55, %v5615_v60 }
0x231c   :  { %v5661_v39 = vmul.f32 1.442695, %v5646_v1 }
0x231d   :  { %v5659_v26 = vmul.f32 1.442695, %v5645_v7  ;;  %v5624_v15 = vpop.xlane.xlu1 %5623 }
0x231e   :  { %10099 = vpow2.f32 %v5661_v39  ;;  %v5648_v61 = vsub.f32 %v12170_v35, %v5624_v15  ;;  %v5621_v34 = vpop.xlane.xlu0 %5620 }
0x231f   :  { %10101 = vpow2.f32 %v5659_v26  ;;  %v5647_v22 = vsub.f32 %v5599_v27, %v5621_v34 }
0x2320   :  { %v5665_v23 = vmul.f32 1.442695, %v5648_v61 }
0x2321   :  { %v5663_v62 = vmul.f32 1.442695, %v5647_v22  ;;  %v5630_v43 = vpop.xlane.xlu1 %5629 }
0x2322   :  { %10103 = vpow2.f32 %v5665_v23  ;;  %v5650_v47 = vsub.f32 %v5602_v5, %v5630_v43  ;;  %v5627_v49 = vpop.xlane.xlu0 %5626 }
0x2323   :  { %10105 = vpow2.f32 %v5663_v62  ;;  %v5649_v19 = vsub.f32 %v5601_v56, %v5627_v49 }
0x2324   :  { %v12216_v20 = vpop.eup %10095  ;;  %v5669_v55 = vmul.f32 1.442695, %v5650_v47 }
0x2325   :  { %v12218_v11 = vpop.eup %10097  ;;  %v5667_v30 = vmul.f32 1.442695, %v5649_v19  ;;  %v5636_v10 = vpop.xlane.xlu1 %5635  ;;  %v5682_v35 = vsel %vm1990_vm4, %v12216_v20, 0.0 }
0x2326   :  { %10107 = vpow2.f32 %v5669_v55  ;;  %v5652_v27 = vsub.f32 %v12189_v13, %v5636_v10  ;;  %v5633_v18 = vpop.xlane.xlu0 %5632  ;;  %5683 = vadd.xlane.f32.xlu1 %v5682_v35  ;;  %v5679_v5 = vsel %vm1990_vm4, %v12218_v11, 0.0 }
0x2327   :  { %10109 = vpow2.f32 %v5667_v30  ;;  %v5651_v56 = vsub.f32 %v5603_v57, %v5633_v18  ;;  %5680 = vadd.xlane.f32.xlu0 %v5679_v5 }
0x2328   :  { %v12225_v44 = vpop.eup %10099  ;;  %v5673_v51 = vmul.f32 1.442695, %v5652_v27 }
0x2329   :  { %v12227_v52 = vpop.eup %10101  ;;  %v5671_v48 = vmul.f32 1.442695, %v5651_v56  ;;  %v5642_v58 = vpop.xlane.xlu1 %5641  ;;  %v5688_v12 = vsel %vm1990_vm4, %v12225_v44, 0.0 }
0x232a   :  { %10111 = vpow2.f32 %v5673_v51  ;;  %v5654_v13 = vsub.f32 %v12200_v29, %v5642_v58  ;;  %5689 = vadd.xlane.f32.xlu1 %v5688_v12  ;;  %v5639_v3 = vpop.xlane.xlu0 %5638  ;;  %v5685_v2 = vsel %vm1990_vm4, %v12227_v52, 0.0 }
0x232b   :  { %10113 = vpow2.f32 %v5671_v48  ;;  %v5653_v57 = vsub.f32 %v12205_v32, %v5639_v3  ;;  %5686 = vadd.xlane.f32.xlu0 %v5685_v2 }
0x232c   :  { %v12235_v4 = vpop.eup %10103  ;;  %v5677_v14 = vmul.f32 1.442695, %v5654_v13 }
0x232d   :  { %v12237_v63 = vpop.eup %10105  ;;  %v5675_v16 = vmul.f32 1.442695, %v5653_v57  ;;  %v5694_v1 = vsel %vm1990_vm4, %v12235_v4, 0.0 }
0x232e   :  { %10115 = vpow2.f32 %v5677_v14  ;;  %5695 = vadd.xlane.f32.xlu1 %v5694_v1  ;;  %v5691_v29 = vsel %vm1990_vm4, %v12237_v63, 0.0 }
0x232f   :  { %10117 = vpow2.f32 %v5675_v16  ;;  %5692 = vadd.xlane.f32.xlu0 %v5691_v29 }
0x2330   :  { %v12243_v60 = vpop.eup %10107 }
0x2331   :  { %v10110_v32 = vpop.eup %10109  ;;  %v5700_v7 = vsel %vm1990_vm4, %v12243_v60, 0.0 }
0x2332   :  { %5701 = vadd.xlane.f32.xlu1 %v5700_v7  ;;  %v5697_v39 = vsel %vm1990_vm4, %v10110_v32, 0.0 }
0x2333   :  { %5698 = vadd.xlane.f32.xlu0 %v5697_v39 }
0x2334   :  { %v12248_v26 = vpop.eup %10111 }
0x2335   :  { %v10114_v15 = vpop.eup %10113  ;;  %v5706_v61 = vsel %vm1990_vm4, %v12248_v26, 0.0 }
0x2336   :  { %5707 = vadd.xlane.f32.xlu1 %v5706_v61  ;;  %v5703_v34 = vsel %vm1990_vm4, %v10114_v15, 0.0 }
0x2337   :  { %5704 = vadd.xlane.f32.xlu0 %v5703_v34 }
0x2338   :  { %v12253_v22 = vpop.eup %10115 }
0x2339   :  { %v10118_v23 = vpop.eup %10117  ;;  %v5712_v62 = vsel %vm1990_vm4, %v12253_v22, 0.0 }
0x233a   :  { %5713 = vadd.xlane.f32.xlu1 %v5712_v62  ;;  %v5709_v43 = vsel %vm1990_vm4, %v10118_v23, 0.0 }
0x233b   :  { %5710 = vadd.xlane.f32.xlu0 %v5709_v43 }
0x23b3   :  { %v5684_v47 = vpop.xlane.xlu1 %5683 }
0x23b4   :  { %10119 = vrcp.f32 %v5684_v47  ;;  %v5681_v49 = vpop.xlane.xlu0 %5680 }
0x23b5   :  { %10121 = vrcp.f32 %v5681_v49  ;;  %v7939_v49 = vld [vmem:[%s12750_s24 + $0x2a0] sm:$0xff] }
0x23b7   :  { %v5690_v19 = vpop.xlane.xlu1 %5689 }
0x23b8   :  { %10123 = vrcp.f32 %v5690_v19  ;;  %v5687_v55 = vpop.xlane.xlu0 %5686  ;;  %v7940_v19 = vld [vmem:[%s12750_s24 + $0x2a8] sm:$0xff] }
0x23b9   :  { %10125 = vrcp.f32 %v5687_v55  ;;  %v7941_v55 = vld [vmem:[%s12750_s24 + $0x2b0] sm:$0xff] }
0x23bb   :  { %v5696_v30 = vpop.xlane.xlu1 %5695 }
0x23bc   :  { %10127 = vrcp.f32 %v5696_v30  ;;  %v5693_v10 = vpop.xlane.xlu0 %5692  ;;  %v9723_v30 = vpack.c.bf16 %v7940_v19, %v7939_v49  ;;  %v10230_v49 = vld [vmem:[%s12728_s14 + $0x10] sm:$0xff]  ;;  %v5924_v19 = vrot.slane %v11985_v36, %v10532_v45 }
0x23bd   :  { %10129 = vrcp.f32 %v5693_v10  ;;  %v7942_v10 = vld [vmem:[%s12750_s24 + $0x2b8] sm:$0xff] }
0x23be   :  { %v10120_v35 = vpop.eup %10119 }
0x23bf   :  { %v10122_v27 = vpop.eup %10121  ;;  %v5702_v18 = vpop.xlane.xlu1 %5701  ;;  %v5718_v51 = vmul.f32 %v10120_v35, %v12216_v20  ;;  %v9726_v35 = vpack.c.bf16 %v7942_v10, %v7941_v55 }
0x23c0   :  { %10131 = vrcp.f32 %v5702_v18  ;;  %v5699_v5 = vpop.xlane.xlu0 %5698  ;;  %v5716_v56 = vmul.f32 %v10122_v27, %v12218_v11 }
0x23c1   :  { %10133 = vrcp.f32 %v5699_v5 }
0x23c2   :  { %v10124_v48 = vpop.eup %10123  ;;  %9163 = vmatprep.mubr.msk.f32.mxu1 %vm1990_vm4, %v5716_v56 }
0x23c3   :  { %v10126_v58 = vpop.eup %10125  ;;  %v5708_v12 = vpop.xlane.xlu1 %5707  ;;  %9164 = vmatmul.mubr.msk.f32.vlgmr.msra.gmra.mrb[128].mxu1 %vm1990_vm4, %v5718_v51  ;;  %v5722_v2 = vmul.f32 %v10124_v48, %v12225_v44 }
0x23c4   :  { %10135 = vrcp.f32 %v5708_v12  ;;  %v5705_v13 = vpop.xlane.xlu0 %5704  ;;  %v5720_v3 = vmul.f32 %v10126_v58, %v12227_v52  ;;  %9724 = vmatpush3.bf16.msra.mxu1 %v9723_v30 }
0x23c5   :  { %10137 = vrcp.f32 %v5705_v13  ;;  %9725 = vmatprep.subr.bf16.mxu1 %v10246_v0 }
0x23c6   :  { %v10128_v57 = vpop.eup %10127  ;;  %9166 = vmatprep.mubr.msk.f32.mxu1 %vm1990_vm4, %v5720_v3 }
0x23c7   :  { %v10130_v11 = vpop.eup %10129  ;;  %v5714_v20 = vpop.xlane.xlu1 %5713  ;;  %9167 = vmatmul.mubr.msk.f32.gmra.mrb[130].mxu1 %vm1990_vm4, %v5722_v2  ;;  %v5726_v1 = vmul.f32 %v10128_v57, %v12235_v4 }
0x23c8   :  { %10139 = vrcp.f32 %v5714_v20  ;;  %v5711_v14 = vpop.xlane.xlu0 %5710  ;;  %v5724_v16 = vmul.f32 %v10130_v11, %v12237_v63  ;;  %9727 = vmatpush3.bf16.msra.mxu1 %v9726_v35 }
0x23c9   :  { %10141 = vrcp.f32 %v5711_v14  ;;  %9734 = vmatprep.subr.bf16.mxu1 %v10246_v0 }
0x23ca   :  { %v10132_v29 = vpop.eup %10131  ;;  %9169 = vmatprep.mubr.msk.f32.mxu1 %vm1990_vm4, %v5724_v16 }
0x23cb   :  { %v10134_v52 = vpop.eup %10133  ;;  %9170 = vmatmul.mubr.msk.f32.gmra.mrb[132].mxu1 %vm1990_vm4, %v5726_v1  ;;  %v5730_v7 = vmul.f32 %v10132_v29, %v12243_v60  ;;  %v7896_v60 = vld [vmem:[%s12750_s24 + $0x280] sm:$0xff] }
0x23cc   :  { %v5728_v44 = vmul.f32 %v10134_v52, %v10110_v32 }
0x23ce   :  { %v10136_v39 = vpop.eup %10135  ;;  %9172 = vmatprep.mubr.msk.f32.mxu1 %vm1990_vm4, %v5728_v44 }
0x23cf   :  { %v10138_v61 = vpop.eup %10137  ;;  %9173 = vmatmul.mubr.msk.f32.gmra.mrb[134].mxu1 %vm1990_vm4, %v5730_v7  ;;  %v5734_v63 = vmul.f32 %v10136_v39, %v12248_v26  ;;  %v7897_v26 = vld [vmem:[%s12750_s24 + $0x288] sm:$0xff] }
0x23d0   :  { %v5732_v34 = vmul.f32 %v10138_v61, %v10114_v15  ;;  %v9717_v15 = vpack.c.bf16 %v7897_v26, %v7896_v60 }
0x23d2   :  { %v10140_v62 = vpop.eup %10139  ;;  %9175 = vmatprep.mubr.msk.f32.mxu1 %vm1990_vm4, %v5732_v34  ;;  %9718 = vmatpush3.bf16.msra.mxu0 %v9717_v15 }
0x23d3   :  { %v10142_v4 = vpop.eup %10141  ;;  %9176 = vmatmul.mubr.msk.f32.gmra.mrb[136].mxu1 %vm1990_vm4, %v5734_v63  ;;  %v5738_v32 = vmul.f32 %v10140_v62, %v12253_v22  ;;  %9719 = vmatprep.subr.bf16.mxu0 %v10246_v0  ;;  %v7898_v22 = vld [vmem:[%s12750_s24 + $0x290] sm:$0xff] }
0x23d4   :  { %v5736_v43 = vmul.f32 %v10142_v4, %v10118_v23  ;;  %v7899_v23 = vld [vmem:[%s12750_s24 + $0x298] sm:$0xff] }
0x23d5   :  { %v9720_v47 = vpack.c.bf16 %v7899_v23, %v7898_v22  ;;  %v10228_v23 = vld [vmem:[%s12728_s14] sm:$0xff] }
0x23d6   :  { %9178 = vmatprep.mubr.msk.f32.mxu1 %vm1990_vm4, %v5736_v43 }
0x23d7   :  { %9179 = vmatmul.mubr.msk.f32.gmra.mrb[138].mxu1 %vm1990_vm4, %v5738_v32  ;;  %9721 = vmatpush3.bf16.msra.mxu0 %v9720_v47  ;;  %v10229_v47 = vld [vmem:[%s12728_s14 + $0x8] sm:$0xff] }
0x23d8   :  { %9206 = vmatprep.mubr.msk.f32.mxu1 %vm10247_vm3, %v10248_v28  ;;  %9728 = vmatprep.subr.bf16.mxu0 %v10246_v0 }
0x2496   :  { %v9165_v27 = vpop.f32.mrb[128].mxu1 }
0x2497   :  { %v5841_v18 = vpop.f32.mrb[129].mxu1  ;;  %v5901_v57 = vmul.f32 %v9165_v27, %v10572_v17 }
0x2498   :  { %v5900_v56 = vmul.f32 %v5841_v18, %v10572_v17 }
0x249a   :  { %v9168_v5 = vpop.f32.mrb[130].mxu1 }
0x249b   :  { %v5903_v51 = vmul.f32 %v9168_v5, %v10593_v38  ;;  %v5851_v48 = vpop.f32.mrb[131].mxu1 }
0x249c   :  { %v5902_v13 = vmul.f32 %v5851_v48, %v10572_v17  ;;  %v7955_v48 = vld [vmem:[%s12750_s24 + $0x2e8] sm:$0xff] }
0x249d   :  { %v5906_v58 = vadd.f32 %v5903_v51, %v5900_v56  ;;  %v7954_v51 = vld [vmem:[%s12750_s24 + $0x2e0] sm:$0xff] }
0x249e   :  { %v9171_v12 = vpop.f32.mrb[132].mxu1 }
0x249f   :  { %v5905_v3 = vmul.f32 %v9171_v12, %v10593_v38  ;;  %v5861_v2 = vpop.f32.mrb[133].mxu1  ;;  %v7956_v12 = vld [vmem:[%s12750_s24 + $0x2f0] sm:$0xff] }
0x24a0   :  { %v5904_v11 = vmul.f32 %v5861_v2, %v10593_v38 }
0x24a1   :  { %v5908_v20 = vadd.f32 %v5905_v3, %v5902_v13  ;;  %v7957_v13 = vld [vmem:[%s12750_s24 + $0x2f8] sm:$0xff] }
0x24a2   :  { %v5907_v14 = vadd.f32 %v5904_v11, %v5901_v57  ;;  %v9174_v16 = vpop.f32.mrb[134].mxu1  ;;  %v9750_v2 = vpack.c.bf16 %v7957_v13, %v7956_v12  ;;  %v7950_v11 = vld [vmem:[%s12750_s24 + $0x2c0] sm:$0xff] }
0x24a3   :  { %v5910_v1 = vmul.f32 %v9174_v16, %v10607_v46  ;;  %v5871_v29 = vpop.f32.mrb[135].mxu1 }
0x24a4   :  { %v5909_v52 = vmul.f32 %v5871_v29, %v10607_v46  ;;  %v7952_v29 = vld [vmem:[%s12750_s24 + $0x2d0] sm:$0xff] }
0x24a5   :  { %v5913_v44 = vadd.f32 %v5910_v1, %v5907_v14 }
0x24a6   :  { %v5912_v7 = vadd.f32 %v5909_v52, %v5906_v58  ;;  %v9177_v39 = vpop.f32.mrb[136].mxu1  ;;  %v10231_v58 = vld [vmem:[%s12729_s13] sm:$0xff]  ;;  %v7953_v52 = vld [vmem:[%s12750_s24 + $0x2d8] sm:$0xff] }
0x24a7   :  { %v5915_v61 = vmul.f32 %v9177_v39, %v10621_v54  ;;  %v5881_v34 = vpop.f32.mrb[137].mxu1 }
0x24a8   :  { %v5911_v63 = vmul.f32 %v5881_v34, %v10607_v46 }
0x24a9   :  { %v5918_v62 = vadd.f32 %v5915_v61, %v5912_v7  ;;  %v6022_v61 = vrot.slane %v11985_v36, %v10600_v42  ;;  %v7959_v42 = vld [vmem:[%s12750_s24 + $0x308] sm:$0xff] }
0x24aa   :  { %v5914_v4 = vadd.f32 %v5911_v63, %v5908_v20  ;;  %v9180_v43 = vpop.f32.mrb[138].mxu1  ;;  %v7951_v20 = vld [vmem:[%s12750_s24 + $0x2c8] sm:$0xff] }
0x24ab   :  { %v5917_v32 = vmul.f32 %v9180_v43, %v10621_v54  ;;  %v5891_v60 = vpop.f32.mrb[139].mxu1  ;;  %9190 = vmatmul.mubr.msk.f32.vlgmr.msra.gmra.mrb[116].mxu0 %vm246_vm1, %v5918_v62  ;;  %v9741_v14 = vpack.c.bf16 %v7951_v20, %v7950_v11 }
0x24ac   :  { %v5916_v26 = vmul.f32 %v5891_v60, %v10621_v54  ;;  %9730 = vmatpush3.bf16.msra.mxu0 %v11997_v21  ;;  %9192 = vmatprep.mubr.msk.f32.mxu0 %vm10247_vm3, %v10248_v28 }
0x24ad   :  { %v5920_v15 = vadd.f32 %v5917_v32, %v5914_v4  ;;  %9731 = vmatprep.subr.bf16.mxu0 %v10246_v0 }
0x24ae   :  { %v5919_v22 = vadd.f32 %v5916_v26, %v5913_v44  ;;  %v9744_v44 = vpack.c.bf16 %v7953_v52, %v7952_v29 }
0x24b0   :  { %9733 = vmatpush3.bf16.msra.mxu0 %v12009_v40 }
0x24b1   :  { %9193 = vmatmul.mubr.msk.f32.gmra.mrb[118].mxu0 %vm246_vm1, %v5919_v22  ;;  %9740 = vmatprep.subr.bf16.mxu0 %v10246_v0  ;;  %v7958_v22 = vld [vmem:[%s12750_s24 + $0x300] sm:$0xff] }
0x24b2   :  { %9195 = vmatprep.mubr.msk.f32.mxu0 %vm10247_vm3, %v10248_v28 }
0x24b5   :  { %9196 = vmatmul.mubr.msk.f32.gmra.mrb[120].mxu0 %vm246_vm1, %v5920_v15 }
0x24b6   :  { %9223 = vmatprep.mubr.msk.f32.mxu0 %vm10247_vm3, %v10248_v28 }
0x24b9   :  { %9224 = vmatmul.mubr.msk.f32.vlgmr.msra.gmra.mrb[122].mxu0 %vm246_vm1, %v10228_v23 }
0x24ba   :  { %9226 = vmatprep.mubr.msk.f32.mxu0 %vm10247_vm3, %v10248_v28  ;;  %9742 = vmatpush3.bf16.msra.mxu0 %v9741_v14 }
0x24bb   :  { %9743 = vmatprep.subr.bf16.mxu0 %v10246_v0 }
0x24bd   :  { %9227 = vmatmul.mubr.msk.f32.gmra.mrb[124].mxu0 %vm246_vm1, %v10229_v47 }
0x24be   :  { %9229 = vmatprep.mubr.msk.f32.mxu0 %vm10247_vm3, %v10248_v28  ;;  %9745 = vmatpush3.bf16.msra.mxu0 %v9744_v44 }
0x24bf   :  { %9752 = vmatprep.subr.bf16.mxu0 %v10246_v0 }
0x24c1   :  { %9230 = vmatmul.mubr.msk.f32.gmra.mrb[126].mxu0 %vm246_vm1, %v10230_v49  ;;  %v9753_v49 = vpack.c.bf16 %v7959_v42, %v7958_v22  ;;  %v10234_v22 = vld [vmem:[%s12730_s11 + $0x18] sm:$0xff] }
0x24c2   :  { %9251 = vmatprep.mubr.msk.f32.mxu0 %vm10247_vm3, %v10248_v28 }
0x257e   :  { %v6000_v55 = vpop.f32.mrb[116].mxu0 }
0x257f   :  { %v6001_v30 = vadd.f32 %v6000_v55, %v5924_v19  ;;  %v9191_v10 = vpop.f32.mrb[117].mxu0  ;;  %v7960_v55 = vld [vmem:[%s12750_s24 + $0x310] sm:$0xff] }
0x2581   :  { %9207 = vmatmul.mubr.msk.f32.vlgmr.msra.gmra.mrb[140].mxu1 %vm246_vm1, %v6001_v30  ;;  %v7961_v30 = vld [vmem:[%s12750_s24 + $0x318] sm:$0xff] }
0x2582   :  { %9736 = vmatpush3.bf16.msra.mxu1 %v11997_v21  ;;  %9209 = vmatprep.mubr.msk.f32.mxu1 %vm10247_vm3, %v10248_v28 }
0x2583   :  { %9737 = vmatprep.subr.bf16.mxu1 %v10246_v0 }
0x2584   :  { %v6005_v35 = vpop.f32.mrb[118].mxu0 }
0x2585   :  { %v6006_v27 = vadd.f32 %v6005_v35, %v5924_v19  ;;  %v9194_v18 = vpop.f32.mrb[119].mxu0 }
0x2586   :  { %9739 = vmatpush3.bf16.msra.mxu1 %v12009_v40  ;;  %v9747_v40 = vpack.c.bf16 %v7955_v48, %v7954_v51 }
0x2587   :  { %9210 = vmatmul.mubr.msk.f32.gmra.mrb[142].mxu1 %vm246_vm1, %v6006_v27  ;;  %9746 = vmatprep.subr.bf16.mxu1 %v10246_v0  ;;  %v9756_v27 = vpack.c.bf16 %v7961_v30, %v7960_v55 }
0x2588   :  { %v6010_v5 = vpop.f32.mrb[120].mxu0  ;;  %9212 = vmatprep.mubr.msk.f32.mxu1 %vm10247_vm3, %v10248_v28 }
0x2589   :  { %v6011_v56 = vadd.f32 %v6010_v5, %v5924_v19  ;;  %v9197_v21 = vpop.f32.mrb[121].mxu0 }
0x258b   :  { %9213 = vmatmul.mubr.msk.f32.gmra.mrb[144].mxu1 %vm246_vm1, %v6011_v56 }
0x258c   :  { %9240 = vmatprep.mubr.msk.f32.mxu1 %vm10247_vm3, %v10248_v28  ;;  %v6178_v3 = vpop.f32.mrb[122].mxu0 }
0x258d   :  { %v9225_v57 = vpop.f32.mrb[123].mxu0 }
0x258f   :  { %9241 = vmatmul.mubr.msk.f32.vlgmr.msra.gmra.mrb[146].mxu1 %vm246_vm1, %v10231_v58 }
0x2590   :  { %9748 = vmatpush3.bf16.msra.mxu1 %v9747_v40  ;;  %9262 = vmatprep.mubr.msk.f32.mxu1 %vm10247_vm3, %v10248_v28  ;;  %v6183_v16 = vpop.f32.mrb[124].mxu0 }
0x2591   :  { %9749 = vmatprep.subr.bf16.mxu1 %v10246_v0  ;;  %v9228_v1 = vpop.f32.mrb[125].mxu0 }
0x2594   :  { %9751 = vmatpush3.bf16.msra.mxu1 %v9750_v2  ;;  %v6188_v7 = vpop.f32.mrb[126].mxu0 }
0x2595   :  { %v9231_v39 = vpop.f32.mrb[127].mxu0 }
0x2654   :  { %v6098_v34 = vpop.f32.mrb[140].mxu1 }
0x2655   :  { %v6099_v63 = vadd.f32 %v6098_v34, %v6022_v61  ;;  %v9208_v62 = vpop.f32.mrb[141].mxu1 }
0x2657   :  { %v6179_v4 = vadd.f32 %v6178_v3, %v6099_v63 }
0x2659   :  { %9263 = vmatmul.mubr.msk.f32.vlgmr.msra.gmra.mrb[148].mxu1 %vm246_vm1, %v6179_v4 }
0x265a   :  { %v6103_v43 = vpop.f32.mrb[142].mxu1  ;;  %9265 = vmatprep.mubr.msk.f32.mxu1 %vm10247_vm3, %v10248_v28 }
0x265b   :  { %v6104_v32 = vadd.f32 %v6103_v43, %v6022_v61  ;;  %v9211_v60 = vpop.f32.mrb[143].mxu1 }
0x265d   :  { %v12405_v26 = vpack.c.bf16 %v6104_v32, %v6099_v63  ;;  %v6184_v15 = vadd.f32 %v6183_v16, %v6104_v32  ;;  %v10233_v63 = vld [vmem:[%s12730_s11] sm:$0xff] }
0x265e   :  { %v6108_v36 = vpop.f32.mrb[144].mxu1 }
0x265f   :  { %v12413_v23 = vadd.f32 %v6108_v36, %v6022_v61  ;;  %v9214_v47 = vpop.f32.mrb[145].mxu1  ;;  %9266 = vmatmul.mubr.msk.f32.gmra.mrb[150].mxu1 %vm246_vm1, %v6184_v15  ;;  %v10232_v61 = vld [vmem:[%s12730_s11 + $0x8] sm:$0xff]  ;;  %v10235_v36 = vld [vmem:[%s12730_s11 + $0x10] sm:$0xff] }
0x2660   :  { %9268 = vmatprep.mubr.msk.f32.mxu1 %vm10247_vm3, %v10248_v28 }
0x2661   :  { %v6189_v19 = vadd.f32 %v6188_v7, %v12413_v23 }
0x2662   :  { %v6258_v10 = vpop.f32.mrb[146].mxu1 }
0x2663   :  { %9252 = vmatmul.mubr.msk.f32.vlgmr.msra.gmra.mrb[128].mxu0 %vm246_vm1, %v6258_v10  ;;  %9269 = vmatmul.mubr.msk.f32.gmra.mrb[152].mxu1 %vm246_vm1, %v6189_v19  ;;  %v9242_v35 = vpop.f32.mrb[147].mxu1 }
0x2664   :  { %9754 = vmatpush3.bf16.msra.mxu0 %v9753_v49  ;;  %9279 = vmatprep.mubr.msk.f32.mxu0 %vm10247_vm3, %v10248_v28 }
0x2665   :  { %9755 = vmatprep.subr.bf16.mxu0 %v10246_v0 }
0x2668   :  { %9757 = vmatpush3.bf16.msra.mxu0 %v9756_v27 }
0x266b   :  { %9280 = vmatmul.mubr.msk.f32.vlgmr.msra.gmra.mrb[130].mxu0 %vm246_vm1, %v6179_v4 }
0x266c   :  { %9282 = vmatprep.mubr.msk.f32.mxu0 %vm10247_vm3, %v10248_v28 }
0x266f   :  { %9283 = vmatmul.mubr.msk.f32.gmra.mrb[132].mxu0 %vm246_vm1, %v6184_v15 }
0x2670   :  { %9285 = vmatprep.mubr.msk.f32.mxu0 %vm10247_vm3, %v10248_v28 }
0x2673   :  { %9286 = vmatmul.mubr.msk.f32.gmra.mrb[134].mxu0 %vm246_vm1, %v6189_v19 }
0x272c   :  { %v6430_v18 = vpop.f32.mrb[148].mxu1 }
0x272d   :  { %v9264_v5 = vpop.f32.mrb[149].mxu1 }
0x2732   :  { %v6435_v56 = vpop.f32.mrb[150].mxu1 }
0x2733   :  { %v9758_v21 = vpack.c.bf16 %v6435_v56, %v6430_v18  ;;  %v9267_v51 = vpop.f32.mrb[151].mxu1 }
0x2735   :  { %9760 = vmatprep.subr.msk.bf16.mxu1 %vm10578_vm2, %v9758_v21 }
0x2736   :  { %v6440_v48 = vpop.f32.mrb[152].mxu1  ;;  %9763 = vmatpush3.bf16.xpose.msk.msra.mxu1 %vm10578_vm2, %v9758_v21  ;;  %v6351_v40 = vpop.f32.mrb[128].mxu0 }
0x2737   :  { %v9270_v58 = vpop.f32.mrb[153].mxu1  ;;  %9292 = vmatprep.subr.msk.mxu1 %vm246_vm1, %v6440_v48  ;;  %v6524_v12 = vmul.f32 %v6351_v40, %v10572_v17  ;;  %v9253_v13 = vpop.f32.mrb[129].mxu0  ;;  %v6525_v3 = vmul.f32 %v6351_v40, %v10593_v38  ;;  %v6526_v25 = vmul.f32 %v6351_v40, %v10607_v46  ;;  %v6527_v20 = vmul.f32 %v6351_v40, %v10621_v54 }
0x2739   :  { %9294 = vmatprep.mubr.msk.f32.mxu1 %vm246_vm1, %v6524_v12 }
0x273e   :  { %v6510_v2 = vpop.f32.mrb[130].mxu0  ;;  %9293 = vmatpush3.xpose.msk.msra.mxu1 %vm246_vm1, %v6440_v48 }
0x273f   :  { %v9281_v57 = vpop.f32.mrb[131].mxu0  ;;  %9768 = vmatprep.subr.bf16.mxu1 %v10246_v0 }
0x2741   :  { %9295 = vmatmul.mubr.msk.f32.vlgmr.msra.gmra.mrb[154].mxu1 %vm246_vm1, %v6525_v3 }
0x2742   :  { %v6515_v11 = vpop.f32.mrb[132].mxu0  ;;  %9297 = vmatprep.mubr.msk.f32.mxu1 %vm246_vm1, %v6526_v25 }
0x2743   :  { %v9764_v14 = vpack.c.bf16 %v6515_v11, %v6510_v2  ;;  %v9284_v16 = vpop.f32.mrb[133].mxu0 }
0x2745   :  { %9765 = vmatprep.subr.bf16.mxu0 %v9764_v14  ;;  %9298 = vmatmul.mubr.msk.f32.gmra.mrb[156].mxu1 %vm246_vm1, %v6527_v20 }
0x2746   :  { %v6520_v1 = vpop.f32.mrb[134].mxu0  ;;  %9767 = vmatpush3.bf16.msra.mxu0 %v9764_v14  ;;  %9320 = vmatprep.mubr.msk.f32.mxu1 %vm10247_vm3, %v10248_v28 }
0x2747   :  { %v9287_v29 = vpop.f32.mrb[135].mxu0  ;;  %9304 = vmatprep.subr.mxu0 %v6520_v1 }
0x274a   :  { %9305 = vmatpush3.msra.mxu0 %v6520_v1 }
0x2814   :  { %v9296_v52 = vpop.f32.mrb[154].mxu1 }
0x2815   :  { %v6635_v44 = vmul.f32 0.17677669, %v9296_v52  ;;  %v6615_v7 = vpop.f32.mrb[155].mxu1 }
0x2816   :  { %v6634_v39 = vmul.f32 0.17677669, %v6615_v7 }
0x2817   :  { %v6639_v34 = vadd.f32 %v10232_v61, %v6635_v44 }
0x2818   :  { %v6638_v62 = vadd.f32 %v10233_v63, %v6634_v39  ;;  %v9299_v4 = vpop.f32.mrb[156].mxu1 }
0x2819   :  { %v6637_v43 = vmul.f32 0.17677669, %v9299_v4  ;;  %v6625_v28 = vpop.f32.mrb[157].mxu1  ;;  %v6645_v32 = vsel %vm1990_vm4, %v6639_v34, -inf  ;;  %v7963_v4 = vld [vmem:[%s12750_s24 + $0x328] sm:$0xff] }
0x281a   :  { %v6636_v60 = vmul.f32 0.17677669, %v6625_v28  ;;  %6646 = vmax.xlane.f32.xlu1 %v6645_v32  ;;  %v6642_v15 = vsel %vm1990_vm4, %v6638_v62, -inf  ;;  %v7964_v28 = vld [vmem:[%s12750_s24 + $0x330] sm:$0xff]  ;;  %v7965_v32 = vld [vmem:[%s12750_s24 + $0x338] sm:$0xff] }
0x281b   :  { %v6641_v42 = vadd.f32 %v10234_v22, %v6637_v43  ;;  %6643 = vmax.xlane.f32.xlu0 %v6642_v15 }
0x281c   :  { %v6640_v47 = vadd.f32 %v10235_v36, %v6636_v60  ;;  %v9772_v60 = vpack.c.bf16 %v7965_v32, %v7964_v28 }
0x281d   :  { %v6651_v49 = vsel %vm1990_vm4, %v6641_v42, -inf }
0x281e   :  { %6652 = vmax.xlane.f32.xlu1 %v6651_v49  ;;  %v6648_v19 = vsel %vm1990_vm4, %v6640_v47, -inf }
0x281f   :  { %6649 = vmax.xlane.f32.xlu0 %v6648_v19 }
0x28a7   :  { %v6647_v55 = vpop.xlane.xlu1 %6646 }
0x28a8   :  { %v6655_v30 = vsub.f32 %v6639_v34, %v6647_v55  ;;  %v6644_v10 = vpop.xlane.xlu0 %6643 }
0x28a9   :  { %v6654_v35 = vsub.f32 %v6638_v62, %v6644_v10  ;;  %v7962_v62 = vld [vmem:[%s12750_s24 + $0x320] sm:$0xff] }
0x28aa   :  { %v6660_v27 = vmul.f32 1.442695, %v6655_v30  ;;  %v9769_v43 = vpack.c.bf16 %v7963_v4, %v7962_v62 }
0x28ab   :  { %v6658_v18 = vmul.f32 1.442695, %v6654_v35  ;;  %v6653_v5 = vpop.xlane.xlu1 %6652  ;;  %v10236_v35 = vld [vmem:[%s12731_s15] sm:$0xff] }
0x28ac   :  { %10143 = vpow2.f32 %v6660_v27  ;;  %v6657_v56 = vsub.f32 %v6641_v42, %v6653_v5  ;;  %v6650_v21 = vpop.xlane.xlu0 %6649  ;;  %9770 = vmatpush3.bf16.msra.mxu1 %v9769_v43 }
0x28ad   :  { %10145 = vpow2.f32 %v6658_v18  ;;  %v6656_v51 = vsub.f32 %v6640_v47, %v6650_v21  ;;  %9771 = vmatprep.subr.bf16.mxu1 %v10246_v0 }
0x28ae   :  { %v6664_v48 = vmul.f32 1.442695, %v6657_v56 }
0x28af   :  { %v6662_v40 = vmul.f32 1.442695, %v6656_v51 }
0x28b0   :  { %10147 = vpow2.f32 %v6664_v48  ;;  %9773 = vmatpush3.bf16.msra.mxu1 %v9772_v60 }
0x28b1   :  { %10149 = vpow2.f32 %v6662_v40 }
0x28b6   :  { %v10144_v58 = vpop.eup %10143 }
0x28b7   :  { %v10146_v12 = vpop.eup %10145  ;;  %v6669_v13 = vsel %vm1990_vm4, %v10144_v58, 0.0 }
0x28b8   :  { %6670 = vadd.xlane.f32.xlu1 %v6669_v13  ;;  %v6666_v3 = vsel %vm1990_vm4, %v10146_v12, 0.0 }
0x28b9   :  { %6667 = vadd.xlane.f32.xlu0 %v6666_v3 }
0x28ba   :  { %v10148_v2 = vpop.eup %10147 }
0x28bb   :  { %v10150_v57 = vpop.eup %10149  ;;  %v6675_v25 = vsel %vm1990_vm4, %v10148_v2, 0.0 }
0x28bc   :  { %6676 = vadd.xlane.f32.xlu1 %v6675_v25  ;;  %v6672_v11 = vsel %vm1990_vm4, %v10150_v57, 0.0 }
0x28bd   :  { %6673 = vadd.xlane.f32.xlu0 %v6672_v11 }
0x2945   :  { %v6671_v20 = vpop.xlane.xlu1 %6670 }
0x2946   :  { %10151 = vrcp.f32 %v6671_v20  ;;  %v6668_v14 = vpop.xlane.xlu0 %6667  ;;  %v10239_v20 = vld [vmem:[%s12731_s15 + $0x8] sm:$0xff] }
0x2947   :  { %10153 = vrcp.f32 %v6668_v14  ;;  %v10240_v14 = vld [vmem:[%s12731_s15 + $0x10] sm:$0xff] }
0x2949   :  { %v6677_v16 = vpop.xlane.xlu1 %6676 }
0x294a   :  { %10155 = vrcp.f32 %v6677_v16  ;;  %v6674_v1 = vpop.xlane.xlu0 %6673  ;;  %v10243_v16 = vld [vmem:[%s12732_s16 + $0x8] sm:$0xff] }
0x294b   :  { %10157 = vrcp.f32 %v6674_v1  ;;  %v10244_v1 = vld [vmem:[%s12732_s16 + $0x10] sm:$0xff] }
0x2950   :  { %v10152_v29 = vpop.eup %10151 }
0x2951   :  { %v10154_v52 = vpop.eup %10153  ;;  %v6681_v7 = vmul.f32 %v10152_v29, %v10144_v58 }
0x2952   :  { %v6679_v44 = vmul.f32 %v10154_v52, %v10146_v12 }
0x2954   :  { %v10156_v39 = vpop.eup %10155  ;;  %9306 = vmatprep.mubr.msk.f32.mxu0 %vm1990_vm4, %v6679_v44 }
0x2955   :  { %v10158_v61 = vpop.eup %10157  ;;  %9307 = vmatmul.mubr.msk.f32.vlgmr.msra.gmra.mrb[136].mxu0 %vm1990_vm4, %v6681_v7  ;;  %v6685_v63 = vmul.f32 %v10156_v39, %v10148_v2 }
0x2956   :  { %v6683_v34 = vmul.f32 %v10158_v61, %v10150_v57 }
0x2958   :  { %9309 = vmatprep.mubr.msk.f32.mxu0 %vm1990_vm4, %v6683_v34 }
0x2959   :  { %9310 = vmatmul.mubr.msk.f32.gmra.mrb[138].mxu0 %vm1990_vm4, %v6685_v63 }
0x2a28   :  { %v9308_v15 = vpop.f32.mrb[136].mxu0 }
0x2a29   :  { %v6784_v22 = vmul.f32 %v9308_v15, %v10593_v38  ;;  %v6764_v42 = vpop.f32.mrb[137].mxu0 }
0x2a2a   :  { %v6783_v36 = vmul.f32 %v6764_v42, %v10572_v17  ;;  %v12503_v17 = vld [vmem:[%s12723_s4 + $0x18] sm:$0x1f] }
0x2a2b   :  { %v6793_v38 = vrot.slane %v12503_v17, %v10614_v50  ;;  %v12512_v50 = vld [vmem:[%s12723_s4 + $0x10] sm:$0xff] }
0x2a2c   :  { %v6785_v47 = vadd.f32 %v6784_v22, %v6783_v36  ;;  %v9311_v49 = vpop.f32.mrb[138].mxu0  ;;  %v6883_v13 = vrot.slane %v12512_v50, %v11417_v6  ;;  %v6888_v57 = vrot.slane %v12512_v50, %v3283_v24  ;;  %v10241_v24 = vld [vmem:[%s12731_s15 + $0x18] sm:$0xff] }
0x2a2d   :  { %v6774_v19 = vpop.f32.mrb[139].mxu0  ;;  %v6788_v55 = vmul.f32 %v9311_v49, %v10621_v54 }
0x2a2e   :  { %v6786_v0 = vmul.f32 %v6774_v19, %v10607_v46 }
0x2a30   :  { %v6787_v30 = vadd.f32 %v6786_v0, %v6785_v47 }
0x2a32   :  { %v6789_v10 = vadd.f32 %v6788_v55, %v6787_v30 }
0x2a34   :  { %9321 = vmatmul.mubr.msk.f32.vlgmr.msra.gmra.mrb[158].mxu1 %vm246_vm1, %v6789_v10 }
0x2a35   :  { %9325 = vmatprep.mubr.msk.f32.mxu1 %vm3286_vm5, %v10236_v35 }
0x2b07   :  { %v6863_v46 = vpop.f32.mrb[158].mxu1 }
0x2b08   :  { %v6864_v54 = vadd.f32 %v6863_v46, %v6793_v38  ;;  %v9322_v27 = vpop.f32.mrb[159].mxu1 }
0x2b09   :  { %v7994_v27 = vld [vmem:[%s12733_s5 + $0x28] sm:$0xff] }
0x2b0a   :  { %v6867_v18 = vsel %vm246_vm1, %v6864_v54, 0.0 }
0x2b0b   :  { %6868 = vadd.xlane.f32.xlu0 %v6867_v18 }
0x2b98   :  { %v6869_v5 = vpop.xlane.xlu0 %6868 }
0x2b99   :  { %v6870_v56 = vmul.f32 0.03125, %v6869_v5  ;;  %v7995_v5 = vld [vmem:[%s12733_s5 + $0x30] sm:$0xff] }
0x2b9b   :  { %v6871_v21 = vsub.f32 %v6864_v54, %v6870_v56  ;;  %v7993_v54 = vld [vmem:[%s12733_s5 + $0x20] sm:$0xff]  ;;  %v7996_v56 = vld [vmem:[%s12733_s5 + $0x38] sm:$0xff] }
0x2b9c   :  { %v9778_v18 = vpack.c.bf16 %v7994_v27, %v7993_v54  ;;  %v8017_v27 = vld [vmem:[%s12734_s7 + $0xf0] sm:$0xff] }
0x2b9d   :  { %v6872_v51 = vmul.f32 %v6871_v21, %v6871_v21 }
0x2b9e   :  { %9779 = vmatprep.subr.bf16.mxu0 %v9778_v18 }
0x2b9f   :  { %v6873_v48 = vsel %vm246_vm1, %v6872_v51, 0.0  ;;  %9781 = vmatpush3.bf16.msra.mxu0 %v9778_v18  ;;  %v8018_v18 = vld [vmem:[%s12734_s7 + $0xf8] sm:$0xff] }
0x2ba0   :  { %6874 = vadd.xlane.f32.xlu1 %v6873_v48 }
0x2c2d   :  { %v6875_v40 = vpop.xlane.xlu1 %6874 }
0x2c2e   :  { %v6876_v58 = vmul.f32 0.03125, %v6875_v40 }
0x2c30   :  { %v6877_v12 = vadd.f32 1e-05, %v6876_v58 }
0x2c32   :  { %10159 = vrsqrt.f32 %v6877_v12 }
0x2c3c   :  { %v10160_v3 = vpop.eup %10159 }
0x2c3d   :  { %v6879_v2 = vmul.f32 %v10160_v3, %v6871_v21  ;;  %v9782_v21 = vpack.c.bf16 %v7996_v56, %v7995_v5  ;;  %v9814_v5 = vpack.c.bf16 %v8018_v18, %v8017_v27  ;;  %v7998_v56 = vld [vmem:[%s12735_s6 + $0x1] ss:$0 sm:$0xff] }
0x2c3f   :  { %v6884_v25 = vmul.f32 %v6883_v13, %v6879_v2  ;;  %9783 = vmatprep.subr.bf16.mxu0 %v9782_v21 }
0x2c40   :  { %9785 = vmatpush3.bf16.msra.mxu0 %v9782_v21 }
0x2c41   :  { %v6889_v11 = vadd.f32 %v6888_v57, %v6884_v25 }
0x2c43   :  { %9323 = vmatprep.subr.mxu1 %v6889_v11 }
0x2c44   :  { %9324 = vmatpush3.msra.mxu1 %v6889_v11 }
0x2c45   :  { %9326 = vmatmul.mubr.msk.f32.vlgmr.msra.gmra.mrb[160].mxu1 %vm3286_vm5, %v10239_v20  ;;  %9775 = vmatprep.subr.bf16.mxu1 %v12405_v26 }
0x2c46   :  { %9777 = vmatpush3.bf16.msra.mxu1 %v12405_v26  ;;  %9328 = vmatprep.mubr.msk.f32.mxu1 %vm3286_vm5, %v10240_v14  ;;  %v10242_v26 = vld [vmem:[%s12732_s16] sm:$0xff]  ;;  %v7123_v14 = vrot.slane %v12512_v50, %v3543_v8 }
0x2c47   :  { %9335 = vmatprep.subr.mxu1 %v12413_v23 }
0x2c49   :  { %9329 = vmatmul.mubr.msk.f32.gmra.mrb[162].mxu1 %vm3286_vm5, %v10241_v24 }
0x2c4a   :  { %9336 = vmatpush3.msra.mxu1 %v12413_v23  ;;  %9337 = vmatprep.mubr.msk.f32.mxu1 %vm1990_vm4, %v10242_v26  ;;  %v10245_v23 = vld [vmem:[%s12732_s16 + $0x18] sm:$0xff] }
0x2c4d   :  { %9338 = vmatmul.mubr.msk.f32.vlgmr.msra.gmra.mrb[160].mxu1 %vm1990_vm4, %v10243_v16 }
0x2c4e   :  { %9340 = vmatprep.mubr.msk.f32.mxu1 %vm1990_vm4, %v10244_v1 }
0x2c51   :  { %9341 = vmatmul.mubr.msk.f32.gmra.mrb[162].mxu1 %vm1990_vm4, %v10245_v23  ;;  %v7131_v23 = vrot.slane %v12512_v50, %v3551_v33  ;;  %v8004_v33 = vld [vmem:[%s12734_s7 + $0x88] sm:$0xff] }
0x2c52   :  { %v9786_v50 = vpack.c.bf16 %v8004_v33, %v8003_v37 }
0x2c54   :  { %9787 = vmatprep.subr.bf16.mxu0 %v9786_v50 }
0x2d20   :  { %v9339_v29 = vpop.f32.mrb[160].mxu1 }
0x2d21   :  { %v12552_v52 = vadd.f32 %v9339_v29, %v11990_v31  ;;  %v7045_v44 = vpop.f32.mrb[161].mxu1 }
0x2d22   :  { %v12555_v7 = vadd.f32 %v7045_v44, %v11993_v9 }
0x2d23   :  { %v7071_v39 = vsel %vm246_vm1, %v12552_v52, 0.0 }
0x2d24   :  { %7072 = vadd.xlane.f32.xlu1 %v7071_v39  ;;  %v9342_v61 = vpop.f32.mrb[162].mxu1  ;;  %v7068_v34 = vsel %vm246_vm1, %v12555_v7, 0.0 }
0x2d25   :  { %v12562_v63 = vadd.f32 %v9342_v61, %v12000_v53  ;;  %7069 = vadd.xlane.f32.xlu0 %v7068_v34  ;;  %v7055_v62 = vpop.f32.mrb[163].mxu1 }
0x2d26   :  { %v12565_v31 = vadd.f32 %v7055_v62, %v12003_v59 }
0x2d27   :  { %v7077_v9 = vsel %vm246_vm1, %v12562_v63, 0.0 }
0x2d28   :  { %7078 = vadd.xlane.f32.xlu1 %v7077_v9  ;;  %v7074_v4 = vsel %vm246_vm1, %v12565_v31, 0.0 }
0x2d29   :  { %7075 = vadd.xlane.f32.xlu0 %v7074_v4 }
0x2db1   :  { %v7073_v43 = vpop.xlane.xlu1 %7072 }
0x2db2   :  { %v7081_v28 = vmul.f32 0.03125, %v7073_v43  ;;  %v7070_v32 = vpop.xlane.xlu0 %7069 }
0x2db3   :  { %v7080_v60 = vmul.f32 0.03125, %v7070_v32 }
0x2db4   :  { %v7085_v53 = vsub.f32 %v12552_v52, %v7081_v28 }
0x2db5   :  { %v7084_v15 = vsub.f32 %v12555_v7, %v7080_v60  ;;  %v7079_v22 = vpop.xlane.xlu1 %7078  ;;  %v8005_v60 = vld [vmem:[%s12734_s7 + $0x90] sm:$0xff] }
0x2db6   :  { %v7083_v42 = vmul.f32 0.03125, %v7079_v22  ;;  %v7076_v59 = vpop.xlane.xlu0 %7075  ;;  %v7089_v36 = vmul.f32 %v7085_v53, %v7085_v53  ;;  %v8007_v22 = vld [vmem:[%s12734_s7 + $0xa0] sm:$0xff] }
0x2db7   :  { %v7082_v47 = vmul.f32 0.03125, %v7076_v59  ;;  %v7088_v49 = vmul.f32 %v7084_v15, %v7084_v15 }
0x2db8   :  { %v7087_v19 = vsub.f32 %v12562_v63, %v7083_v42  ;;  %v7095_v0 = vsel %vm246_vm1, %v7089_v36, 0.0  ;;  %v8008_v42 = vld [vmem:[%s12734_s7 + $0xa8] sm:$0xff]  ;;  %v8009_v36 = vld [vmem:[%s12734_s7 + $0xb0] sm:$0xff] }
0x2db9   :  { %v7086_v55 = vsub.f32 %v12565_v31, %v7082_v47  ;;  %7096 = vadd.xlane.f32.xlu1 %v7095_v0  ;;  %v7092_v30 = vsel %vm246_vm1, %v7088_v49, 0.0  ;;  %v9794_v59 = vpack.c.bf16 %v8008_v42, %v8007_v22  ;;  %v8010_v47 = vld [vmem:[%s12734_s7 + $0xb8] sm:$0xff]  ;;  %v8012_v0 = vld [vmem:[%s12734_s7 + $0xc8] sm:$0xff] }
0x2dba   :  { %7093 = vadd.xlane.f32.xlu0 %v7092_v30  ;;  %v7091_v10 = vmul.f32 %v7087_v19, %v7087_v19  ;;  %v9798_v49 = vpack.c.bf16 %v8010_v47, %v8009_v36  ;;  %v8013_v30 = vld [vmem:[%s12734_s7 + $0xd0] sm:$0xff] }
0x2dbb   :  { %v7090_v35 = vmul.f32 %v7086_v55, %v7086_v55 }
0x2dbc   :  { %v7101_v38 = vsel %vm246_vm1, %v7091_v10, 0.0  ;;  %v8014_v10 = vld [vmem:[%s12734_s7 + $0xd8] sm:$0xff] }
0x2dbd   :  { %7102 = vadd.xlane.f32.xlu1 %v7101_v38  ;;  %v7098_v46 = vsel %vm246_vm1, %v7090_v35, 0.0  ;;  %v9806_v35 = vpack.c.bf16 %v8014_v10, %v8013_v30  ;;  %v8015_v38 = vld [vmem:[%s12734_s7 + $0xe0] sm:$0xff] }
0x2dbe   :  { %7099 = vadd.xlane.f32.xlu0 %v7098_v46  ;;  %v8016_v46 = vld [vmem:[%s12734_s7 + $0xe8] sm:$0xff] }
0x2dbf   :  { %v9810_v54 = vpack.c.bf16 %v8016_v46, %v8015_v38 }
0x2e46   :  { %v7097_v51 = vpop.xlane.xlu1 %7096 }
0x2e47   :  { %v7105_v48 = vmul.f32 0.03125, %v7097_v51  ;;  %v7094_v40 = vpop.xlane.xlu0 %7093 }
0x2e48   :  { %v7104_v58 = vmul.f32 0.03125, %v7094_v40 }
0x2e49   :  { %v7109_v12 = vadd.f32 1e-05, %v7105_v48 }
0x2e4a   :  { %v7108_v13 = vadd.f32 1e-05, %v7104_v58  ;;  %v7103_v3 = vpop.xlane.xlu1 %7102 }
0x2e4b   :  { %10161 = vrsqrt.f32 %v7109_v12  ;;  %v7107_v2 = vmul.f32 0.03125, %v7103_v3  ;;  %v7100_v57 = vpop.xlane.xlu0 %7099 }
0x2e4c   :  { %10163 = vrsqrt.f32 %v7108_v13  ;;  %v7106_v25 = vmul.f32 0.03125, %v7100_v57 }
0x2e4d   :  { %v7111_v11 = vadd.f32 1e-05, %v7107_v2 }
0x2e4e   :  { %v7110_v20 = vadd.f32 1e-05, %v7106_v25 }
0x2e4f   :  { %10165 = vrsqrt.f32 %v7111_v11 }
0x2e50   :  { %10167 = vrsqrt.f32 %v7110_v20 }
0x2e55   :  { %v10162_v24 = vpop.eup %10161 }
0x2e56   :  { %v10164_v26 = vpop.eup %10163  ;;  %v7117_v16 = vmul.f32 %v10162_v24, %v7085_v53  ;;  %v8006_v53 = vld [vmem:[%s12734_s7 + $0x98] sm:$0xff] }
0x2e57   :  { %v7116_v1 = vmul.f32 %v10164_v26, %v7084_v15  ;;  %v9790_v15 = vpack.c.bf16 %v8006_v53, %v8005_v60 }
0x2e58   :  { %v7125_v29 = vmul.f32 %v7123_v14, %v7117_v16 }
0x2e59   :  { %v10166_v44 = vpop.eup %10165  ;;  %v7124_v39 = vmul.f32 %v7123_v14, %v7116_v1 }
0x2e5a   :  { %v10168_v61 = vpop.eup %10167  ;;  %v7119_v34 = vmul.f32 %v10166_v44, %v7087_v19  ;;  %v7133_v4 = vadd.f32 %v7131_v23, %v7125_v29  ;;  %v8011_v19 = vld [vmem:[%s12734_s7 + $0xc0] sm:$0xff] }
0x2e5b   :  { %v7132_v62 = vadd.f32 %v7131_v23, %v7124_v39  ;;  %v7118_v9 = vmul.f32 %v10168_v61, %v7086_v55  ;;  %v9802_v55 = vpack.c.bf16 %v8012_v0, %v8011_v19 }
0x2e5c   :  { %v7127_v43 = vmul.f32 %v7123_v14, %v7119_v34 }
0x2e5d   :  { %9351 = vmatprep.mubr.msk.f32.mxu0 %vm246_vm1, %v7132_v62  ;;  %v7126_v8 = vmul.f32 %v7123_v14, %v7118_v9 }
0x2e5e   :  { %9352 = vmatmul.mubr.msk.f32.vlgmr.msra.gmra.mrb[140].mxu0 %vm246_vm1, %v7133_v4  ;;  %v7135_v32 = vadd.f32 %v7131_v23, %v7127_v43 }
0x2e5f   :  { %v7134_v28 = vadd.f32 %v7131_v23, %v7126_v8  ;;  %9789 = vmatpush3.bf16.msra.mxu0 %v9786_v50 }
0x2e60   :  { %9791 = vmatprep.subr.bf16.mxu0 %v9790_v15 }
0x2e61   :  { %9354 = vmatprep.mubr.msk.f32.mxu0 %vm246_vm1, %v7134_v28 }
0x2e62   :  { %9355 = vmatmul.mubr.msk.f32.gmra.mrb[142].mxu0 %vm246_vm1, %v7135_v32 }
0x2e63   :  { %9793 = vmatpush3.bf16.msra.mxu0 %v9790_v15 }
0x2e64   :  { %9795 = vmatprep.subr.bf16.mxu0 %v9794_v59 }
0x2e67   :  { %9797 = vmatpush3.bf16.msra.mxu0 %v9794_v59 }
0x2e68   :  { %9799 = vmatprep.subr.bf16.mxu0 %v9798_v49 }
0x2e6b   :  { %9801 = vmatpush3.bf16.msra.mxu0 %v9798_v49 }
0x2e6c   :  { %9803 = vmatprep.subr.bf16.mxu0 %v9802_v55 }
0x2e6f   :  { %9805 = vmatpush3.bf16.msra.mxu0 %v9802_v55 }
0x2e70   :  { %9807 = vmatprep.subr.bf16.mxu0 %v9806_v35 }
0x2e73   :  { %9809 = vmatpush3.bf16.msra.mxu0 %v9806_v35 }
0x2e74   :  { %9811 = vmatprep.subr.bf16.mxu0 %v9810_v54 }
0x2e77   :  { %9813 = vmatpush3.bf16.msra.mxu0 %v9810_v54 }
0x2e78   :  { %9815 = vmatprep.subr.bf16.mxu0 %v9814_v5 }
0x2e7b   :  { %9817 = vmatpush3.bf16.msra.mxu0 %v9814_v5 }
0x2f31   :  { %v9353_v21 = vpop.f32.mrb[140].mxu0 }
0x2f32   :  { %v12652_v51 = vadd.f32 %v9353_v21, %v7998_v56  ;;  %v7227_v48 = vpop.f32.mrb[141].mxu0 }
0x2f33   :  { %v12654_v40 = vadd.f32 %v7998_v56, %v7227_v48 }
0x2f34   :  { %v12657_v58 = vmul.f32 0.70710677, %v12652_v51 }
0x2f35   :  { %v12660_v12 = vmul.f32 0.70710677, %v12654_v40  ;;  %v9356_v13 = vpop.f32.mrb[142].mxu0 }
0x2f36   :  { %v7251_v3 = vand.u32 2147483647, %v12657_v58  ;;  %v12663_v2 = vadd.f32 %v9356_v13, %v7998_v56  ;;  %v7237_v57 = vpop.f32.mrb[143].mxu0  ;;  %vm7331_vm10 = vcmp.ge.f32.partialorder %v12657_v58, 0.0 }
0x2f37   :  { %v7250_v25 = vand.u32 2147483647, %v12660_v12  ;;  %v12666_v11 = vadd.f32 %v7998_v56, %v7237_v57  ;;  %vm7330_vm11 = vcmp.ge.f32.partialorder %v12660_v12, 0.0 }
0x2f38   :  { %v7255_v20 = vmul.f32 0.3275911, %v7251_v3  ;;  %v12669_v14 = vmul.f32 0.70710677, %v12663_v2  ;;  %v7307_v62 = vsub.f32 0.0, %v7251_v3 }
0x2f39   :  { %v7254_v24 = vmul.f32 0.3275911, %v7250_v25  ;;  %v12672_v26 = vmul.f32 0.70710677, %v12666_v11  ;;  %v7306_v9 = vsub.f32 0.0, %v7250_v25 }
0x2f3a   :  { %v7259_v16 = vadd.f32 1.0, %v7255_v20  ;;  %v7253_v1 = vand.u32 2147483647, %v12669_v14  ;;  %v7311_v43 = vmul.f32 %v7307_v62, %v7251_v3  ;;  %vm7333_vm12 = vcmp.ge.f32.partialorder %v12669_v14, 0.0 }
0x2f3b   :  { %v7258_v23 = vadd.f32 1.0, %v7254_v24  ;;  %v7252_v29 = vand.u32 2147483647, %v12672_v26  ;;  %v7310_v37 = vmul.f32 %v7306_v9, %v7250_v25  ;;  %vm7332_vm13 = vcmp.ge.f32.partialorder %v12672_v26, 0.0 }
0x2f3c   :  { %10169 = vrcp.f32 %v7259_v16  ;;  %v7257_v44 = vmul.f32 0.3275911, %v7253_v1  ;;  %v7309_v8 = vsub.f32 0.0, %v7253_v1  ;;  %v7316_v15 = vmul.f32 1.442695, %v7311_v43 }
0x2f3d   :  { %10171 = vrcp.f32 %v7258_v23  ;;  %v7256_v39 = vmul.f32 0.3275911, %v7252_v29  ;;  %v7308_v33 = vsub.f32 0.0, %v7252_v29  ;;  %v7314_v47 = vmul.f32 1.442695, %v7310_v37 }
0x2f3e   :  { %v7261_v61 = vadd.f32 1.0, %v7257_v44  ;;  %v7313_v22 = vmul.f32 %v7309_v8, %v7253_v1 }
0x2f3f   :  { %v7260_v34 = vadd.f32 1.0, %v7256_v39  ;;  %v7312_v49 = vmul.f32 %v7308_v33, %v7252_v29 }
0x2f40   :  { %10173 = vrcp.f32 %v7261_v61  ;;  %v7320_v35 = vmul.f32 1.442695, %v7313_v22 }
0x2f41   :  { %10175 = vrcp.f32 %v7260_v34  ;;  %v7318_v27 = vmul.f32 1.442695, %v7312_v49 }
0x2f42   :  { %10177 = vpow2.f32 %v7316_v15 }
0x2f43   :  { %10179 = vpow2.f32 %v7314_v47 }
0x2f44   :  { %10181 = vpow2.f32 %v7320_v35 }
0x2f45   :  { %10183 = vpow2.f32 %v7318_v27 }
0x2f46   :  { %v10170_v4 = vpop.eup %10169 }
0x2f47   :  { %v10172_v28 = vpop.eup %10171  ;;  %v7271_v32 = vmul.f32 1.0614054, %v10170_v4 }
0x2f48   :  { %v7270_v50 = vmul.f32 1.0614054, %v10172_v28 }
0x2f49   :  { %v7275_v60 = vadd.f32 -1.4531521, %v7271_v32 }
0x2f4a   :  { %v10174_v53 = vpop.eup %10173  ;;  %v7274_v42 = vadd.f32 -1.4531521, %v7270_v50 }
0x2f4b   :  { %v10176_v59 = vpop.eup %10175  ;;  %v7279_v36 = vmul.f32 %v10170_v4, %v7275_v60  ;;  %v7273_v19 = vmul.f32 1.0614054, %v10174_v53 }
0x2f4c   :  { %v7278_v0 = vmul.f32 %v10172_v28, %v7274_v42  ;;  %v7272_v55 = vmul.f32 1.0614054, %v10176_v59  ;;  %v10178_v61 = vpop.eup %10177 }
0x2f4d   :  { %v7283_v30 = vadd.f32 1.4214138, %v7279_v36  ;;  %v7277_v10 = vadd.f32 -1.4531521, %v7273_v19  ;;  %v10180_v9 = vpop.eup %10179 }
0x2f4e   :  { %v7282_v38 = vadd.f32 1.4214138, %v7278_v0  ;;  %v7276_v46 = vadd.f32 -1.4531521, %v7272_v55  ;;  %v10182_v60 = vpop.eup %10181 }
0x2f4f   :  { %v7287_v54 = vmul.f32 %v10170_v4, %v7283_v30  ;;  %v7281_v18 = vmul.f32 %v10174_v53, %v7277_v10  ;;  %v10184_v42 = vpop.eup %10183  ;;  %v7342_v10 = vmul.f32 0.5, %v12654_v40  ;;  %v7345_v40 = vmul.f32 0.5, %v12663_v2 }
0x2f50   :  { %v7286_v5 = vmul.f32 %v10172_v28, %v7282_v38  ;;  %v7280_v56 = vmul.f32 %v10176_v59, %v7276_v46 }
0x2f51   :  { %v7291_v21 = vadd.f32 -0.28449672, %v7287_v54  ;;  %v7285_v48 = vadd.f32 1.4214138, %v7281_v18  ;;  %v7344_v18 = vmul.f32 0.5, %v12666_v11 }
0x2f52   :  { %v7290_v13 = vadd.f32 -0.28449672, %v7286_v5  ;;  %v7284_v3 = vadd.f32 1.4214138, %v7280_v56 }
0x2f53   :  { %v7295_v57 = vmul.f32 %v10170_v4, %v7291_v21  ;;  %v7289_v25 = vmul.f32 %v10174_v53, %v7285_v48 }
0x2f54   :  { %v7294_v20 = vmul.f32 %v10172_v28, %v7290_v13  ;;  %v7288_v24 = vmul.f32 %v10176_v59, %v7284_v3 }
0x2f55   :  { %v7299_v16 = vadd.f32 0.2548296, %v7295_v57  ;;  %v7293_v1 = vadd.f32 -0.28449672, %v7289_v25 }
0x2f56   :  { %v7298_v23 = vadd.f32 0.2548296, %v7294_v20  ;;  %v7292_v29 = vadd.f32 -0.28449672, %v7288_v24 }
0x2f57   :  { %v7303_v44 = vmul.f32 %v10170_v4, %v7299_v16  ;;  %v7297_v39 = vmul.f32 %v10174_v53, %v7293_v1 }
0x2f58   :  { %v7302_v34 = vmul.f32 %v10172_v28, %v7298_v23  ;;  %v7296_v62 = vmul.f32 %v10176_v59, %v7292_v29 }
0x2f59   :  { %v7323_v43 = vmul.f32 %v10178_v61, %v7303_v44  ;;  %v7301_v8 = vadd.f32 0.2548296, %v7297_v39 }
0x2f5a   :  { %v7322_v32 = vmul.f32 %v10180_v9, %v7302_v34  ;;  %v7300_v37 = vadd.f32 0.2548296, %v7296_v62 }
0x2f5b   :  { %v7327_v33 = vsub.f32 1.0, %v7323_v43  ;;  %v7305_v50 = vmul.f32 %v10174_v53, %v7301_v8 }
0x2f5c   :  { %v7326_v15 = vsub.f32 1.0, %v7322_v32  ;;  %v7304_v22 = vmul.f32 %v10176_v59, %v7300_v37  ;;  %v7343_v59 = vmul.f32 0.5, %v12652_v51  ;;  %v7463_v51 = vrot.slane %v12503_v17, %v11417_v6 }
0x2f5d   :  { %v7335_v36 = vsub.f32 0.0, %v7327_v33  ;;  %v7325_v47 = vmul.f32 %v10182_v60, %v7305_v50 }
0x2f5e   :  { %v7334_v4 = vsub.f32 0.0, %v7326_v15  ;;  %v7324_v49 = vmul.f32 %v10184_v42, %v7304_v22  ;;  %v7537_v42 = vld [vmem:[%s12736_s17] sm:$0xff] }
0x2f5f   :  { %v7339_v19 = vsel %vm7331_vm10, %v7327_v33, %v7335_v36  ;;  %v7329_v28 = vsub.f32 1.0, %v7325_v47  ;;  %9403 = vmatprep.mubr.msk.f32.mxu1 %vm246_vm1, %v7537_v42 }
0x2f60   :  { %v7347_v0 = vadd.f32 1.0, %v7339_v19  ;;  %v7338_v55 = vsel %vm7330_vm11, %v7326_v15, %v7334_v4  ;;  %v7328_v30 = vsub.f32 1.0, %v7324_v49 }
0x2f61   :  { %v7346_v53 = vadd.f32 1.0, %v7338_v55  ;;  %v7337_v35 = vsub.f32 0.0, %v7329_v28 }
0x2f62   :  { %v7336_v38 = vsub.f32 0.0, %v7328_v30  ;;  %v7351_v54 = vmul.f32 %v7347_v0, %v7343_v59  ;;  %v7468_v59 = vld [vmem:[%s12737_s8] sm:$0x3] }
0x2f63   :  { %v7350_v58 = vmul.f32 %v7346_v53, %v7342_v10  ;;  %v7341_v46 = vsel %vm7333_vm12, %v7329_v28, %v7337_v35 }
0x2f64   :  { %v7340_v27 = vsel %vm7332_vm13, %v7328_v30, %v7336_v38  ;;  %v7349_v12 = vadd.f32 1.0, %v7341_v46  ;;  %v7524_v38 = vrot.slane %v7468_v59, %v10526_v41 }
0x2f65   :  { %9389 = vmatprep.mubr.f32.mxu0 %v7350_v58  ;;  %v7348_v5 = vadd.f32 1.0, %v7340_v27  ;;  %v7532_v27 = vrot.slane %v7468_v59, %v10532_v45  ;;  %v7538_v45 = vld [vmem:[%s12736_s17 + $0x8] sm:$0xff] }
0x2f66   :  { %9390 = vmatmul.mubr.f32.vlgmr.msra.gmra.mrb[144].mxu0 %v7351_v54  ;;  %v7353_v21 = vmul.f32 %v7349_v12, %v7345_v40 }
0x2f67   :  { %v7352_v56 = vmul.f32 %v7348_v5, %v7344_v18 }
0x2f69   :  { %9392 = vmatprep.mubr.f32.mxu0 %v7352_v56 }
0x2f6a   :  { %9393 = vmatmul.mubr.f32.gmra.mrb[146].mxu0 %v7353_v21 }
0x3039   :  { %v9391_v14 = vpop.f32.mrb[144].mxu0 }
0x303a   :  { %v7457_v26 = vadd.f32 %v12552_v52, %v9391_v14  ;;  %v7437_v48 = vpop.f32.mrb[145].mxu0 }
0x303b   :  { %v7456_v13 = vadd.f32 %v12555_v7, %v7437_v48 }
0x303c   :  { %v7465_v3 = vadd.f32 %v7463_v51, %v7457_v26 }
0x303d   :  { %v7464_v11 = vadd.f32 %v7463_v51, %v7456_v13  ;;  %v9394_v57 = vpop.f32.mrb[146].mxu0 }
0x303e   :  { %v7459_v25 = vadd.f32 %v12562_v63, %v9394_v57  ;;  %v7447_v2 = vpop.f32.mrb[147].mxu0  ;;  %v7472_v20 = vsel %vm246_vm1, %v7465_v3, 0.0 }
0x303f   :  { %v7458_v24 = vadd.f32 %v12565_v31, %v7447_v2  ;;  %7473 = vadd.xlane.f32.xlu1 %v7472_v20  ;;  %v7469_v16 = vsel %vm246_vm1, %v7464_v11, 0.0 }
0x3040   :  { %v7467_v6 = vadd.f32 %v7463_v51, %v7459_v25  ;;  %7470 = vadd.xlane.f32.xlu0 %v7469_v16 }
0x3041   :  { %v7466_v17 = vadd.f32 %v7463_v51, %v7458_v24 }
0x3042   :  { %v7478_v52 = vsel %vm246_vm1, %v7467_v6, 0.0 }
0x3043   :  { %7479 = vadd.xlane.f32.xlu1 %v7478_v52  ;;  %v7475_v7 = vsel %vm246_vm1, %v7466_v17, 0.0 }
0x3044   :  { %7476 = vadd.xlane.f32.xlu0 %v7475_v7 }
0x30cc   :  { %v7474_v1 = vpop.xlane.xlu1 %7473 }
0x30cd   :  { %v7482_v23 = vmul.f32 0.03125, %v7474_v1  ;;  %v7471_v63 = vpop.xlane.xlu0 %7470 }
0x30ce   :  { %v7481_v29 = vmul.f32 0.03125, %v7471_v63 }
0x30cf   :  { %v7486_v44 = vsub.f32 %v7465_v3, %v7482_v23 }
0x30d0   :  { %v7485_v39 = vsub.f32 %v7464_v11, %v7481_v29  ;;  %v7480_v61 = vpop.xlane.xlu1 %7479 }
0x30d1   :  { %v7484_v31 = vmul.f32 0.03125, %v7480_v61  ;;  %v7477_v34 = vpop.xlane.xlu0 %7476  ;;  %v7490_v62 = vmul.f32 %v7486_v44, %v7486_v44 }
0x30d2   :  { %v7483_v9 = vmul.f32 0.03125, %v7477_v34  ;;  %v7489_v43 = vmul.f32 %v7485_v39, %v7485_v39 }
0x30d3   :  { %v7488_v8 = vsub.f32 %v7467_v6, %v7484_v31  ;;  %v7496_v32 = vsel %vm246_vm1, %v7490_v62, 0.0 }
0x30d4   :  { %v7487_v37 = vsub.f32 %v7466_v17, %v7483_v9  ;;  %7497 = vadd.xlane.f32.xlu1 %v7496_v32  ;;  %v7493_v33 = vsel %vm246_vm1, %v7489_v43, 0.0 }
0x30d5   :  { %7494 = vadd.xlane.f32.xlu0 %v7493_v33  ;;  %v7492_v50 = vmul.f32 %v7488_v8, %v7488_v8 }
0x30d6   :  { %v7491_v60 = vmul.f32 %v7487_v37, %v7487_v37 }
0x30d7   :  { %v7502_v15 = vsel %vm246_vm1, %v7492_v50, 0.0 }
0x30d8   :  { %7503 = vadd.xlane.f32.xlu1 %v7502_v15  ;;  %v7499_v22 = vsel %vm246_vm1, %v7491_v60, 0.0 }
0x30d9   :  { %7500 = vadd.xlane.f32.xlu0 %v7499_v22 }
0x3161   :  { %v7498_v36 = vpop.xlane.xlu1 %7497 }
0x3162   :  { %v7506_v47 = vmul.f32 0.03125, %v7498_v36  ;;  %v7495_v4 = vpop.xlane.xlu0 %7494 }
0x3163   :  { %v7505_v49 = vmul.f32 0.03125, %v7495_v4 }
0x3164   :  { %v7510_v19 = vadd.f32 1e-05, %v7506_v47 }
0x3165   :  { %v7509_v28 = vadd.f32 1e-05, %v7505_v49  ;;  %v7504_v0 = vpop.xlane.xlu1 %7503 }
0x3166   :  { %10185 = vrsqrt.f32 %v7510_v19  ;;  %v7508_v55 = vmul.f32 0.03125, %v7504_v0  ;;  %v7501_v30 = vpop.xlane.xlu0 %7500 }
0x3167   :  { %10187 = vrsqrt.f32 %v7509_v28  ;;  %v7507_v10 = vmul.f32 0.03125, %v7501_v30 }
0x3168   :  { %v7512_v53 = vadd.f32 1e-05, %v7508_v55 }
0x3169   :  { %v7511_v35 = vadd.f32 1e-05, %v7507_v10 }
0x316a   :  { %10189 = vrsqrt.f32 %v7512_v53 }
0x316b   :  { %10191 = vrsqrt.f32 %v7511_v35 }
0x3170   :  { %v10186_v58 = vpop.eup %10185 }
0x3171   :  { %v10188_v46 = vpop.eup %10187  ;;  %v7518_v54 = vmul.f32 %v10186_v58, %v7486_v44 }
0x3172   :  { %v7517_v12 = vmul.f32 %v10188_v46, %v7485_v39 }
0x3173   :  { %v7526_v18 = vmul.f32 %v7524_v38, %v7518_v54 }
0x3174   :  { %v10190_v5 = vpop.eup %10189  ;;  %v7525_v40 = vmul.f32 %v7524_v38, %v7517_v12 }
0x3175   :  { %v10192_v56 = vpop.eup %10191  ;;  %v7534_v21 = vadd.f32 %v7532_v27, %v7526_v18  ;;  %v7520_v51 = vmul.f32 %v10190_v5, %v7488_v8 }
0x3176   :  { %v7533_v14 = vadd.f32 %v7532_v27, %v7525_v40  ;;  %v7519_v26 = vmul.f32 %v10192_v56, %v7487_v37 }
0x3177   :  { %v7528_v48 = vmul.f32 %v7524_v38, %v7520_v51 }
0x3178   :  { %v9818_v13 = vpack.c.bf16 %v7534_v21, %v7533_v14  ;;  %v7527_v3 = vmul.f32 %v7524_v38, %v7519_v26 }
0x3179   :  { %v7536_v11 = vadd.f32 %v7532_v27, %v7528_v48 }
0x317a   :  { %9819 = vmatprep.subr.bf16.mxu1 %v9818_v13  ;;  %v7535_v41 = vadd.f32 %v7532_v27, %v7527_v3 }
0x317b   :  { %9821 = vmatpush3.bf16.msra.mxu1 %v9818_v13 }
0x317c   :  { %v9822_v57 = vpack.c.bf16 %v7536_v11, %v7535_v41 }
0x317e   :  { %9823 = vmatprep.subr.bf16.mxu1 %v9822_v57 }
0x317f   :  { %9825 = vmatpush3.bf16.msra.mxu1 %v9822_v57 }
0x3182   :  { %9404 = vmatmul.mubr.msk.f32.vlgmr.msra.gmra.mrb[164].mxu1 %vm246_vm1, %v7538_v45 }
0x3255   :  { %v9405_v25 = vpop.f32.mrb[164].mxu1 }
0x3256   :  { %7621 = vst.msk [vmem:[%s12738_s19 + $0x8] sm:$0xff] %vm246_vm1, %v9405_v25  ;;  %v7611_v2 = vpop.f32.mrb[165].mxu1 }
0x3257   :  { %7620 = vst.msk [vmem:[%s12738_s19] sm:$0xff] %vm246_vm1, %v7611_v2 }

</bundles_post_ra>
